<compile_context>
chip_gen: v7x
topology: tpu7x:2x2x1
jax: 0.10.0
libtpu: 0.0.40
codegen_flags: <defaults>
</compile_context>

<pallas_src>
import functools

import jax
import jax.numpy as jnp
import numpy as np
from jax import lax
from jax.experimental import pallas as pl
from jax.experimental.pallas import tpu as pltpu


def bottleneck_kernel(use_roll, x_ref, w1_ref, b1_ref, w2_ref, b2_ref,
                      w3_ref, b3_ref, out_ref, y1pad_ref):
    # x_ref    : (Nb, H, W, Cin)      bf16   (Nb images per grid step)
    # w1_ref   : (Cin, width)         bf16     b1_ref: (1, width) f32
    # w2_ref   : (9*width, width)     bf16     b2_ref: (1, width) f32  (im2col)
    # w3_ref   : (width, Cout)        bf16     b3_ref: (1, Cout)  f32
    # out_ref  : (Nb, H, W, Cout)
    # y1pad_ref: (Nb, H+2, W, width)  f32 scratch (H-halo padded conv1 output)
    Nb, H, W, Cin = x_ref.shape
    width = w1_ref.shape[1]
    Cout = w3_ref.shape[1]
    M = Nb * H * W

    x = x_ref[...]                                    # (Nb, H, W, Cin) bf16
    xf = x.reshape(M, Cin)

    # ---- conv1 (1x1) + folded-BN bias + relu --------------------------------
    y1 = jnp.dot(xf, w1_ref[...], preferred_element_type=jnp.float32)
    y1 = jnp.maximum(y1 + b1_ref[...], 0.0)           # (M, width) f32
    y1 = y1.reshape(Nb, H, W, width)

    # ---- conv2 (3x3, stride 1, pad 1) + folded-BN bias + relu ---------------
    # H halo: store the conv1 output into the padded scratch; the +-1 row
    # views are then plain slices along the leading H axis (whole-tile copies).
    # Halo rows are tiny, so re-zero them every step (safe under megacore).
    zrow = jnp.zeros((Nb, 1, W, width), jnp.float32)
    y1pad_ref[:, pl.ds(0, 1), :, :] = zrow
    y1pad_ref[:, pl.ds(H + 1, 1), :, :] = zrow
    y1pad_ref[:, pl.ds(1, H), :, :] = y1
    rows = (y1pad_ref[:, pl.ds(0, H), :, :],          # kh = 0  (row h-1)
            y1,                                       # kh = 1  (row h)
            y1pad_ref[:, pl.ds(2, H), :, :])          # kh = 2  (row h+1)

    if use_roll:
        # W shifts as XLU sublane rotations + iota border masks (no
        # sublane-misaligned slice/concat copies serializing against the MXU).
        widx = lax.broadcasted_iota(jnp.int32, (1, 1, W, width), 2)
        not_first = widx >= 1            # valid lanes for the w-1 neighbour
        not_last = widx < (W - 1)        # valid lanes for the w+1 neighbour

        def wshift(v, kw):
            if kw == 1:                                 # dw = 0
                return v.astype(jnp.bfloat16)
            if kw == 0:                                 # dw = -1: out[w]=v[w-1]
                r = pltpu.roll(v, shift=1, axis=2)
                return jnp.where(not_first, r, 0.0).astype(jnp.bfloat16)
            r = pltpu.roll(v, shift=W - 1, axis=2)      # dw = +1: out[w]=v[w+1]
            return jnp.where(not_last, r, 0.0).astype(jnp.bfloat16)
    else:
        # Fallback: zero-column concat + slices (previous known-good lowering).
        zcol = jnp.zeros((Nb, H, 1, width), jnp.float32)

        def wshift(v, kw):
            if kw == 1:
                return v.astype(jnp.bfloat16)
            if kw == 0:
                r = jnp.concatenate([zcol, v[:, :, :W - 1, :]], axis=2)
            else:
                r = jnp.concatenate([v[:, :, 1:, :], zcol], axis=2)
            return r.astype(jnp.bfloat16)

    # im2col: (Nb, H, W, 9*width); channel order (kh, kw, cin) matches w2_ref.
    cols = jnp.concatenate(
        [wshift(rows[kh], kw) for kh in range(3) for kw in range(3)], axis=-1)
    y2 = jnp.dot(cols.reshape(M, 9 * width), w2_ref[...],
                 preferred_element_type=jnp.float32)
    y2 = jnp.maximum(y2 + b2_ref[...], 0.0).astype(jnp.bfloat16)   # (M, width)

    # ---- conv3 (1x1) + folded-BN bias + identity residual + relu ------------
    y3 = jnp.dot(y2, w3_ref[...], preferred_element_type=jnp.float32)
    y3 = y3 + b3_ref[...] + xf.astype(jnp.float32)
    out_ref[...] = jnp.maximum(y3, 0.0).reshape(Nb, H, W, Cout).astype(
        out_ref.dtype)


def _vmem_capacity_bytes():
    try:
        return int(pltpu.get_tpu_info().vmem_capacity_bytes)
    except Exception:
        return 64 * 2**20            # conservative default (v7x per-core VMEM)


def _choose_batch_block(N, H, W, Cin, width, Cout, out_bytes, vmem_cap):
    """Largest per-step batch block that (a) fits a ~55% VMEM budget,
    (b) divides N, (c) keeps the grid >= 2 steps (2-TC sharding on v7x),
    preferring the smallest block that already gives >= 512 matmul rows."""
    hw = H * W
    bytes_per_image = (
        2 * hw * Cin * 2               # x block (bf16), double-buffered
        + 2 * hw * Cout * out_bytes    # out block, double-buffered
        + hw * width * 4               # conv1 output (f32)
        + (H + 2) * W * width * 4      # H-padded scratch (f32)
        + hw * 9 * width * 2           # im2col cols (bf16)
        + hw * 3 * width * 4           # rolled/masked temporaries (f32)
        + 2 * hw * Cout * 4            # conv3 accumulator + residual (f32)
        + hw * width * 4               # conv2 accumulator (f32)
    )
    budget = int(0.55 * vmem_cap)
    nb_cap = max(1, budget // bytes_per_image)
    divisors = [d for d in range(1, N + 1) if N % d == 0]
    cands = [d for d in divisors if d <= nb_cap and (N // d >= 2 or N == 1)]
    if not cands:
        cands = [1]
    big = [d for d in cands if d * hw >= 512]      # target M >= 512 rows
    return min(big) if big else max(cands)


def bottleneck_forward(x, params, out_dtype=jnp.bfloat16, use_roll=True):
    """x: NHWC float32 (or bf16). Returns NHWC `out_dtype`."""
    N, H, W, Cin = x.shape
    width = params["w1b"].shape[1]
    Cout = params["w3b"].shape[1]
    assert Cin == Cout, "identity shortcut requires inplanes == planes * 4"

    vmem_cap = _vmem_capacity_bytes()
    Nb = _choose_batch_block(N, H, W, Cin, width, Cout,
                             jnp.dtype(out_dtype).itemsize, vmem_cap)
    grid = (N // Nb,)
    xb = x.astype(jnp.bfloat16)       # bf16 MXU inputs; accumulation stays f32

    return pl.pallas_call(
        functools.partial(bottleneck_kernel, use_roll),
        out_shape=jax.ShapeDtypeStruct((N, H, W, Cout), out_dtype),
        grid_spec=pltpu.PrefetchScalarGridSpec(
            num_scalar_prefetch=0,
            grid=grid,
            in_specs=[
                pl.BlockSpec((Nb, H, W, Cin), lambda n: (n, 0, 0, 0)),   # x
                pl.BlockSpec((Cin, width), lambda n: (0, 0)),            # w1
                pl.BlockSpec((1, width), lambda n: (0, 0)),              # b1
                pl.BlockSpec((9 * width, width), lambda n: (0, 0)),      # w2
                pl.BlockSpec((1, width), lambda n: (0, 0)),              # b2
                pl.BlockSpec((width, Cout), lambda n: (0, 0)),           # w3
                pl.BlockSpec((1, Cout), lambda n: (0, 0)),               # b3
            ],
            out_specs=pl.BlockSpec((Nb, H, W, Cout), lambda n: (n, 0, 0, 0)),
            scratch_shapes=[pltpu.VMEM((Nb, H + 2, W, width), jnp.float32)],
        ),
        compiler_params=pltpu.CompilerParams(
            dimension_semantics=("parallel",),   # batch-block axis -> 2 TCs (v7x)
            vmem_limit_bytes=int(min(0.8 * vmem_cap, 100 * 2**20)),
        ),
    )(xb, params["w1b"], params["b1"], params["w2b"], params["b2"],
      params["w3b"], params["b3"])


def make_params(key, inplanes, planes, base_width=64, groups=1):
    """Raw Bottleneck parameters: conv weights (HWIO / IO) + eval-mode BN stats."""
    width = int(planes * (base_width / 64.0)) * groups
    cout = planes * 4  # expansion = 4
    ks = jax.random.split(key, 6)

    def bn(k, c):
        k1, k2, k3, k4 = jax.random.split(k, 4)
        gamma = 1.0 + 0.1 * jax.random.normal(k1, (c,), jnp.float32)
        beta = 0.1 * jax.random.normal(k2, (c,), jnp.float32)
        mean = 0.1 * jax.random.normal(k3, (c,), jnp.float32)
        var = jnp.abs(jax.random.normal(k4, (c,), jnp.float32)) + 0.5
        return gamma, beta, mean, var

    w1 = jax.random.normal(ks[0], (inplanes, width), jnp.float32) / np.sqrt(inplanes)
    w2 = jax.random.normal(ks[1], (3, 3, width, width), jnp.float32) / np.sqrt(9 * width)
    w3 = jax.random.normal(ks[2], (width, cout), jnp.float32) / np.sqrt(width)
    return dict(w1=w1, w2=w2, w3=w3,
                bn1=bn(ks[3], width), bn2=bn(ks[4], width), bn3=bn(ks[5], cout))


def prepare_params(raw, eps=1e-5):
    """Fold eval-mode BN into the conv weights / biases (exact f32 algebra),
    pre-reshape w2 for the im2col matmul, and cast matmul weights to bf16."""
    def fold(gamma, beta, mean, var):
        scale = gamma / jnp.sqrt(var + eps)
        shift = beta - mean * scale
        return scale, shift

    s1, b1 = fold(*raw["bn1"])
    s2, b2 = fold(*raw["bn2"])
    s3, b3 = fold(*raw["bn3"])
    width = raw["w1"].shape[1]

    w1b = (raw["w1"] * s1[None, :]).astype(jnp.bfloat16)
    w2b = (raw["w2"] * s2[None, None, None, :]).reshape(9 * width, width).astype(jnp.bfloat16)
    w3b = (raw["w3"] * s3[None, :]).astype(jnp.bfloat16)
    return dict(w1b=w1b, b1=b1[None, :], w2b=w2b, b2=b2[None, :],
                w3b=w3b, b3=b3[None, :])


def reference_forward(x, params, out_dtype=jnp.bfloat16):
    """Plain-JAX reference (lax convs, NHWC/HWIO) mirroring the kernel's
    numerics: bf16 operands, f32 accumulation, bf16 intermediate activations."""
    dn = ("NHWC", "HWIO", "NHWC")
    width = params["w1b"].shape[1]
    hi = lax.Precision.HIGHEST
    f32 = lambda a: a.astype(jnp.float32)
    bf = lambda a: f32(a.astype(jnp.bfloat16))
    relu = lambda v: jnp.maximum(v, 0.0)

    xb = bf(x)
    w1 = f32(params["w1b"])[None, None]                     # (1,1,Cin,width)
    w2 = f32(params["w2b"]).reshape(3, 3, width, width)     # HWIO
    w3 = f32(params["w3b"])[None, None]                     # (1,1,width,Cout)

    y = lax.conv_general_dilated(xb, w1, (1, 1), "VALID",
                                 dimension_numbers=dn, precision=hi)
    y = bf(relu(y + params["b1"][0]))
    y = lax.conv_general_dilated(y, w2, (1, 1), "SAME",
                                 dimension_numbers=dn, precision=hi)
    y = bf(relu(y + params["b2"][0]))
    y = lax.conv_general_dilated(y, w3, (1, 1), "VALID",
                                 dimension_numbers=dn, precision=hi)
    y = relu(y + params["b3"][0] + xb)
    return y.astype(out_dtype)


if __name__ == "__main__":
    key = jax.random.PRNGKey(0)
    kx, kp = jax.random.split(key)

    # Bottleneck(inplanes=256, planes=64): width=64, Cout=256 == inplanes, so
    # the identity shortcut applies with downsample=None.  Channels are
    # lane-dense; spatial/batch kept small for the smoke test (benchmark at
    # real ResNet shapes, e.g. 32x56x56, before drawing perf conclusions).
    N, H, W = 8, 8, 8
    inplanes, planes = 256, 64

    x = jax.random.normal(kx, (N, H, W, inplanes), jnp.float32)   # NHWC
    raw = make_params(kp, inplanes, planes)
    params = prepare_params(raw)

    ref = np.asarray(reference_forward(x, params).astype(jnp.float32))

    def run_and_check(use_roll):
        out = jax.block_until_ready(
            bottleneck_forward(x, params, use_roll=use_roll))
        np.testing.assert_allclose(np.asarray(out.astype(jnp.float32)), ref,
                                   rtol=2e-2, atol=2e-2)

    try:
        run_and_check(use_roll=True)        # preferred: XLU-roll im2col path
    except Exception:
        # TODO(synk): XLU-roll path unavailable on this toolchain; use the
        # slice-based W-shift fallback (previous known-good lowering).
        run_and_check(use_roll=False)

    print("KERNEL_OK")
</pallas_src>

<mosaic_0001>
module attributes {stable_mosaic.version = 11 : i64} {
  func.func @bottleneck_kernel(%arg0: i32, %arg1: memref<4x8x8x256xbf16, #tpu.memory_space<vmem>>, %arg2: memref<256x64xbf16, #tpu.memory_space<vmem>>, %arg3: memref<1x64xf32, #tpu.memory_space<vmem>>, %arg4: memref<576x64xbf16, #tpu.memory_space<vmem>>, %arg5: memref<1x64xf32, #tpu.memory_space<vmem>>, %arg6: memref<64x256xbf16, #tpu.memory_space<vmem>>, %arg7: memref<1x256xf32, #tpu.memory_space<vmem>>, %arg8: memref<4x8x8x256xbf16, #tpu.memory_space<vmem>>, %arg9: memref<4x10x8x64xf32, #tpu.memory_space<vmem>>) attributes {dimension_semantics = [#tpu.dimension_semantics<parallel>], iteration_bounds = array<i64: 2>, scalar_prefetch = 0 : i64, scratch_operands = 1 : i64, tpu.core_type = #tpu.core_type<tc>, window_params = [{transform_indices = @transform_0, window_bounds = array<i64: 4, 8, 8, 256>}, {pipeline_mode = #tpu.pipeline_mode<synchronous>, transform_indices = @transform_1, window_bounds = array<i64: 256, 64>}, {pipeline_mode = #tpu.pipeline_mode<synchronous>, transform_indices = @transform_2, window_bounds = array<i64: 1, 64>}, {pipeline_mode = #tpu.pipeline_mode<synchronous>, transform_indices = @transform_3, window_bounds = array<i64: 576, 64>}, {pipeline_mode = #tpu.pipeline_mode<synchronous>, transform_indices = @transform_4, window_bounds = array<i64: 1, 64>}, {pipeline_mode = #tpu.pipeline_mode<synchronous>, transform_indices = @transform_5, window_bounds = array<i64: 64, 256>}, {pipeline_mode = #tpu.pipeline_mode<synchronous>, transform_indices = @transform_6, window_bounds = array<i64: 1, 256>}, {transform_indices = @transform_7, window_bounds = array<i64: 4, 8, 8, 256>}]} {
    %c0 = arith.constant 0 : index
    %c0_0 = arith.constant 0 : index
    %c0_1 = arith.constant 0 : index
    %c0_2 = arith.constant 0 : index
    %0 = vector.load %arg1[%c0, %c0_0, %c0_1, %c0_2] : memref<4x8x8x256xbf16, #tpu.memory_space<vmem>>, vector<4x8x8x256xbf16>
    %1 = vector.shape_cast %0 : vector<4x8x8x256xbf16> to vector<256x256xbf16>
    %c0_3 = arith.constant 0 : index
    %c0_4 = arith.constant 0 : index
    %2 = vector.load %arg2[%c0_3, %c0_4] : memref<256x64xbf16, #tpu.memory_space<vmem>>, vector<256x64xbf16>
    %cst = arith.constant dense<0.000000e+00> : vector<256x64xf32>
    %3 = tpu.matmul %1, %2, %cst {dimension_numbers = #tpu.dot_dimension_numbers<[1], [0], [0], [1], [0, 0, 1, 1], [], []>} : vector<256x256xbf16>, vector<256x64xbf16>, vector<256x64xf32> -> vector<256x64xf32>
    %c0_5 = arith.constant 0 : index
    %c0_6 = arith.constant 0 : index
    %4 = vector.load %arg3[%c0_5, %c0_6] : memref<1x64xf32, #tpu.memory_space<vmem>>, vector<1x64xf32>
    %5 = vector.broadcast %4 : vector<1x64xf32> to vector<256x64xf32>
    %6 = arith.addf %3, %5 : vector<256x64xf32>
    %cst_7 = arith.constant 0.000000e+00 : f32
    %7 = vector.broadcast %cst_7 : f32 to vector<256x64xf32>
    %8 = arith.maximumf %6, %7 : vector<256x64xf32>
    %9 = vector.shape_cast %8 : vector<256x64xf32> to vector<4x8x8x64xf32>
    %cst_8 = arith.constant 0.000000e+00 : f32
    %10 = vector.broadcast %cst_8 : f32 to vector<4x1x8x64xf32>
    %c0_9 = arith.constant 0 : index
    %c0_10 = arith.constant 0 : index
    %c0_11 = arith.constant 0 : index
    %c0_12 = arith.constant 0 : index
    %11 = vector.load %arg9[%c0_9, %c0_10, %c0_11, %c0_12] : memref<4x10x8x64xf32, #tpu.memory_space<vmem>>, vector<4x1x8x64xf32>
    tpu.vector_store %arg9[%c0_9, %c0_10, %c0_11, %c0_12], %10 {strides = array<i32>} : memref<4x10x8x64xf32, #tpu.memory_space<vmem>>, vector<4x1x8x64xf32>,
    %c0_13 = arith.constant 0 : index
    %c9 = arith.constant 9 : index
    %c0_14 = arith.constant 0 : index
    %c0_15 = arith.constant 0 : index
    %12 = vector.load %arg9[%c0_13, %c9, %c0_14, %c0_15] : memref<4x10x8x64xf32, #tpu.memory_space<vmem>>, vector<4x1x8x64xf32>
    tpu.vector_store %arg9[%c0_13, %c9, %c0_14, %c0_15], %10 {strides = array<i32>} : memref<4x10x8x64xf32, #tpu.memory_space<vmem>>, vector<4x1x8x64xf32>,
    %c0_16 = arith.constant 0 : index
    %c1 = arith.constant 1 : index
    %c0_17 = arith.constant 0 : index
    %c0_18 = arith.constant 0 : index
    %13 = vector.load %arg9[%c0_16, %c1, %c0_17, %c0_18] : memref<4x10x8x64xf32, #tpu.memory_space<vmem>>, vector<4x8x8x64xf32>
    tpu.vector_store %arg9[%c0_16, %c1, %c0_17, %c0_18], %9 {strides = array<i32>} : memref<4x10x8x64xf32, #tpu.memory_space<vmem>>, vector<4x8x8x64xf32>,
    %c0_19 = arith.constant 0 : index
    %c0_20 = arith.constant 0 : index
    %c0_21 = arith.constant 0 : index
    %c0_22 = arith.constant 0 : index
    %14 = vector.load %arg9[%c0_19, %c0_20, %c0_21, %c0_22] : memref<4x10x8x64xf32, #tpu.memory_space<vmem>>, vector<4x8x8x64xf32>
    %c0_23 = arith.constant 0 : index
    %c2 = arith.constant 2 : index
    %c0_24 = arith.constant 0 : index
    %c0_25 = arith.constant 0 : index
    %15 = vector.load %arg9[%c0_23, %c2, %c0_24, %c0_25] : memref<4x10x8x64xf32, #tpu.memory_space<vmem>>, vector<4x8x8x64xf32>
    %16 = tpu.iota {dimensions = array<i32: 2>} : vector<1x1x8x64xi32>
    %c1_i32 = arith.constant 1 : i32
    %17 = vector.broadcast %c1_i32 : i32 to vector<1x1x8x64xi32>
    %18 = arith.cmpi sge, %16, %17 : vector<1x1x8x64xi32>
    %c7_i32 = arith.constant 7 : i32
    %19 = vector.broadcast %c7_i32 : i32 to vector<1x1x8x64xi32>
    %20 = arith.cmpi slt, %16, %19 : vector<1x1x8x64xi32>
    %c1_i32_26 = arith.constant 1 : i32
    %21 = tpu.dynamic_rotate %14 by %c1_i32_26 dim 2 : vector<4x8x8x64xf32>, i32 -> vector<4x8x8x64xf32>
    %cst_27 = arith.constant 0.000000e+00 : f32
    %22 = vector.shape_cast %18 : vector<1x1x8x64xi1> to vector<1x1x8x64xi1>
    %23 = vector.broadcast %22 : vector<1x1x8x64xi1> to vector<4x8x8x64xi1>
    %24 = vector.broadcast %cst_27 : f32 to vector<4x8x8x64xf32>
    %25 = arith.select %23, %21, %24 : vector<4x8x8x64xi1>, vector<4x8x8x64xf32>
    %26 = arith.truncf %25 : vector<4x8x8x64xf32> to vector<4x8x8x64xbf16>
    %27 = arith.truncf %14 : vector<4x8x8x64xf32> to vector<4x8x8x64xbf16>
    %c7_i32_28 = arith.constant 7 : i32
    %28 = tpu.dynamic_rotate %14 by %c7_i32_28 dim 2 : vector<4x8x8x64xf32>, i32 -> vector<4x8x8x64xf32>
    %cst_29 = arith.constant 0.000000e+00 : f32
    %29 = vector.shape_cast %20 : vector<1x1x8x64xi1> to vector<1x1x8x64xi1>
    %30 = vector.broadcast %29 : vector<1x1x8x64xi1> to vector<4x8x8x64xi1>
    %31 = vector.broadcast %cst_29 : f32 to vector<4x8x8x64xf32>
    %32 = arith.select %30, %28, %31 : vector<4x8x8x64xi1>, vector<4x8x8x64xf32>
    %33 = arith.truncf %32 : vector<4x8x8x64xf32> to vector<4x8x8x64xbf16>
    %c1_i32_30 = arith.constant 1 : i32
    %34 = tpu.dynamic_rotate %9 by %c1_i32_30 dim 2 : vector<4x8x8x64xf32>, i32 -> vector<4x8x8x64xf32>
    %cst_31 = arith.constant 0.000000e+00 : f32
    %35 = vector.shape_cast %18 : vector<1x1x8x64xi1> to vector<1x1x8x64xi1>
    %36 = vector.broadcast %35 : vector<1x1x8x64xi1> to vector<4x8x8x64xi1>
    %37 = vector.broadcast %cst_31 : f32 to vector<4x8x8x64xf32>
    %38 = arith.select %36, %34, %37 : vector<4x8x8x64xi1>, vector<4x8x8x64xf32>
    %39 = arith.truncf %38 : vector<4x8x8x64xf32> to vector<4x8x8x64xbf16>
    %40 = arith.truncf %9 : vector<4x8x8x64xf32> to vector<4x8x8x64xbf16>
    %c7_i32_32 = arith.constant 7 : i32
    %41 = tpu.dynamic_rotate %9 by %c7_i32_32 dim 2 : vector<4x8x8x64xf32>, i32 -> vector<4x8x8x64xf32>
    %cst_33 = arith.constant 0.000000e+00 : f32
    %42 = vector.shape_cast %20 : vector<1x1x8x64xi1> to vector<1x1x8x64xi1>
    %43 = vector.broadcast %42 : vector<1x1x8x64xi1> to vector<4x8x8x64xi1>
    %44 = vector.broadcast %cst_33 : f32 to vector<4x8x8x64xf32>
    %45 = arith.select %43, %41, %44 : vector<4x8x8x64xi1>, vector<4x8x8x64xf32>
    %46 = arith.truncf %45 : vector<4x8x8x64xf32> to vector<4x8x8x64xbf16>
    %c1_i32_34 = arith.constant 1 : i32
    %47 = tpu.dynamic_rotate %15 by %c1_i32_34 dim 2 : vector<4x8x8x64xf32>, i32 -> vector<4x8x8x64xf32>
    %cst_35 = arith.constant 0.000000e+00 : f32
    %48 = vector.shape_cast %18 : vector<1x1x8x64xi1> to vector<1x1x8x64xi1>
    %49 = vector.broadcast %48 : vector<1x1x8x64xi1> to vector<4x8x8x64xi1>
    %50 = vector.broadcast %cst_35 : f32 to vector<4x8x8x64xf32>
    %51 = arith.select %49, %47, %50 : vector<4x8x8x64xi1>, vector<4x8x8x64xf32>
    %52 = arith.truncf %51 : vector<4x8x8x64xf32> to vector<4x8x8x64xbf16>
    %53 = arith.truncf %15 : vector<4x8x8x64xf32> to vector<4x8x8x64xbf16>
    %c7_i32_36 = arith.constant 7 : i32
    %54 = tpu.dynamic_rotate %15 by %c7_i32_36 dim 2 : vector<4x8x8x64xf32>, i32 -> vector<4x8x8x64xf32>
    %cst_37 = arith.constant 0.000000e+00 : f32
    %55 = vector.shape_cast %20 : vector<1x1x8x64xi1> to vector<1x1x8x64xi1>
    %56 = vector.broadcast %55 : vector<1x1x8x64xi1> to vector<4x8x8x64xi1>
    %57 = vector.broadcast %cst_37 : f32 to vector<4x8x8x64xf32>
    %58 = arith.select %56, %54, %57 : vector<4x8x8x64xi1>, vector<4x8x8x64xf32>
    %59 = arith.truncf %58 : vector<4x8x8x64xf32> to vector<4x8x8x64xbf16>
    %60 = tpu.concatenate %26, %27, %33, %39, %40, %46, %52, %53, %59 in 3 : vector<4x8x8x64xbf16>, vector<4x8x8x64xbf16>, vector<4x8x8x64xbf16>, vector<4x8x8x64xbf16>, vector<4x8x8x64xbf16>, vector<4x8x8x64xbf16>, vector<4x8x8x64xbf16>, vector<4x8x8x64xbf16>, vector<4x8x8x64xbf16> -> vector<4x8x8x576xbf16>
    %61 = vector.shape_cast %60 : vector<4x8x8x576xbf16> to vector<256x576xbf16>
    %c0_38 = arith.constant 0 : index
    %c0_39 = arith.constant 0 : index
    %62 = vector.load %arg4[%c0_38, %c0_39] : memref<576x64xbf16, #tpu.memory_space<vmem>>, vector<576x64xbf16>
    %cst_40 = arith.constant dense<0.000000e+00> : vector<256x64xf32>
    %63 = tpu.matmul %61, %62, %cst_40 {dimension_numbers = #tpu.dot_dimension_numbers<[1], [0], [0], [1], [0, 0, 1, 1], [], []>} : vector<256x576xbf16>, vector<576x64xbf16>, vector<256x64xf32> -> vector<256x64xf32>
    %c0_41 = arith.constant 0 : index
    %c0_42 = arith.constant 0 : index
    %64 = vector.load %arg5[%c0_41, %c0_42] : memref<1x64xf32, #tpu.memory_space<vmem>>, vector<1x64xf32>
    %65 = vector.broadcast %64 : vector<1x64xf32> to vector<256x64xf32>
    %66 = arith.addf %63, %65 : vector<256x64xf32>
    %cst_43 = arith.constant 0.000000e+00 : f32
    %67 = vector.broadcast %cst_43 : f32 to vector<256x64xf32>
    %68 = arith.maximumf %66, %67 : vector<256x64xf32>
    %69 = arith.truncf %68 : vector<256x64xf32> to vector<256x64xbf16>
    %c0_44 = arith.constant 0 : index
    %c0_45 = arith.constant 0 : index
    %70 = vector.load %arg6[%c0_44, %c0_45] : memref<64x256xbf16, #tpu.memory_space<vmem>>, vector<64x256xbf16>
    %cst_46 = arith.constant dense<0.000000e+00> : vector<256x256xf32>
    %71 = tpu.matmul %69, %70, %cst_46 {dimension_numbers = #tpu.dot_dimension_numbers<[1], [0], [0], [1], [0, 0, 1, 1], [], []>} : vector<256x64xbf16>, vector<64x256xbf16>, vector<256x256xf32> -> vector<256x256xf32>
    %c0_47 = arith.constant 0 : index
    %c0_48 = arith.constant 0 : index
    %72 = vector.load %arg7[%c0_47, %c0_48] : memref<1x256xf32, #tpu.memory_space<vmem>>, vector<1x256xf32>
    %73 = vector.broadcast %72 : vector<1x256xf32> to vector<256x256xf32>
    %74 = arith.addf %71, %73 : vector<256x256xf32>
    %75 = arith.extf %1 : vector<256x256xbf16> to vector<256x256xf32>
    %76 = arith.addf %74, %75 : vector<256x256xf32>
    %cst_49 = arith.constant 0.000000e+00 : f32
    %77 = vector.broadcast %cst_49 : f32 to vector<256x256xf32>
    %78 = arith.maximumf %76, %77 : vector<256x256xf32>
    %79 = vector.shape_cast %78 : vector<256x256xf32> to vector<4x8x8x256xf32>
    %80 = arith.truncf %79 : vector<4x8x8x256xf32> to vector<4x8x8x256xbf16>
    %c0_50 = arith.constant 0 : index
    %c0_51 = arith.constant 0 : index
    %c0_52 = arith.constant 0 : index
    %c0_53 = arith.constant 0 : index
    %81 = vector.load %arg8[%c0_50, %c0_51, %c0_52, %c0_53] : memref<4x8x8x256xbf16, #tpu.memory_space<vmem>>, vector<4x8x8x256xbf16>
    tpu.vector_store %arg8[%c0_50, %c0_51, %c0_52, %c0_53], %80 {strides = array<i32>} : memref<4x8x8x256xbf16, #tpu.memory_space<vmem>>, vector<4x8x8x256xbf16>,
    return
  }
  func.func @transform_0(%arg0: i32) -> (i32, i32, i32, i32) {
    %c0_i32 = arith.constant 0 : i32
    %c0_i32_0 = arith.constant 0 : i32
    %c0_i32_1 = arith.constant 0 : i32
    %c0_i32_2 = arith.constant 0 : i32
    return %arg0, %c0_i32, %c0_i32_0, %c0_i32_1 : i32, i32, i32, i32
  }
  func.func @transform_1(%arg0: i32) -> (i32, i32) {
    %c0_i32 = arith.constant 0 : i32
    %c0_i32_0 = arith.constant 0 : i32
    %c0_i32_1 = arith.constant 0 : i32
    return %c0_i32, %c0_i32_0 : i32, i32
  }
  func.func @transform_2(%arg0: i32) -> (i32, i32) {
    %c0_i32 = arith.constant 0 : i32
    %c0_i32_0 = arith.constant 0 : i32
    %c0_i32_1 = arith.constant 0 : i32
    return %c0_i32, %c0_i32_0 : i32, i32
  }
  func.func @transform_3(%arg0: i32) -> (i32, i32) {
    %c0_i32 = arith.constant 0 : i32
    %c0_i32_0 = arith.constant 0 : i32
    %c0_i32_1 = arith.constant 0 : i32
    return %c0_i32, %c0_i32_0 : i32, i32
  }
  func.func @transform_4(%arg0: i32) -> (i32, i32) {
    %c0_i32 = arith.constant 0 : i32
    %c0_i32_0 = arith.constant 0 : i32
    %c0_i32_1 = arith.constant 0 : i32
    return %c0_i32, %c0_i32_0 : i32, i32
  }
  func.func @transform_5(%arg0: i32) -> (i32, i32) {
    %c0_i32 = arith.constant 0 : i32
    %c0_i32_0 = arith.constant 0 : i32
    %c0_i32_1 = arith.constant 0 : i32
    return %c0_i32, %c0_i32_0 : i32, i32
  }
  func.func @transform_6(%arg0: i32) -> (i32, i32) {
    %c0_i32 = arith.constant 0 : i32
    %c0_i32_0 = arith.constant 0 : i32
    %c0_i32_1 = arith.constant 0 : i32
    return %c0_i32, %c0_i32_0 : i32, i32
  }
  func.func @transform_7(%arg0: i32) -> (i32, i32, i32, i32) {
    %c0_i32 = arith.constant 0 : i32
    %c0_i32_0 = arith.constant 0 : i32
    %c0_i32_1 = arith.constant 0 : i32
    %c0_i32_2 = arith.constant 0 : i32
    return %arg0, %c0_i32, %c0_i32_0, %c0_i32_1 : i32, i32, i32, i32
  }
}

module attributes {stable_mosaic.version = 11 : i64} {
  func.func @bottleneck_kernel(%arg0: i32, %arg1: memref<4x8x8x256xbf16, #tpu.memory_space<vmem>>, %arg2: memref<256x64xbf16, #tpu.memory_space<vmem>>, %arg3: memref<1x64xf32, #tpu.memory_space<vmem>>, %arg4: memref<576x64xbf16, #tpu.memory_space<vmem>>, %arg5: memref<1x64xf32, #tpu.memory_space<vmem>>, %arg6: memref<64x256xbf16, #tpu.memory_space<vmem>>, %arg7: memref<1x256xf32, #tpu.memory_space<vmem>>, %arg8: memref<4x8x8x256xbf16, #tpu.memory_space<vmem>>, %arg9: memref<4x10x8x64xf32, #tpu.memory_space<vmem>>) attributes {dimension_semantics = [#tpu.dimension_semantics<parallel>], iteration_bounds = array<i64: 2>, scalar_prefetch = 0 : i64, scratch_operands = 1 : i64, tpu.core_type = #tpu.core_type<tc>, window_params = [{transform_indices = @transform_0, window_bounds = array<i64: 4, 8, 8, 256>}, {pipeline_mode = #tpu.pipeline_mode<synchronous>, transform_indices = @transform_1, window_bounds = array<i64: 256, 64>}, {pipeline_mode = #tpu.pipeline_mode<synchronous>, transform_indices = @transform_2, window_bounds = array<i64: 1, 64>}, {pipeline_mode = #tpu.pipeline_mode<synchronous>, transform_indices = @transform_3, window_bounds = array<i64: 576, 64>}, {pipeline_mode = #tpu.pipeline_mode<synchronous>, transform_indices = @transform_4, window_bounds = array<i64: 1, 64>}, {pipeline_mode = #tpu.pipeline_mode<synchronous>, transform_indices = @transform_5, window_bounds = array<i64: 64, 256>}, {pipeline_mode = #tpu.pipeline_mode<synchronous>, transform_indices = @transform_6, window_bounds = array<i64: 1, 256>}, {transform_indices = @transform_7, window_bounds = array<i64: 4, 8, 8, 256>}]} {
    %c0 = arith.constant 0 : index
    %c0_0 = arith.constant 0 : index
    %c0_1 = arith.constant 0 : index
    %c0_2 = arith.constant 0 : index
    %0 = vector.load %arg1[%c0, %c0_0, %c0_1, %c0_2] : memref<4x8x8x256xbf16, #tpu.memory_space<vmem>>, vector<4x8x8x256xbf16>
    %1 = vector.shape_cast %0 : vector<4x8x8x256xbf16> to vector<256x256xbf16>
    %c0_3 = arith.constant 0 : index
    %c0_4 = arith.constant 0 : index
    %2 = vector.load %arg2[%c0_3, %c0_4] : memref<256x64xbf16, #tpu.memory_space<vmem>>, vector<256x64xbf16>
    %cst = arith.constant dense<0.000000e+00> : vector<256x64xf32>
    %3 = tpu.matmul %1, %2, %cst {dimension_numbers = #tpu.dot_dimension_numbers<[1], [0], [0], [1], [0, 0, 1, 1], [], []>} : vector<256x256xbf16>, vector<256x64xbf16>, vector<256x64xf32> -> vector<256x64xf32>
    %c0_5 = arith.constant 0 : index
    %c0_6 = arith.constant 0 : index
    %4 = vector.load %arg3[%c0_5, %c0_6] : memref<1x64xf32, #tpu.memory_space<vmem>>, vector<1x64xf32>
    %5 = vector.broadcast %4 : vector<1x64xf32> to vector<256x64xf32>
    %6 = arith.addf %3, %5 : vector<256x64xf32>
    %cst_7 = arith.constant 0.000000e+00 : f32
    %7 = vector.broadcast %cst_7 : f32 to vector<256x64xf32>
    %8 = arith.maximumf %6, %7 : vector<256x64xf32>
    %9 = vector.shape_cast %8 : vector<256x64xf32> to vector<4x8x8x64xf32>
    %cst_8 = arith.constant 0.000000e+00 : f32
    %10 = vector.broadcast %cst_8 : f32 to vector<4x1x8x64xf32>
    %c0_9 = arith.constant 0 : index
    %c0_10 = arith.constant 0 : index
    %c0_11 = arith.constant 0 : index
    %c0_12 = arith.constant 0 : index
    %11 = vector.load %arg9[%c0_9, %c0_10, %c0_11, %c0_12] : memref<4x10x8x64xf32, #tpu.memory_space<vmem>>, vector<4x1x8x64xf32>
    tpu.vector_store %arg9[%c0_9, %c0_10, %c0_11, %c0_12], %10 {strides = array<i32>} : memref<4x10x8x64xf32, #tpu.memory_space<vmem>>, vector<4x1x8x64xf32>,
    %c0_13 = arith.constant 0 : index
    %c9 = arith.constant 9 : index
    %c0_14 = arith.constant 0 : index
    %c0_15 = arith.constant 0 : index
    %12 = vector.load %arg9[%c0_13, %c9, %c0_14, %c0_15] : memref<4x10x8x64xf32, #tpu.memory_space<vmem>>, vector<4x1x8x64xf32>
    tpu.vector_store %arg9[%c0_13, %c9, %c0_14, %c0_15], %10 {strides = array<i32>} : memref<4x10x8x64xf32, #tpu.memory_space<vmem>>, vector<4x1x8x64xf32>,
    %c0_16 = arith.constant 0 : index
    %c1 = arith.constant 1 : index
    %c0_17 = arith.constant 0 : index
    %c0_18 = arith.constant 0 : index
    %13 = vector.load %arg9[%c0_16, %c1, %c0_17, %c0_18] : memref<4x10x8x64xf32, #tpu.memory_space<vmem>>, vector<4x8x8x64xf32>
    tpu.vector_store %arg9[%c0_16, %c1, %c0_17, %c0_18], %9 {strides = array<i32>} : memref<4x10x8x64xf32, #tpu.memory_space<vmem>>, vector<4x8x8x64xf32>,
    %c0_19 = arith.constant 0 : index
    %c0_20 = arith.constant 0 : index
    %c0_21 = arith.constant 0 : index
    %c0_22 = arith.constant 0 : index
    %14 = vector.load %arg9[%c0_19, %c0_20, %c0_21, %c0_22] : memref<4x10x8x64xf32, #tpu.memory_space<vmem>>, vector<4x8x8x64xf32>
    %c0_23 = arith.constant 0 : index
    %c2 = arith.constant 2 : index
    %c0_24 = arith.constant 0 : index
    %c0_25 = arith.constant 0 : index
    %15 = vector.load %arg9[%c0_23, %c2, %c0_24, %c0_25] : memref<4x10x8x64xf32, #tpu.memory_space<vmem>>, vector<4x8x8x64xf32>
    %cst_26 = arith.constant 0.000000e+00 : f32
    %16 = vector.broadcast %cst_26 : f32 to vector<4x8x1x64xf32>
    %17 = vector.extract_strided_slice %14 {offsets = [0, 0, 0, 0], sizes = [4, 8, 7, 64], strides = [1, 1, 1, 1]} : vector<4x8x8x64xf32> to vector<4x8x7x64xf32>
    %18 = tpu.concatenate %16, %17 in 2 : vector<4x8x1x64xf32>, vector<4x8x7x64xf32> -> vector<4x8x8x64xf32>
    %19 = arith.truncf %18 : vector<4x8x8x64xf32> to vector<4x8x8x64xbf16>
    %20 = arith.truncf %14 : vector<4x8x8x64xf32> to vector<4x8x8x64xbf16>
    %21 = vector.extract_strided_slice %14 {offsets = [0, 0, 1, 0], sizes = [4, 8, 7, 64], strides = [1, 1, 1, 1]} : vector<4x8x8x64xf32> to vector<4x8x7x64xf32>
    %22 = tpu.concatenate %21, %16 in 2 : vector<4x8x7x64xf32>, vector<4x8x1x64xf32> -> vector<4x8x8x64xf32>
    %23 = arith.truncf %22 : vector<4x8x8x64xf32> to vector<4x8x8x64xbf16>
    %24 = vector.extract_strided_slice %9 {offsets = [0, 0, 0, 0], sizes = [4, 8, 7, 64], strides = [1, 1, 1, 1]} : vector<4x8x8x64xf32> to vector<4x8x7x64xf32>
    %25 = tpu.concatenate %16, %24 in 2 : vector<4x8x1x64xf32>, vector<4x8x7x64xf32> -> vector<4x8x8x64xf32>
    %26 = arith.truncf %25 : vector<4x8x8x64xf32> to vector<4x8x8x64xbf16>
    %27 = arith.truncf %9 : vector<4x8x8x64xf32> to vector<4x8x8x64xbf16>
    %28 = vector.extract_strided_slice %9 {offsets = [0, 0, 1, 0], sizes = [4, 8, 7, 64], strides = [1, 1, 1, 1]} : vector<4x8x8x64xf32> to vector<4x8x7x64xf32>
    %29 = tpu.concatenate %28, %16 in 2 : vector<4x8x7x64xf32>, vector<4x8x1x64xf32> -> vector<4x8x8x64xf32>
    %30 = arith.truncf %29 : vector<4x8x8x64xf32> to vector<4x8x8x64xbf16>
    %31 = vector.extract_strided_slice %15 {offsets = [0, 0, 0, 0], sizes = [4, 8, 7, 64], strides = [1, 1, 1, 1]} : vector<4x8x8x64xf32> to vector<4x8x7x64xf32>
    %32 = tpu.concatenate %16, %31 in 2 : vector<4x8x1x64xf32>, vector<4x8x7x64xf32> -> vector<4x8x8x64xf32>
    %33 = arith.truncf %32 : vector<4x8x8x64xf32> to vector<4x8x8x64xbf16>
    %34 = arith.truncf %15 : vector<4x8x8x64xf32> to vector<4x8x8x64xbf16>
    %35 = vector.extract_strided_slice %15 {offsets = [0, 0, 1, 0], sizes = [4, 8, 7, 64], strides = [1, 1, 1, 1]} : vector<4x8x8x64xf32> to vector<4x8x7x64xf32>
    %36 = tpu.concatenate %35, %16 in 2 : vector<4x8x7x64xf32>, vector<4x8x1x64xf32> -> vector<4x8x8x64xf32>
    %37 = arith.truncf %36 : vector<4x8x8x64xf32> to vector<4x8x8x64xbf16>
    %38 = tpu.concatenate %19, %20, %23, %26, %27, %30, %33, %34, %37 in 3 : vector<4x8x8x64xbf16>, vector<4x8x8x64xbf16>, vector<4x8x8x64xbf16>, vector<4x8x8x64xbf16>, vector<4x8x8x64xbf16>, vector<4x8x8x64xbf16>, vector<4x8x8x64xbf16>, vector<4x8x8x64xbf16>, vector<4x8x8x64xbf16> -> vector<4x8x8x576xbf16>
    %39 = vector.shape_cast %38 : vector<4x8x8x576xbf16> to vector<256x576xbf16>
    %c0_27 = arith.constant 0 : index
    %c0_28 = arith.constant 0 : index
    %40 = vector.load %arg4[%c0_27, %c0_28] : memref<576x64xbf16, #tpu.memory_space<vmem>>, vector<576x64xbf16>
    %cst_29 = arith.constant dense<0.000000e+00> : vector<256x64xf32>
    %41 = tpu.matmul %39, %40, %cst_29 {dimension_numbers = #tpu.dot_dimension_numbers<[1], [0], [0], [1], [0, 0, 1, 1], [], []>} : vector<256x576xbf16>, vector<576x64xbf16>, vector<256x64xf32> -> vector<256x64xf32>
    %c0_30 = arith.constant 0 : index
    %c0_31 = arith.constant 0 : index
    %42 = vector.load %arg5[%c0_30, %c0_31] : memref<1x64xf32, #tpu.memory_space<vmem>>, vector<1x64xf32>
    %43 = vector.broadcast %42 : vector<1x64xf32> to vector<256x64xf32>
    %44 = arith.addf %41, %43 : vector<256x64xf32>
    %cst_32 = arith.constant 0.000000e+00 : f32
    %45 = vector.broadcast %cst_32 : f32 to vector<256x64xf32>
    %46 = arith.maximumf %44, %45 : vector<256x64xf32>
    %47 = arith.truncf %46 : vector<256x64xf32> to vector<256x64xbf16>
    %c0_33 = arith.constant 0 : index
    %c0_34 = arith.constant 0 : index
    %48 = vector.load %arg6[%c0_33, %c0_34] : memref<64x256xbf16, #tpu.memory_space<vmem>>, vector<64x256xbf16>
    %cst_35 = arith.constant dense<0.000000e+00> : vector<256x256xf32>
    %49 = tpu.matmul %47, %48, %cst_35 {dimension_numbers = #tpu.dot_dimension_numbers<[1], [0], [0], [1], [0, 0, 1, 1], [], []>} : vector<256x64xbf16>, vector<64x256xbf16>, vector<256x256xf32> -> vector<256x256xf32>
    %c0_36 = arith.constant 0 : index
    %c0_37 = arith.constant 0 : index
    %50 = vector.load %arg7[%c0_36, %c0_37] : memref<1x256xf32, #tpu.memory_space<vmem>>, vector<1x256xf32>
    %51 = vector.broadcast %50 : vector<1x256xf32> to vector<256x256xf32>
    %52 = arith.addf %49, %51 : vector<256x256xf32>
    %53 = arith.extf %1 : vector<256x256xbf16> to vector<256x256xf32>
    %54 = arith.addf %52, %53 : vector<256x256xf32>
    %cst_38 = arith.constant 0.000000e+00 : f32
    %55 = vector.broadcast %cst_38 : f32 to vector<256x256xf32>
    %56 = arith.maximumf %54, %55 : vector<256x256xf32>
    %57 = vector.shape_cast %56 : vector<256x256xf32> to vector<4x8x8x256xf32>
    %58 = arith.truncf %57 : vector<4x8x8x256xf32> to vector<4x8x8x256xbf16>
    %c0_39 = arith.constant 0 : index
    %c0_40 = arith.constant 0 : index
    %c0_41 = arith.constant 0 : index
    %c0_42 = arith.constant 0 : index
    %59 = vector.load %arg8[%c0_39, %c0_40, %c0_41, %c0_42] : memref<4x8x8x256xbf16, #tpu.memory_space<vmem>>, vector<4x8x8x256xbf16>
    tpu.vector_store %arg8[%c0_39, %c0_40, %c0_41, %c0_42], %58 {strides = array<i32>} : memref<4x8x8x256xbf16, #tpu.memory_space<vmem>>, vector<4x8x8x256xbf16>,
    return
  }
  func.func @transform_0(%arg0: i32) -> (i32, i32, i32, i32) {
    %c0_i32 = arith.constant 0 : i32
    %c0_i32_0 = arith.constant 0 : i32
    %c0_i32_1 = arith.constant 0 : i32
    %c0_i32_2 = arith.constant 0 : i32
    return %arg0, %c0_i32, %c0_i32_0, %c0_i32_1 : i32, i32, i32, i32
  }
  func.func @transform_1(%arg0: i32) -> (i32, i32) {
    %c0_i32 = arith.constant 0 : i32
    %c0_i32_0 = arith.constant 0 : i32
    %c0_i32_1 = arith.constant 0 : i32
    return %c0_i32, %c0_i32_0 : i32, i32
  }
  func.func @transform_2(%arg0: i32) -> (i32, i32) {
    %c0_i32 = arith.constant 0 : i32
    %c0_i32_0 = arith.constant 0 : i32
    %c0_i32_1 = arith.constant 0 : i32
    return %c0_i32, %c0_i32_0 : i32, i32
  }
  func.func @transform_3(%arg0: i32) -> (i32, i32) {
    %c0_i32 = arith.constant 0 : i32
    %c0_i32_0 = arith.constant 0 : i32
    %c0_i32_1 = arith.constant 0 : i32
    return %c0_i32, %c0_i32_0 : i32, i32
  }
  func.func @transform_4(%arg0: i32) -> (i32, i32) {
    %c0_i32 = arith.constant 0 : i32
    %c0_i32_0 = arith.constant 0 : i32
    %c0_i32_1 = arith.constant 0 : i32
    return %c0_i32, %c0_i32_0 : i32, i32
  }
  func.func @transform_5(%arg0: i32) -> (i32, i32) {
    %c0_i32 = arith.constant 0 : i32
    %c0_i32_0 = arith.constant 0 : i32
    %c0_i32_1 = arith.constant 0 : i32
    return %c0_i32, %c0_i32_0 : i32, i32
  }
  func.func @transform_6(%arg0: i32) -> (i32, i32) {
    %c0_i32 = arith.constant 0 : i32
    %c0_i32_0 = arith.constant 0 : i32
    %c0_i32_1 = arith.constant 0 : i32
    return %c0_i32, %c0_i32_0 : i32, i32
  }
  func.func @transform_7(%arg0: i32) -> (i32, i32, i32, i32) {
    %c0_i32 = arith.constant 0 : i32
    %c0_i32_0 = arith.constant 0 : i32
    %c0_i32_1 = arith.constant 0 : i32
    %c0_i32_2 = arith.constant 0 : i32
    return %arg0, %c0_i32, %c0_i32_0, %c0_i32_1 : i32, i32, i32, i32
  }
}

</mosaic_0001>

<bundles_post_ra>
// kernel: tpu_custom_call.1
= control target key start
LH: loop header
LB: loop body
LE: loop exit
PB: predicated region body
PF: predicated region fallthrough
CT: control target
= control target key end

     0   :  { %12 = vsyncpa [#allocation4], 0  ;;  %s7578_s0 = inlined_call_operand.vmem [shape: bf16[8,8,8,256], index: 0, kind: input, shape index: {}]   ;;  %s7579_s1 = inlined_call_operand.vmem [shape: bf16[256,64], index: 1, kind: input, shape index: {}]   ;;  %s7580_s2 = inlined_call_operand.vmem [shape: f32[1,64], index: 2, kind: input, shape index: {}]   ;;  %s7581_s3 = inlined_call_operand.vmem [shape: bf16[576,64], index: 3, kind: input, shape index: {}]   ;;  %s7582_s4 = inlined_call_operand.vmem [shape: f32[1,64], index: 4, kind: input, shape index: {}]   ;;  %s7583_s5 = inlined_call_operand.vmem [shape: bf16[64,256], index: 5, kind: input, shape index: {}]   ;;  %s7584_s6 = inlined_call_operand.vmem [shape: f32[1,256], index: 6, kind: input, shape index: {}]   ;;  %s7585_s7 = inlined_call_operand.hbm [shape: bf16[8,8,8,256], index: 7, kind: output, shape index: {}]  }
   0x1   :  { %14 = vsyncpa [#allocation4 + $0x1], 0  ;;  %s5581_s24 = smov 0   ;;  %s5583_s25 = smov 0  }
   0x2   :  { %s5585_s26 = smov 0   ;;  %s5587_s27 = smov 0  }
   0x3 LB: > { %s5602_s28 = sadd.s32 4294967295, %s5533_s27   ;;  %s4556_s29 = sadd.s32 4294967294, %s5533_s27   ;;  %s5533_s27 = sphi %s5587_s27, %s7720_s27   ;;  %s5529_s26 = sphi %s5585_s26, %s7719_s26   ;;  %s5525_s25 = sphi %s5583_s25, %s7718_s25   ;;  %s5521_s24 = sphi %s5581_s24, %s7717_s24  }
   0x4   : > { %s5606_s30 = sadd.s32 1, %s5533_s27   ;;  %s179_s8 = sadd.s32 1, %s5529_s26 }
   0x5   : > { %s176_s9 = ssub.s32 %s5533_s27, %s5606_s30  ;;  %p189_p0 = scmp.ne.s32.totalorder %s5529_s26, %s5525_s25 }
   0x6   : > { %p177_p1 = scmp.eq.s32.totalorder %s176_s9, 0  ;;  %p190_p2 = scmp.eq.s32.totalorder %s5602_s28, 1 }
   0x7   : > { %p195_p3 = scmp.ne.s32.totalorder %s5525_s25, %s5521_s24  ;;  %p196_p4 = scmp.eq.s32.totalorder %s4556_s29, 1 }
   0x8   : > { %s5617_s10 = scalar_select %p177_p1, %s5529_s26, %s179_s8  }
   0x9   : > { %p5619_p5 = por %p190_p2, %p189_p0  ;;  %p5623_p6 = por %p196_p4, %p195_p3 }
   0xa   : > { %p4559_p7 = scmp.ge.s32.totalorder %s5533_s27, 1  ;;  %p242_p8 = scmp.lt.s32.totalorder %s5533_s27, 3 }
   0xc   : > { %p243_p9 = pnand %p4559_p7, %p242_p8 }
   0xe   : > { %246 = sbr.rel (%p243_p9) target bundleno = 1121 (0x461), region = 48 }
  0x15   : > { %v5315_v0 = vld [vmem:[%s7579_s1 + $0x40] sm:$0xff]   ;;  %s4561_s15 = sshll.u32 %s5602_s28, 2  ;;  %v5317_v2 = vld [vmem:[%s7579_s1 + $0x48] sm:$0xff]   ;;  %v5319_v4 = vld [vmem:[%s7579_s1 + $0x50] sm:$0xff]   ;;  %vm804_vm0 = vcmask 523264   ;;  %v5535_v61 = vmov 0.0  }
  0x16   : > { %v5316_v1 = vld [vmem:[%s7579_s1] sm:$0xff]   ;;  %4859 = vmatprep.subr.bf16.mxu0 %v5315_v0  ;;  %p276_p10 = scmp.lt.s32.totalorder %s4561_s15, 7  ;;  %v5318_v3 = vld [vmem:[%s7579_s1 + $0x8] sm:$0xff]   ;;  %v5320_v5 = vld [vmem:[%s7579_s1 + $0x10] sm:$0xff]   ;;  %807 = vst.msk [vmem:[#allocation2 + $0xa0] sm:$0xff] %vm804_vm0, %v5535_v61  ;;  %s272_s19 = sand.u32 1, %s5525_s25  }
  0x17   : > { %4860 = vmatpush3.bf16.msra.mxu0 %v5316_v1  ;;  %v5321_v6 = vld [vmem:[%s7579_s1 + $0x58] sm:$0xff]   ;;  %v5323_v8 = vld [vmem:[%s7579_s1 + $0x60] sm:$0xff]   ;;  %v5325_v10 = vld [vmem:[%s7579_s1 + $0x68] sm:$0xff]   ;;  %805 = vst.msk [vmem:[#allocation2] sm:$0xff] %vm804_vm0, %v5535_v61  ;;  %s4560_s20 = sshll.u32 %s272_s19, 8  ;;  %s7537_s9 = scalar_lea.sflag [#allocation4], %s272_s19 }
  0x18   : > { %4861 = vmatprep.subr.bf16.mxu0 %v5317_v2  ;;  %s7722_s15 = smov (!%p276_p10, %s4561_s15), 7  ;;  %v5322_v7 = vld [vmem:[%s7579_s1 + $0x18] sm:$0xff]   ;;  %v5324_v9 = vld [vmem:[%s7579_s1 + $0x20] sm:$0xff]   ;;  %v5326_v14 = vld [vmem:[%s7579_s1 + $0x28] sm:$0xff]   ;;  %806 = vst.msk [vmem:[#allocation2 + $0x50] sm:$0xff] %vm804_vm0, %v5535_v61  ;;  %s7405_s21 = scalar_lea.vmem [#allocation3], %s4560_s20 }
  0x19   : > { %s4808_s14 = sshll.u32 %s7722_s15, 6  ;;  %v5327_v15 = vld [vmem:[%s7579_s1 + $0x70] sm:$0xff]   ;;  %v5329_v17 = vld [vmem:[%s7579_s1 + $0x78] sm:$0xff]   ;;  %808 = vst.msk [vmem:[#allocation2 + $0xf0] sm:$0xff] %vm804_vm0, %v5535_v61  ;;  %810 = vst.msk [vmem:[#allocation2 + $0x48] sm:$0xff] %vm804_vm0, %v5535_v61  ;;  %s5536_s15 = smov 64  }
  0x1a   : > { %s5660_s22 = scalar_lea.vmem %s7578_s0, %s4808_s14  ;;  %v5328_v16 = vld [vmem:[%s7579_s1 + $0x30] sm:$0xff]   ;;  %v5330_v18 = vld [vmem:[%s7579_s1 + $0x38] sm:$0xff]   ;;  %811 = vst.msk [vmem:[#allocation2 + $0x98] sm:$0xff] %vm804_vm0, %v5535_v61  ;;  %812 = vst.msk [vmem:[#allocation2 + $0xe8] sm:$0xff] %vm804_vm0, %v5535_v61  ;;  %s4494_s23 = sshll.u32 %s7405_s21, 4  ;;  %s7531_s23 = int_to_ptr.vmem [resolvable:$true] %s4494_s23 }
  0x1b   : > { %4862 = vmatpush3.bf16.msra.mxu0 %v5318_v3  ;;  %v284_v11 = vld [vmem:[%s5660_s22] sm:$0xff]  ;;  %v285_v12 = vld [vmem:[%s5660_s22 + $0x8] sm:$0xff]  ;;  %v286_v19 = vld [vmem:[%s5660_s22 + $0x10] sm:$0xff]  ;;  %813 = vst.msk [vmem:[#allocation2 + $0x138] sm:$0xff] %vm804_vm0, %v5535_v61  ;;  %s5538_s13 = smov [#allocation3]  }
  0x1c   : > { %4863 = vmatprep.subr.bf16.mxu0 %v5319_v4  ;;  %v4566_v13 = vcombine.high %v284_v11, %v285_v12  ;;  %v287_v20 = vld [vmem:[%s5660_s22 + $0x18] sm:$0xff]  ;;  %v4565_v21 = vcombine.low %v284_v11, %v285_v12  ;;  %v288_v23 = vld [vmem:[%s5660_s22 + $0x20] sm:$0xff]  ;;  %v289_v24 = vld [vmem:[%s5660_s22 + $0x28] sm:$0xff]  ;;  %s5475_s14 = sshll.u32 %s5538_s13, 4  ;;  %s5476_s14 = int_to_ptr.vmem [resolvable:$false] %s5475_s14 }
  0x1d   : > { %v4568_v22 = vcombine.high %v286_v19, %v287_v20  ;;  %v4567_v25 = vcombine.low %v286_v19, %v287_v20  ;;  %v4570_v26 = vcombine.high %v288_v23, %v289_v24  ;;  %v290_v27 = vld [vmem:[%s5660_s22 + $0x30] sm:$0xff]  ;;  %v291_v28 = vld [vmem:[%s5660_s22 + $0x38] sm:$0xff]  ;;  %v4569_v29 = vcombine.low %v288_v23, %v289_v24  ;;  %v292_v31 = vld [vmem:[%s5660_s22 + $0x40] sm:$0xff]  ;;  %s5477_s16 = scalar_lea.vmem %s5476_s14, 8192  ;;  %p5478_p0 = scmp.lt.s32.totalorder %s7531_s23, %s5476_s14 }
  0x1e   : > { %643 = vmatprep.mubr.bf16.mxu0 %v4566_v13  ;;  %v4572_v30 = vcombine.high %v290_v27, %v291_v28  ;;  %v293_v32 = vld [vmem:[%s5660_s22 + $0x48] sm:$0xff]  ;;  %v4571_v33 = vcombine.low %v290_v27, %v291_v28  ;;  %v294_v35 = vld [vmem:[%s5660_s22 + $0x50] sm:$0xff]  ;;  %v295_v36 = vld [vmem:[%s5660_s22 + $0x58] sm:$0xff] }
  0x1f   : > { %4864 = vmatpush3.bf16.msra.mxu0 %v5320_v5  ;;  %v4574_v34 = vcombine.high %v292_v31, %v293_v32  ;;  %v4573_v37 = vcombine.low %v292_v31, %v293_v32  ;;  %v4576_v38 = vcombine.high %v294_v35, %v295_v36  ;;  %v296_v39 = vld [vmem:[%s5660_s22 + $0x60] sm:$0xff]  ;;  %v297_v40 = vld [vmem:[%s5660_s22 + $0x68] sm:$0xff]  ;;  %v4575_v41 = vcombine.low %v294_v35, %v295_v36  ;;  %v298_v43 = vld [vmem:[%s5660_s22 + $0x70] sm:$0xff] }
  0x20   : > { %4865 = vmatprep.subr.bf16.mxu0 %v5321_v6  ;;  %v4578_v42 = vcombine.high %v296_v39, %v297_v40  ;;  %v299_v44 = vld [vmem:[%s5660_s22 + $0x78] sm:$0xff]  ;;  %v4577_v45 = vcombine.low %v296_v39, %v297_v40  ;;  %v300_v47 = vld [vmem:[%s5660_s22 + $0x80] sm:$0xff]  ;;  %v301_v48 = vld [vmem:[%s5660_s22 + $0x88] sm:$0xff] }
  0x21   : > { %v4580_v46 = vcombine.high %v298_v43, %v299_v44  ;;  %v4579_v49 = vcombine.low %v298_v43, %v299_v44  ;;  %v4582_v50 = vcombine.high %v300_v47, %v301_v48  ;;  %v302_v51 = vld [vmem:[%s5660_s22 + $0x90] sm:$0xff]  ;;  %v303_v52 = vld [vmem:[%s5660_s22 + $0x98] sm:$0xff]  ;;  %v4581_v53 = vcombine.low %v300_v47, %v301_v48  ;;  %v304_v55 = vld [vmem:[%s5660_s22 + $0xa0] sm:$0xff] }
  0x22   : > { %v4584_v54 = vcombine.high %v302_v51, %v303_v52  ;;  %v305_v56 = vld [vmem:[%s5660_s22 + $0xa8] sm:$0xff]  ;;  %v4583_v57 = vcombine.low %v302_v51, %v303_v52  ;;  %v306_v59 = vld [vmem:[%s5660_s22 + $0xb0] sm:$0xff]  ;;  %v307_v60 = vld [vmem:[%s5660_s22 + $0xb8] sm:$0xff] }
  0x23   : > { %4866 = vmatpush3.bf16.msra.mxu0 %v5322_v7  ;;  %v4586_v58 = vcombine.high %v304_v55, %v305_v56  ;;  %v4585_v62 = vcombine.low %v304_v55, %v305_v56  ;;  %v4588_v63 = vcombine.high %v306_v59, %v307_v60  ;;  %v863_v0 = vld [vmem:[#allocation2 + $0xa0] sm:$0xff]  ;;  %v309_v2 = vld [vmem:[%s5660_s22 + $0xc8] sm:$0xff]  ;;  %v4587_v4 = vcombine.low %v306_v59, %v307_v60  ;;  %v855_v12 = vld [vmem:[#allocation2 + $0x50] sm:$0xff] }
  0x24   : > { %4867 = vmatprep.subr.bf16.mxu0 %v5323_v8  ;;  %v308_v1 = vld [vmem:[%s5660_s22 + $0xc0] sm:$0xff]  ;;  %v1030_v3 = vpack.c.bf16 %v863_v0, %v863_v0  ;;  %v871_v8 = vld [vmem:[#allocation2 + $0xf0] sm:$0xff]  ;;  %v5365_v27 = vld [vmem:[%s7581_s3 + $0x48] sm:$0xff]  }
  0x25   : > { %v4590_v5 = vcombine.high %v308_v1, %v309_v2  ;;  %v5718_v6 = vld [vmem:[#allocation2] sm:$0xff]  ;;  %v1038_v11 = vpack.c.bf16 %v871_v8, %v871_v8  ;;  %v4589_v13 = vcombine.low %v308_v1, %v309_v2  ;;  %v314_v20 = vld [vmem:[%s5660_s22 + $0xf0] sm:$0xff]  ;;  %v5366_v28 = vld [vmem:[%s7581_s3 + $0x8] sm:$0xff]  }
  0x26   : > { %1656 = vrot.lane.b32.xlu0 %v1030_v3, %s5536_s15  ;;  %v1014_v7 = vpack.c.bf16 %v5718_v6, %v5718_v6  ;;  %v5369_v31 = vld [vmem:[%s7581_s3 + $0x58] sm:$0xff]   ;;  %v5373_v35 = vld [vmem:[%s7581_s3 + $0x68] sm:$0xff]   ;;  %v5773_v40 = vld [vmem:[%s7580_s2] ss:$0 sm:$0xff] }
  0x27   : > { %4868 = vmatpush3.bf16.msra.mxu0 %v5324_v9  ;;  %v310_v9 = vld [vmem:[%s5660_s22 + $0xd0] sm:$0xff]  ;;  %v5370_v32 = vld [vmem:[%s7581_s3 + $0x18] sm:$0xff]   ;;  %v5374_v36 = vld [vmem:[%s7581_s3 + $0x28] sm:$0xff]  }
  0x28   : > { %4869 = vmatprep.subr.bf16.mxu0 %v5325_v10  ;;  %v311_v10 = vld [vmem:[%s5660_s22 + $0xd8] sm:$0xff] }
  0x29   : > { %v5377_v47 = vld [vmem:[%s7581_s3 + $0x78] sm:$0xff]  }
  0x2a   : > { %1624 = vrot.lane.b32.xlu0 %v1014_v7, %s5536_s15  ;;  %v5378_v52 = vld [vmem:[%s7581_s3 + $0x38] sm:$0xff]  }
  0x2b   : > { %4870 = vmatpush3.bf16.msra.mxu0 %v5326_v14  ;;  %v1022_v14 = vpack.c.bf16 %v855_v12, %v855_v12 }
  0x2c   : > { %4871 = vmatprep.subr.bf16.mxu0 %v5327_v15  ;;  %v4592_v15 = vcombine.high %v310_v9, %v311_v10 }
  0x2d   : > { %1640 = vrot.lane.b32.xlu1 %v1022_v14, %s5536_s15 }
  0x2e   : > { %1672 = vrot.lane.b32.xlu0 %v1038_v11, %s5536_s15 }
  0x2f   : > { %4872 = vmatpush3.bf16.msra.mxu0 %v5328_v16  ;;  %v312_v16 = vld [vmem:[%s5660_s22 + $0xe0] sm:$0xff] }
  0x30   : > { %4873 = vmatprep.subr.bf16.mxu0 %v5329_v17  ;;  %v313_v17 = vld [vmem:[%s5660_s22 + $0xe8] sm:$0xff] }
  0x31   : > { %v4594_v19 = vcombine.high %v312_v16, %v313_v17 }
  0x33   : > { %4874 = vmatpush3.bf16.msra.mxu0 %v5330_v18  ;;  %v4591_v18 = vcombine.low %v310_v9, %v311_v10 }
  0x36   : > { %644 = vmatmul.mubr.bf16.vlgmr.msra.gmra.mrb[0].mxu0 %v4565_v21  ;;  %v315_v21 = vld [vmem:[%s5660_s22 + $0xf8] sm:$0xff] }
  0x37   : > { %651 = vmatprep.mubr.bf16.mxu0 %v4568_v22  ;;  %v4593_v22 = vcombine.low %v312_v16, %v313_v17  ;;  %v4596_v23 = vcombine.high %v314_v20, %v315_v21  ;;  %v4595_v24 = vcombine.low %v314_v20, %v315_v21 }
  0x3e   : > { %652 = vmatmul.mubr.bf16.gmra.mrb[4].mxu0 %v4567_v25  ;;  %v5363_v25 = vld [vmem:[%s7581_s3 + $0x40] sm:$0xff]  }
  0x3f   : > { %659 = vmatprep.mubr.bf16.mxu0 %v4570_v26  ;;  %v5364_v26 = vld [vmem:[%s7581_s3] sm:$0xff]   ;;  %4971 = vmatprep.subr.bf16.mxu0 %v5363_v25 }
  0x40   : > { %5255 = vmatprep.subr.bf16.mxu1 %v5363_v25  ;;  %4972 = vmatpush3.bf16.msra.mxu0 %v5364_v26 }
  0x41   : > { %5263 = vmatpush3.bf16.msra.mxu1 %v5364_v26  ;;  %4973 = vmatprep.subr.bf16.mxu0 %v5365_v27 }
  0x42   : > { %5256 = vmatprep.subr.bf16.mxu1 %v5365_v27 }
  0x44   : > { %4974 = vmatpush3.bf16.msra.mxu0 %v5366_v28 }
  0x45   : > { %5264 = vmatpush3.bf16.msra.mxu1 %v5366_v28 }
  0x46   : > { %660 = vmatmul.mubr.bf16.gmra.mrb[8].mxu0 %v4569_v29  ;;  %v5367_v29 = vld [vmem:[%s7581_s3 + $0x50] sm:$0xff]  }
  0x47   : > { %667 = vmatprep.mubr.bf16.mxu0 %v4572_v30  ;;  %v5368_v30 = vld [vmem:[%s7581_s3 + $0x10] sm:$0xff]   ;;  %4975 = vmatprep.subr.bf16.mxu0 %v5367_v29 }
  0x48   : > { %5257 = vmatprep.subr.bf16.mxu1 %v5367_v29  ;;  %4976 = vmatpush3.bf16.msra.mxu0 %v5368_v30 }
  0x49   : > { %5265 = vmatpush3.bf16.msra.mxu1 %v5368_v30  ;;  %4977 = vmatprep.subr.bf16.mxu0 %v5369_v31 }
  0x4a   : > { %5258 = vmatprep.subr.bf16.mxu1 %v5369_v31 }
  0x4c   : > { %4978 = vmatpush3.bf16.msra.mxu0 %v5370_v32 }
  0x4d   : > { %5266 = vmatpush3.bf16.msra.mxu1 %v5370_v32 }
  0x4e   : > { %668 = vmatmul.mubr.bf16.gmra.mrb[12].mxu0 %v4571_v33  ;;  %v5371_v33 = vld [vmem:[%s7581_s3 + $0x60] sm:$0xff]  }
  0x4f   : > { %675 = vmatprep.mubr.bf16.mxu0 %v4574_v34  ;;  %v5372_v34 = vld [vmem:[%s7581_s3 + $0x20] sm:$0xff]   ;;  %4979 = vmatprep.subr.bf16.mxu0 %v5371_v33 }
  0x50   : > { %5259 = vmatprep.subr.bf16.mxu1 %v5371_v33  ;;  %4980 = vmatpush3.bf16.msra.mxu0 %v5372_v34 }
  0x51   : > { %5267 = vmatpush3.bf16.msra.mxu1 %v5372_v34  ;;  %4981 = vmatprep.subr.bf16.mxu0 %v5373_v35 }
  0x52   : > { %5260 = vmatprep.subr.bf16.mxu1 %v5373_v35 }
  0x54   : > { %4982 = vmatpush3.bf16.msra.mxu0 %v5374_v36 }
  0x55   : > { %5268 = vmatpush3.bf16.msra.mxu1 %v5374_v36 }
  0x56   : > { %676 = vmatmul.mubr.bf16.gmra.mrb[16].mxu0 %v4573_v37  ;;  %v912_v37 = vlaneseq }
  0x57   : > { %683 = vmatprep.mubr.bf16.mxu0 %v4576_v38  ;;  %v5375_v38 = vld [vmem:[%s7581_s3 + $0x70] sm:$0xff]  }
  0x58   : > { %4983 = vmatprep.subr.bf16.mxu0 %v5375_v38  ;;  %5261 = vmatprep.subr.bf16.mxu1 %v5375_v38 }
  0x5e   : > { %684 = vmatmul.mubr.bf16.gmra.mrb[20].mxu0 %v4575_v41 }
  0x5f   : > { %691 = vmatprep.mubr.bf16.mxu0 %v4578_v42  ;;  %v5376_v42 = vld [vmem:[%s7581_s3 + $0x30] sm:$0xff]  }
  0x60   : > { %4984 = vmatpush3.bf16.msra.mxu0 %v5376_v42  ;;  %5269 = vmatpush3.bf16.msra.mxu1 %v5376_v42 }
  0x61   : > { %4985 = vmatprep.subr.bf16.mxu0 %v5377_v47  ;;  %5262 = vmatprep.subr.bf16.mxu1 %v5377_v47 }
  0x64   : > { %4986 = vmatpush3.bf16.msra.mxu0 %v5378_v52  ;;  %5270 = vmatpush3.bf16.msra.mxu1 %v5378_v52 }
  0x66   : > { %692 = vmatmul.mubr.bf16.gmra.mrb[24].mxu0 %v4577_v45 }
  0x67   : > { %699 = vmatprep.mubr.bf16.mxu0 %v4580_v46  ;;  %v5778_v46 = vshrl.u32 %v912_v37, 7 }
  0x69   : > { %vm914_vm1 = vcmp.ge.s32.totalorder %v5778_v46, 1  ;;  %vm915_vm2 = vcmp.lt.s32.totalorder %v5778_v46, 7 }
  0x6e   : > { %700 = vmatmul.mubr.bf16.gmra.mrb[28].mxu0 %v4579_v49 }
  0x6f   : > { %707 = vmatprep.mubr.bf16.mxu0 %v4582_v50 }
  0x76   : > { %708 = vmatmul.mubr.bf16.gmra.mrb[32].mxu0 %v4581_v53 }
  0x77   : > { %715 = vmatprep.mubr.bf16.mxu0 %v4584_v54 }
  0x7e   : > { %716 = vmatmul.mubr.bf16.gmra.mrb[36].mxu0 %v4583_v57 }
  0x7f   : > { %723 = vmatprep.mubr.bf16.mxu0 %v4586_v58 }
  0x86   : > { %724 = vmatmul.mubr.bf16.gmra.mrb[40].mxu0 %v4585_v62 }
  0x87   : > { %731 = vmatprep.mubr.bf16.mxu0 %v4588_v63 }
  0x8e   : > { %732 = vmatmul.mubr.bf16.gmra.mrb[44].mxu0 %v4587_v4 }
  0x8f   : > { %739 = vmatprep.mubr.bf16.mxu0 %v4590_v5 }
  0x96   : > { %740 = vmatmul.mubr.bf16.gmra.mrb[48].mxu0 %v4589_v13 }
  0x97   : > { %747 = vmatprep.mubr.bf16.mxu0 %v4592_v15 }
  0x9e   : > { %748 = vmatmul.mubr.bf16.gmra.mrb[52].mxu0 %v4591_v18 }
  0x9f   : > { %755 = vmatprep.mubr.bf16.mxu0 %v4594_v19 }
  0xa6   : > { %756 = vmatmul.mubr.bf16.gmra.mrb[56].mxu0 %v4593_v22 }
  0xa7   : > { %763 = vmatprep.mubr.bf16.mxu0 %v4596_v23 }
  0xae   : > { %764 = vmatmul.mubr.bf16.gmra.mrb[60].mxu0 %v4595_v24 }
 0x109   : > { %v4875_v39 = vpop.f32.mrb[0].mxu0 }
 0x10a   : > { %v4876_v41 = vpop.f32.mrb[1].mxu0 }
 0x10b   : > { %v4877_v43 = vadd.f32 %v4876_v41, %v4875_v39  ;;  %v4878_v44 = vpop.f32.mrb[2].mxu0 }
 0x10c   : > { %v4879_v45 = vpop.f32.mrb[3].mxu0 }
 0x10d   : > { %v646_v48 = vadd.f32 %v4877_v43, %v5773_v40  ;;  %v4880_v49 = vadd.f32 %v4879_v45, %v4878_v44 }
 0x10f   : > { %v5784_v50 = vmax.f32 %v646_v48, 0.0  ;;  %v649_v51 = vadd.f32 %v4880_v49, %v5773_v40 }
 0x111   : > { %815 = vst.msk [vmem:[#allocation2 + $0x8] sm:$0xff] %vm804_vm0, %v5784_v50  ;;  %v5793_v53 = vmax.f32 %v649_v51, 0.0  ;;  %v4881_v54 = vpop.f32.mrb[4].mxu0  ;;  %v1144_v55 = vrot.slane %v5784_v50, 7 }
 0x112   : > { %v4882_v56 = vpop.f32.mrb[5].mxu0 }
 0x113   : > { %816 = vst.msk [vmem:[#allocation2 + $0x10] sm:$0xff] %vm804_vm0, %v5793_v53  ;;  %v4883_v57 = vadd.f32 %v4882_v56, %v4881_v54  ;;  %v4884_v58 = vpop.f32.mrb[6].mxu0  ;;  %v1176_v59 = vsel %vm914_vm1, %v1144_v55, 0.0  ;;  %v1145_v60 = vrot.slane %v5793_v53, 7 }
 0x114   : > { %v4885_v61 = vpop.f32.mrb[7].mxu0  ;;  %v1208_v62 = vpack.c.bf16 %v1176_v59, %v1176_v59 }
 0x115   : > { %v654_v63 = vadd.f32 %v4883_v57, %v5773_v40  ;;  %v4886_v0 = vadd.f32 %v4885_v61, %v4884_v58  ;;  %v1177_v1 = vsel %vm914_vm1, %v1145_v60, 0.0 }
 0x116   : > { %1720 = vrot.lane.b32.xlu0 %v1208_v62, %s5536_s15  ;;  %v1209_v2 = vpack.c.bf16 %v1177_v1, %v1177_v1 }
 0x117   : > { %v5805_v3 = vmax.f32 %v654_v63, 0.0  ;;  %v657_v4 = vadd.f32 %v4886_v0, %v5773_v40 }
 0x118   : > { %1722 = vrot.lane.b32.xlu1 %v1209_v2, %s5536_s15  ;;  %v5809_v5 = vld [vmem:[#allocation2 + $0x8] sm:$0xff] }
 0x119   : > { %817 = vst.msk [vmem:[#allocation2 + $0x18] sm:$0xff] %vm804_vm0, %v5805_v3  ;;  %v5813_v7 = vmax.f32 %v657_v4, 0.0  ;;  %v4887_v8 = vpop.f32.mrb[8].mxu0  ;;  %v1015_v9 = vpack.c.bf16 %v5809_v5, %v5809_v5  ;;  %v1146_v10 = vrot.slane %v5805_v3, 7 }
 0x11a   : > { %v4888_v11 = vpop.f32.mrb[9].mxu0  ;;  %v5818_v12 = vld [vmem:[#allocation2 + $0x10] sm:$0xff] }
 0x11b   : > { %818 = vst.msk [vmem:[#allocation2 + $0x20] sm:$0xff] %vm804_vm0, %v5813_v7  ;;  %v4889_v13 = vadd.f32 %v4888_v11, %v4887_v8  ;;  %v4890_v14 = vpop.f32.mrb[10].mxu0  ;;  %v5824_v15 = vpack.c.bf16 %v5818_v12, %v5818_v12  ;;  %v1147_v16 = vrot.slane %v5813_v7, 7  ;;  %v1178_v18 = vsel %vm914_vm1, %v1146_v10, 0.0 }
 0x11c   : > { %v4891_v17 = vpop.f32.mrb[11].mxu0  ;;  %1626 = vrot.lane.b32.xlu1 %v1015_v9, %s5536_s15  ;;  %v1210_v25 = vpack.c.bf16 %v1178_v18, %v1178_v18 }
 0x11d   : > { %v662_v19 = vadd.f32 %v4889_v13, %v5773_v40  ;;  %v4892_v20 = vadd.f32 %v4891_v17, %v4890_v14  ;;  %1628 = vrot.lane.b32.xlu0 %v5824_v15, %s5536_s15  ;;  %v1179_v21 = vsel %vm914_vm1, %v1147_v16, 0.0 }
 0x11e   : > { %v1211_v22 = vpack.c.bf16 %v1179_v21, %v1179_v21 }
 0x11f   : > { %v5835_v23 = vmax.f32 %v662_v19, 0.0  ;;  %v665_v24 = vadd.f32 %v4892_v20, %v5773_v40 }
 0x120   : > { %1726 = vrot.lane.b32.xlu1 %v1211_v22, %s5536_s15  ;;  %v5839_v26 = vld [vmem:[#allocation2 + $0x18] sm:$0xff] }
 0x121   : > { %819 = vst.msk [vmem:[#allocation2 + $0x28] sm:$0xff] %vm804_vm0, %v5835_v23  ;;  %v5843_v27 = vmax.f32 %v665_v24, 0.0  ;;  %v4893_v28 = vpop.f32.mrb[12].mxu0  ;;  %1724 = vrot.lane.b32.xlu0 %v1210_v25, %s5536_s15  ;;  %v5848_v29 = vpack.c.bf16 %v5839_v26, %v5839_v26  ;;  %v1148_v30 = vrot.slane %v5835_v23, 7 }
 0x122   : > { %v4894_v31 = vpop.f32.mrb[13].mxu0  ;;  %v5851_v32 = vld [vmem:[#allocation2 + $0x20] sm:$0xff] }
 0x123   : > { %820 = vst.msk [vmem:[#allocation2 + $0x30] sm:$0xff] %vm804_vm0, %v5843_v27  ;;  %v4895_v33 = vadd.f32 %v4894_v31, %v4893_v28  ;;  %v4896_v34 = vpop.f32.mrb[14].mxu0  ;;  %v5857_v35 = vpack.c.bf16 %v5851_v32, %v5851_v32  ;;  %v1149_v36 = vrot.slane %v5843_v27, 7  ;;  %v1180_v38 = vsel %vm914_vm1, %v1148_v30, 0.0 }
 0x124   : > { %v4897_v37 = vpop.f32.mrb[15].mxu0  ;;  %1630 = vrot.lane.b32.xlu1 %v5848_v29, %s5536_s15  ;;  %v1212_v47 = vpack.c.bf16 %v1180_v38, %v1180_v38  ;;  %v1050_v55 = vrot.slane %v5851_v32, 1 }
 0x125   : > { %v670_v39 = vadd.f32 %v4895_v33, %v5773_v40  ;;  %v4898_v41 = vadd.f32 %v4897_v37, %v4896_v34  ;;  %1632 = vrot.lane.b32.xlu0 %v5857_v35, %s5536_s15  ;;  %v1181_v42 = vsel %vm914_vm1, %v1149_v36, 0.0 }
 0x126   : > { %v1213_v43 = vpack.c.bf16 %v1181_v42, %v1181_v42  ;;  %v5898_v63 = vsel %vm915_vm2, %v1050_v55, 0.0 }
 0x127   : > { %v5869_v44 = vmax.f32 %v670_v39, 0.0  ;;  %v673_v45 = vadd.f32 %v4898_v41, %v5773_v40 }
 0x128   : > { %1730 = vrot.lane.b32.xlu1 %v1213_v43, %s5536_s15  ;;  %v5873_v48 = vld [vmem:[#allocation2 + $0x28] sm:$0xff] }
 0x129   : > { %821 = vst.msk [vmem:[#allocation2 + $0x38] sm:$0xff] %vm804_vm0, %v5869_v44  ;;  %v5877_v49 = vmax.f32 %v673_v45, 0.0  ;;  %v4899_v51 = vpop.f32.mrb[16].mxu0  ;;  %1728 = vrot.lane.b32.xlu0 %v1212_v47, %s5536_s15  ;;  %v5882_v52 = vpack.c.bf16 %v5873_v48, %v5873_v48  ;;  %v1051_v54 = vrot.slane %v5873_v48, 1 }
 0x12a   : > { %v4900_v56 = vpop.f32.mrb[17].mxu0 }
 0x12b   : > { %822 = vst.msk [vmem:[#allocation2 + $0x40] sm:$0xff] %vm804_vm0, %v5877_v49  ;;  %v4901_v57 = vadd.f32 %v4900_v56, %v4899_v51  ;;  %v4902_v58 = vpop.f32.mrb[18].mxu0  ;;  %v5893_v60 = vsel %vm915_vm2, %v1051_v54, 0.0  ;;  %v5949_v56 = vld [vmem:[%s7581_s3 + $0x100] sm:$0xff]  }
 0x12c   : > { %v4903_v59 = vpop.f32.mrb[19].mxu0  ;;  %1634 = vrot.lane.b32.xlu1 %v5882_v52, %s5536_s15  ;;  %5215 = vmatprep.subr.bf16.mxu1 %v5949_v56 }
 0x12d   : > { %v678_v61 = vadd.f32 %v4901_v57, %v5773_v40  ;;  %v4904_v62 = vadd.f32 %v4903_v59, %v4902_v58 }
 0x12f   : > { %v5902_v1 = vmax.f32 %v678_v61, 0.0  ;;  %v681_v2 = vadd.f32 %v4904_v62, %v5773_v40 }
 0x131   : > { %823 = vst.msk [vmem:[#allocation2 + $0x58] sm:$0xff] %vm804_vm0, %v5902_v1  ;;  %v5907_v4 = vmax.f32 %v681_v2, 0.0  ;;  %v4905_v8 = vpop.f32.mrb[20].mxu0  ;;  %v1152_v9 = vrot.slane %v5902_v1, 7 }
 0x132   : > { %v4906_v10 = vpop.f32.mrb[21].mxu0 }
 0x133   : > { %824 = vst.msk [vmem:[#allocation2 + $0x60] sm:$0xff] %vm804_vm0, %v5907_v4  ;;  %v4907_v11 = vadd.f32 %v4906_v10, %v4905_v8  ;;  %v4908_v13 = vpop.f32.mrb[22].mxu0  ;;  %v1184_v14 = vsel %vm914_vm1, %v1152_v9, 0.0  ;;  %v1153_v16 = vrot.slane %v5907_v4, 7 }
 0x134   : > { %v4909_v17 = vpop.f32.mrb[23].mxu0  ;;  %v1216_v18 = vpack.c.bf16 %v1184_v14, %v1184_v14 }
 0x135   : > { %v686_v19 = vadd.f32 %v4907_v11, %v5773_v40  ;;  %v4910_v20 = vadd.f32 %v4909_v17, %v4908_v13  ;;  %v1185_v21 = vsel %vm914_vm1, %v1153_v16, 0.0 }
 0x136   : > { %1736 = vrot.lane.b32.xlu0 %v1216_v18, %s5536_s15  ;;  %v1217_v25 = vpack.c.bf16 %v1185_v21, %v1185_v21 }
 0x137   : > { %v5919_v22 = vmax.f32 %v686_v19, 0.0  ;;  %v689_v24 = vadd.f32 %v4910_v20, %v5773_v40 }
 0x138   : > { %v5922_v28 = vld [vmem:[#allocation2 + $0x58] sm:$0xff] }
 0x139   : > { %7638 = vst [vmem:[#allocation6_spill] sm:$0xff] %v5919_v22  ;;  %825 = vst.msk [vmem:[#allocation2 + $0x68] sm:$0xff] %vm804_vm0, %v5919_v22  ;;  %v5926_v30 = vmax.f32 %v689_v24, 0.0  ;;  %v4911_v31 = vpop.f32.mrb[24].mxu0  ;;  %v1023_v33 = vpack.c.bf16 %v5922_v28, %v5922_v28  ;;  %v1154_v34 = vrot.slane %v5919_v22, 7 }
 0x13a   : > { %v4912_v36 = vpop.f32.mrb[25].mxu0  ;;  %1738 = vrot.lane.b32.xlu0 %v1217_v25, %s5536_s15  ;;  %v5932_v37 = vld [vmem:[#allocation2 + $0x60] sm:$0xff] }
 0x13b   : > { %7639 = vst [vmem:[#allocation7_spill] sm:$0xff] %v5926_v30  ;;  %826 = vst.msk [vmem:[#allocation2 + $0x70] sm:$0xff] %vm804_vm0, %v5926_v30  ;;  %v4913_v38 = vadd.f32 %v4912_v36, %v4911_v31  ;;  %v4914_v39 = vpop.f32.mrb[26].mxu0  ;;  %1642 = vrot.lane.b32.xlu1 %v1023_v33, %s5536_s15  ;;  %v1024_v41 = vpack.c.bf16 %v5932_v37, %v5932_v37  ;;  %v1155_v42 = vrot.slane %v5926_v30, 7  ;;  %v1186_v54 = vsel %vm914_vm1, %v1154_v34, 0.0 }
 0x13c   : > { %v4915_v43 = vpop.f32.mrb[27].mxu0  ;;  %v1218_v59 = vpack.c.bf16 %v1186_v54, %v1186_v54  ;;  %v1151_v31 = vrot.slane %v5877_v49, 7 }
 0x13d   : > { %v694_v45 = vadd.f32 %v4913_v38, %v5773_v40  ;;  %v4916_v47 = vadd.f32 %v4915_v43, %v4914_v39  ;;  %v1187_v51 = vsel %vm914_vm1, %v1155_v42, 0.0 }
 0x13e   : > { %1644 = vrot.lane.b32.xlu0 %v1024_v41, %s5536_s15  ;;  %v1219_v55 = vpack.c.bf16 %v1187_v51, %v1187_v51  ;;  %v1183_v51 = vsel %vm914_vm1, %v1151_v31, 0.0 }
 0x13f   : > { %v5951_v57 = vmax.f32 %v694_v45, 0.0  ;;  %v697_v58 = vadd.f32 %v4916_v47, %v5773_v40 }
 0x140   : > { %1742 = vrot.lane.b32.xlu1 %v1219_v55, %s5536_s15  ;;  %v5955_v61 = vld [vmem:[#allocation2 + $0x68] sm:$0xff] }
 0x141   : > { %7640 = vst [vmem:[#allocation8_spill] sm:$0xff] %v5951_v57  ;;  %827 = vst.msk [vmem:[#allocation2 + $0x78] sm:$0xff] %vm804_vm0, %v5951_v57  ;;  %v5960_v62 = vmax.f32 %v697_v58, 0.0  ;;  %v4917_v2 = vpop.f32.mrb[28].mxu0  ;;  %v1025_v8 = vpack.c.bf16 %v5955_v61, %v5955_v61  ;;  %v1156_v9 = vrot.slane %v5951_v57, 7 }
 0x142   : > { %v4918_v10 = vpop.f32.mrb[29].mxu0  ;;  %1740 = vrot.lane.b32.xlu0 %v1218_v59, %s5536_s15  ;;  %v5966_v11 = vld [vmem:[#allocation2 + $0x70] sm:$0xff] }
 0x143   : > { %7641 = vst [vmem:[#allocation9_spill] sm:$0xff] %v5960_v62  ;;  %828 = vst.msk [vmem:[#allocation2 + $0x80] sm:$0xff] %vm804_vm0, %v5960_v62  ;;  %v4919_v13 = vadd.f32 %v4918_v10, %v4917_v2  ;;  %v4920_v14 = vpop.f32.mrb[30].mxu0  ;;  %v1026_v16 = vpack.c.bf16 %v5966_v11, %v5966_v11  ;;  %v1157_v17 = vrot.slane %v5960_v62, 7  ;;  %v1188_v24 = vsel %vm914_vm1, %v1156_v9, 0.0 }
 0x144   : > { %1646 = vrot.lane.b32.xlu1 %v1025_v8, %s5536_s15  ;;  %v4921_v18 = vpop.f32.mrb[31].mxu0  ;;  %v1220_v36 = vpack.c.bf16 %v1188_v24, %v1188_v24 }
 0x145   : > { %v702_v19 = vadd.f32 %v4919_v13, %v5773_v40  ;;  %v4922_v20 = vadd.f32 %v4921_v18, %v4920_v14  ;;  %v1189_v21 = vsel %vm914_vm1, %v1157_v17, 0.0  ;;  %v1150_v13 = vrot.slane %v5869_v44, 7 }
 0x146   : > { %1648 = vrot.lane.b32.xlu0 %v1026_v16, %s5536_s15  ;;  %v1221_v25 = vpack.c.bf16 %v1189_v21, %v1189_v21  ;;  %v1215_v14 = vpack.c.bf16 %v1183_v51, %v1183_v51 }
 0x147   : > { %v5981_v33 = vmax.f32 %v702_v19, 0.0  ;;  %v705_v34 = vadd.f32 %v4922_v20, %v5773_v40  ;;  %v1182_v24 = vsel %vm914_vm1, %v1150_v13, 0.0 }
 0x148   : > { %1746 = vrot.lane.b32.xlu1 %v1221_v25, %s5536_s15  ;;  %v5985_v38 = vld [vmem:[#allocation2 + $0x78] sm:$0xff] }
 0x149   : > { %7642 = vst [vmem:[#allocation10_spill] sm:$0xff] %v5981_v33  ;;  %829 = vst.msk [vmem:[#allocation2 + $0x88] sm:$0xff] %vm804_vm0, %v5981_v33  ;;  %v5989_v39 = vmax.f32 %v705_v34, 0.0  ;;  %v4923_v41 = vpop.f32.mrb[32].mxu0  ;;  %v1027_v42 = vpack.c.bf16 %v5985_v38, %v5985_v38  ;;  %v1158_v43 = vrot.slane %v5981_v33, 7 }
 0x14a   : > { %1744 = vrot.lane.b32.xlu0 %v1220_v36, %s5536_s15  ;;  %v4924_v45 = vpop.f32.mrb[33].mxu0  ;;  %v5995_v47 = vld [vmem:[#allocation2 + $0x80] sm:$0xff] }
 0x14b   : > { %7643 = vst [vmem:[#allocation11_spill] sm:$0xff] %v5989_v39  ;;  %830 = vst.msk [vmem:[#allocation2 + $0x90] sm:$0xff] %vm804_vm0, %v5989_v39  ;;  %v4925_v54 = vadd.f32 %v4924_v45, %v4923_v41  ;;  %v4926_v55 = vpop.f32.mrb[34].mxu0  ;;  %v1028_v58 = vpack.c.bf16 %v5995_v47, %v5995_v47  ;;  %v1190_v59 = vsel %vm914_vm1, %v1158_v43, 0.0  ;;  %v1159_v2 = vrot.slane %v5989_v39, 7 }
 0x14c   : > { %1650 = vrot.lane.b32.xlu1 %v1027_v42, %s5536_s15  ;;  %v4927_v8 = vpop.f32.mrb[35].mxu0  ;;  %v1222_v16 = vpack.c.bf16 %v1190_v59, %v1190_v59 }
 0x14d   : > { %v710_v9 = vadd.f32 %v4925_v54, %v5773_v40  ;;  %v4928_v10 = vadd.f32 %v4927_v8, %v4926_v55  ;;  %v1191_v19 = vsel %vm914_vm1, %v1159_v2, 0.0  ;;  %v1214_v54 = vpack.c.bf16 %v1182_v24, %v1182_v24 }
 0x14e   : > { %1652 = vrot.lane.b32.xlu0 %v1028_v58, %s5536_s15  ;;  %v1223_v34 = vpack.c.bf16 %v1191_v19, %v1191_v19 }
 0x14f   : > { %v6010_v17 = vmax.f32 %v710_v9, 0.0  ;;  %v713_v18 = vadd.f32 %v4928_v10, %v5773_v40 }
 0x150   : > { %1734 = vrot.lane.b32.xlu1 %v1215_v14, %s5536_s15  ;;  %v6026_v42 = vld [vmem:[#allocation2 + $0x88] sm:$0xff] }
 0x151   : > { %7644 = vst [vmem:[#allocation12_spill] sm:$0xff] %v6010_v17  ;;  %831 = vst.msk [vmem:[#allocation2 + $0xa8] sm:$0xff] %vm804_vm0, %v6010_v17  ;;  %v6018_v20 = vmax.f32 %v713_v18, 0.0  ;;  %v4929_v21 = vpop.f32.mrb[36].mxu0  ;;  %v1160_v25 = vrot.slane %v6010_v17, 7  ;;  %v1029_v59 = vpack.c.bf16 %v6026_v42, %v6026_v42 }
 0x152   : > { %v4930_v31 = vpop.f32.mrb[37].mxu0  ;;  %1748 = vrot.lane.b32.xlu0 %v1222_v16, %s5536_s15 }
 0x153   : > { %7645 = vst [vmem:[#allocation13_spill] sm:$0xff] %v6018_v20  ;;  %832 = vst.msk [vmem:[#allocation2 + $0xb0] sm:$0xff] %vm804_vm0, %v6018_v20  ;;  %v4931_v36 = vadd.f32 %v4930_v31, %v4929_v21  ;;  %v4932_v41 = vpop.f32.mrb[38].mxu0  ;;  %v1192_v43 = vsel %vm914_vm1, %v1160_v25, 0.0  ;;  %v1161_v45 = vrot.slane %v6018_v20, 7 }
 0x154   : > { %1750 = vrot.lane.b32.xlu1 %v1223_v34, %s5536_s15  ;;  %v4933_v51 = vpop.f32.mrb[39].mxu0  ;;  %v1224_v2 = vpack.c.bf16 %v1192_v43, %v1192_v43 }
 0x155   : > { %v718_v55 = vadd.f32 %v4931_v36, %v5773_v40  ;;  %v4934_v58 = vadd.f32 %v4933_v51, %v4932_v41  ;;  %v1193_v10 = vsel %vm914_vm1, %v1161_v45, 0.0 }
 0x156   : > { %1732 = vrot.lane.b32.xlu0 %v1214_v54, %s5536_s15  ;;  %v1225_v19 = vpack.c.bf16 %v1193_v10, %v1193_v10 }
 0x157   : > { %v6036_v8 = vmax.f32 %v718_v55, 0.0  ;;  %v721_v9 = vadd.f32 %v4934_v58, %v5773_v40 }
 0x158   : > { %1654 = vrot.lane.b32.xlu1 %v1029_v59, %s5536_s15  ;;  %v6054_v34 = vld [vmem:[#allocation2 + $0xa8] sm:$0xff] }
 0x159   : > { %7646 = vst [vmem:[#allocation14_spill] sm:$0xff] %v6036_v8  ;;  %833 = vst.msk [vmem:[#allocation2 + $0xb8] sm:$0xff] %vm804_vm0, %v6036_v8  ;;  %v6044_v13 = vmax.f32 %v721_v9, 0.0  ;;  %v4935_v14 = vpop.f32.mrb[40].mxu0  ;;  %v1162_v16 = vrot.slane %v6036_v8, 7  ;;  %v1031_v54 = vpack.c.bf16 %v6054_v34, %v6054_v34 }
 0x15a   : > { %v4936_v18 = vpop.f32.mrb[41].mxu0  ;;  %1752 = vrot.lane.b32.xlu0 %v1224_v2, %s5536_s15  ;;  %v6048_v21 = vld [vmem:[#allocation2 + $0xb0] sm:$0xff] }
 0x15b   : > { %7647 = vst [vmem:[#allocation15_spill] sm:$0xff] %v6044_v13  ;;  %7648 = vst [vmem:[#allocation16_spill] sm:$0xff] %v6048_v21  ;;  %v4937_v24 = vadd.f32 %v4936_v18, %v4935_v14  ;;  %v4938_v25 = vpop.f32.mrb[42].mxu0  ;;  %v1032_v31 = vpack.c.bf16 %v6048_v21, %v6048_v21  ;;  %v1194_v36 = vsel %vm914_vm1, %v1162_v16, 0.0  ;;  %v1163_v41 = vrot.slane %v6044_v13, 7 }
 0x15c   : > { %834 = vst.msk [vmem:[#allocation2 + $0xc0] sm:$0xff] %vm804_vm0, %v6044_v13  ;;  %1754 = vrot.lane.b32.xlu1 %v1225_v19, %s5536_s15  ;;  %v4939_v43 = vpop.f32.mrb[43].mxu0  ;;  %v1226_v55 = vpack.c.bf16 %v1194_v36, %v1194_v36 }
 0x15d   : > { %v726_v45 = vadd.f32 %v4937_v24, %v5773_v40  ;;  %v4940_v51 = vadd.f32 %v4939_v43, %v4938_v25  ;;  %v1195_v2 = vsel %vm914_vm1, %v1163_v41, 0.0 }
 0x15e   : > { %1660 = vrot.lane.b32.xlu0 %v1032_v31, %s5536_s15  ;;  %v1227_v18 = vpack.c.bf16 %v1195_v2, %v1195_v2 }
 0x15f   : > { %v6064_v58 = vmax.f32 %v726_v45, 0.0  ;;  %v729_v59 = vadd.f32 %v4940_v51, %v5773_v40 }
 0x160   : > { %1658 = vrot.lane.b32.xlu1 %v1031_v54, %s5536_s15  ;;  %v6078_v36 = vld [vmem:[#allocation2 + $0xb8] sm:$0xff] }
 0x161   : > { %7649 = vst [vmem:[#allocation17_spill] sm:$0xff] %v6064_v58  ;;  %835 = vst.msk [vmem:[#allocation2 + $0xc8] sm:$0xff] %vm804_vm0, %v6064_v58  ;;  %v6072_v9 = vmax.f32 %v729_v59, 0.0  ;;  %v4941_v10 = vpop.f32.mrb[44].mxu0  ;;  %v1164_v14 = vrot.slane %v6064_v58, 7 }
 0x162   : > { %v4942_v16 = vpop.f32.mrb[45].mxu0  ;;  %1756 = vrot.lane.b32.xlu0 %v1226_v55, %s5536_s15  ;;  %7651 = vst [vmem:[#allocation19_spill] sm:$0xff] %v6078_v36  ;;  %v1033_v55 = vpack.c.bf16 %v6078_v36, %v6078_v36 }
 0x163   : > { %7650 = vst [vmem:[#allocation18_spill] sm:$0xff] %v6072_v9  ;;  %v867_v19 = vld [vmem:[#allocation2 + $0xc0] sm:$0xff]  ;;  %836 = vst.msk [vmem:[#allocation2 + $0xd0] sm:$0xff] %vm804_vm0, %v6072_v9  ;;  %v4943_v24 = vadd.f32 %v4942_v16, %v4941_v10  ;;  %v4944_v31 = vpop.f32.mrb[46].mxu0  ;;  %v1196_v41 = vsel %vm914_vm1, %v1164_v14, 0.0  ;;  %v1165_v43 = vrot.slane %v6072_v9, 7 }
 0x164   : > { %v1034_v25 = vpack.c.bf16 %v867_v19, %v867_v19  ;;  %1758 = vrot.lane.b32.xlu1 %v1227_v18, %s5536_s15  ;;  %v4945_v45 = vpop.f32.mrb[47].mxu0  ;;  %v1228_v59 = vpack.c.bf16 %v1196_v41, %v1196_v41 }
 0x165   : > { %v734_v51 = vadd.f32 %v4943_v24, %v5773_v40  ;;  %v4946_v54 = vadd.f32 %v4945_v45, %v4944_v31  ;;  %v1197_v14 = vsel %vm914_vm1, %v1165_v43, 0.0 }
 0x166   : > { %1664 = vrot.lane.b32.xlu0 %v1034_v25, %s5536_s15  ;;  %v1229_v25 = vpack.c.bf16 %v1197_v14, %v1197_v14 }
 0x167   : > { %v6088_v2 = vmax.f32 %v734_v51, 0.0  ;;  %v737_v10 = vadd.f32 %v4946_v54, %v5773_v40 }
 0x168   : > { %1662 = vrot.lane.b32.xlu1 %v1033_v55, %s5536_s15  ;;  %v6102_v51 = vld [vmem:[#allocation2 + $0xc8] sm:$0xff] }
 0x169   : > { %7652 = vst [vmem:[#allocation20_spill] sm:$0xff] %v6088_v2  ;;  %837 = vst.msk [vmem:[#allocation2 + $0xd8] sm:$0xff] %vm804_vm0, %v6088_v2  ;;  %v6096_v16 = vmax.f32 %v737_v10, 0.0  ;;  %v4947_v18 = vpop.f32.mrb[48].mxu0  ;;  %v1166_v19 = vrot.slane %v6088_v2, 7  ;;  %v1035_v14 = vpack.c.bf16 %v6102_v51, %v6102_v51 }
 0x16a   : > { %1760 = vrot.lane.b32.xlu0 %v1228_v59, %s5536_s15  ;;  %v4948_v24 = vpop.f32.mrb[49].mxu0  ;;  %v869_v31 = vld [vmem:[#allocation2 + $0xd0] sm:$0xff]  ;;  %7654 = vst [vmem:[#allocation22_spill] sm:$0xff] %v6102_v51 }
 0x16b   : > { %7653 = vst [vmem:[#allocation21_spill] sm:$0xff] %v6096_v16  ;;  %838 = vst.msk [vmem:[#allocation2 + $0xe0] sm:$0xff] %vm804_vm0, %v6096_v16  ;;  %v4949_v41 = vadd.f32 %v4948_v24, %v4947_v18  ;;  %v4950_v43 = vpop.f32.mrb[50].mxu0  ;;  %v1036_v45 = vpack.c.bf16 %v869_v31, %v869_v31  ;;  %v1198_v54 = vsel %vm914_vm1, %v1166_v19, 0.0  ;;  %v6114_v31 = vld [vmem:[#allocation2 + $0x38] sm:$0xff]  ;;  %v1167_v19 = vrot.slane %v6096_v16, 7 }
 0x16c   : > { %1762 = vrot.lane.b32.xlu1 %v1229_v25, %s5536_s15  ;;  %v4951_v55 = vpop.f32.mrb[51].mxu0  ;;  %v1230_v0 = vpack.c.bf16 %v1198_v54, %v1198_v54 }
 0x16d   : > { %v742_v10 = vadd.f32 %v4949_v41, %v5773_v40  ;;  %v4952_v59 = vadd.f32 %v4951_v55, %v4950_v43  ;;  %v6122_v43 = vld [vmem:[#allocation2 + $0x30] sm:$0xff]  ;;  %v6128_v55 = vpack.c.bf16 %v6114_v31, %v6114_v31 }
 0x16e   : > { %1668 = vrot.lane.b32.xlu0 %v1036_v45, %s5536_s15 }
 0x16f   : > { %v6111_v18 = vmax.f32 %v742_v10, 0.0  ;;  %v745_v24 = vadd.f32 %v4952_v59, %v5773_v40 }
 0x170   : > { %1666 = vrot.lane.b32.xlu1 %v1035_v14, %s5536_s15  ;;  %v1199_v14 = vsel %vm914_vm1, %v1167_v19, 0.0  ;;  %v6145_v19 = vpop.permute.xlu0 %1656  ;;  %v6150_v13 = vld [vmem:[#allocation2 + $0xd8] sm:$0xff] }
 0x171   : > { %7655 = vst [vmem:[#allocation23_spill] sm:$0xff] %v6111_v18  ;;  %839 = vst.msk [vmem:[#allocation2 + $0xf8] sm:$0xff] %vm804_vm0, %v6111_v18  ;;  %v6120_v25 = vmax.f32 %v745_v24, 0.0  ;;  %v4953_v41 = vpop.f32.mrb[52].mxu0  ;;  %v1168_v45 = vrot.slane %v6111_v18, 7 }
 0x172   : > { %v4954_v54 = vpop.f32.mrb[53].mxu0  ;;  %1764 = vrot.lane.b32.xlu0 %v1230_v0, %s5536_s15  ;;  %v6140_v0 = vpack.c.bf16 %v6122_v43, %v6122_v43  ;;  %7657 = vst [vmem:[#allocation25_spill] sm:$0xff] %v6145_v19  ;;  %7659 = vst [vmem:[#allocation27_spill] sm:$0xff] %v6150_v13 }
 0x173   : > { %7656 = vst [vmem:[#allocation24_spill] sm:$0xff] %v6120_v25  ;;  %840 = vst.msk [vmem:[#allocation2 + $0x100] sm:$0xff] %vm804_vm0, %v6120_v25  ;;  %v4955_v10 = vadd.f32 %v4954_v54, %v4953_v41  ;;  %v4956_v59 = vpop.f32.mrb[54].mxu0  ;;  %v1200_v24 = vsel %vm914_vm1, %v1168_v45, 0.0  ;;  %v1231_v41 = vpack.c.bf16 %v1199_v14, %v1199_v14  ;;  %v1169_v58 = vrot.slane %v6120_v25, 7 }
 0x174   : > { %1638 = vrot.lane.b32.xlu1 %v6128_v55, %s5536_s15  ;;  %v4957_v16 = vpop.f32.mrb[55].mxu0  ;;  %v1232_v54 = vpack.c.bf16 %v1200_v24, %v1200_v24  ;;  %v6172_v8 = vpop.permute.xlu0 %1624 }
 0x175   : > { %v750_v18 = vadd.f32 %v4955_v10, %v5773_v40  ;;  %v4958_v9 = vadd.f32 %v4957_v16, %v4956_v59 }
 0x176   : > { %1636 = vrot.lane.b32.xlu0 %v6140_v0, %s5536_s15 }
 0x177   : > { %v6147_v2 = vmax.f32 %v750_v18, 0.0  ;;  %v753_v45 = vadd.f32 %v4958_v9, %v5773_v40  ;;  %v5382_v18 = vld [vmem:[%s7581_s3 + $0xc0] sm:$0xff]   ;;  %v1037_v9 = vpack.c.bf16 %v6150_v13, %v6150_v13 }
 0x178   : > { %1766 = vrot.lane.b32.xlu1 %v1231_v41, %s5536_s15  ;;  %5083 = vmatprep.subr.bf16.mxu0 %v5382_v18  ;;  %v6179_v39 = vld [vmem:[#allocation2 + $0xf8] sm:$0xff]  ;;  %v1046_v18 = vrot.slane %v5718_v6, 1 }
 0x179   : > { %7658 = vst [vmem:[#allocation26_spill] sm:$0xff] %v6147_v2  ;;  %841 = vst.msk [vmem:[#allocation2 + $0x108] sm:$0xff] %vm804_vm0, %v6147_v2  ;;  %v6156_v16 = vmax.f32 %v753_v45, 0.0  ;;  %v4959_v10 = vpop.f32.mrb[56].mxu0  ;;  %v1170_v59 = vrot.slane %v6147_v2, 7  ;;  %v1201_v2 = vsel %vm914_vm1, %v1169_v58, 0.0 }
 0x17a   : > { %v4960_v14 = vpop.f32.mrb[57].mxu0  ;;  %1768 = vrot.lane.b32.xlu0 %v1232_v54, %s5536_s15  ;;  %v873_v24 = vld [vmem:[#allocation2 + $0x100] sm:$0xff]  ;;  %7662 = vst [vmem:[#allocation30_spill] sm:$0xff] %v6179_v39 }
 0x17b   : > { %7660 = vst [vmem:[#allocation28_spill] sm:$0xff] %v6156_v16  ;;  %842 = vst.msk [vmem:[#allocation2 + $0x110] sm:$0xff] %vm804_vm0, %v6156_v16  ;;  %v4961_v41 = vadd.f32 %v4960_v14, %v4959_v10  ;;  %v4962_v45 = vpop.f32.mrb[58].mxu0  ;;  %v1040_v25 = vpack.c.bf16 %v873_v24, %v873_v24  ;;  %v1202_v20 = vsel %vm914_vm1, %v1170_v59, 0.0  ;;  %v1233_v10 = vpack.c.bf16 %v1201_v2, %v1201_v2 }
 0x17c   : > { %1670 = vrot.lane.b32.xlu1 %v1037_v9, %s5536_s15  ;;  %v4963_v54 = vpop.f32.mrb[59].mxu0  ;;  %v1234_v14 = vpack.c.bf16 %v1202_v20, %v1202_v20  ;;  %v1171_v59 = vrot.slane %v6156_v16, 7  ;;  %v916_v2 = vrot.slane %v5718_v6, 7 }
 0x17d   : > { %v758_v13 = vadd.f32 %v4961_v41, %v5773_v40  ;;  %v4964_v51 = vadd.f32 %v4963_v54, %v4962_v45  ;;  %v1039_v41 = vpack.c.bf16 %v6179_v39, %v6179_v39  ;;  %v1047_v54 = vrot.slane %v5809_v5, 1 }
 0x17e   : > { %1676 = vrot.lane.b32.xlu0 %v1040_v25, %s5536_s15  ;;  %v1203_v6 = vsel %vm914_vm1, %v1171_v59, 0.0  ;;  %v950_v19 = vsel %vm914_vm1, %v916_v2, 0.0  ;;  %v917_v59 = vrot.slane %v5809_v5, 7 }
 0x17f   : > { %v6176_v24 = vmax.f32 %v758_v13, 0.0  ;;  %v761_v58 = vadd.f32 %v4964_v51, %v5773_v40  ;;  %v6191_v51 = vpop.permute.xlu0 %1672  ;;  %v982_v62 = vpack.c.bf16 %v950_v19, %v950_v19 }
 0x180   : > { %1770 = vrot.lane.b32.xlu1 %v1233_v10, %s5536_s15  ;;  %7663 = vst [vmem:[#allocation31_spill] sm:$0xff] %v6191_v51  ;;  %v1080_v51 = vsel %vm915_vm2, %v1046_v18, 0.0  ;;  %v874_v21 = vld [vmem:[#allocation2 + $0x108] sm:$0xff] }
 0x181   : > { %7661 = vst [vmem:[#allocation29_spill] sm:$0xff] %v6176_v24  ;;  %843 = vst.msk [vmem:[#allocation2 + $0x118] sm:$0xff] %vm804_vm0, %v6176_v24  ;;  %v6186_v9 = vmax.f32 %v761_v58, 0.0  ;;  %v4965_v20 = vpop.f32.mrb[60].mxu0  ;;  %v1172_v13 = vrot.slane %v6176_v24, 7  ;;  %v6203_v24 = vpop.permute.xlu1 %1640  ;;  %v1112_v18 = vpack.c.bf16 %v1080_v51, %v1080_v51  ;;  %v1041_v51 = vpack.c.bf16 %v874_v21, %v874_v21 }
 0x182   : > { %v4966_v25 = vpop.f32.mrb[61].mxu0  ;;  %1772 = vrot.lane.b32.xlu0 %v1234_v14, %s5536_s15  ;;  %v875_v45 = vld [vmem:[#allocation2 + $0x110] sm:$0xff] }
 0x183   : > { %844 = vst.msk [vmem:[#allocation2 + $0x120] sm:$0xff] %vm804_vm0, %v6186_v9  ;;  %v4967_v10 = vadd.f32 %v4966_v25, %v4965_v20  ;;  %v1042_v58 = vpack.c.bf16 %v875_v45, %v875_v45  ;;  %v1204_v16 = vsel %vm914_vm1, %v1172_v13, 0.0  ;;  %v4968_v14 = vpop.f32.mrb[62].mxu0  ;;  %v1235_v13 = vpack.c.bf16 %v1203_v6, %v1203_v6 }
 0x184   : > { %1674 = vrot.lane.b32.xlu1 %v1039_v41, %s5536_s15  ;;  %v4969_v39 = vpop.f32.mrb[63].mxu0  ;;  %v1081_v41 = vsel %vm915_vm2, %v1047_v54, 0.0  ;;  %v1236_v45 = vpack.c.bf16 %v1204_v16, %v1204_v16  ;;  %v1173_v17 = vrot.slane %v6186_v9, 7  ;;  %v951_v16 = vsel %vm914_vm1, %v917_v59, 0.0 }
 0x185   : > { %v766_v20 = vadd.f32 %v4967_v10, %v5773_v40  ;;  %v4970_v25 = vadd.f32 %v4969_v39, %v4968_v14  ;;  %v1113_v5 = vpack.c.bf16 %v1081_v41, %v1081_v41  ;;  %v1049_v6 = vrot.slane %v5839_v26, 1 }
 0x186   : > { %1680 = vrot.lane.b32.xlu0 %v1042_v58, %s5536_s15  ;;  %v1205_v19 = vsel %vm914_vm1, %v1173_v17, 0.0  ;;  %v1048_v14 = vrot.slane %v5818_v12, 1  ;;  %v1978_v17 = vsel %vm804_vm0, %v982_v62, %v6172_v8  ;;  %v983_v41 = vpack.c.bf16 %v951_v16, %v951_v16  ;;  %v5383_v8 = vld [vmem:[%s7581_s3 + $0x80] sm:$0xff]  }
 0x187   : > { %v6215_v36 = vmax.f32 %v766_v20, 0.0  ;;  %v769_v2 = vadd.f32 %v4970_v25, %v5773_v40 }
 0x188   : > { %v1721_v10 = vpop.permute.xlu0 %1720  ;;  %1774 = vrot.lane.b32.xlu1 %v1235_v13, %s5536_s15  ;;  %v6250_v62 = vsel %vm915_vm2, %v1048_v14, 0.0 }
 0x189   : > { %845 = vst.msk [vmem:[#allocation2 + $0x128] sm:$0xff] %vm804_vm0, %v6215_v36  ;;  %v6221_v39 = vmax.f32 %v769_v2, 0.0  ;;  %v1174_v54 = vrot.slane %v6215_v36, 7  ;;  %v2074_v20 = vsel %vm804_vm0, %v1112_v18, %v1721_v10  ;;  %v1237_v2 = vpack.c.bf16 %v1205_v19, %v1205_v19 }
 0x18a   : > { %v1723_v58 = vpop.permute.xlu1 %1722  ;;  %1776 = vrot.lane.b32.xlu0 %v1236_v45, %s5536_s15  ;;  %v877_v40 = vld [vmem:[#allocation2 + $0x120] sm:$0xff]  ;;  %v918_v45 = vrot.slane %v5818_v12, 7  ;;  %v876_v12 = vld [vmem:[#allocation2 + $0x118] sm:$0xff]  ;;  %v1272_v19 = vrot.slane %v5784_v50, 1 }
 0x18b   : > { %v2077_v25 = vsel %vm804_vm0, %v1113_v5, %v1723_v58  ;;  %846 = vst.msk [vmem:[#allocation2 + $0x130] sm:$0xff] %vm804_vm0, %v6221_v39  ;;  %v1044_v59 = vpack.c.bf16 %v877_v40, %v877_v40  ;;  %v1206_v13 = vsel %vm914_vm1, %v1174_v54, 0.0  ;;  %v6244_v5 = vsel %vm915_vm2, %v1049_v6, 0.0  ;;  %v5384_v40 = vld [vmem:[%s7581_s3 + $0xc8] sm:$0xff]  }
 0x18c   : > { %v4615_v21 = vcombine.low %v2074_v20, %v2077_v25  ;;  %1678 = vrot.lane.b32.xlu1 %v1041_v51, %s5536_s15  ;;  %v1238_v10 = vpack.c.bf16 %v1206_v13, %v1206_v13  ;;  %v919_v54 = vrot.slane %v5839_v26, 7  ;;  %v1115_v26 = vpack.c.bf16 %v6244_v5, %v6244_v5 }
 0x18d   : > { %v952_v6 = vsel %vm914_vm1, %v918_v45, 0.0  ;;  %v1114_v20 = vpack.c.bf16 %v6250_v62, %v6250_v62  ;;  %v1043_v25 = vpack.c.bf16 %v876_v12, %v876_v12 }
 0x18e   : > { %1684 = vrot.lane.b32.xlu0 %v1044_v59, %s5536_s15  ;;  %3199 = vmatprep.mubr.bf16.mxu0 %v4615_v21  ;;  %v1627_v18 = vpop.permute.xlu1 %1626  ;;  %v953_v59 = vsel %vm914_vm1, %v919_v54, 0.0 }
 0x18f   : > { %v1981_v58 = vsel %vm804_vm0, %v983_v41, %v1627_v18  ;;  %v1629_v51 = vpop.permute.xlu0 %1628  ;;  %v5385_v41 = vld [vmem:[%s7581_s3 + $0x88] sm:$0xff]   ;;  %v5386_v18 = vld [vmem:[%s7581_s3 + $0xd0] sm:$0xff]   ;;  %v985_v54 = vpack.c.bf16 %v953_v59, %v953_v59 }
 0x190   : > { %v4614_v16 = vcombine.low %v1978_v17, %v1981_v58  ;;  %1778 = vrot.lane.b32.xlu1 %v1237_v2, %s5536_s15  ;;  %v1175_v17 = vrot.slane %v6221_v39, 7  ;;  %v984_v2 = vpack.c.bf16 %v952_v6, %v952_v6  ;;  %v1304_v58 = vsel %vm915_vm2, %v1272_v19, 0.0  ;;  %v5387_v19 = vld [vmem:[%s7581_s3 + $0x90] sm:$0xff]  }
 0x192   : > { %1780 = vrot.lane.b32.xlu0 %v1238_v10, %s5536_s15  ;;  %v1727_v14 = vpop.permute.xlu1 %1726  ;;  %3200 = vmatmul.mubr.bf16.vlgmr.msra.gmra.mrb[64].mxu0 %v4614_v16  ;;  %v921_v16 = vrot.slane %v5873_v48, 7  ;;  %v1207_v6 = vsel %vm914_vm1, %v1175_v17, 0.0  ;;  %v5388_v48 = vld [vmem:[%s7581_s3 + $0xd8] sm:$0xff]  }
 0x193   : > { %v2083_v13 = vsel %vm804_vm0, %v1115_v26, %v1727_v14  ;;  %v1725_v21 = vpop.permute.xlu0 %1724  ;;  %5084 = vmatpush3.bf16.msra.mxu0 %v5383_v8  ;;  %v920_v8 = vrot.slane %v5851_v32, 7  ;;  %v1336_v32 = vpack.c.bf16 %v1304_v58, %v1304_v58 }
 0x194   : > { %v2080_v45 = vsel %vm804_vm0, %v1114_v20, %v1725_v21  ;;  %1682 = vrot.lane.b32.xlu1 %v1043_v25, %s5536_s15  ;;  %5085 = vmatprep.subr.bf16.mxu0 %v5384_v40  ;;  %v1984_v40 = vsel %vm804_vm0, %v984_v2, %v1629_v51  ;;  %v1117_v51 = vpack.c.bf16 %v5893_v60, %v5893_v60  ;;  %v1274_v20 = vrot.slane %v5805_v3, 1  ;;  %v5390_v2 = vld [vmem:[%s7581_s3 + $0x98] sm:$0xff]  }
 0x195   : > { %v4620_v10 = vcombine.low %v2080_v45, %v2083_v13  ;;  %v954_v25 = vsel %vm914_vm1, %v920_v8, 0.0  ;;  %v1239_v13 = vpack.c.bf16 %v1207_v6, %v1207_v6  ;;  %v955_v21 = vsel %vm914_vm1, %v921_v16, 0.0  ;;  %v878_v45 = vld [vmem:[#allocation2 + $0x128] sm:$0xff] }
 0x196   : > { %1912 = vrot.lane.b32.xlu0 %v5824_v15, %s5536_s15  ;;  %v1631_v12 = vpop.permute.xlu1 %1630  ;;  %v986_v58 = vpack.c.bf16 %v954_v25, %v954_v25  ;;  %v987_v8 = vpack.c.bf16 %v955_v21, %v955_v21  ;;  %v1306_v16 = vsel %vm915_vm2, %v1274_v20, 0.0  ;;  %v1276_v25 = vrot.slane %v5835_v23, 1  ;;  %v5394_v21 = vld [vmem:[%s7581_s3 + $0xa8] sm:$0xff]  }
 0x197   : > { %v1987_v26 = vsel %vm804_vm0, %v985_v54, %v1631_v12  ;;  %v1633_v14 = vpop.permute.xlu0 %1632  ;;  %3207 = vmatprep.mubr.bf16.mxu0 %v4620_v10  ;;  %5086 = vmatpush3.bf16.msra.mxu0 %v5385_v41  ;;  %v5391_v54 = vld [vmem:[%s7581_s3 + $0xe0] sm:$0xff]  }
 0x198   : > { %v4619_v15 = vcombine.low %v1984_v40, %v1987_v26  ;;  %1914 = vrot.lane.b32.xlu1 %v5848_v29, %s5536_s15  ;;  %5087 = vmatprep.subr.bf16.mxu0 %v5386_v18  ;;  %v1116_v29 = vpack.c.bf16 %v5898_v63, %v5898_v63  ;;  %v1273_v18 = vrot.slane %v5793_v53, 1  ;;  %v1045_v26 = vpack.c.bf16 %v878_v45, %v878_v45  ;;  %v5395_v45 = vld [vmem:[%s7581_s3 + $0xf0] sm:$0xff]  }
 0x199   : > { %v1990_v6 = vsel %vm804_vm0, %v986_v58, %v1633_v14  ;;  %v5393_v14 = vld [vmem:[%s7581_s3 + $0xe8] sm:$0xff]  }
 0x19a   : > { %1816 = vrot.lane.b32.xlu0 %v1336_v32, %s5536_s15  ;;  %v1731_v59 = vpop.permute.xlu1 %1730  ;;  %3208 = vmatmul.mubr.bf16.gmra.mrb[68].mxu0 %v4619_v15  ;;  %v1305_v15 = vsel %vm915_vm2, %v1273_v18, 0.0  ;;  %v5392_v32 = vld [vmem:[%s7581_s3 + $0xa0] sm:$0xff]   ;;  %v1308_v18 = vsel %vm915_vm2, %v1276_v25, 0.0  ;;  %v926_v25 = vrot.slane %v5932_v37, 7 }
 0x19b   : > { %v2089_v17 = vsel %vm804_vm0, %v1117_v51, %v1731_v59  ;;  %v1729_v41 = vpop.permute.xlu0 %1728  ;;  %5088 = vmatpush3.bf16.msra.mxu0 %v5387_v19 }
 0x19c   : > { %v2086_v10 = vsel %vm804_vm0, %v1116_v29, %v1729_v41  ;;  %1782 = vrot.lane.b32.xlu1 %v1239_v13, %s5536_s15  ;;  %5089 = vmatprep.subr.bf16.mxu0 %v5388_v48  ;;  %v5411_v48 = vld [vmem:[#allocation2 + $0x50] sm:$0xff]  ;;  %v1337_v29 = vpack.c.bf16 %v1305_v15, %v1305_v15  ;;  %v1275_v13 = vrot.slane %v5813_v7, 1  ;;  %v1055_v41 = vrot.slane %v5922_v28, 1 }
 0x19d   : > { %v4625_v12 = vcombine.low %v2086_v10, %v2089_v17  ;;  %v924_v51 = vrot.slane %v5411_v48, 7  ;;  %v1054_v59 = vrot.slane %v5411_v48, 1 }
 0x19e   : > { %1916 = vrot.lane.b32.xlu0 %v5857_v35, %s5536_s15  ;;  %v1635_v40 = vpop.permute.xlu1 %1634  ;;  %v1338_v35 = vpack.c.bf16 %v1306_v16, %v1306_v16  ;;  %v1307_v58 = vsel %vm915_vm2, %v1275_v13, 0.0  ;;  %v886_v16 = vld [vmem:[#allocation2 + $0x40] sm:$0xff] }
 0x19f   : > { %v1993_v19 = vsel %vm804_vm0, %v987_v8, %v1635_v40  ;;  %3215 = vmatprep.mubr.bf16.mxu0 %v4625_v12  ;;  %5090 = vmatpush3.bf16.msra.mxu0 %v5390_v2  ;;  %v958_v17 = vsel %vm914_vm1, %v924_v51, 0.0  ;;  %v925_v2 = vrot.slane %v5922_v28, 7  ;;  %v1088_v10 = vsel %vm915_vm2, %v1054_v59, 0.0  ;;  %v5396_v12 = vld [vmem:[%s7581_s3 + $0xb0] sm:$0xff]   ;;  %v5397_v40 = vld [vmem:[%s7581_s3 + $0xf8] sm:$0xff]  }
 0x1a0   : > { %v4624_v20 = vcombine.low %v1990_v6, %v1993_v19  ;;  %1686 = vrot.lane.b32.xlu1 %v1045_v26, %s5536_s15  ;;  %5091 = vmatprep.subr.bf16.mxu0 %v5391_v54  ;;  %v990_v54 = vpack.c.bf16 %v958_v17, %v958_v17  ;;  %v1340_v28 = vpack.c.bf16 %v1308_v18, %v1308_v18  ;;  %v1278_v19 = vrot.slane %v5869_v44, 1 }
 0x1a1   : > { %v959_v26 = vsel %vm914_vm1, %v925_v2, 0.0  ;;  %v1120_v6 = vpack.c.bf16 %v1088_v10, %v1088_v10  ;;  %v1339_v15 = vpack.c.bf16 %v1307_v58, %v1307_v58  ;;  %v1277_v51 = vrot.slane %v5843_v27, 1  ;;  %v5380_v58 = vld [vmem:[%s7581_s3 + $0x108] sm:$0xff]  }
 0x1a2   : > { %1820 = vrot.lane.b32.xlu0 %v1338_v35, %s5536_s15  ;;  %3216 = vmatmul.mubr.bf16.gmra.mrb[72].mxu0 %v4624_v20  ;;  %v5398_v20 = vld [vmem:[%s7581_s3 + $0xb8] sm:$0xff]   ;;  %v1057_v59 = vrot.slane %v5955_v61, 1  ;;  %v1310_v17 = vsel %vm915_vm2, %v1278_v19, 0.0  ;;  %v1280_v2 = vrot.slane %v5902_v1, 1  ;;  %v6403_v19 = vld [vmem:[#allocation2 + $0x48] sm:$0xff] }
 0x1a3   : > { %5092 = vmatpush3.bf16.msra.mxu0 %v5392_v32  ;;  %v1470_v32 = vpack.c.bf16 %v886_v16, %v886_v16 }
 0x1a4   : > { %1818 = vrot.lane.b32.xlu1 %v1337_v29, %s5536_s15  ;;  %5093 = vmatprep.subr.bf16.mxu0 %v5393_v14  ;;  %v991_v14 = vpack.c.bf16 %v959_v26, %v959_v26  ;;  %v1056_v29 = vrot.slane %v5932_v37, 1  ;;  %v1279_v37 = vrot.slane %v5877_v49, 1 }
 0x1a6   : > { %1920 = vrot.lane.b32.xlu0 %v6140_v0, %s5536_s15  ;;  %v1089_v0 = vsel %vm915_vm2, %v1055_v41, 0.0  ;;  %v927_v41 = vrot.slane %v5955_v61, 7  ;;  %v960_v61 = vsel %vm914_vm1, %v926_v25, 0.0  ;;  %v1090_v16 = vsel %vm915_vm2, %v1056_v29, 0.0 }
 0x1a7   : > { %5094 = vmatpush3.bf16.msra.mxu0 %v5394_v21  ;;  %v1121_v48 = vpack.c.bf16 %v1089_v0, %v1089_v0  ;;  %v888_v0 = vld [vmem:[#allocation2 + $0x60] sm:$0xff]  ;;  %v1059_v29 = vrot.slane %v5985_v38, 1 }
 0x1a8   : > { %v1737_v8 = vpop.permute.xlu0 %1736  ;;  %1918 = vrot.lane.b32.xlu1 %v5882_v52, %s5536_s15  ;;  %5095 = vmatprep.subr.bf16.mxu0 %v5395_v45  ;;  %v2002_v52 = vsel %vm804_vm0, %v990_v54, %v6203_v24  ;;  %v1309_v54 = vsel %vm915_vm2, %v1277_v51, 0.0 }
 0x1a9   : > { %v2098_v13 = vsel %vm804_vm0, %v1120_v6, %v1737_v8  ;;  %v1342_v8 = vpack.c.bf16 %v1310_v17, %v1310_v17  ;;  %v1341_v6 = vpack.c.bf16 %v1309_v54, %v1309_v54 }
 0x1aa   : > { %1824 = vrot.lane.b32.xlu0 %v1340_v28, %s5536_s15  ;;  %v1091_v28 = vsel %vm915_vm2, %v1057_v59, 0.0  ;;  %v1472_v59 = vpack.c.bf16 %v888_v0, %v888_v0 }
 0x1ab   : > { %5096 = vmatpush3.bf16.msra.mxu0 %v5396_v12  ;;  %v1123_v51 = vpack.c.bf16 %v1091_v28, %v1091_v28 }
 0x1ac   : > { %v1739_v35 = vpop.permute.xlu0 %1738  ;;  %1822 = vrot.lane.b32.xlu1 %v1339_v15, %s5536_s15  ;;  %5097 = vmatprep.subr.bf16.mxu0 %v5397_v40  ;;  %v961_v40 = vsel %vm914_vm1, %v927_v41, 0.0  ;;  %v1311_v15 = vsel %vm915_vm2, %v1279_v37, 0.0 }
 0x1ad   : > { %v1643_v24 = vpop.permute.xlu1 %1642  ;;  %v2101_v21 = vsel %vm804_vm0, %v1121_v48, %v1739_v35  ;;  %v992_v48 = vpack.c.bf16 %v960_v61, %v960_v61  ;;  %v1471_v35 = vpack.c.bf16 %v6403_v19, %v6403_v19 }
 0x1ae   : > { %v2005_v45 = vsel %vm804_vm0, %v991_v14, %v1643_v24  ;;  %1924 = vrot.lane.b32.xlu0 %v1470_v32, %s5536_s15  ;;  %v4635_v18 = vcombine.low %v2098_v13, %v2101_v21  ;;  %v6412_v32 = vld [vmem:[#allocation2 + $0x118] sm:$0xff]  ;;  %v5381_v14 = vld [vmem:[%s7581_s3 + $0x110] sm:$0xff]   ;;  %v1058_v24 = vrot.slane %v5966_v11, 1 }
 0x1af   : > { %v4634_v10 = vcombine.low %v2002_v52, %v2005_v45  ;;  %5098 = vmatpush3.bf16.msra.mxu0 %v5398_v20  ;;  %v6410_v52 = vld [vmem:[#allocation2 + $0x110] sm:$0xff]  ;;  %v1122_v20 = vpack.c.bf16 %v1090_v16, %v1090_v16  ;;  %v1523_v41 = vrot.slane %v6412_v32, 1 }
 0x1b0   : > { %3231 = vmatprep.mubr.bf16.mxu1 %v4635_v18  ;;  %v1645_v12 = vpop.permute.xlu0 %1644  ;;  %1922 = vrot.lane.b32.xlu1 %v6128_v55, %s5536_s15  ;;  %v1312_v55 = vsel %vm915_vm2, %v1280_v2, 0.0  ;;  %v1522_v17 = vrot.slane %v6410_v52, 1  ;;  %v928_v2 = vrot.slane %v5966_v11, 7  ;;  %v1093_v11 = vsel %vm915_vm2, %v1059_v29, 0.0 }
 0x1b1   : > { %3232 = vmatmul.mubr.bf16.vlgmr.msra.gmra.mrb[0].mxu1 %v4634_v10  ;;  %v1344_v37 = vpack.c.bf16 %v1312_v55, %v1312_v55  ;;  %v929_v10 = vrot.slane %v5985_v38, 7  ;;  %v2008_v54 = vsel %vm804_vm0, %v992_v48, %v1645_v12  ;;  %v1092_v38 = vsel %vm915_vm2, %v1058_v24, 0.0 }
 0x1b2   : > { %1828 = vrot.lane.b32.xlu0 %v1342_v8, %s5536_s15  ;;  %v1743_v26 = vpop.permute.xlu1 %1742  ;;  %5216 = vmatpush3.bf16.msra.mxu1 %v5949_v56  ;;  %v993_v56 = vpack.c.bf16 %v961_v40, %v961_v40  ;;  %v1282_v8 = vrot.slane %v5919_v22, 1  ;;  %v6434_v28 = vsel %vm915_vm2, %v1522_v17, 0.0  ;;  %v6446_v12 = vsel %vm915_vm2, %v1523_v41, 0.0  ;;  %v6448_v40 = vld [vmem:[#allocation2 + $0x70] sm:$0xff] }
 0x1b3   : > { %5217 = vmatprep.subr.bf16.mxu1 %v5380_v58  ;;  %v2107_v13 = vsel %vm804_vm0, %v1123_v51, %v1743_v26  ;;  %7664 = vst [vmem:[#allocation32_spill] sm:$0xff] %v6434_v28  ;;  %7665 = vst [vmem:[#allocation33_spill] sm:$0xff] %v6446_v12  ;;  %v1343_v48 = vpack.c.bf16 %v1311_v15, %v1311_v15  ;;  %v963_v51 = vsel %vm914_vm1, %v929_v10, 0.0  ;;  %v7673_v28 = vld [vmem:[#allocation14_spill] sm:$0xff] }
 0x1b4   : > { %v1741_v25 = vpop.permute.xlu0 %1740  ;;  %1826 = vrot.lane.b32.xlu1 %v1341_v6, %s5536_s15  ;;  %v962_v6 = vsel %vm914_vm1, %v928_v2, 0.0  ;;  %v1474_v29 = vpack.c.bf16 %v6448_v40, %v6448_v40  ;;  %v1314_v24 = vsel %vm915_vm2, %v1282_v8, 0.0  ;;  %v995_v17 = vpack.c.bf16 %v963_v51, %v963_v51 }
 0x1b5   : > { %v2104_v21 = vsel %vm804_vm0, %v1122_v20, %v1741_v25  ;;  %v1125_v20 = vpack.c.bf16 %v1093_v11, %v1093_v11  ;;  %v6457_v25 = vld [vmem:[#allocation2 + $0x68] sm:$0xff]  ;;  %v994_v15 = vpack.c.bf16 %v962_v6, %v962_v6  ;;  %v1061_v2 = vrot.slane %v6026_v42, 1 }
 0x1b6   : > { %v4640_v45 = vcombine.low %v2104_v21, %v2107_v13  ;;  %1928 = vrot.lane.b32.xlu0 %v1472_v59, %s5536_s15  ;;  %v1647_v18 = vpop.permute.xlu1 %1646  ;;  %5218 = vmatpush3.bf16.msra.mxu1 %v5380_v58  ;;  %v5389_v58 = vld [vmem:[%s7581_s3 + $0x118] sm:$0xff]   ;;  %v1281_v59 = vrot.slane %v5907_v4, 1  ;;  %v1501_v8 = vrot.slane %v6114_v31, 1  ;;  %v930_v6 = vrot.slane %v5995_v47, 7 }
 0x1b7   : > { %v2011_v61 = vsel %vm804_vm0, %v993_v56, %v1647_v18  ;;  %5219 = vmatprep.subr.bf16.mxu1 %v5381_v14  ;;  %v1060_v18 = vrot.slane %v5995_v47, 1  ;;  %v1095_v51 = vsel %vm915_vm2, %v1061_v2, 0.0  ;;  %v1290_v12 = vrot.slane %v7673_v28, 1 }
 0x1b8   : > { %v4639_v16 = vcombine.low %v2008_v54, %v2011_v61  ;;  %v1649_v0 = vpop.permute.xlu0 %1648  ;;  %1926 = vrot.lane.b32.xlu1 %v1471_v35, %s5536_s15  ;;  %3239 = vmatprep.mubr.bf16.mxu1 %v4640_v45  ;;  %v1124_v35 = vpack.c.bf16 %v1092_v38, %v1092_v38  ;;  %v1473_v45 = vpack.c.bf16 %v6457_v25, %v6457_v25  ;;  %v1313_v61 = vsel %vm915_vm2, %v1281_v59, 0.0 }
 0x1b9   : > { %v2014_v10 = vsel %vm804_vm0, %v994_v15, %v1649_v0  ;;  %v1346_v38 = vpack.c.bf16 %v1314_v24, %v1314_v24  ;;  %v1284_v0 = vrot.slane %v5951_v57, 1  ;;  %v1345_v31 = vpack.c.bf16 %v1313_v61, %v1313_v61 }
 0x1ba   : > { %1832 = vrot.lane.b32.xlu0 %v1344_v37, %s5536_s15  ;;  %3240 = vmatmul.mubr.bf16.gmra.mrb[4].mxu1 %v4639_v16  ;;  %v1747_v55 = vpop.permute.xlu1 %1746  ;;  %v1500_v37 = vrot.slane %v6122_v43, 1  ;;  %v1283_v59 = vrot.slane %v5926_v30, 1  ;;  %v6498_v15 = vsel %vm915_vm2, %v1501_v8, 0.0 }
 0x1bb   : > { %5220 = vmatpush3.bf16.msra.mxu1 %v5381_v14  ;;  %v2113_v13 = vsel %vm804_vm0, %v1125_v20, %v1747_v55  ;;  %v6480_v55 = vld [vmem:[#allocation2 + $0x80] sm:$0xff]  ;;  %v931_v20 = vrot.slane %v6026_v42, 7 }
 0x1bc   : > { %v1745_v56 = vpop.permute.xlu0 %1744  ;;  %1830 = vrot.lane.b32.xlu1 %v1343_v48, %s5536_s15  ;;  %5221 = vmatprep.subr.bf16.mxu1 %v5389_v58  ;;  %v6491_v47 = vsel %vm915_vm2, %v1500_v37, 0.0  ;;  %v1476_v42 = vpack.c.bf16 %v6480_v55, %v6480_v55 }
 0x1bd   : > { %v2110_v21 = vsel %vm804_vm0, %v1124_v35, %v1745_v56  ;;  %v6493_v35 = vld [vmem:[#allocation2 + $0x78] sm:$0xff]  ;;  %v5412_v56 = vld [vmem:[#allocation2 + $0xa0] sm:$0xff]  ;;  %v965_v37 = vsel %vm914_vm1, %v931_v20, 0.0 }
 0x1be   : > { %v4645_v41 = vcombine.low %v2110_v21, %v2113_v13  ;;  %1932 = vrot.lane.b32.xlu0 %v1474_v29, %s5536_s15  ;;  %v1651_v14 = vpop.permute.xlu1 %1650  ;;  %v1062_v29 = vrot.slane %v5412_v56, 1  ;;  %v932_v24 = vrot.slane %v5412_v56, 7  ;;  %v964_v21 = vsel %vm914_vm1, %v930_v6, 0.0 }
 0x1bf   : > { %v2017_v54 = vsel %vm804_vm0, %v995_v17, %v1651_v14  ;;  %5222 = vmatpush3.bf16.msra.mxu1 %v5389_v58  ;;  %v1094_v58 = vsel %vm915_vm2, %v1060_v18, 0.0  ;;  %v1316_v14 = vsel %vm915_vm2, %v1284_v0, 0.0  ;;  %v1118_v18 = vpack.c.bf16 %v6491_v47, %v6491_v47 }
 0x1c0   : > { %v4644_v16 = vcombine.low %v2014_v10, %v2017_v54  ;;  %v1653_v11 = vpop.permute.xlu0 %1652  ;;  %1930 = vrot.lane.b32.xlu1 %v1473_v45, %s5536_s15  ;;  %3247 = vmatprep.mubr.bf16.mxu1 %v4645_v41  ;;  %v1126_v17 = vpack.c.bf16 %v1094_v58, %v1094_v58  ;;  %v1127_v41 = vpack.c.bf16 %v1095_v51, %v1095_v51  ;;  %v1063_v10 = vrot.slane %v6054_v34, 1 }
 0x1c1   : > { %v1475_v2 = vpack.c.bf16 %v6493_v35, %v6493_v35  ;;  %v1119_v54 = vpack.c.bf16 %v6498_v15, %v6498_v15  ;;  %v1348_v58 = vpack.c.bf16 %v1316_v14, %v1316_v14  ;;  %v997_v56 = vpack.c.bf16 %v965_v37, %v965_v37 }
 0x1c2   : > { %1836 = vrot.lane.b32.xlu0 %v1346_v38, %s5536_s15  ;;  %3248 = vmatmul.mubr.bf16.gmra.mrb[8].mxu1 %v4644_v16  ;;  %v1735_v48 = vpop.permute.xlu1 %1734  ;;  %v1315_v16 = vsel %vm915_vm2, %v1283_v59, 0.0  ;;  %v996_v38 = vpack.c.bf16 %v964_v21, %v964_v21  ;;  %v966_v37 = vsel %vm914_vm1, %v932_v24, 0.0 }
 0x1c3   : > { %v2095_v51 = vsel %vm804_vm0, %v1119_v54, %v1735_v48  ;;  %v1347_v21 = vpack.c.bf16 %v1315_v16, %v1315_v16 }
 0x1c4   : > { %v1749_v13 = vpop.permute.xlu0 %1748  ;;  %1834 = vrot.lane.b32.xlu1 %v1345_v31, %s5536_s15  ;;  %v1096_v31 = vsel %vm915_vm2, %v1062_v29, 0.0  ;;  %v933_v29 = vrot.slane %v6054_v34, 7  ;;  %v2020_v48 = vsel %vm804_vm0, %v996_v38, %v1653_v11  ;;  %v6541_v34 = vld [vmem:[#allocation2 + $0x88] sm:$0xff] }
 0x1c5   : > { %v2116_v61 = vsel %vm804_vm0, %v1126_v17, %v1749_v13  ;;  %v6526_v13 = vld [vmem:[#allocation2 + $0x90] sm:$0xff]  ;;  %v1477_v24 = vpack.c.bf16 %v6541_v34, %v6541_v34 }
 0x1c6   : > { %1936 = vrot.lane.b32.xlu0 %v1476_v42, %s5536_s15  ;;  %v1751_v45 = vpop.permute.xlu1 %1750  ;;  %v1286_v42 = vrot.slane %v5981_v33, 1  ;;  %v967_v38 = vsel %vm914_vm1, %v933_v29, 0.0 }
 0x1c7   : > { %v2119_v8 = vsel %vm804_vm0, %v1127_v41, %v1751_v45  ;;  %v1097_v41 = vsel %vm915_vm2, %v1063_v10, 0.0  ;;  %v1128_v45 = vpack.c.bf16 %v1096_v31, %v1096_v31  ;;  %v1478_v10 = vpack.c.bf16 %v6526_v13, %v6526_v13 }
 0x1c8   : > { %v4650_v6 = vcombine.low %v2116_v61, %v2119_v8  ;;  %v1733_v0 = vpop.permute.xlu0 %1732  ;;  %1934 = vrot.lane.b32.xlu1 %v1475_v2, %s5536_s15  ;;  %v1129_v8 = vpack.c.bf16 %v1097_v41, %v1097_v41  ;;  %v1318_v11 = vsel %vm915_vm2, %v1286_v42, 0.0  ;;  %v999_v29 = vpack.c.bf16 %v967_v38, %v967_v38  ;;  %v7671_v38 = vld [vmem:[#allocation11_spill] sm:$0xff] }
 0x1c9   : > { %v2092_v20 = vsel %vm804_vm0, %v1118_v18, %v1733_v0  ;;  %v7666_v18 = vld [vmem:[#allocation9_spill] sm:$0xff] }
 0x1ca   : > { %v4630_v17 = vcombine.low %v2092_v20, %v2095_v51  ;;  %1840 = vrot.lane.b32.xlu0 %v1348_v58, %s5536_s15  ;;  %3255 = vmatprep.mubr.bf16.mxu1 %v4650_v6  ;;  %v1655_v59 = vpop.permute.xlu1 %1654  ;;  %v1285_v2 = vrot.slane %v7666_v18, 1  ;;  %v7667_v6 = vld [vmem:[#allocation16_spill] sm:$0xff]  ;;  %v7668_v58 = vld [vmem:[#allocation19_spill] sm:$0xff]  ;;  %v998_v51 = vpack.c.bf16 %v966_v37, %v966_v37 }
 0x1cb   : > { %v2023_v14 = vsel %vm804_vm0, %v997_v56, %v1655_v59  ;;  %v1064_v0 = vrot.slane %v7667_v6, 1  ;;  %v1065_v31 = vrot.slane %v7668_v58, 1  ;;  %v934_v41 = vrot.slane %v7667_v6, 7 }
 0x1cc   : > { %v4649_v54 = vcombine.low %v2020_v48, %v2023_v14  ;;  %v1753_v61 = vpop.permute.xlu0 %1752  ;;  %1838 = vrot.lane.b32.xlu1 %v1347_v21, %s5536_s15  ;;  %3223 = vmatprep.mubr.bf16.mxu0 %v4630_v17  ;;  %v1317_v42 = vsel %vm915_vm2, %v1285_v2, 0.0  ;;  %v1350_v21 = vpack.c.bf16 %v1318_v11, %v1318_v11  ;;  %v6558_v48 = vld [vmem:[#allocation2 + $0xb0] sm:$0xff]  ;;  %v1287_v6 = vrot.slane %v7671_v38, 1 }
 0x1cd   : > { %v2122_v20 = vsel %vm804_vm0, %v1128_v45, %v1753_v61  ;;  %v7669_v14 = vld [vmem:[#allocation12_spill] sm:$0xff]  ;;  %v1098_v37 = vsel %vm915_vm2, %v1064_v0, 0.0  ;;  %v1349_v2 = vpack.c.bf16 %v1317_v42, %v1317_v42  ;;  %v1099_v61 = vsel %vm915_vm2, %v1065_v31, 0.0 }
 0x1ce   : > { %1940 = vrot.lane.b32.xlu0 %v1478_v10, %s5536_s15  ;;  %3256 = vmatmul.mubr.bf16.gmra.mrb[12].mxu1 %v4649_v54  ;;  %v1755_v16 = vpop.permute.xlu1 %1754  ;;  %v1288_v54 = vrot.slane %v7669_v14, 1  ;;  %v935_v10 = vrot.slane %v7668_v58, 7  ;;  %v1480_v0 = vpack.c.bf16 %v6558_v48, %v6558_v48  ;;  %v1130_v58 = vpack.c.bf16 %v1098_v37, %v1098_v37 }
 0x1cf   : > { %v2125_v56 = vsel %vm804_vm0, %v1129_v8, %v1755_v16  ;;  %v7670_v8 = vld [vmem:[#allocation25_spill] sm:$0xff]  ;;  %v1131_v42 = vpack.c.bf16 %v1099_v61, %v1099_v61 }
 0x1d0   : > { %v4655_v17 = vcombine.low %v2122_v20, %v2125_v56  ;;  %v1661_v59 = vpop.permute.xlu0 %1660  ;;  %1938 = vrot.lane.b32.xlu1 %v1477_v24, %s5536_s15  ;;  %v2026_v11 = vsel %vm804_vm0, %v998_v51, %v7670_v8  ;;  %v6570_v24 = vld [vmem:[#allocation2 + $0x98] sm:$0xff]  ;;  %v1320_v51 = vsel %vm915_vm2, %v1288_v54, 0.0  ;;  %v7672_v8 = vld [vmem:[#allocation22_spill] sm:$0xff]  ;;  %v1319_v54 = vsel %vm915_vm2, %v1287_v6, 0.0 }
 0x1d1   : > { %v1479_v31 = vpack.c.bf16 %v6570_v24, %v6570_v24  ;;  %v1351_v6 = vpack.c.bf16 %v1319_v54, %v1319_v54 }
 0x1d2   : > { %1844 = vrot.lane.b32.xlu0 %v1350_v21, %s5536_s15  ;;  %3263 = vmatprep.mubr.bf16.mxu1 %v4655_v17  ;;  %v1659_v45 = vpop.permute.xlu1 %1658  ;;  %v968_v17 = vsel %vm914_vm1, %v934_v41, 0.0 }
 0x1d3   : > { %v2029_v16 = vsel %vm804_vm0, %v999_v29, %v1659_v45  ;;  %v969_v29 = vsel %vm914_vm1, %v935_v10, 0.0  ;;  %v5413_v45 = vld [vmem:[#allocation2 + $0xc0] sm:$0xff] }
 0x1d4   : > { %v4654_v20 = vcombine.low %v2026_v11, %v2029_v16  ;;  %v1757_v56 = vpop.permute.xlu0 %1756  ;;  %1842 = vrot.lane.b32.xlu1 %v1349_v2, %s5536_s15  ;;  %v1066_v2 = vrot.slane %v5413_v45, 1  ;;  %v1067_v11 = vrot.slane %v7672_v8, 1  ;;  %v936_v26 = vrot.slane %v5413_v45, 7  ;;  %v6591_v10 = vld [vmem:[#allocation2 + $0xc0] sm:$0xff] }
 0x1d5   : > { %v2128_v37 = vsel %vm804_vm0, %v1130_v58, %v1757_v56  ;;  %v1001_v14 = vpack.c.bf16 %v969_v29, %v969_v29 }
 0x1d6   : > { %1944 = vrot.lane.b32.xlu0 %v1480_v0, %s5536_s15  ;;  %3264 = vmatmul.mubr.bf16.gmra.mrb[16].mxu1 %v4654_v20  ;;  %v1759_v21 = vpop.permute.xlu1 %1758  ;;  %v1352_v20 = vpack.c.bf16 %v1320_v51, %v1320_v51  ;;  %v1000_v0 = vpack.c.bf16 %v968_v17, %v968_v17  ;;  %v1100_v58 = vsel %vm915_vm2, %v1066_v2, 0.0 }
 0x1d7   : > { %v2131_v61 = vsel %vm804_vm0, %v1131_v42, %v1759_v21  ;;  %v1101_v42 = vsel %vm915_vm2, %v1067_v11, 0.0  ;;  %v7674_v21 = vld [vmem:[#allocation13_spill] sm:$0xff]  ;;  %v1132_v2 = vpack.c.bf16 %v1100_v58, %v1100_v58 }
 0x1d8   : > { %v4660_v16 = vcombine.low %v2128_v37, %v2131_v61  ;;  %v1665_v41 = vpop.permute.xlu0 %1664  ;;  %1942 = vrot.lane.b32.xlu1 %v1479_v31, %s5536_s15  ;;  %v937_v31 = vrot.slane %v7672_v8, 7  ;;  %v2032_v51 = vsel %vm804_vm0, %v1000_v0, %v1661_v59  ;;  %v1289_v29 = vrot.slane %v7674_v21, 1  ;;  %v5414_v58 = vld [vmem:[#allocation2 + $0x38] sm:$0xff] }
 0x1d9   : > { %v1482_v61 = vpack.c.bf16 %v6591_v10, %v6591_v10  ;;  %v1133_v54 = vpack.c.bf16 %v1101_v42, %v1101_v42  ;;  %v1322_v8 = vsel %vm915_vm2, %v1290_v12, 0.0  ;;  %v970_v59 = vsel %vm914_vm1, %v936_v26, 0.0 }
 0x1da   : > { %1848 = vrot.lane.b32.xlu0 %v1352_v20, %s5536_s15  ;;  %3271 = vmatprep.mubr.bf16.mxu1 %v4660_v16  ;;  %v1663_v56 = vpop.permute.xlu1 %1662  ;;  %v6606_v16 = vld [vmem:[#allocation2 + $0xb8] sm:$0xff]  ;;  %v971_v20 = vsel %vm914_vm1, %v937_v31, 0.0  ;;  %v1321_v12 = vsel %vm915_vm2, %v1289_v29, 0.0  ;;  %v5415_v31 = vld [vmem:[#allocation2 + $0xd0] sm:$0xff] }
 0x1db   : > { %v2035_v17 = vsel %vm804_vm0, %v1001_v14, %v1663_v56  ;;  %v1481_v11 = vpack.c.bf16 %v6606_v16, %v6606_v16  ;;  %v1068_v28 = vrot.slane %v5415_v31, 1 }
 0x1dc   : > { %v4659_v45 = vcombine.low %v2032_v51, %v2035_v17  ;;  %v1761_v37 = vpop.permute.xlu0 %1760  ;;  %1846 = vrot.lane.b32.xlu1 %v1351_v6, %s5536_s15  ;;  %v923_v6 = vrot.slane %v5414_v58, 7  ;;  %v1354_v51 = vpack.c.bf16 %v1322_v8, %v1322_v8  ;;  %v922_v17 = vrot.slane %v6122_v43, 7 }
 0x1dd   : > { %v2134_v0 = vsel %vm804_vm0, %v1132_v2, %v1761_v37  ;;  %v6625_v37 = vld [vmem:[#allocation2 + $0xd0] sm:$0xff]  ;;  %v7675_v2 = vld [vmem:[#allocation17_spill] sm:$0xff]  ;;  %v938_v58 = vrot.slane %v5415_v31, 7 }
 0x1de   : > { %1948 = vrot.lane.b32.xlu0 %v1482_v61, %s5536_s15  ;;  %3272 = vmatmul.mubr.bf16.gmra.mrb[20].mxu1 %v4659_v45  ;;  %v1763_v14 = vpop.permute.xlu1 %1762  ;;  %v1002_v45 = vpack.c.bf16 %v970_v59, %v970_v59  ;;  %v1003_v61 = vpack.c.bf16 %v971_v20, %v971_v20  ;;  %v957_v43 = vsel %vm914_vm1, %v923_v6, 0.0  ;;  %v7677_v59 = vld [vmem:[#allocation15_spill] sm:$0xff] }
 0x1df   : > { %v2137_v56 = vsel %vm804_vm0, %v1133_v54, %v1763_v14  ;;  %v1292_v54 = vrot.slane %v7675_v2, 1  ;;  %v1353_v14 = vpack.c.bf16 %v1321_v12, %v1321_v12  ;;  %v1291_v20 = vrot.slane %v7677_v59, 1 }
 0x1e0   : > { %v4665_v26 = vcombine.low %v2134_v0, %v2137_v56  ;;  %v6621_v42 = vpop.permute.xlu0 %1668  ;;  %1946 = vrot.lane.b32.xlu1 %v1481_v11, %s5536_s15  ;;  %v7676_v0 = vld [vmem:[#allocation27_spill] sm:$0xff]  ;;  %v2038_v11 = vsel %vm804_vm0, %v1002_v45, %v1665_v41  ;;  %v956_v12 = vsel %vm914_vm1, %v922_v17, 0.0  ;;  %v1102_v41 = vsel %vm915_vm2, %v1068_v28, 0.0 }
 0x1e1   : > { %v1069_v56 = vrot.slane %v7676_v0, 1  ;;  %v1324_v6 = vsel %vm915_vm2, %v1292_v54, 0.0  ;;  %v6653_v28 = vpack.c.bf16 %v956_v12, %v956_v12  ;;  %v1323_v0 = vsel %vm915_vm2, %v1291_v20, 0.0  ;;  %v7679_v20 = vld [vmem:[#allocation20_spill] sm:$0xff] }
 0x1e2   : > { %1852 = vrot.lane.b32.xlu0 %v1354_v51, %s5536_s15  ;;  %3279 = vmatprep.mubr.bf16.mxu1 %v4665_v26  ;;  %v1667_v29 = vpop.permute.xlu1 %1666  ;;  %v1484_v26 = vpack.c.bf16 %v6625_v37, %v6625_v37  ;;  %v6642_v51 = vld [vmem:[#allocation2 + $0xc8] sm:$0xff]  ;;  %v972_v54 = vsel %vm914_vm1, %v938_v58, 0.0  ;;  %v1294_v59 = vrot.slane %v7679_v20, 1 }
 0x1e3   : > { %v2041_v8 = vsel %vm804_vm0, %v1003_v61, %v1667_v29  ;;  %v1483_v61 = vpack.c.bf16 %v6642_v51, %v6642_v51  ;;  %v1103_v31 = vsel %vm915_vm2, %v1069_v56, 0.0  ;;  %v5416_v29 = vld [vmem:[#allocation2 + $0xd8] sm:$0xff] }
 0x1e4   : > { %v4664_v21 = vcombine.low %v2038_v11, %v2041_v8  ;;  %v1765_v38 = vpop.permute.xlu0 %1764  ;;  %1850 = vrot.lane.b32.xlu1 %v1353_v14, %s5536_s15  ;;  %v939_v17 = vrot.slane %v5416_v29, 7  ;;  %v6651_v14 = vpack.c.bf16 %v957_v43, %v957_v43  ;;  %v1356_v8 = vpack.c.bf16 %v1324_v6, %v1324_v6  ;;  %v6664_v29 = vld [vmem:[#allocation2 + $0xe0] sm:$0xff] }
 0x1e5   : > { %v1135_v12 = vpack.c.bf16 %v1103_v31, %v1103_v31  ;;  %7678 = vst [vmem:[#allocation16_spill] sm:$0xff] %v6664_v29 }
 0x1e6   : > { %1952 = vrot.lane.b32.xlu0 %v1484_v26, %s5536_s15  ;;  %3280 = vmatmul.mubr.bf16.gmra.mrb[24].mxu1 %v4664_v21  ;;  %v1639_v45 = vpop.permute.xlu1 %1638  ;;  %v1134_v21 = vpack.c.bf16 %v1102_v41, %v1102_v41  ;;  %v5417_v26 = vld [vmem:[#allocation2 + $0xf0] sm:$0xff]  ;;  %v1355_v41 = vpack.c.bf16 %v1323_v0, %v1323_v0  ;;  %v973_v6 = vsel %vm914_vm1, %v939_v17, 0.0  ;;  %v1486_v17 = vpack.c.bf16 %v6664_v29, %v6664_v29  ;;  %v6741_v29 = vld [vmem:[#allocation2 + $0x108] sm:$0xff] }
 0x1e7   : > { %v1070_v2 = vrot.slane %v5417_v26, 1  ;;  %v1999_v56 = vsel %vm804_vm0, %v6651_v14, %v1639_v45  ;;  %v940_v30 = vrot.slane %v5417_v26, 7  ;;  %v1004_v0 = vpack.c.bf16 %v972_v54, %v972_v54 }
 0x1e8   : > { %v1637_v11 = vpop.permute.xlu0 %1636  ;;  %1950 = vrot.lane.b32.xlu1 %v1483_v61, %s5536_s15  ;;  %v7680_v61 = vld [vmem:[#allocation30_spill] sm:$0xff]  ;;  %v2140_v45 = vsel %vm804_vm0, %v1134_v21, %v1765_v38  ;;  %v1326_v38 = vsel %vm915_vm2, %v1294_v59, 0.0  ;;  %v5418_v21 = vld [vmem:[#allocation2 + $0xf8] sm:$0xff] }
 0x1e9   : > { %v1996_v43 = vsel %vm804_vm0, %v6653_v28, %v1637_v11  ;;  %v1071_v18 = vrot.slane %v7680_v61, 1  ;;  %v7681_v11 = vld [vmem:[#allocation18_spill] sm:$0xff]  ;;  %v6679_v61 = vld [vmem:[#allocation2 + $0xd8] sm:$0xff]  ;;  %v941_v26 = vrot.slane %v5418_v21, 7  ;;  %v2044_v54 = vsel %vm804_vm0, %v1004_v0, %v6621_v42  ;;  %v7683_v21 = vld [vmem:[#allocation23_spill] sm:$0xff] }
 0x1ea   : > { %v4629_v33 = vcombine.low %v1996_v43, %v1999_v56  ;;  %1856 = vrot.lane.b32.xlu0 %v1356_v8, %s5536_s15  ;;  %v1767_v58 = vpop.permute.xlu1 %1766  ;;  %v1293_v31 = vrot.slane %v7681_v11, 1  ;;  %v1104_v56 = vsel %vm915_vm2, %v1070_v2, 0.0  ;;  %v1005_v8 = vpack.c.bf16 %v973_v6, %v973_v6  ;;  %v5419_v0 = vld [vmem:[#allocation2 + $0x100] sm:$0xff] }
 0x1eb   : > { %v2143_v57 = vsel %vm804_vm0, %v1135_v12, %v1767_v58  ;;  %v1485_v2 = vpack.c.bf16 %v6679_v61, %v6679_v61  ;;  %v1136_v12 = vpack.c.bf16 %v1104_v56, %v1104_v56  ;;  %v1296_v42 = vrot.slane %v7683_v21, 1  ;;  %v7685_v21 = vld [vmem:[#allocation21_spill] sm:$0xff] }
 0x1ec   : > { %v4670_v22 = vcombine.low %v2140_v45, %v2143_v57  ;;  %v1769_v43 = vpop.permute.xlu0 %1768  ;;  %1854 = vrot.lane.b32.xlu1 %v1355_v41, %s5536_s15  ;;  %3224 = vmatmul.mubr.bf16.gmra.mrb[76].mxu0 %v4629_v33  ;;  %v1105_v33 = vsel %vm915_vm2, %v1071_v18, 0.0  ;;  %v1325_v59 = vsel %vm915_vm2, %v1293_v31, 0.0  ;;  %v1358_v18 = vpack.c.bf16 %v1326_v38, %v1326_v38 }
 0x1ed   : > { %v1137_v45 = vpack.c.bf16 %v1105_v33, %v1105_v33  ;;  %v1072_v31 = vrot.slane %v5419_v0, 1  ;;  %v2146_v38 = vsel %vm804_vm0, %v1136_v12, %v1769_v43  ;;  %v6706_v33 = vld [vmem:[#allocation2 + $0xe8] sm:$0xff]  ;;  %v1295_v20 = vrot.slane %v7685_v21, 1 }
 0x1ee   : > { %1956 = vrot.lane.b32.xlu0 %v1486_v17, %s5536_s15  ;;  %3287 = vmatprep.mubr.bf16.mxu1 %v4670_v22  ;;  %v1671_v57 = vpop.permute.xlu1 %1670  ;;  %v974_v22 = vsel %vm914_vm1, %v940_v30, 0.0  ;;  %v6698_v17 = vld [vmem:[#allocation2 + $0x100] sm:$0xff]  ;;  %v975_v30 = vsel %vm914_vm1, %v941_v26, 0.0  ;;  %7684 = vst [vmem:[#allocation25_spill] sm:$0xff] %v6706_v33  ;;  %v1487_v26 = vpack.c.bf16 %v6706_v33, %v6706_v33  ;;  %v942_v11 = vrot.slane %v5419_v0, 7 }
 0x1ef   : > { %v2047_v58 = vsel %vm804_vm0, %v1005_v8, %v1671_v57  ;;  %7682 = vst [vmem:[#allocation19_spill] sm:$0xff] %v6698_v17  ;;  %v1357_v8 = vpack.c.bf16 %v1325_v59, %v1325_v59  ;;  %v5420_v57 = vld [vmem:[#allocation2 + $0x108] sm:$0xff]  ;;  %v1488_v59 = vpack.c.bf16 %v6698_v17, %v6698_v17  ;;  %v1328_v43 = vsel %vm915_vm2, %v1296_v42, 0.0 }
 0x1f0   : > { %v4669_v41 = vcombine.low %v2044_v54, %v2047_v58  ;;  %v6695_v6 = vpop.permute.xlu0 %1676  ;;  %1954 = vrot.lane.b32.xlu1 %v1485_v2, %s5536_s15  ;;  %v1073_v54 = vrot.slane %v5420_v57, 1  ;;  %v1006_v58 = vpack.c.bf16 %v974_v22, %v974_v22  ;;  %v1007_v22 = vpack.c.bf16 %v975_v30, %v975_v30 }
 0x1f1   : > { %v1106_v12 = vsel %vm915_vm2, %v1072_v31, 0.0  ;;  %v1327_v30 = vsel %vm915_vm2, %v1295_v20, 0.0  ;;  %v1360_v31 = vpack.c.bf16 %v1328_v43, %v1328_v43 }
 0x1f2   : > { %1860 = vrot.lane.b32.xlu0 %v1358_v18, %s5536_s15  ;;  %3288 = vmatmul.mubr.bf16.gmra.mrb[28].mxu1 %v4669_v41  ;;  %v1771_v56 = vpop.permute.xlu1 %1770  ;;  %v1359_v20 = vpack.c.bf16 %v1327_v30, %v1327_v30 }
 0x1f3   : > { %v2149_v2 = vsel %vm804_vm0, %v1137_v45, %v1771_v56  ;;  %v1107_v56 = vsel %vm915_vm2, %v1073_v54, 0.0 }
 0x1f4   : > { %v4675_v18 = vcombine.low %v2146_v38, %v2149_v2  ;;  %v1773_v41 = vpop.permute.xlu0 %1772  ;;  %1858 = vrot.lane.b32.xlu1 %v1357_v8, %s5536_s15  ;;  %v943_v8 = vrot.slane %v5420_v57, 7  ;;  %v7686_v38 = vld [vmem:[#allocation31_spill] sm:$0xff]  ;;  %v1139_v54 = vpack.c.bf16 %v1107_v56, %v1107_v56  ;;  %v7687_v57 = vld [vmem:[#allocation26_spill] sm:$0xff] }
 0x1f5   : > { %v2050_v2 = vsel %vm804_vm0, %v1006_v58, %v7686_v38  ;;  %v1298_v17 = vrot.slane %v7687_v57, 1 }
 0x1f6   : > { %1960 = vrot.lane.b32.xlu0 %v1488_v59, %s5536_s15  ;;  %3295 = vmatprep.mubr.bf16.mxu1 %v4675_v18  ;;  %v1675_v45 = vpop.permute.xlu1 %1674  ;;  %v976_v18 = vsel %vm914_vm1, %v942_v11, 0.0  ;;  %v1138_v59 = vpack.c.bf16 %v1106_v12, %v1106_v12  ;;  %v977_v38 = vsel %vm914_vm1, %v943_v8, 0.0  ;;  %v7688_v12 = vld [vmem:[#allocation24_spill] sm:$0xff] }
 0x1f7   : > { %v2053_v0 = vsel %vm804_vm0, %v1007_v22, %v1675_v45  ;;  %v5421_v22 = vld [vmem:[#allocation2 + $0x110] sm:$0xff]  ;;  %v1297_v56 = vrot.slane %v7688_v12, 1  ;;  %v1009_v33 = vpack.c.bf16 %v977_v38, %v977_v38  ;;  %v1330_v8 = vsel %vm915_vm2, %v1298_v17, 0.0 }
 0x1f8   : > { %v4674_v42 = vcombine.low %v2050_v2, %v2053_v0  ;;  %v6726_v21 = vpop.permute.xlu0 %1680  ;;  %1958 = vrot.lane.b32.xlu1 %v1487_v26, %s5536_s15  ;;  %v1074_v45 = vrot.slane %v5421_v22, 1  ;;  %v5422_v2 = vld [vmem:[#allocation2 + $0x118] sm:$0xff]  ;;  %v2152_v43 = vsel %vm804_vm0, %v1138_v59, %v1773_v41  ;;  %v944_v30 = vrot.slane %v5421_v22, 7 }
 0x1f9   : > { %v1075_v26 = vrot.slane %v5422_v2, 1  ;;  %v1329_v17 = vsel %vm915_vm2, %v1297_v56, 0.0  ;;  %v1362_v38 = vpack.c.bf16 %v1330_v8, %v1330_v8  ;;  %v5424_v8 = vld [vmem:[#allocation2 + $0x18] sm:$0xff] }
 0x1fa   : > { %1864 = vrot.lane.b32.xlu0 %v1360_v31, %s5536_s15  ;;  %3296 = vmatmul.mubr.bf16.gmra.mrb[32].mxu1 %v4674_v42  ;;  %v1775_v58 = vpop.permute.xlu1 %1774  ;;  %v1490_v42 = vpack.c.bf16 %v6410_v52, %v6410_v52  ;;  %v1008_v31 = vpack.c.bf16 %v976_v18, %v976_v18  ;;  %v1108_v41 = vsel %vm915_vm2, %v1074_v45, 0.0  ;;  %v945_v18 = vrot.slane %v5422_v2, 7 }
 0x1fb   : > { %v2155_v11 = vsel %vm804_vm0, %v1139_v54, %v1775_v58  ;;  %v1489_v54 = vpack.c.bf16 %v6741_v29, %v6741_v29  ;;  %v1109_v52 = vsel %vm915_vm2, %v1075_v26, 0.0  ;;  %v5423_v26 = vld [vmem:[#allocation2 + $0x10] sm:$0xff]  ;;  %v1361_v56 = vpack.c.bf16 %v1329_v17, %v1329_v17 }
 0x1fc   : > { %v4680_v0 = vcombine.low %v2152_v43, %v2155_v11  ;;  %v1777_v57 = vpop.permute.xlu0 %1776  ;;  %1862 = vrot.lane.b32.xlu1 %v1359_v20, %s5536_s15  ;;  %v2056_v58 = vsel %vm804_vm0, %v1008_v31, %v6695_v6  ;;  %v1140_v43 = vpack.c.bf16 %v1108_v41, %v1108_v41  ;;  %v1141_v11 = vpack.c.bf16 %v1109_v52, %v1109_v52  ;;  %v7690_v52 = vld [vmem:[#allocation28_spill] sm:$0xff] }
 0x1fd   : > { %v1368_v2 = vrot.slane %v5423_v26, 7  ;;  %v978_v6 = vsel %vm914_vm1, %v944_v30, 0.0  ;;  %v979_v31 = vsel %vm914_vm1, %v945_v18, 0.0  ;;  %v1369_v41 = vrot.slane %v5424_v8, 7 }
 0x1fe   : > { %1964 = vrot.lane.b32.xlu0 %v1490_v42, %s5536_s15  ;;  %3303 = vmatprep.mubr.bf16.mxu1 %v4680_v0  ;;  %v1679_v59 = vpop.permute.xlu1 %1678  ;;  %v6760_v0 = vld [vmem:[#allocation2 + $0x120] sm:$0xff]  ;;  %v7689_v42 = vld [vmem:[#allocation29_spill] sm:$0xff]  ;;  %v1011_v17 = vpack.c.bf16 %v979_v31, %v979_v31 }
 0x1ff   : > { %v2059_v22 = vsel %vm804_vm0, %v1009_v33, %v1679_v59  ;;  %v1300_v12 = vrot.slane %v7689_v42, 1  ;;  %v2158_v59 = vsel %vm804_vm0, %v1140_v43, %v1777_v57  ;;  %v1492_v30 = vpack.c.bf16 %v6760_v0, %v6760_v0  ;;  %v5425_v57 = vld [vmem:[#allocation2 + $0x120] sm:$0xff] }
 0x200   : > { %v4679_v45 = vcombine.low %v2056_v58, %v2059_v22  ;;  %v6757_v20 = vpop.permute.xlu0 %1684  ;;  %1962 = vrot.lane.b32.xlu1 %v1489_v54, %s5536_s15  ;;  %v1299_v58 = vrot.slane %v7690_v52, 1  ;;  %v1400_v18 = vsel %vm914_vm1, %v1368_v2, 0.0  ;;  %v1076_v43 = vrot.slane %v5425_v57, 1  ;;  %v6789_v52 = vld [vmem:[#allocation2 + $0x130] sm:$0xff] }
 0x202   : > { %1868 = vrot.lane.b32.xlu0 %v1362_v38, %s5536_s15  ;;  %3304 = vmatmul.mubr.bf16.gmra.mrb[36].mxu1 %v4679_v45  ;;  %v1779_v33 = vpop.permute.xlu1 %1778  ;;  %v1010_v45 = vpack.c.bf16 %v978_v6, %v978_v6  ;;  %v1332_v38 = vsel %vm915_vm2, %v1300_v12, 0.0  ;;  %v5426_v6 = vld [vmem:[#allocation2 + $0x128] sm:$0xff]  ;;  %v1331_v12 = vsel %vm915_vm2, %v1299_v58, 0.0 }
 0x203   : > { %v2161_v54 = vsel %vm804_vm0, %v1141_v11, %v1779_v33  ;;  %v1491_v33 = vpack.c.bf16 %v6412_v32, %v6412_v32  ;;  %v1077_v31 = vrot.slane %v5426_v6, 1  ;;  %v1432_v32 = vpack.c.bf16 %v1400_v18, %v1400_v18 }
 0x204   : > { %v4685_v22 = vcombine.low %v2158_v59, %v2161_v54  ;;  %v1781_v26 = vpop.permute.xlu0 %1780  ;;  %1866 = vrot.lane.b32.xlu1 %v1361_v56, %s5536_s15  ;;  %v1401_v56 = vsel %vm914_vm1, %v1369_v41, 0.0  ;;  %v2062_v2 = vsel %vm804_vm0, %v1010_v45, %v6726_v21  ;;  %v1302_v41 = vrot.slane %v6215_v36, 1 }
 0x205   : > { %v1433_v42 = vpack.c.bf16 %v1401_v56, %v1401_v56  ;;  %v1110_v21 = vsel %vm915_vm2, %v1076_v43, 0.0  ;;  %v1363_v58 = vpack.c.bf16 %v1331_v12, %v1331_v12  ;;  %v1494_v43 = vpack.c.bf16 %v6789_v52, %v6789_v52  ;;  %v6803_v12 = vld [vmem:[#allocation2 + $0x128] sm:$0xff] }
 0x206   : > { %1968 = vrot.lane.b32.xlu0 %v1492_v30, %s5536_s15  ;;  %3311 = vmatprep.mubr.bf16.mxu1 %v4685_v22  ;;  %v1683_v11 = vpop.permute.xlu1 %1682  ;;  %v1364_v22 = vpack.c.bf16 %v1332_v38, %v1332_v38  ;;  %v946_v30 = vrot.slane %v5425_v57, 7  ;;  %v1301_v57 = vrot.slane %v6186_v9, 1 }
 0x207   : > { %v2065_v8 = vsel %vm804_vm0, %v1011_v17, %v1683_v11  ;;  %v1111_v17 = vsel %vm915_vm2, %v1077_v31, 0.0  ;;  %v947_v11 = vrot.slane %v5426_v6, 7  ;;  %v1334_v6 = vsel %vm915_vm2, %v1302_v41, 0.0 }
 0x208   : > { %v4684_v59 = vcombine.low %v2062_v2, %v2065_v8  ;;  %v1913_v54 = vpop.permute.xlu0 %1912  ;;  %1966 = vrot.lane.b32.xlu1 %v1491_v33, %s5536_s15  ;;  %v1142_v2 = vpack.c.bf16 %v1110_v21, %v1110_v21  ;;  %v1143_v8 = vpack.c.bf16 %v1111_v17, %v1111_v17  ;;  %v980_v31 = vsel %vm914_vm1, %v946_v30, 0.0 }
 0x209   : > { %v2266_v38 = vsel %vm804_vm0, %v1432_v32, %v1913_v54  ;;  %v981_v54 = vsel %vm914_vm1, %v947_v11, 0.0  ;;  %v1333_v41 = vsel %vm915_vm2, %v1301_v57, 0.0  ;;  %v1366_v30 = vpack.c.bf16 %v1334_v6, %v1334_v6 }
 0x20a   : > { %1872 = vrot.lane.b32.xlu0 %v1364_v22, %s5536_s15  ;;  %3312 = vmatmul.mubr.bf16.gmra.mrb[40].mxu1 %v4684_v59  ;;  %v1915_v45 = vpop.permute.xlu1 %1914  ;;  %v1493_v59 = vpack.c.bf16 %v6803_v12, %v6803_v12  ;;  %v2164_v22 = vsel %vm804_vm0, %v1142_v2, %v1781_v26  ;;  %v1013_v17 = vpack.c.bf16 %v981_v54, %v981_v54  ;;  %v5428_v26 = vld [vmem:[#allocation2 + $0x28] sm:$0xff]  ;;  %v1303_v6 = vrot.slane %v6221_v39, 1 }
 0x20b   : > { %v2269_v18 = vsel %vm804_vm0, %v1433_v42, %v1915_v45  ;;  %v1240_v54 = vpack.c.bf16 %v5784_v50, %v5784_v50 }
 0x20c   : > { %v4617_v33 = vcombine.low %v2266_v38, %v2269_v18  ;;  %v1817_v56 = vpop.permute.xlu0 %1816  ;;  %1870 = vrot.lane.b32.xlu1 %v1363_v58, %s5536_s15  ;;  %v1012_v58 = vpack.c.bf16 %v980_v31, %v980_v31  ;;  %v5427_v38 = vld [vmem:[#allocation2 + $0x20] sm:$0xff]  ;;  %v1335_v50 = vsel %vm915_vm2, %v1303_v6, 0.0  ;;  %v1242_v6 = vpack.c.bf16 %v5805_v3, %v5805_v3 }
 0x20d   : > { %v1370_v18 = vrot.slane %v5427_v38, 7  ;;  %v5430_v3 = vld [vmem:[#allocation2 + $0x60] sm:$0xff] }
 0x20e   : > { %1972 = vrot.lane.b32.xlu0 %v1494_v43, %s5536_s15  ;;  %v1783_v42 = vpop.permute.xlu1 %1782  ;;  %3360 = vmatprep.mubr.bf16.mxu0 %v4617_v33  ;;  %v1365_v33 = vpack.c.bf16 %v1333_v41, %v1333_v41  ;;  %v1371_v43 = vrot.slane %v5428_v26, 7  ;;  %v2068_v2 = vsel %vm804_vm0, %v1012_v58, %v6757_v20  ;;  %v4809_v20 = vpack.c.bf16 %v6244_v5, %v6250_v62 }
 0x20f   : > { %v2167_v32 = vsel %vm804_vm0, %v1143_v8, %v1783_v42  ;;  %v6823_v8 = vld [vmem:[#allocation2 + $0x138] sm:$0xff] }
 0x210   : > { %v4690_v21 = vcombine.low %v2164_v22, %v2167_v32  ;;  %v1917_v45 = vpop.permute.xlu0 %1916  ;;  %1970 = vrot.lane.b32.xlu1 %v1493_v59, %s5536_s15  ;;  %v1495_v59 = vpack.c.bf16 %v6823_v8, %v6823_v8  ;;  %v1241_v22 = vpack.c.bf16 %v5793_v53, %v5793_v53  ;;  %v1402_v32 = vsel %vm914_vm1, %v1370_v18, 0.0 }
 0x211   : > { %v1434_v5 = vpack.c.bf16 %v1402_v32, %v1402_v32  ;;  %v1367_v18 = vpack.c.bf16 %v1335_v50, %v1335_v50 }
 0x212   : > { %1876 = vrot.lane.b32.xlu0 %v1366_v30, %s5536_s15  ;;  %3319 = vmatprep.mubr.bf16.mxu1 %v4690_v21  ;;  %v1687_v11 = vpop.permute.xlu1 %1686  ;;  %v1403_v21 = vsel %vm914_vm1, %v1371_v43, 0.0  ;;  %v2170_v30 = vsel %vm804_vm0, %v1240_v54, %v1817_v56 }
 0x213   : > { %v2071_v57 = vsel %vm804_vm0, %v1013_v17, %v1687_v11  ;;  %v1435_v62 = vpack.c.bf16 %v1403_v21, %v1403_v21  ;;  %v2272_v11 = vsel %vm804_vm0, %v1434_v5, %v1917_v45  ;;  %v1505_v45 = vrot.slane %v6457_v25, 1 }
 0x214   : > { %v4689_v31 = vcombine.low %v2068_v2, %v2071_v57  ;;  %v1821_v42 = vpop.permute.xlu0 %1820  ;;  %1874 = vrot.lane.b32.xlu1 %v1365_v33, %s5536_s15  ;;  %v1503_v33 = vrot.slane %v6403_v19, 1  ;;  %v5429_v2 = vld [vmem:[#allocation2 + $0x40] sm:$0xff]  ;;  %v7691_v19 = vpack.c.bf16 %v5893_v60, %v5898_v63 }
 0x215   : > { %v1502_v57 = vrot.slane %v5429_v2, 1  ;;  %v1374_v63 = vrot.slane %v5429_v2, 7  ;;  %v1506_v2 = vrot.slane %v6448_v40, 1 }
 0x216   : > { %3320 = vmatmul.mubr.bf16.gmra.mrb[44].mxu1 %v4689_v31  ;;  %v1819_v41 = vpop.permute.xlu1 %1818  ;;  %v1243_v31 = vpack.c.bf16 %v5813_v7, %v5813_v7  ;;  %v1504_v7 = vrot.slane %v5430_v3, 1  ;;  %v1535_v60 = vsel %vm915_vm2, %v1503_v33, 0.0 }
 0x217   : > { %v2173_v58 = vsel %vm804_vm0, %v1241_v22, %v1819_v41  ;;  %5223 = vmatprep.mubr.msk.bf16.mxu1 %vm804_vm0, %v4809_v20  ;;  %v2176_v22 = vsel %vm804_vm0, %v1242_v6, %v1821_v42  ;;  %v1534_v21 = vsel %vm915_vm2, %v1502_v57, 0.0  ;;  %v1537_v42 = vsel %vm915_vm2, %v1505_v45, 0.0 }
 0x218   : > { %v4616_v53 = vcombine.low %v2170_v30, %v2173_v58  ;;  %v1921_v17 = vpop.permute.xlu0 %1920  ;;  %1974 = vrot.lane.b32.xlu1 %v1495_v59, %s5536_s15  ;;  %v4811_v59 = vpack.c.bf16 %v6498_v15, %v6491_v47  ;;  %v5431_v47 = vld [vmem:[#allocation2 + $0x48] sm:$0xff]  ;;  %v1406_v33 = vsel %vm914_vm1, %v1374_v63, 0.0 }
 0x219   : > { %v1375_v15 = vrot.slane %v5431_v47, 7  ;;  %v2278_v58 = vsel %vm804_vm0, %v6653_v28, %v1921_v17  ;;  %v1245_v28 = vpack.c.bf16 %v5843_v27, %v5843_v27  ;;  %v1508_v27 = vrot.slane %v6480_v55, 1 }
 0x21a   : > { %v1919_v38 = vpop.permute.xlu1 %1918  ;;  %3361 = vmatmul.mubr.bf16.vlgmr.msra.gmra.mrb[80].mxu0 %v4616_v53  ;;  %v1438_v45 = vpack.c.bf16 %v1406_v33, %v1406_v33  ;;  %v1538_v55 = vsel %vm915_vm2, %v1506_v2, 0.0  ;;  %v1379_v33 = vrot.slane %v6493_v35, 7 }
 0x21b   : > { %v2275_v56 = vsel %vm804_vm0, %v1435_v62, %v1919_v38  ;;  %v4812_v62 = vpack.c.bf16 %v1535_v60, %v1534_v21  ;;  %v1536_v38 = vsel %vm915_vm2, %v1504_v7, 0.0  ;;  %v1510_v60 = vrot.slane %v6526_v13, 1 }
 0x21c   : > { %v4622_v26 = vcombine.low %v2272_v11, %v2275_v56  ;;  %v1825_v43 = vpop.permute.xlu0 %1824  ;;  %1878 = vrot.lane.b32.xlu1 %v1367_v18, %s5536_s15  ;;  %v1407_v18 = vsel %vm914_vm1, %v1375_v15, 0.0  ;;  %v1507_v11 = vrot.slane %v6493_v35, 1  ;;  %v1244_v56 = vpack.c.bf16 %v5835_v23, %v5835_v23 }
 0x21d   : > { %v4813_v17 = vpack.c.bf16 %v1537_v42, %v1536_v38  ;;  %v1439_v23 = vpack.c.bf16 %v1407_v18, %v1407_v18 }
 0x21e   : > { %5224 = vmatmul.mubr.msk.bf16.vlgmr.msra.gmra.mrb[48].mxu1 %vm804_vm0, %v7691_v19  ;;  %v1823_v54 = vpop.permute.xlu1 %1822  ;;  %3368 = vmatprep.mubr.bf16.mxu0 %v4622_v26  ;;  %v2182_v57 = vsel %vm804_vm0, %v1244_v56, %v1825_v43  ;;  %v1539_v19 = vsel %vm915_vm2, %v1507_v11, 0.0  ;;  %v1377_v43 = vrot.slane %v6457_v25, 7  ;;  %v1246_v25 = vpack.c.bf16 %v5869_v44, %v5869_v44 }
 0x21f   : > { %v2179_v20 = vsel %vm804_vm0, %v1243_v31, %v1823_v54  ;;  %5227 = vmatprep.mubr.msk.bf16.mxu1 %vm804_vm0, %v4811_v59  ;;  %v1376_v54 = vrot.slane %v5430_v3, 7  ;;  %v4814_v21 = vpack.c.bf16 %v1539_v19, %v1538_v55  ;;  %v1540_v3 = vsel %vm915_vm2, %v1508_v27, 0.0 }
 0x220   : > { %v4621_v32 = vcombine.low %v2176_v22, %v2179_v20  ;;  %v1925_v41 = vpop.permute.xlu0 %1924  ;;  %v1542_v11 = vsel %vm915_vm2, %v1510_v60, 0.0  ;;  %v1248_v27 = vpack.c.bf16 %v5902_v1, %v5902_v1  ;;  %v1515_v19 = vrot.slane %v6642_v51, 1 }
 0x221   : > { %v2284_v20 = vsel %vm804_vm0, %v1438_v45, %v1925_v41  ;;  %v1247_v41 = vpack.c.bf16 %v5877_v49, %v5877_v49  ;;  %v1408_v42 = vsel %vm914_vm1, %v1376_v54, 0.0  ;;  %v1512_v49 = vrot.slane %v6558_v48, 1 }
 0x222   : > { %v1923_v30 = vpop.permute.xlu1 %1922  ;;  %3369 = vmatmul.mubr.bf16.gmra.mrb[84].mxu0 %v4621_v32  ;;  %v1511_v32 = vrot.slane %v6570_v24, 1  ;;  %v1440_v38 = vpack.c.bf16 %v1408_v42, %v1408_v42  ;;  %v1411_v54 = vsel %vm914_vm1, %v1379_v33, 0.0  ;;  %v7696_v33 = vld [vmem:[#allocation19_spill] sm:$0xff] }
 0x223   : > { %v2281_v50 = vsel %vm804_vm0, %v6651_v14, %v1923_v30  ;;  %v1509_v14 = vrot.slane %v6541_v34, 1  ;;  %v1513_v30 = vrot.slane %v6606_v16, 1 }
 0x224   : > { %v4627_v53 = vcombine.low %v2278_v58, %v2281_v50  ;;  %v1829_v5 = vpop.permute.xlu0 %1828  ;;  %v1409_v50 = vsel %vm914_vm1, %v1377_v43, 0.0  ;;  %v1543_v56 = vsel %vm915_vm2, %v1511_v32, 0.0  ;;  %v1443_v32 = vpack.c.bf16 %v1411_v54, %v1411_v54  ;;  %v5434_v54 = vld [vmem:[#allocation2 + $0x90] sm:$0xff] }
 0x225   : > { %v1541_v40 = vsel %vm915_vm2, %v1509_v14, 0.0  ;;  %v2188_v13 = vsel %vm804_vm0, %v1246_v25, %v1829_v5  ;;  %v1441_v18 = vpack.c.bf16 %v1409_v50, %v1409_v50  ;;  %v1545_v5 = vsel %vm915_vm2, %v1513_v30, 0.0  ;;  %v7692_v30 = vld [vmem:[#allocation6_spill] sm:$0xff] }
 0x226   : > { %5228 = vmatmul.mubr.msk.bf16.gmra.mrb[52].mxu1 %vm804_vm0, %v4812_v62  ;;  %v1827_v26 = vpop.permute.xlu1 %1826  ;;  %3376 = vmatprep.mubr.bf16.mxu0 %v4627_v53  ;;  %v4815_v63 = vpack.c.bf16 %v1541_v40, %v1540_v3  ;;  %v1381_v25 = vrot.slane %v6541_v34, 7  ;;  %v1250_v42 = vpack.c.bf16 %v7692_v30, %v7692_v30 }
 0x227   : > { %v2185_v6 = vsel %vm804_vm0, %v1245_v28, %v1827_v26  ;;  %5231 = vmatprep.mubr.msk.bf16.mxu1 %vm804_vm0, %v4813_v17  ;;  %v5432_v28 = vld [vmem:[#allocation2 + $0x70] sm:$0xff] }
 0x228   : > { %v4626_v31 = vcombine.low %v2182_v57, %v2185_v6  ;;  %v1929_v59 = vpop.permute.xlu0 %1928  ;;  %v1378_v17 = vrot.slane %v5432_v28, 7  ;;  %v4816_v6 = vpack.c.bf16 %v1543_v56, %v1542_v11  ;;  %v5399_v56 = vld [vmem:[%s7583_s5] ss:$8 sps:$4 sm:$0xff]   ;;  %v5401_v28 = vld [vmem:[%s7583_s5 + $0x4] ss:$8 sps:$4 sm:$0xff]  }
 0x229   : > { %v2290_v48 = vsel %vm804_vm0, %v1440_v38, %v1929_v59  ;;  %v7694_v38 = vld [vmem:[#allocation16_spill] sm:$0xff]  ;;  %3806 = vmatprep.subr.bf16.mxu1 %v5401_v28 }
 0x22a   : > { %v1927_v22 = vpop.permute.xlu1 %1926  ;;  %3377 = vmatmul.mubr.bf16.gmra.mrb[88].mxu0 %v4626_v31  ;;  %v1249_v31 = vpack.c.bf16 %v5907_v4, %v5907_v4  ;;  %v1410_v35 = vsel %vm914_vm1, %v1378_v17, 0.0  ;;  %v1514_v4 = vrot.slane %v6591_v10, 1  ;;  %3807 = vmatpush1.bf16.msra.mxu1 %v5399_v56 }
 0x22b   : > { %v2287_v7 = vsel %vm804_vm0, %v1439_v23, %v1927_v22  ;;  %v1544_v23 = vsel %vm915_vm2, %v1512_v49, 0.0  ;;  %v1517_v22 = vrot.slane %v6679_v61, 1  ;;  %v1442_v55 = vpack.c.bf16 %v1410_v35, %v1410_v35  ;;  %v7693_v49 = vld [vmem:[#allocation7_spill] sm:$0xff] }
 0x22c   : > { %v4632_v47 = vcombine.low %v2284_v20, %v2287_v7  ;;  %v1833_v15 = vpop.permute.xlu0 %1832  ;;  %v4817_v45 = vpack.c.bf16 %v1545_v5, %v1544_v23  ;;  %v1516_v7 = vrot.slane %v6625_v37, 1  ;;  %v1413_v5 = vsel %vm914_vm1, %v1381_v25, 0.0 }
 0x22d   : > { %v2194_v1 = vsel %vm804_vm0, %v1248_v27, %v1833_v15  ;;  %v1549_v15 = vsel %vm915_vm2, %v1517_v22, 0.0 }
 0x22e   : > { %5232 = vmatmul.mubr.msk.bf16.gmra.mrb[56].mxu1 %vm804_vm0, %v4814_v21  ;;  %v1831_v58 = vpop.permute.xlu1 %1830  ;;  %3384 = vmatprep.mubr.bf16.mxu0 %v4632_v47  ;;  %v1547_v47 = vsel %vm915_vm2, %v1515_v19, 0.0  ;;  %v5433_v21 = vld [vmem:[#allocation2 + $0x80] sm:$0xff]  ;;  %v1445_v19 = vpack.c.bf16 %v1413_v5, %v1413_v5 }
 0x22f   : > { %v2191_v44 = vsel %vm804_vm0, %v1247_v41, %v1831_v58  ;;  %5235 = vmatprep.mubr.msk.bf16.mxu1 %vm804_vm0, %v4815_v63  ;;  %v1380_v3 = vrot.slane %v5433_v21, 7  ;;  %v1546_v63 = vsel %vm915_vm2, %v1514_v4, 0.0  ;;  %v7699_v5 = vld [vmem:[#allocation10_spill] sm:$0xff] }
 0x230   : > { %v4631_v53 = vcombine.low %v2188_v13, %v2191_v44  ;;  %v1933_v62 = vpop.permute.xlu0 %1932  ;;  %v4818_v13 = vpack.c.bf16 %v1547_v47, %v1546_v63  ;;  %v1548_v44 = vsel %vm915_vm2, %v1516_v7, 0.0  ;;  %v7697_v47 = vld [vmem:[#allocation8_spill] sm:$0xff] }
 0x231   : > { %v2296_v10 = vsel %vm804_vm0, %v1442_v55, %v1933_v62  ;;  %v4819_v34 = vpack.c.bf16 %v1549_v15, %v1548_v44  ;;  %v1518_v62 = vrot.slane %v7694_v38, 1  ;;  %v1412_v17 = vsel %vm914_vm1, %v1380_v3, 0.0  ;;  %v7698_v3 = vld [vmem:[#allocation9_spill] sm:$0xff] }
 0x232   : > { %v1931_v14 = vpop.permute.xlu1 %1930  ;;  %3385 = vmatmul.mubr.bf16.gmra.mrb[92].mxu0 %v4631_v53  ;;  %v1251_v53 = vpack.c.bf16 %v7693_v49, %v7693_v49  ;;  %v1252_v21 = vpack.c.bf16 %v7697_v47, %v7697_v47  ;;  %v5435_v49 = vld [vmem:[#allocation2 + $0xb0] sm:$0xff]  ;;  %v5436_v47 = vld [vmem:[#allocation2 + $0xc0] sm:$0xff] }
 0x233   : > { %v2293_v26 = vsel %vm804_vm0, %v1441_v18, %v1931_v14  ;;  %v7695_v18 = vld [vmem:[#allocation25_spill] sm:$0xff]  ;;  %v1550_v35 = vsel %vm915_vm2, %v1518_v62, 0.0 }
 0x234   : > { %v4637_v2 = vcombine.low %v2290_v48, %v2293_v26  ;;  %v1837_v57 = vpop.permute.xlu0 %1836  ;;  %v1519_v11 = vrot.slane %v7695_v18, 1  ;;  %v1520_v48 = vrot.slane %v7696_v33, 1  ;;  %v1521_v26 = vrot.slane %v6741_v29, 1 }
 0x236   : > { %5236 = vmatmul.mubr.msk.bf16.gmra.mrb[60].mxu1 %vm804_vm0, %v4816_v6  ;;  %v1835_v59 = vpop.permute.xlu1 %1834  ;;  %3392 = vmatprep.mubr.bf16.mxu0 %v4637_v2  ;;  %v2200_v2 = vsel %vm804_vm0, %v1250_v42, %v1837_v57  ;;  %v1382_v57 = vrot.slane %v5434_v54, 7 }
 0x237   : > { %v2197_v40 = vsel %vm804_vm0, %v1249_v31, %v1835_v59  ;;  %5239 = vmatprep.mubr.msk.bf16.mxu1 %vm804_vm0, %v4817_v45  ;;  %v1383_v31 = vrot.slane %v6570_v24, 7  ;;  %v1444_v45 = vpack.c.bf16 %v1412_v17, %v1412_v17  ;;  %v1551_v59 = vsel %vm915_vm2, %v1519_v11, 0.0  ;;  %v5402_v17 = vld [vmem:[%s7583_s5 + $0x10] ss:$8 sps:$4 sm:$0xff]  }
 0x238   : > { %v4636_v43 = vcombine.low %v2194_v1, %v2197_v40  ;;  %v1937_v20 = vpop.permute.xlu0 %1936  ;;  %v1552_v1 = vsel %vm915_vm2, %v1520_v48, 0.0  ;;  %v1553_v40 = vsel %vm915_vm2, %v1521_v26, 0.0  ;;  %v4820_v55 = vpack.c.bf16 %v1551_v59, %v1550_v35  ;;  %v7702_v35 = vld [vmem:[#allocation32_spill] sm:$0xff] }
 0x239   : > { %v2302_v24 = vsel %vm804_vm0, %v1444_v45, %v1937_v20  ;;  %v4821_v15 = vpack.c.bf16 %v1553_v40, %v1552_v1  ;;  %v1414_v25 = vsel %vm914_vm1, %v1382_v57, 0.0  ;;  %v1254_v48 = vpack.c.bf16 %v7699_v5, %v7699_v5  ;;  %v5405_v5 = vld [vmem:[%s7583_s5 + $0x20] ss:$8 sps:$4 sm:$0xff]  }
 0x23a   : > { %v1935_v60 = vpop.permute.xlu1 %1934  ;;  %3393 = vmatmul.mubr.bf16.gmra.mrb[96].mxu0 %v4636_v43  ;;  %v1446_v44 = vpack.c.bf16 %v1414_v25, %v1414_v25 }
 0x23b   : > { %v2299_v41 = vsel %vm804_vm0, %v1443_v32, %v1935_v60  ;;  %v1415_v32 = vsel %vm914_vm1, %v1383_v31, 0.0  ;;  %v1253_v60 = vpack.c.bf16 %v7698_v3, %v7698_v3  ;;  %v1527_v31 = vrot.slane %v6823_v8, 1 }
 0x23c   : > { %v4642_v58 = vcombine.low %v2296_v10, %v2299_v41  ;;  %v1841_v50 = vpop.permute.xlu0 %1840  ;;  %v1524_v10 = vrot.slane %v6760_v0, 1  ;;  %v1525_v41 = vrot.slane %v6803_v12, 1  ;;  %v1447_v42 = vpack.c.bf16 %v1415_v32, %v1415_v32 }
 0x23d   : > { %v2206_v63 = vsel %vm804_vm0, %v1252_v21, %v1841_v50  ;;  %v1385_v50 = vrot.slane %v6606_v16, 7  ;;  %v1559_v32 = vsel %vm915_vm2, %v1527_v31, 0.0  ;;  %v1386_v21 = vrot.slane %v5436_v47, 7  ;;  %v7708_v47 = vld [vmem:[#allocation17_spill] sm:$0xff] }
 0x23e   : > { %5240 = vmatmul.mubr.msk.bf16.gmra.mrb[64].mxu1 %vm804_vm0, %v4818_v13  ;;  %v1839_v14 = vpop.permute.xlu1 %1838  ;;  %3400 = vmatprep.mubr.bf16.mxu0 %v4642_v58  ;;  %v1556_v62 = vsel %vm915_vm2, %v1524_v10, 0.0  ;;  %v1557_v11 = vsel %vm915_vm2, %v1525_v41, 0.0  ;;  %v7704_v41 = vld [vmem:[#allocation12_spill] sm:$0xff] }
 0x23f   : > { %v2203_v6 = vsel %vm804_vm0, %v1251_v53, %v1839_v14  ;;  %5243 = vmatprep.mubr.msk.bf16.mxu1 %vm804_vm0, %v4819_v34  ;;  %v1384_v53 = vrot.slane %v5435_v49, 7  ;;  %v5404_v14 = vld [vmem:[%s7583_s5 + $0x14] ss:$8 sps:$4 sm:$0xff]   ;;  %v1417_v57 = vsel %vm914_vm1, %v1385_v50, 0.0  ;;  %v1388_v50 = vrot.slane %v6625_v37, 7 }
 0x240   : > { %v4641_v23 = vcombine.low %v2200_v2, %v2203_v6  ;;  %v1941_v27 = vpop.permute.xlu0 %1940  ;;  %v7700_v6 = vld [vmem:[#allocation11_spill] sm:$0xff]  ;;  %3808 = vmatprep.subr.bf16.mxu1 %v5404_v14 }
 0x241   : > { %v2308_v56 = vsel %vm804_vm0, %v1446_v44, %v1941_v27  ;;  %v1255_v16 = vpack.c.bf16 %v7700_v6, %v7700_v6  ;;  %v1526_v27 = vrot.slane %v6789_v52, 1  ;;  %v1416_v45 = vsel %vm914_vm1, %v1384_v53, 0.0  ;;  %3809 = vmatpush1.bf16.msra.mxu1 %v5402_v17  ;;  %v7706_v6 = vld [vmem:[#allocation14_spill] sm:$0xff] }
 0x242   : > { %v1939_v22 = vpop.permute.xlu1 %1938  ;;  %3401 = vmatmul.mubr.bf16.gmra.mrb[100].mxu0 %v4641_v23  ;;  %v4823_v23 = vpack.c.bf16 %v1557_v11, %v1556_v62  ;;  %v1258_v37 = vpack.c.bf16 %v7706_v6, %v7706_v6 }
 0x243   : > { %v2305_v4 = vsel %vm804_vm0, %v1445_v19, %v1939_v22  ;;  %v7701_v19 = vld [vmem:[#allocation33_spill] sm:$0xff] }
 0x244   : > { %v4647_v43 = vcombine.low %v2302_v24, %v2305_v4  ;;  %v1845_v7 = vpop.permute.xlu0 %1844  ;;  %v7703_v59 = vpack.c.bf16 %v7701_v19, %v7702_v35  ;;  %v1448_v4 = vpack.c.bf16 %v1416_v45, %v1416_v45 }
 0x245   : > { %v2212_v22 = vsel %vm804_vm0, %v1254_v48, %v1845_v7  ;;  %v1387_v7 = vrot.slane %v6642_v51, 7  ;;  %v5407_v48 = vld [vmem:[%s7583_s5 + $0x24] ss:$8 sps:$4 sm:$0xff]  }
 0x246   : > { %5244 = vmatmul.mubr.msk.bf16.gmra.mrb[68].mxu1 %vm804_vm0, %v4820_v55  ;;  %v1843_v20 = vpop.permute.xlu1 %1842  ;;  %3408 = vmatprep.mubr.bf16.mxu0 %v4647_v43  ;;  %v1449_v43 = vpack.c.bf16 %v1417_v57, %v1417_v57  ;;  %v1558_v55 = vsel %vm915_vm2, %v1526_v27, 0.0 }
 0x247   : > { %v2209_v30 = vsel %vm804_vm0, %v1253_v60, %v1843_v20  ;;  %5247 = vmatprep.mubr.msk.bf16.mxu1 %vm804_vm0, %v4821_v15  ;;  %v4824_v10 = vpack.c.bf16 %v1559_v32, %v1558_v55  ;;  %v1419_v51 = vsel %vm914_vm1, %v1387_v7, 0.0  ;;  %3810 = vmatprep.subr.bf16.mxu1 %v5407_v48 }
 0x248   : > { %v4646_v58 = vcombine.low %v2206_v63, %v2209_v30  ;;  %v1945_v13 = vpop.permute.xlu0 %1944  ;;  %v1256_v63 = vpack.c.bf16 %v7704_v41, %v7704_v41  ;;  %v7705_v30 = vld [vmem:[#allocation13_spill] sm:$0xff]  ;;  %v1451_v11 = vpack.c.bf16 %v1419_v51, %v1419_v51  ;;  %3811 = vmatpush1.bf16.msra.mxu1 %v5405_v5 }
 0x249   : > { %v2314_v60 = vsel %vm804_vm0, %v1448_v4, %v1945_v13 }
 0x24a   : > { %v1943_v34 = vpop.permute.xlu1 %1942  ;;  %3409 = vmatmul.mubr.bf16.gmra.mrb[104].mxu0 %v4646_v58  ;;  %v1418_v58 = vsel %vm914_vm1, %v1386_v21, 0.0  ;;  %v1260_v21 = vpack.c.bf16 %v7708_v47, %v7708_v47 }
 0x24b   : > { %v2311_v28 = vsel %vm804_vm0, %v1447_v42, %v1943_v34  ;;  %v1257_v42 = vpack.c.bf16 %v7705_v30, %v7705_v30  ;;  %v1450_v62 = vpack.c.bf16 %v1418_v58, %v1418_v58 }
 0x24c   : > { %v4652_v26 = vcombine.low %v2308_v56, %v2311_v28  ;;  %v1849_v2 = vpop.permute.xlu0 %1848  ;;  %v1389_v28 = vrot.slane %v6679_v61, 7 }
 0x24d   : > { %v2218_v13 = vsel %vm804_vm0, %v1256_v63, %v1849_v2 }
 0x24e   : > { %5248 = vmatmul.mubr.msk.bf16.gmra.mrb[72].mxu1 %vm804_vm0, %v7703_v59  ;;  %v1847_v54 = vpop.permute.xlu1 %1846  ;;  %3416 = vmatprep.mubr.bf16.mxu0 %v4652_v26  ;;  %v1421_v31 = vsel %vm914_vm1, %v1389_v28, 0.0 }
 0x24f   : > { %v2215_v1 = vsel %vm804_vm0, %v1255_v16, %v1847_v54  ;;  %5251 = vmatprep.mubr.msk.bf16.mxu1 %vm804_vm0, %v4823_v23  ;;  %v7707_v16 = vld [vmem:[#allocation15_spill] sm:$0xff]  ;;  %v1420_v23 = vsel %vm914_vm1, %v1388_v50, 0.0  ;;  %v1391_v54 = vrot.slane %v7695_v18, 7  ;;  %v7709_v18 = vld [vmem:[#allocation18_spill] sm:$0xff] }
 0x250   : > { %v4651_v40 = vcombine.low %v2212_v22, %v2215_v1  ;;  %v1949_v24 = vpop.permute.xlu0 %1948  ;;  %v1259_v61 = vpack.c.bf16 %v7707_v16, %v7707_v16  ;;  %v1452_v57 = vpack.c.bf16 %v1420_v23, %v1420_v23  ;;  %v1453_v22 = vpack.c.bf16 %v1421_v31, %v1421_v31 }
 0x251   : > { %v2320_v17 = vsel %vm804_vm0, %v1450_v62, %v1949_v24  ;;  %v1390_v1 = vrot.slane %v7694_v38, 7  ;;  %v1423_v32 = vsel %vm914_vm1, %v1391_v54, 0.0  ;;  %v1261_v7 = vpack.c.bf16 %v7709_v18, %v7709_v18  ;;  %v5437_v54 = vld [vmem:[#allocation2 + $0x110] sm:$0xff] }
 0x252   : > { %v1947_v3 = vpop.permute.xlu1 %1946  ;;  %3417 = vmatmul.mubr.bf16.gmra.mrb[108].mxu0 %v4651_v40  ;;  %v1455_v63 = vpack.c.bf16 %v1423_v32, %v1423_v32  ;;  %v7712_v32 = vld [vmem:[#allocation23_spill] sm:$0xff] }
 0x253   : > { %v2317_v15 = vsel %vm804_vm0, %v1449_v43, %v1947_v3  ;;  %v1422_v38 = vsel %vm914_vm1, %v1390_v1, 0.0  ;;  %v5438_v1 = vld [vmem:[#allocation2 + $0x118] sm:$0xff]  ;;  %v1264_v47 = vpack.c.bf16 %v7712_v32, %v7712_v32 }
 0x254   : > { %v4657_v25 = vcombine.low %v2314_v60, %v2317_v15  ;;  %v1853_v20 = vpop.permute.xlu0 %1852 }
 0x255   : > { %v2224_v45 = vsel %vm804_vm0, %v1258_v37, %v1853_v20 }
 0x256   : > { %5252 = vmatmul.mubr.msk.bf16.gmra.mrb[76].mxu1 %vm804_vm0, %v4824_v10  ;;  %v1851_v44 = vpop.permute.xlu1 %1850  ;;  %3424 = vmatprep.mubr.bf16.mxu0 %v4657_v25 }
 0x257   : > { %v2221_v49 = vsel %vm804_vm0, %v1257_v42, %v1851_v44  ;;  %v1454_v44 = vpack.c.bf16 %v1422_v38, %v1422_v38 }
 0x258   : > { %v4656_v53 = vcombine.low %v2218_v13, %v2221_v49  ;;  %v1953_v34 = vpop.permute.xlu0 %1952  ;;  %v1392_v13 = vrot.slane %v7696_v33, 7  ;;  %v5408_v33 = vld [vmem:[%s7583_s5 + $0x30] ss:$8 sps:$4 sm:$0xff]  }
 0x259   : > { %v2326_v24 = vsel %vm804_vm0, %v1452_v57, %v1953_v34  ;;  %v1394_v57 = vrot.slane %v5437_v54, 7 }
 0x25a   : > { %v1951_v56 = vpop.permute.xlu1 %1950  ;;  %3425 = vmatmul.mubr.bf16.gmra.mrb[112].mxu0 %v4656_v53  ;;  %v1393_v53 = vrot.slane %v6741_v29, 7  ;;  %v5410_v29 = vld [vmem:[%s7583_s5 + $0x34] ss:$8 sps:$4 sm:$0xff]   ;;  %v1424_v48 = vsel %vm914_vm1, %v1392_v13, 0.0 }
 0x25b   : > { %v2323_v14 = vsel %vm804_vm0, %v1451_v11, %v1951_v56  ;;  %v7710_v56 = vld [vmem:[#allocation20_spill] sm:$0xff]  ;;  %3812 = vmatprep.subr.bf16.mxu1 %v5410_v29 }
 0x25c   : > { %v4662_v26 = vcombine.low %v2320_v17, %v2323_v14  ;;  %v1857_v2 = vpop.permute.xlu0 %1856  ;;  %v1262_v28 = vpack.c.bf16 %v7710_v56, %v7710_v56  ;;  %v7711_v14 = vld [vmem:[#allocation21_spill] sm:$0xff]  ;;  %v1425_v6 = vsel %vm914_vm1, %v1393_v53, 0.0  ;;  %3813 = vmatpush1.bf16.msra.mxu1 %v5408_v33  ;;  %v1396_v53 = vrot.slane %v6760_v0, 7 }
 0x25d   : > { %v2230_v25 = vsel %vm804_vm0, %v1260_v21, %v1857_v2  ;;  %v1263_v5 = vpack.c.bf16 %v7711_v14, %v7711_v14  ;;  %v7715_v14 = vld [vmem:[#allocation28_spill] sm:$0xff] }
 0x25e   : > { %v1855_v27 = vpop.permute.xlu1 %1854  ;;  %3432 = vmatprep.mubr.bf16.mxu0 %v4662_v26  ;;  %v1428_v33 = vsel %vm914_vm1, %v1396_v53, 0.0 }
 0x25f   : > { %v2227_v19 = vsel %vm804_vm0, %v1259_v61, %v1855_v27 }
 0x260   : > { %v4661_v35 = vcombine.low %v2224_v45, %v2227_v19  ;;  %v1957_v59 = vpop.permute.xlu0 %1956  ;;  %v1456_v19 = vpack.c.bf16 %v1424_v48, %v1424_v48 }
 0x261   : > { %v2332_v34 = vsel %vm804_vm0, %v1454_v44, %v1957_v59  ;;  %v1457_v59 = vpack.c.bf16 %v1425_v6, %v1425_v6  ;;  %v1399_v6 = vrot.slane %v6823_v8, 7 }
 0x262   : > { %v1955_v40 = vpop.permute.xlu1 %1954  ;;  %3433 = vmatmul.mubr.bf16.gmra.mrb[116].mxu0 %v4661_v35 }
 0x263   : > { %v2329_v4 = vsel %vm804_vm0, %v1453_v22, %v1955_v40  ;;  %v1395_v40 = vrot.slane %v5438_v1, 7 }
 0x264   : > { %v4667_v43 = vcombine.low %v2326_v24, %v2329_v4  ;;  %v1861_v55 = vpop.permute.xlu0 %1860 }
 0x265   : > { %v4987_v3 = vpop.f32.mrb[64].mxu0  ;;  %v2236_v37 = vsel %vm804_vm0, %v1262_v28, %v1861_v55  ;;  %v7714_v28 = vld [vmem:[#allocation26_spill] sm:$0xff] }
 0x266   : > { %v1859_v60 = vpop.permute.xlu1 %1858  ;;  %v4988_v15 = vpop.f32.mrb[65].mxu0  ;;  %3440 = vmatprep.mubr.bf16.mxu0 %v4667_v43 }
 0x267   : > { %v2233_v20 = vsel %vm804_vm0, %v1261_v7, %v1859_v60  ;;  %v7085_v10 = vadd.f32 %v4988_v15, %v4987_v3  ;;  %v4990_v41 = vpop.f32.mrb[66].mxu0  ;;  %v7713_v3 = vld [vmem:[#allocation24_spill] sm:$0xff]  ;;  %v1426_v7 = vsel %vm914_vm1, %v1394_v57, 0.0  ;;  %v1427_v15 = vsel %vm914_vm1, %v1395_v40, 0.0 }
 0x268   : > { %v4666_v30 = vcombine.low %v2230_v25, %v2233_v20  ;;  %v1961_v42 = vpop.permute.xlu0 %1960  ;;  %v4991_v58 = vpop.f32.mrb[67].mxu0  ;;  %v1265_v18 = vpack.c.bf16 %v7713_v3, %v7713_v3  ;;  %v1431_v57 = vsel %vm914_vm1, %v1399_v6, 0.0 }
 0x269   : > { %v7087_v51 = vadd.f32 %v4991_v58, %v4990_v41  ;;  %v2338_v24 = vsel %vm804_vm0, %v1456_v19, %v1961_v42  ;;  %v1458_v58 = vpack.c.bf16 %v1426_v7, %v1426_v7  ;;  %v1463_v3 = vpack.c.bf16 %v1431_v57, %v1431_v57 }
 0x26a   : > { %v1959_v49 = vpop.permute.xlu1 %1958  ;;  %3441 = vmatmul.mubr.bf16.gmra.mrb[120].mxu0 %v4666_v30 }
 0x26b   : > { %v2335_v62 = vsel %vm804_vm0, %v1455_v63, %v1959_v49  ;;  %v1459_v49 = vpack.c.bf16 %v1427_v15, %v1427_v15 }
 0x26c   : > { %v4672_v11 = vcombine.low %v2332_v34, %v2335_v62  ;;  %v1865_v50 = vpop.permute.xlu0 %1864  ;;  %v1397_v62 = vrot.slane %v6803_v12, 7 }
 0x26d   : > { %v4993_v17 = vpop.f32.mrb[68].mxu0  ;;  %v2242_v25 = vsel %vm804_vm0, %v1264_v47, %v1865_v50 }
 0x26e   : > { %v1863_v26 = vpop.permute.xlu1 %1862  ;;  %v4994_v2 = vpop.f32.mrb[69].mxu0  ;;  %3448 = vmatprep.mubr.bf16.mxu0 %v4672_v11  ;;  %v1429_v0 = vsel %vm914_vm1, %v1397_v62, 0.0 }
 0x26f   : > { %v2239_v16 = vsel %vm804_vm0, %v1263_v5, %v1863_v26  ;;  %v7109_v61 = vadd.f32 %v4994_v2, %v4993_v17  ;;  %v4996_v23 = vpop.f32.mrb[70].mxu0  ;;  %v1266_v17 = vpack.c.bf16 %v7714_v28, %v7714_v28  ;;  %v1267_v5 = vpack.c.bf16 %v7715_v14, %v7715_v14 }
 0x270   : > { %v4671_v27 = vcombine.low %v2236_v37, %v2239_v16  ;;  %v1965_v31 = vpop.permute.xlu0 %1964  ;;  %v4997_v45 = vpop.f32.mrb[71].mxu0  ;;  %v1460_v37 = vpack.c.bf16 %v1428_v33, %v1428_v33  ;;  %v1461_v16 = vpack.c.bf16 %v1429_v0, %v1429_v0 }
 0x271   : > { %v7111_v35 = vadd.f32 %v4997_v45, %v4996_v23  ;;  %v2344_v11 = vsel %vm804_vm0, %v1458_v58, %v1965_v31  ;;  %v1398_v23 = vrot.slane %v6789_v52, 7  ;;  %v5537_v31 = vmov 0  }
 0x272   : > { %v1963_v22 = vpop.permute.xlu1 %1962  ;;  %3449 = vmatmul.mubr.bf16.gmra.mrb[124].mxu0 %v4671_v27  ;;  %3838 = vmatprep.mubr.bf16.mxu1 %v5537_v31  ;;  %v1269_v52 = vpack.c.bf16 %v6186_v9, %v6186_v9 }
 0x273   : > { %v2341_v4 = vsel %vm804_vm0, %v1457_v59, %v1963_v22  ;;  %v7716_v22 = vld [vmem:[#allocation29_spill] sm:$0xff] }
 0x274   : > { %v4677_v43 = vcombine.low %v2338_v24, %v2341_v4  ;;  %v1869_v55 = vpop.permute.xlu0 %1868  ;;  %v1268_v8 = vpack.c.bf16 %v7716_v22, %v7716_v22  ;;  %v1430_v24 = vsel %vm914_vm1, %v1398_v23, 0.0 }
 0x275   : > { %v4999_v21 = vpop.f32.mrb[72].mxu0  ;;  %v2248_v12 = vsel %vm804_vm0, %v1266_v17, %v1869_v55 }
 0x276   : > { %v1867_v38 = vpop.permute.xlu1 %1866  ;;  %v5000_v60 = vpop.f32.mrb[73].mxu0  ;;  %3456 = vmatprep.mubr.bf16.mxu0 %v4677_v43 }
 0x277   : > { %v2245_v20 = vsel %vm804_vm0, %v1265_v18, %v1867_v38  ;;  %v7125_v41 = vadd.f32 %v5000_v60, %v4999_v21  ;;  %v5002_v63 = vpop.f32.mrb[74].mxu0  ;;  %v1462_v38 = vpack.c.bf16 %v1430_v24, %v1430_v24 }
 0x278   : > { %v4676_v30 = vcombine.low %v2242_v25, %v2245_v20  ;;  %v5003_v42 = vpop.f32.mrb[75].mxu0  ;;  %v1969_v44 = vpop.permute.xlu0 %1968 }
 0x279   : > { %v7127_v13 = vadd.f32 %v5003_v42, %v5002_v63  ;;  %v2350_v45 = vsel %vm804_vm0, %v1460_v37, %v1969_v44  ;;  %v1270_v63 = vpack.c.bf16 %v6215_v36, %v6215_v36  ;;  %v1271_v42 = vpack.c.bf16 %v6221_v39, %v6221_v39 }
 0x27a   : > { %v1967_v34 = vpop.permute.xlu1 %1966  ;;  %3457 = vmatmul.mubr.bf16.gmra.mrb[128].mxu0 %v4676_v30 }
 0x27b   : > { %v2347_v50 = vsel %vm804_vm0, %v1459_v49, %v1967_v34 }
 0x27c   : > { %v4682_v56 = vcombine.low %v2344_v11, %v2347_v50  ;;  %v1873_v48 = vpop.permute.xlu0 %1872 }
 0x27d   : > { %v2254_v32 = vsel %vm804_vm0, %v1268_v8, %v1873_v48 }
 0x27e   : > { %v1871_v29 = vpop.permute.xlu1 %1870  ;;  %3464 = vmatprep.mubr.bf16.mxu0 %v4682_v56 }
 0x27f   : > { %v2251_v26 = vsel %vm804_vm0, %v1267_v5, %v1871_v29 }
 0x280   : > { %v4681_v2 = vcombine.low %v2248_v12, %v2251_v26  ;;  %v1973_v1 = vpop.permute.xlu0 %1972 }
 0x281   : > { %v2356_v9 = vsel %vm804_vm0, %v1462_v38, %v1973_v1 }
 0x282   : > { %v1971_v27 = vpop.permute.xlu1 %1970  ;;  %3465 = vmatmul.mubr.bf16.gmra.mrb[132].mxu0 %v4681_v2 }
 0x283   : > { %v2353_v19 = vsel %vm804_vm0, %v1461_v16, %v1971_v27 }
 0x284   : > { %v4687_v59 = vcombine.low %v2350_v45, %v2353_v19  ;;  %v5011_v54 = vpop.f32.mrb[0].mxu1  ;;  %v1877_v25 = vpop.permute.xlu0 %1876 }
 0x285   : > { %v5012_v40 = vpop.f32.mrb[1].mxu1  ;;  %v2260_v49 = vsel %vm804_vm0, %v1270_v63, %v1877_v25 }
 0x286   : > { %v7156_v4 = vadd.f32 %v5012_v40, %v5011_v54  ;;  %v5014_v43 = vpop.f32.mrb[2].mxu1  ;;  %v1875_v55 = vpop.permute.xlu1 %1874  ;;  %3472 = vmatprep.mubr.bf16.mxu0 %v4687_v59 }
 0x287   : > { %v2257_v47 = vsel %vm804_vm0, %v1269_v52, %v1875_v55  ;;  %v5015_v21 = vpop.f32.mrb[3].mxu1 }
 0x288   : > { %v4686_v18 = vcombine.low %v2254_v32, %v2257_v47  ;;  %v7160_v7 = vadd.f32 %v5015_v21, %v5014_v43 }
 0x28a   : > { %v1975_v60 = vpop.permute.xlu1 %1974  ;;  %3473 = vmatmul.mubr.bf16.gmra.mrb[136].mxu0 %v4686_v18 }
 0x28b   : > { %v2359_v15 = vsel %vm804_vm0, %v1463_v3, %v1975_v60 }
 0x28c   : > { %v4692_v20 = vcombine.low %v2356_v9, %v2359_v15 }
 0x28d   : > { %v5017_v30 = vpop.f32.mrb[4].mxu1 }
 0x28e   : > { %v5018_v58 = vpop.f32.mrb[5].mxu1  ;;  %v1879_v44 = vpop.permute.xlu1 %1878  ;;  %3480 = vmatprep.mubr.bf16.mxu0 %v4692_v20 }
 0x28f   : > { %v7169_v53 = vadd.f32 %v5018_v58, %v5017_v30  ;;  %v2263_v34 = vsel %vm804_vm0, %v1271_v42, %v1879_v44  ;;  %v5020_v62 = vpop.f32.mrb[6].mxu1 }
 0x290   : > { %v4691_v11 = vcombine.low %v2260_v49, %v2263_v34  ;;  %v5021_v50 = vpop.f32.mrb[7].mxu1 }
 0x291   : > { %v7172_v56 = vadd.f32 %v5021_v50, %v5020_v62 }
 0x292   : > { %3481 = vmatmul.mubr.bf16.gmra.mrb[140].mxu0 %v4691_v11 }
 0x295   : > { %v5023_v36 = vpop.f32.mrb[8].mxu1 }
 0x296   : > { %v5024_v28 = vpop.f32.mrb[9].mxu1 }
 0x297   : > { %v7174_v17 = vadd.f32 %v5024_v28, %v5023_v36  ;;  %v5026_v39 = vpop.f32.mrb[10].mxu1 }
 0x298   : > { %v5027_v14 = vpop.f32.mrb[11].mxu1 }
 0x299   : > { %v7176_v5 = vadd.f32 %v5027_v14, %v5026_v39 }
 0x2a1   : > { %v5029_v33 = vpop.f32.mrb[12].mxu1 }
 0x2a2   : > { %v5030_v29 = vpop.f32.mrb[13].mxu1 }
 0x2a3   : > { %v7178_v0 = vadd.f32 %v5030_v29, %v5029_v33  ;;  %v5032_v12 = vpop.f32.mrb[14].mxu1 }
 0x2a4   : > { %v5033_v48 = vpop.f32.mrb[15].mxu1 }
 0x2a5   : > { %v7180_v26 = vadd.f32 %v5033_v48, %v5032_v12 }
 0x2a9   : > { %v5035_v2 = vpop.f32.mrb[16].mxu1 }
 0x2aa   : > { %v5036_v6 = vpop.f32.mrb[17].mxu1 }
 0x2ab   : > { %v7182_v37 = vadd.f32 %v5036_v6, %v5035_v2  ;;  %v5038_v16 = vpop.f32.mrb[18].mxu1 }
 0x2ac   : > { %v5039_v23 = vpop.f32.mrb[19].mxu1 }
 0x2ad   : > { %v7184_v27 = vadd.f32 %v5039_v23, %v5038_v16 }
 0x2b1   : > { %v5041_v45 = vpop.f32.mrb[20].mxu1 }
 0x2b2   : > { %v5042_v19 = vpop.f32.mrb[21].mxu1 }
 0x2b3   : > { %v7186_v59 = vadd.f32 %v5042_v19, %v5041_v45  ;;  %v5044_v54 = vpop.f32.mrb[22].mxu1  ;;  %v7219_v45 = vld [vmem:[%s7582_s4] ss:$0 sm:$0xff] }
 0x2b4   : > { %v5045_v57 = vpop.f32.mrb[23].mxu1 }
 0x2b5   : > { %v7188_v22 = vadd.f32 %v5045_v57, %v5044_v54 }
 0x2b9   : > { %v5047_v8 = vpop.f32.mrb[24].mxu1 }
 0x2ba   : > { %v5048_v1 = vpop.f32.mrb[25].mxu1 }
 0x2bb   : > { %v7190_v40 = vadd.f32 %v5048_v1, %v5047_v8  ;;  %v5050_v52 = vpop.f32.mrb[26].mxu1  ;;  %v3202_v1 = vadd.f32 %v7085_v10, %v7219_v45  ;;  %v3210_v10 = vadd.f32 %v7109_v61, %v7219_v45 }
 0x2bc   : > { %v5051_v24 = vpop.f32.mrb[27].mxu1 }
 0x2bd   : > { %v7192_v43 = vadd.f32 %v5051_v24, %v5050_v52 }
 0x2bf   : > { %v5005_v55 = vpop.f32.mrb[76].mxu0 }
 0x2c0   : > { %v5006_v32 = vpop.f32.mrb[77].mxu0 }
 0x2c1   : > { %v7194_v47 = vadd.f32 %v5006_v32, %v5005_v55  ;;  %v5008_v21 = vpop.f32.mrb[78].mxu0  ;;  %v3205_v32 = vadd.f32 %v7087_v51, %v7219_v45  ;;  %v3213_v51 = vadd.f32 %v7111_v35, %v7219_v45 }
 0x2c2   : > { %v5009_v3 = vpop.f32.mrb[79].mxu0 }
 0x2c3   : > { %v7196_v18 = vadd.f32 %v5009_v3, %v5008_v21 }
 0x2c5   : > { %v5053_v38 = vpop.f32.mrb[28].mxu1 }
 0x2c6   : > { %v5054_v60 = vpop.f32.mrb[29].mxu1 }
 0x2c7   : > { %v7198_v9 = vadd.f32 %v5054_v60, %v5053_v38  ;;  %v5056_v15 = vpop.f32.mrb[30].mxu1 }
 0x2c8   : > { %v5057_v25 = vpop.f32.mrb[31].mxu1 }
 0x2c9   : > { %v7200_v20 = vadd.f32 %v5057_v25, %v5056_v15 }
 0x2cd   : > { %v5059_v63 = vpop.f32.mrb[32].mxu1 }
 0x2ce   : > { %v5060_v30 = vpop.f32.mrb[33].mxu1 }
 0x2cf   : > { %v7202_v42 = vadd.f32 %v5060_v30, %v5059_v63  ;;  %v5062_v58 = vpop.f32.mrb[34].mxu1 }
 0x2d0   : > { %v5063_v44 = vpop.f32.mrb[35].mxu1 }
 0x2d1   : > { %v7204_v49 = vadd.f32 %v5063_v44, %v5062_v58 }
 0x2d5   : > { %v5065_v34 = vpop.f32.mrb[36].mxu1 }
 0x2d6   : > { %v5066_v62 = vpop.f32.mrb[37].mxu1 }
 0x2d7   : > { %v7206_v11 = vadd.f32 %v5066_v62, %v5065_v34  ;;  %v5068_v50 = vpop.f32.mrb[38].mxu1 }
 0x2d8   : > { %v5069_v36 = vpop.f32.mrb[39].mxu1 }
 0x2d9   : > { %v7208_v28 = vadd.f32 %v5069_v36, %v5068_v50 }
 0x2dd   : > { %v5071_v39 = vpop.f32.mrb[40].mxu1 }
 0x2de   : > { %v5072_v14 = vpop.f32.mrb[41].mxu1 }
 0x2df   : > { %v7210_v33 = vadd.f32 %v5072_v14, %v5071_v39  ;;  %v5074_v29 = vpop.f32.mrb[42].mxu1 }
 0x2e0   : > { %v5075_v12 = vpop.f32.mrb[43].mxu1 }
 0x2e1   : > { %v7212_v48 = vadd.f32 %v5075_v12, %v5074_v29 }
 0x2e9   : > { %v5077_v2 = vpop.f32.mrb[44].mxu1 }
 0x2ea   : > { %v5078_v6 = vpop.f32.mrb[45].mxu1 }
 0x2eb   : > { %v7214_v16 = vadd.f32 %v5078_v6, %v5077_v2  ;;  %v5080_v23 = vpop.f32.mrb[46].mxu1 }
 0x2ec   : > { %v5081_v19 = vpop.f32.mrb[47].mxu1 }
 0x2ed   : > { %v7221_v54 = vadd.f32 %v5081_v19, %v5080_v23  ;;  %v5099_v57 = vpop.f32.mrb[80].mxu0 }
 0x2ee   : > { %v5100_v8 = vpop.f32.mrb[81].mxu0 }
 0x2ef   : > { %v5101_v52 = vadd.f32 %v5100_v8, %v5099_v57  ;;  %v5102_v24 = vpop.f32.mrb[82].mxu0 }
 0x2f0   : > { %v5103_v55 = vpop.f32.mrb[83].mxu0 }
 0x2f1   : > { %v5104_v21 = vadd.f32 %v5103_v55, %v5102_v24  ;;  %v5225_v3 = vpop.f32.mrb[48].mxu1  ;;  %v3363_v38 = vadd.f32 %v5101_v52, %v3202_v1  ;;  %v3218_v55 = vadd.f32 %v7125_v41, %v7219_v45 }
 0x2f2   : > { %v3523_v60 = vpop.f32.mrb[49].mxu1 }
 0x2f3   : > { %v3524_v15 = vadd.f32 %v3523_v60, %v3363_v38  ;;  %v5226_v25 = vpop.f32.mrb[50].mxu1  ;;  %v3366_v63 = vadd.f32 %v5104_v21, %v3205_v32 }
 0x2f4   : > { %v3526_v30 = vpop.f32.mrb[51].mxu1 }
 0x2f5   : > { %v3527_v58 = vadd.f32 %v3526_v30, %v3366_v63  ;;  %v5105_v44 = vpop.f32.mrb[84].mxu0  ;;  %v3650_v62 = vmax.f32 %v3524_v15, 0.0 }
 0x2f6   : > { %v5106_v34 = vpop.f32.mrb[85].mxu0 }
 0x2f7   : > { %v3651_v50 = vmax.f32 %v3527_v58, 0.0  ;;  %v5107_v36 = vadd.f32 %v5106_v34, %v5105_v44  ;;  %v5108_v39 = vpop.f32.mrb[86].mxu0 }
 0x2f8   : > { %v5109_v14 = vpop.f32.mrb[87].mxu0 }
 0x2f9   : > { %v3682_v29 = vpack.c.bf16 %v3651_v50, %v3650_v62  ;;  %v3371_v12 = vadd.f32 %v5107_v36, %v3210_v10  ;;  %v5110_v2 = vadd.f32 %v5109_v14, %v5108_v39  ;;  %v5229_v6 = vpop.f32.mrb[52].mxu1 }
 0x2fa   : > { %v3539_v23 = vpop.f32.mrb[53].mxu1 }
 0x2fb   : > { %v3532_v19 = vadd.f32 %v5225_v3, %v3371_v12  ;;  %v3374_v57 = vadd.f32 %v5110_v2, %v3213_v51  ;;  %v5230_v8 = vpop.f32.mrb[54].mxu1  ;;  %4754 = vmatmul.mubr.msk.bf16.vlgmr.msra.gmra.mrb[80].mxu1 %vm804_vm0, %v3682_v29  ;;  %v3221_v3 = vadd.f32 %v7127_v13, %v7219_v45  ;;  %v3226_v13 = vadd.f32 %v7194_v47, %v7219_v45 }
 0x2fc   : > { %v3542_v1 = vpop.f32.mrb[55].mxu1  ;;  %3848 = vmatprep.mubr.bf16.mxu1 %v5537_v31  ;;  %v3229_v2 = vadd.f32 %v7196_v18, %v7219_v45 }
 0x2fd   : > { %v3535_v61 = vadd.f32 %v5226_v25, %v3374_v57  ;;  %v5111_v52 = vpop.f32.mrb[88].mxu0  ;;  %v3652_v35 = vmax.f32 %v3532_v19, 0.0 }
 0x2fe   : > { %v5112_v24 = vpop.f32.mrb[89].mxu0 }
 0x2ff   : > { %v3653_v32 = vmax.f32 %v3535_v61, 0.0  ;;  %v5113_v21 = vadd.f32 %v5112_v24, %v5111_v52  ;;  %v5114_v38 = vpop.f32.mrb[90].mxu0 }
 0x300   : > { %v5115_v60 = vpop.f32.mrb[91].mxu0 }
 0x301   : > { %v3683_v15 = vpack.c.bf16 %v3653_v32, %v3652_v35  ;;  %v3379_v63 = vadd.f32 %v5113_v21, %v3218_v55  ;;  %v5116_v30 = vadd.f32 %v5115_v60, %v5114_v38  ;;  %v7237_v58 = vpop.f32.mrb[56].mxu1  ;;  %v3234_v21 = vadd.f32 %v7156_v4, %v7219_v45 }
 0x302   : > { %v3555_v44 = vpop.f32.mrb[57].mxu1 }
 0x303   : > { %v3540_v25 = vadd.f32 %v3539_v23, %v3379_v63  ;;  %v3382_v34 = vadd.f32 %v5116_v30, %v3221_v3  ;;  %v7239_v10 = vpop.f32.mrb[58].mxu1  ;;  %4755 = vmatmul.mubr.msk.bf16.gmra.mrb[84].mxu1 %vm804_vm0, %v3683_v15  ;;  %v3237_v63 = vadd.f32 %v7160_v7, %v7219_v45 }
 0x304   : > { %v3558_v41 = vpop.f32.mrb[59].mxu1  ;;  %3858 = vmatprep.mubr.bf16.mxu1 %v5537_v31 }
 0x305   : > { %v3543_v62 = vadd.f32 %v3542_v1, %v3382_v34  ;;  %v5117_v50 = vpop.f32.mrb[92].mxu0  ;;  %v3654_v39 = vmax.f32 %v3540_v25, 0.0 }
 0x306   : > { %v5118_v36 = vpop.f32.mrb[93].mxu0 }
 0x307   : > { %v3655_v14 = vmax.f32 %v3543_v62, 0.0  ;;  %v5119_v51 = vadd.f32 %v5118_v36, %v5117_v50  ;;  %v5120_v29 = vpop.f32.mrb[94].mxu0 }
 0x308   : > { %v5121_v12 = vpop.f32.mrb[95].mxu0 }
 0x309   : > { %v3684_v23 = vpack.c.bf16 %v3655_v14, %v3654_v39  ;;  %v3387_v19 = vadd.f32 %v5119_v51, %v3226_v13  ;;  %v5122_v57 = vadd.f32 %v5121_v12, %v5120_v29  ;;  %v7247_v61 = vpop.f32.mrb[60].mxu1  ;;  %v3242_v51 = vadd.f32 %v7169_v53, %v7219_v45 }
 0x30a   : > { %v7249_v52 = vpop.f32.mrb[61].mxu1 }
 0x30b   : > { %v3548_v1 = vadd.f32 %v5229_v6, %v3387_v19  ;;  %v3390_v24 = vadd.f32 %v5122_v57, %v3229_v2  ;;  %v7251_v55 = vpop.f32.mrb[62].mxu1  ;;  %4756 = vmatmul.mubr.msk.bf16.gmra.mrb[88].mxu1 %vm804_vm0, %v3684_v23  ;;  %v3245_v19 = vadd.f32 %v7172_v56, %v7219_v45 }
 0x30c   : > { %v7254_v47 = vpop.f32.mrb[63].mxu1  ;;  %3868 = vmatprep.mubr.bf16.mxu1 %v5537_v31 }
 0x30d   : > { %v3551_v35 = vadd.f32 %v5230_v8, %v3390_v24  ;;  %v5123_v32 = vpop.f32.mrb[96].mxu0  ;;  %v3656_v38 = vmax.f32 %v3548_v1, 0.0 }
 0x30e   : > { %v5124_v18 = vpop.f32.mrb[97].mxu0 }
 0x30f   : > { %v3657_v60 = vmax.f32 %v3551_v35, 0.0  ;;  %v5125_v3 = vadd.f32 %v5124_v18, %v5123_v32  ;;  %v5126_v15 = vpop.f32.mrb[98].mxu0 }
 0x310   : > { %v5127_v6 = vpop.f32.mrb[99].mxu0 }
 0x311   : > { %v3685_v30 = vpack.c.bf16 %v3657_v60, %v3656_v38  ;;  %v3395_v25 = vadd.f32 %v5125_v3, %v3234_v21  ;;  %v5128_v34 = vadd.f32 %v5127_v6, %v5126_v15  ;;  %v7261_v62 = vpop.f32.mrb[64].mxu1  ;;  %v3250_v3 = vadd.f32 %v7174_v17, %v7219_v45 }
 0x312   : > { %v7263_v50 = vpop.f32.mrb[65].mxu1 }
 0x313   : > { %v3556_v8 = vadd.f32 %v3555_v44, %v3395_v25  ;;  %v3398_v36 = vadd.f32 %v5128_v34, %v3237_v63  ;;  %v7265_v13 = vpop.f32.mrb[66].mxu1  ;;  %4757 = vmatmul.mubr.msk.bf16.gmra.mrb[92].mxu1 %vm804_vm0, %v3685_v30  ;;  %v3253_v25 = vadd.f32 %v7176_v5, %v7219_v45 }
 0x314   : > { %v7268_v4 = vpop.f32.mrb[67].mxu1  ;;  %3878 = vmatprep.mubr.bf16.mxu1 %v5537_v31 }
 0x315   : > { %v3559_v39 = vadd.f32 %v3558_v41, %v3398_v36  ;;  %v5129_v14 = vpop.f32.mrb[100].mxu0  ;;  %v3658_v29 = vmax.f32 %v3556_v8, 0.0 }
 0x316   : > { %v5130_v7 = vpop.f32.mrb[101].mxu0 }
 0x317   : > { %v3659_v12 = vmax.f32 %v3559_v39, 0.0  ;;  %v5131_v2 = vadd.f32 %v5130_v7, %v5129_v14  ;;  %v5132_v23 = vpop.f32.mrb[102].mxu0 }
 0x318   : > { %v5133_v44 = vpop.f32.mrb[103].mxu0 }
 0x319   : > { %v3686_v57 = vpack.c.bf16 %v3659_v12, %v3658_v29  ;;  %v3403_v1 = vadd.f32 %v5131_v2, %v3242_v51  ;;  %v5134_v24 = vadd.f32 %v5133_v44, %v5132_v23  ;;  %v7275_v35 = vpop.f32.mrb[68].mxu1  ;;  %v3258_v2 = vadd.f32 %v7178_v0, %v7219_v45 }
 0x31a   : > { %v7277_v32 = vpop.f32.mrb[69].mxu1 }
 0x31b   : > { %v3564_v41 = vadd.f32 %v7237_v58, %v3403_v1  ;;  %v3406_v18 = vadd.f32 %v5134_v24, %v3245_v19  ;;  %v7280_v21 = vpop.f32.mrb[70].mxu1  ;;  %4758 = vmatmul.mubr.msk.bf16.gmra.mrb[96].mxu1 %vm804_vm0, %v3686_v57  ;;  %v3261_v1 = vadd.f32 %v7180_v26, %v7219_v45 }
 0x31c   : > { %v7283_v53 = vpop.f32.mrb[71].mxu1  ;;  %3888 = vmatprep.mubr.bf16.mxu1 %v5537_v31 }
 0x31d   : > { %v3567_v56 = vadd.f32 %v7239_v10, %v3406_v18  ;;  %v5135_v38 = vpop.f32.mrb[104].mxu0  ;;  %v3660_v15 = vmax.f32 %v3564_v41, 0.0 }
 0x31e   : > { %v5136_v60 = vpop.f32.mrb[105].mxu0 }
 0x31f   : > { %v3661_v6 = vmax.f32 %v3567_v56, 0.0  ;;  %v5137_v63 = vadd.f32 %v5136_v60, %v5135_v38  ;;  %v5138_v58 = vpop.f32.mrb[106].mxu0 }
 0x320   : > { %v5139_v30 = vpop.f32.mrb[107].mxu0 }
 0x321   : > { %v3687_v34 = vpack.c.bf16 %v3661_v6, %v3660_v15  ;;  %v3411_v8 = vadd.f32 %v5137_v63, %v3250_v3  ;;  %v5140_v36 = vadd.f32 %v5139_v30, %v5138_v58  ;;  %v7291_v39 = vpop.f32.mrb[72].mxu1  ;;  %v3266_v63 = vadd.f32 %v7182_v37, %v7219_v45 }
 0x322   : > { %v7293_v14 = vpop.f32.mrb[73].mxu1 }
 0x323   : > { %v3572_v10 = vadd.f32 %v7249_v52, %v3411_v8  ;;  %v3414_v7 = vadd.f32 %v5140_v36, %v3253_v25  ;;  %v7296_v51 = vpop.f32.mrb[74].mxu1  ;;  %4759 = vmatmul.mubr.msk.bf16.gmra.mrb[100].mxu1 %vm804_vm0, %v3687_v34  ;;  %v3269_v8 = vadd.f32 %v7184_v27, %v7219_v45 }
 0x324   : > { %v7299_v17 = vpop.f32.mrb[75].mxu1  ;;  %3898 = vmatprep.mubr.bf16.mxu1 %v5537_v31 }
 0x325   : > { %v3575_v5 = vadd.f32 %v7254_v47, %v3414_v7  ;;  %v5141_v29 = vpop.f32.mrb[108].mxu0  ;;  %v3662_v23 = vmax.f32 %v3572_v10, 0.0 }
 0x326   : > { %v5142_v12 = vpop.f32.mrb[109].mxu0 }
 0x327   : > { %v3663_v44 = vmax.f32 %v3575_v5, 0.0  ;;  %v5143_v19 = vadd.f32 %v5142_v12, %v5141_v29  ;;  %v5144_v52 = vpop.f32.mrb[110].mxu0 }
 0x328   : > { %v5145_v57 = vpop.f32.mrb[111].mxu0 }
 0x329   : > { %v3688_v24 = vpack.c.bf16 %v3663_v44, %v3662_v23  ;;  %v3419_v41 = vadd.f32 %v5143_v19, %v3258_v2  ;;  %v5146_v18 = vadd.f32 %v5145_v57, %v5144_v52  ;;  %v7307_v56 = vpop.f32.mrb[76].mxu1  ;;  %v3274_v2 = vadd.f32 %v7186_v59, %v7219_v45 }
 0x32a   : > { %v7309_v38 = vpop.f32.mrb[77].mxu1 }
 0x32b   : > { %v3580_v47 = vadd.f32 %v7247_v61, %v3419_v41  ;;  %v3422_v60 = vadd.f32 %v5146_v18, %v3261_v1  ;;  %v7312_v3 = vpop.f32.mrb[78].mxu1  ;;  %4760 = vmatmul.mubr.msk.bf16.gmra.mrb[104].mxu1 %vm804_vm0, %v3688_v24 }
 0x32c   : > { %v7315_v0 = vpop.f32.mrb[79].mxu1  ;;  %3908 = vmatprep.mubr.bf16.mxu1 %v5537_v31 }
 0x32d   : > { %v3583_v26 = vadd.f32 %v7251_v55, %v3422_v60  ;;  %v5147_v15 = vpop.f32.mrb[112].mxu0  ;;  %v3664_v58 = vmax.f32 %v3580_v47, 0.0  ;;  %v3282_v60 = vadd.f32 %v7190_v40, %v7219_v45 }
 0x32e   : > { %v5148_v6 = vpop.f32.mrb[113].mxu0 }
 0x32f   : > { %v3665_v30 = vmax.f32 %v3583_v26, 0.0  ;;  %v5149_v25 = vadd.f32 %v5148_v6, %v5147_v15  ;;  %v5150_v61 = vpop.f32.mrb[114].mxu0 }
 0x330   : > { %v5151_v34 = vpop.f32.mrb[115].mxu0 }
 0x331   : > { %v3689_v36 = vpack.c.bf16 %v3665_v30, %v3664_v58  ;;  %v3427_v10 = vadd.f32 %v5149_v25, %v3266_v63  ;;  %v5152_v7 = vadd.f32 %v5151_v34, %v5150_v61 }
 0x333   : > { %v3588_v5 = vadd.f32 %v7263_v50, %v3427_v10  ;;  %v3430_v29 = vadd.f32 %v5152_v7, %v3269_v8  ;;  %4761 = vmatmul.mubr.msk.bf16.gmra.mrb[108].mxu1 %vm804_vm0, %v3689_v36  ;;  %v3277_v50 = vadd.f32 %v7188_v22, %v7219_v45  ;;  %v3290_v36 = vadd.f32 %v7198_v9, %v7219_v45 }
 0x334   : > { %3918 = vmatprep.mubr.bf16.mxu1 %v5537_v31 }
 0x335   : > { %v3591_v37 = vadd.f32 %v7268_v4, %v3430_v29  ;;  %v5153_v55 = vpop.f32.mrb[116].mxu0  ;;  %v3666_v23 = vmax.f32 %v3588_v5, 0.0 }
 0x336   : > { %v5154_v12 = vpop.f32.mrb[117].mxu0 }
 0x337   : > { %v3667_v44 = vmax.f32 %v3591_v37, 0.0  ;;  %v5155_v27 = vadd.f32 %v5154_v12, %v5153_v55  ;;  %v5156_v19 = vpop.f32.mrb[118].mxu0 }
 0x338   : > { %v5157_v52 = vpop.f32.mrb[119].mxu0 }
 0x339   : > { %v3690_v57 = vpack.c.bf16 %v3667_v44, %v3666_v23  ;;  %v3435_v1 = vadd.f32 %v5155_v27, %v3274_v2  ;;  %v5158_v24 = vadd.f32 %v5157_v52, %v5156_v19  ;;  %v3298_v27 = vadd.f32 %v7202_v42, %v7219_v45 }
 0x33b   : > { %v3596_v41 = vadd.f32 %v7261_v62, %v3435_v1  ;;  %v3438_v18 = vadd.f32 %v5158_v24, %v3277_v50  ;;  %4762 = vmatmul.mubr.msk.bf16.gmra.mrb[112].mxu1 %vm804_vm0, %v3690_v57  ;;  %v3285_v62 = vadd.f32 %v7192_v43, %v7219_v45 }
 0x33c   : > { %3928 = vmatprep.mubr.bf16.mxu1 %v5537_v31 }
 0x33d   : > { %v3599_v59 = vadd.f32 %v7265_v13, %v3438_v18  ;;  %v5159_v4 = vpop.f32.mrb[120].mxu0  ;;  %v3668_v26 = vmax.f32 %v3596_v41, 0.0 }
 0x33e   : > { %v5160_v47 = vpop.f32.mrb[121].mxu0 }
 0x33f   : > { %v3669_v15 = vmax.f32 %v3599_v59, 0.0  ;;  %v5161_v22 = vadd.f32 %v5160_v47, %v5159_v4  ;;  %v5162_v6 = vpop.f32.mrb[122].mxu0  ;;  %v3306_v47 = vadd.f32 %v7206_v11, %v7219_v45 }
 0x340   : > { %v5163_v63 = vpop.f32.mrb[123].mxu0 }
 0x341   : > { %v3691_v58 = vpack.c.bf16 %v3669_v15, %v3668_v26  ;;  %v3443_v30 = vadd.f32 %v5161_v22, %v3282_v60  ;;  %v5164_v25 = vadd.f32 %v5163_v63, %v5162_v6 }
 0x343   : > { %v3604_v61 = vadd.f32 %v7277_v32, %v3443_v30  ;;  %v3446_v34 = vadd.f32 %v5164_v25, %v3285_v62  ;;  %4763 = vmatmul.mubr.msk.bf16.gmra.mrb[116].mxu1 %vm804_vm0, %v3691_v58  ;;  %v3293_v32 = vadd.f32 %v7200_v20, %v7219_v45 }
 0x344   : > { %3938 = vmatprep.mubr.bf16.mxu1 %v5537_v31 }
 0x345   : > { %v3607_v40 = vadd.f32 %v7283_v53, %v3446_v34  ;;  %v5165_v13 = vpop.f32.mrb[124].mxu0  ;;  %v3670_v10 = vmax.f32 %v3604_v61, 0.0  ;;  %v3314_v61 = vadd.f32 %v7210_v33, %v7219_v45 }
 0x346   : > { %v5166_v8 = vpop.f32.mrb[125].mxu0 }
 0x347   : > { %v3671_v7 = vmax.f32 %v3607_v40, 0.0  ;;  %v5167_v43 = vadd.f32 %v5166_v8, %v5165_v13  ;;  %v5168_v5 = vpop.f32.mrb[126].mxu0 }
 0x348   : > { %v5169_v29 = vpop.f32.mrb[127].mxu0 }
 0x349   : > { %v3692_v37 = vpack.c.bf16 %v3671_v7, %v3670_v10  ;;  %v3451_v55 = vadd.f32 %v5167_v43, %v3290_v36  ;;  %v5170_v12 = vadd.f32 %v5169_v29, %v5168_v5 }
 0x34b   : > { %v3612_v2 = vadd.f32 %v7275_v35, %v3451_v55  ;;  %v3454_v23 = vadd.f32 %v5170_v12, %v3293_v32  ;;  %4764 = vmatmul.mubr.msk.bf16.gmra.mrb[120].mxu1 %vm804_vm0, %v3692_v37  ;;  %v3301_v35 = vadd.f32 %v7204_v49, %v7219_v45  ;;  %v3322_v32 = vadd.f32 %v7214_v16, %v7219_v45 }
 0x34c   : > { %3948 = vmatprep.mubr.bf16.mxu1 %v5537_v31 }
 0x34d   : > { %v3615_v9 = vadd.f32 %v7280_v21, %v3454_v23  ;;  %v5171_v53 = vpop.f32.mrb[128].mxu0  ;;  %v3672_v19 = vmax.f32 %v3612_v2, 0.0 }
 0x34e   : > { %v5172_v44 = vpop.f32.mrb[129].mxu0 }
 0x34f   : > { %v3673_v52 = vmax.f32 %v3615_v9, 0.0  ;;  %v5173_v20 = vadd.f32 %v5172_v44, %v5171_v53  ;;  %v5174_v50 = vpop.f32.mrb[130].mxu0 }
 0x350   : > { %v5175_v57 = vpop.f32.mrb[131].mxu0 }
 0x351   : > { %v3693_v1 = vpack.c.bf16 %v3673_v52, %v3672_v19  ;;  %v3459_v24 = vadd.f32 %v5173_v20, %v3298_v27  ;;  %v5176_v41 = vadd.f32 %v5175_v57, %v5174_v50 }
 0x353   : > { %v3620_v18 = vadd.f32 %v7293_v14, %v3459_v24  ;;  %v3462_v59 = vadd.f32 %v5176_v41, %v3301_v35  ;;  %4765 = vmatmul.mubr.msk.bf16.gmra.mrb[124].mxu1 %vm804_vm0, %v3693_v1  ;;  %v3309_v14 = vadd.f32 %v7208_v28, %v7219_v45  ;;  %v5440_v41 = vld [vmem:[%s5660_s22 + $0x8] sm:$0xff] }
 0x354   : > { %3958 = vmatprep.mubr.bf16.mxu1 %v5537_v31 }
 0x355   : > { %v3623_v42 = vadd.f32 %v7299_v17, %v3462_v59  ;;  %v5177_v21 = vpop.f32.mrb[132].mxu0  ;;  %v3674_v60 = vmax.f32 %v3620_v18, 0.0  ;;  %v4001_v18 = vunpack.c.l.bf16 %v5440_v41 }
 0x356   : > { %v5178_v4 = vpop.f32.mrb[133].mxu0 }
 0x357   : > { %v3675_v26 = vmax.f32 %v3623_v42, 0.0  ;;  %v5179_v49 = vadd.f32 %v5178_v4, %v5177_v21  ;;  %v5180_v15 = vpop.f32.mrb[134].mxu0 }
 0x358   : > { %v5181_v22 = vpop.f32.mrb[135].mxu0 }
 0x359   : > { %v3694_v6 = vpack.c.bf16 %v3675_v26, %v3674_v60  ;;  %v3467_v63 = vadd.f32 %v5179_v49, %v3306_v47  ;;  %v5182_v62 = vadd.f32 %v5181_v22, %v5180_v15 }
 0x35b   : > { %v3628_v58 = vadd.f32 %v7291_v39, %v3467_v63  ;;  %v3470_v30 = vadd.f32 %v5182_v62, %v3309_v14  ;;  %4766 = vmatmul.mubr.msk.bf16.gmra.mrb[128].mxu1 %vm804_vm0, %v3694_v6  ;;  %v3317_v39 = vadd.f32 %v7212_v48, %v7219_v45  ;;  %v5441_v63 = vld [vmem:[%s5660_s22 + $0x10] sm:$0xff] }
 0x35c   : > { %3968 = vmatprep.mubr.bf16.mxu1 %v5537_v31  ;;  %v4003_v62 = vunpack.c.l.bf16 %v5441_v63 }
 0x35d   : > { %v3631_v11 = vadd.f32 %v7296_v51, %v3470_v30  ;;  %v5183_v17 = vpop.f32.mrb[136].mxu0  ;;  %v3676_v34 = vmax.f32 %v3628_v58, 0.0 }
 0x35e   : > { %v5184_v25 = vpop.f32.mrb[137].mxu0 }
 0x35f   : > { %v3677_v40 = vmax.f32 %v3631_v11, 0.0  ;;  %v5185_v28 = vadd.f32 %v5184_v25, %v5183_v17  ;;  %v5186_v13 = vpop.f32.mrb[138].mxu0  ;;  %v4004_v17 = vunpack.c.h.bf16 %v5441_v63 }
 0x360   : > { %v5187_v8 = vpop.f32.mrb[139].mxu0 }
 0x361   : > { %v3695_v36 = vpack.c.bf16 %v3677_v40, %v3676_v34  ;;  %v3475_v10 = vadd.f32 %v5185_v28, %v3314_v61  ;;  %v5188_v7 = vadd.f32 %v5187_v8, %v5186_v13  ;;  %v5442_v34 = vld [vmem:[%s5660_s22 + $0x18] sm:$0xff] }
 0x362   : > { %v4005_v40 = vunpack.c.l.bf16 %v5442_v34 }
 0x363   : > { %v3636_v43 = vadd.f32 %v7309_v38, %v3475_v10  ;;  %v3478_v5 = vadd.f32 %v5188_v7, %v3317_v39  ;;  %4767 = vmatmul.mubr.msk.bf16.gmra.mrb[132].mxu1 %vm804_vm0, %v3695_v36  ;;  %v3325_v38 = vadd.f32 %v7221_v54, %v7219_v45  ;;  %v3710_v45 = vsub.s32 0, %v5778_v46  ;;  %v3706_v54 = vld [vmem:[%s7584_s6] sm:$0x3] }
 0x364   : > { %3978 = vmatprep.mubr.bf16.mxu1 %v5537_v31  ;;  %v4006_v39 = vunpack.c.h.bf16 %v5442_v34 }
 0x365   : > { %v3639_v33 = vadd.f32 %v7315_v0, %v3478_v5  ;;  %v5189_v51 = vpop.f32.mrb[140].mxu0  ;;  %v3678_v37 = vmax.f32 %v3636_v43, 0.0  ;;  %v7389_v20 = vrot.slane %v3706_v54, %v3710_v45 }
 0x366   : > { %v5190_v29 = vpop.f32.mrb[141].mxu0 }
 0x367   : > { %v3679_v55 = vmax.f32 %v3639_v33, 0.0  ;;  %v5191_v48 = vadd.f32 %v5190_v29, %v5189_v51  ;;  %v5192_v12 = vpop.f32.mrb[142].mxu0 }
 0x368   : > { %v5193_v2 = vpop.f32.mrb[143].mxu0 }
 0x369   : > { %v3696_v23 = vpack.c.bf16 %v3679_v55, %v3678_v37  ;;  %v3483_v9 = vadd.f32 %v5191_v48, %v3322_v32  ;;  %v5194_v53 = vadd.f32 %v5193_v2, %v5192_v12  ;;  %v5443_v55 = vld [vmem:[%s5660_s22 + $0x20] sm:$0xff] }
 0x36a   : > { %v4007_v48 = vunpack.c.l.bf16 %v5443_v55 }
 0x36b   : > { %v3644_v44 = vadd.f32 %v7307_v56, %v3483_v9  ;;  %v3486_v0 = vadd.f32 %v5194_v53, %v3325_v38  ;;  %4768 = vmatmul.mubr.msk.bf16.gmra.mrb[136].mxu1 %vm804_vm0, %v3696_v23  ;;  %v3714_v56 = vsub.s32 1, %v5778_v46  ;;  %v4002_v46 = vunpack.c.h.bf16 %v5440_v41 }
 0x36c   : > { %3988 = vmatprep.mubr.bf16.mxu1 %v5537_v31  ;;  %v4008_v23 = vunpack.c.h.bf16 %v5443_v55 }
 0x36d   : > { %v3647_v16 = vadd.f32 %v7312_v3, %v3486_v0  ;;  %v3680_v27 = vmax.f32 %v3644_v44, 0.0  ;;  %v7391_v31 = vrot.slane %v3706_v54, %v3714_v56  ;;  %v5439_v3 = vld [vmem:[%s5660_s22] sm:$0xff]  ;;  %v5444_v44 = vld [vmem:[%s5660_s22 + $0x28] sm:$0xff] }
 0x36e   : > { %v3999_v50 = vunpack.c.l.bf16 %v5439_v3  ;;  %v4000_v35 = vunpack.c.h.bf16 %v5439_v3  ;;  %v4009_v0 = vunpack.c.l.bf16 %v5444_v44 }
 0x36f   : > { %v3681_v19 = vmax.f32 %v3647_v16, 0.0 }
 0x371   : > { %v3697_v52 = vpack.c.bf16 %v3681_v19, %v3680_v27 }
 0x373   : > { %4769 = vmatmul.mubr.msk.bf16.gmra.mrb[140].mxu1 %vm804_vm0, %v3697_v52  ;;  %v4010_v52 = vunpack.c.h.bf16 %v5444_v44 }
 0x3ce   : > { %v3840_v57 = vpop.f32.mrb[80].mxu1 }
 0x3cf   : > { %v3841_v1 = vadd.f32 %v3840_v57, %v7389_v20  ;;  %v3842_v24 = vpop.f32.mrb[81].mxu1 }
 0x3d0   : > { %v3843_v59 = vadd.f32 %v3842_v24, %v7391_v31  ;;  %v3844_v42 = vpop.f32.mrb[82].mxu1 }
 0x3d1   : > { %v4063_v21 = vadd.f32 %v3999_v50, %v3841_v1  ;;  %v3845_v4 = vadd.f32 %v3844_v42, %v7389_v20  ;;  %v3846_v47 = vpop.f32.mrb[83].mxu1 }
 0x3d2   : > { %v4064_v60 = vadd.f32 %v4000_v35, %v3843_v59  ;;  %v3847_v26 = vadd.f32 %v3846_v47, %v7391_v31 }
 0x3d3   : > { %v4127_v49 = vmax.f32 %v4063_v21, 0.0  ;;  %v4065_v15 = vadd.f32 %v4001_v18, %v3845_v4  ;;  %v5445_v18 = vld [vmem:[%s5660_s22 + $0x30] sm:$0xff] }
 0x3d4   : > { %v4128_v22 = vmax.f32 %v4064_v60, 0.0  ;;  %v4066_v14 = vadd.f32 %v4002_v46, %v3847_v26  ;;  %v4011_v59 = vunpack.c.l.bf16 %v5445_v18  ;;  %v4012_v4 = vunpack.c.h.bf16 %v5445_v18  ;;  %v5446_v26 = vld [vmem:[%s5660_s22 + $0x38] sm:$0xff] }
 0x3d5   : > { %v4129_v6 = vmax.f32 %v4065_v15, 0.0 }
 0x3d6   : > { %v4825_v58 = vpack.c.bf16 %v4128_v22, %v4127_v49  ;;  %v4130_v30 = vmax.f32 %v4066_v14, 0.0  ;;  %v3850_v11 = vpop.f32.mrb[84].mxu1  ;;  %v4013_v49 = vunpack.c.l.bf16 %v5446_v26 }
 0x3d7   : > { %v3851_v25 = vadd.f32 %v3850_v11, %v7389_v20  ;;  %v3852_v61 = vpop.f32.mrb[85].mxu1 }
 0x3d8   : > { %4447 = vst [vmem:[%s7405_s21] sm:$0xff] %v4825_v58  ;;  %v4826_v28 = vpack.c.bf16 %v4130_v30, %v4129_v6  ;;  %v3853_v13 = vadd.f32 %v3852_v61, %v7391_v31  ;;  %v3854_v8 = vpop.f32.mrb[86].mxu1  ;;  %v4014_v6 = vunpack.c.h.bf16 %v5446_v26 }
 0x3d9   : > { %v4067_v36 = vadd.f32 %v4003_v62, %v3851_v25  ;;  %v3855_v10 = vadd.f32 %v3854_v8, %v7389_v20  ;;  %v3856_v7 = vpop.f32.mrb[87].mxu1 }
 0x3da   : > { %4448 = vst [vmem:[%s7405_s21 + $0x8] sm:$0xff] %v4826_v28  ;;  %v4068_v43 = vadd.f32 %v4004_v17, %v3853_v13  ;;  %v3857_v5 = vadd.f32 %v3856_v7, %v7391_v31  ;;  %v5447_v28 = vld [vmem:[%s5660_s22 + $0x40] sm:$0xff] }
 0x3db   : > { %v4131_v33 = vmax.f32 %v4067_v36, 0.0  ;;  %v4069_v51 = vadd.f32 %v4005_v40, %v3855_v10  ;;  %v4015_v13 = vunpack.c.l.bf16 %v5447_v28  ;;  %v4016_v10 = vunpack.c.h.bf16 %v5447_v28 }
 0x3dc   : > { %v4132_v29 = vmax.f32 %v4068_v43, 0.0  ;;  %v4070_v32 = vadd.f32 %v4006_v39, %v3857_v5  ;;  %v5448_v5 = vld [vmem:[%s5660_s22 + $0x48] sm:$0xff] }
 0x3dd   : > { %v4133_v37 = vmax.f32 %v4069_v51, 0.0 }
 0x3de   : > { %v4827_v12 = vpack.c.bf16 %v4132_v29, %v4131_v33  ;;  %v4134_v2 = vmax.f32 %v4070_v32, 0.0  ;;  %v3860_v38 = vpop.f32.mrb[88].mxu1  ;;  %v4017_v33 = vunpack.c.l.bf16 %v5448_v5 }
 0x3df   : > { %v3861_v9 = vadd.f32 %v3860_v38, %v7389_v20  ;;  %v3862_v53 = vpop.f32.mrb[89].mxu1 }
 0x3e0   : > { %4449 = vst [vmem:[%s7405_s21 + $0x10] sm:$0xff] %v4827_v12  ;;  %v4828_v16 = vpack.c.bf16 %v4134_v2, %v4133_v37  ;;  %v3863_v27 = vadd.f32 %v3862_v53, %v7391_v31  ;;  %v3864_v19 = vpop.f32.mrb[90].mxu1  ;;  %v4018_v37 = vunpack.c.h.bf16 %v5448_v5 }
 0x3e1   : > { %v4071_v45 = vadd.f32 %v4007_v48, %v3861_v9  ;;  %v3865_v54 = vadd.f32 %v3864_v19, %v7389_v20  ;;  %v3866_v56 = vpop.f32.mrb[91].mxu1 }
 0x3e2   : > { %4450 = vst [vmem:[%s7405_s21 + $0x18] sm:$0xff] %v4828_v16  ;;  %v4072_v3 = vadd.f32 %v4008_v23, %v3863_v27  ;;  %v3867_v50 = vadd.f32 %v3866_v56, %v7391_v31  ;;  %v5449_v16 = vld [vmem:[%s5660_s22 + $0x50] sm:$0xff] }
 0x3e3   : > { %v4135_v57 = vmax.f32 %v4071_v45, 0.0  ;;  %v4073_v35 = vadd.f32 %v4009_v0, %v3865_v54  ;;  %v4019_v27 = vunpack.c.l.bf16 %v5449_v16  ;;  %v4020_v54 = vunpack.c.h.bf16 %v5449_v16 }
 0x3e4   : > { %v4136_v1 = vmax.f32 %v4072_v3, 0.0  ;;  %v4074_v24 = vadd.f32 %v4010_v52, %v3867_v50  ;;  %v5450_v50 = vld [vmem:[%s5660_s22 + $0x58] sm:$0xff] }
 0x3e5   : > { %v4137_v41 = vmax.f32 %v4073_v35, 0.0 }
 0x3e6   : > { %v4829_v42 = vpack.c.bf16 %v4136_v1, %v4135_v57  ;;  %v4138_v46 = vmax.f32 %v4074_v24, 0.0  ;;  %v3870_v21 = vpop.f32.mrb[92].mxu1  ;;  %v4021_v57 = vunpack.c.l.bf16 %v5450_v50 }
 0x3e7   : > { %v3871_v47 = vadd.f32 %v3870_v21, %v7389_v20  ;;  %v3872_v60 = vpop.f32.mrb[93].mxu1 }
 0x3e8   : > { %4451 = vst [vmem:[%s7405_s21 + $0x20] sm:$0xff] %v4829_v42  ;;  %v4830_v15 = vpack.c.bf16 %v4138_v46, %v4137_v41  ;;  %v3873_v22 = vadd.f32 %v3872_v60, %v7391_v31  ;;  %v3874_v14 = vpop.f32.mrb[94].mxu1  ;;  %v4022_v41 = vunpack.c.h.bf16 %v5450_v50 }
 0x3e9   : > { %v4075_v63 = vadd.f32 %v4011_v59, %v3871_v47  ;;  %v3875_v62 = vadd.f32 %v3874_v14, %v7389_v20  ;;  %v3876_v58 = vpop.f32.mrb[95].mxu1 }
 0x3ea   : > { %4452 = vst [vmem:[%s7405_s21 + $0x28] sm:$0xff] %v4830_v15  ;;  %v4076_v30 = vadd.f32 %v4012_v4, %v3873_v22  ;;  %v3877_v11 = vadd.f32 %v3876_v58, %v7391_v31  ;;  %v5451_v15 = vld [vmem:[%s5660_s22 + $0x60] sm:$0xff] }
 0x3eb   : > { %v4139_v17 = vmax.f32 %v4075_v63, 0.0  ;;  %v4077_v25 = vadd.f32 %v4013_v49, %v3875_v62  ;;  %v4023_v22 = vunpack.c.l.bf16 %v5451_v15  ;;  %v4024_v62 = vunpack.c.h.bf16 %v5451_v15 }
 0x3ec   : > { %v4140_v61 = vmax.f32 %v4076_v30, 0.0  ;;  %v4078_v34 = vadd.f32 %v4014_v6, %v3877_v11  ;;  %v5452_v11 = vld [vmem:[%s5660_s22 + $0x68] sm:$0xff] }
 0x3ed   : > { %v4141_v40 = vmax.f32 %v4077_v25, 0.0 }
 0x3ee   : > { %v4831_v8 = vpack.c.bf16 %v4140_v61, %v4139_v17  ;;  %v4142_v39 = vmax.f32 %v4078_v34, 0.0  ;;  %v3880_v36 = vpop.f32.mrb[96].mxu1  ;;  %v4025_v17 = vunpack.c.l.bf16 %v5452_v11 }
 0x3ef   : > { %v3881_v7 = vadd.f32 %v3880_v36, %v7389_v20  ;;  %v3882_v43 = vpop.f32.mrb[97].mxu1 }
 0x3f0   : > { %4453 = vst [vmem:[%s7405_s21 + $0x30] sm:$0xff] %v4831_v8  ;;  %v4832_v51 = vpack.c.bf16 %v4142_v39, %v4141_v40  ;;  %v3883_v29 = vadd.f32 %v3882_v43, %v7391_v31  ;;  %v3884_v32 = vpop.f32.mrb[98].mxu1  ;;  %v4026_v40 = vunpack.c.h.bf16 %v5452_v11 }
 0x3f1   : > { %v4079_v55 = vadd.f32 %v4015_v13, %v3881_v7  ;;  %v3885_v48 = vadd.f32 %v3884_v32, %v7389_v20  ;;  %v3886_v12 = vpop.f32.mrb[99].mxu1 }
 0x3f2   : > { %4454 = vst [vmem:[%s7405_s21 + $0x38] sm:$0xff] %v4832_v51  ;;  %v4080_v2 = vadd.f32 %v4016_v10, %v3883_v29  ;;  %v3887_v38 = vadd.f32 %v3886_v12, %v7391_v31  ;;  %v5453_v51 = vld [vmem:[%s5660_s22 + $0x70] sm:$0xff] }
 0x3f3   : > { %v4143_v23 = vmax.f32 %v4079_v55, 0.0  ;;  %v4081_v9 = vadd.f32 %v4017_v33, %v3885_v48  ;;  %v4027_v29 = vunpack.c.l.bf16 %v5453_v51  ;;  %v4028_v48 = vunpack.c.h.bf16 %v5453_v51 }
 0x3f4   : > { %v4144_v53 = vmax.f32 %v4080_v2, 0.0  ;;  %v4082_v44 = vadd.f32 %v4018_v37, %v3887_v38  ;;  %v5454_v38 = vld [vmem:[%s5660_s22 + $0x78] sm:$0xff] }
 0x3f5   : > { %v4145_v0 = vmax.f32 %v4081_v9, 0.0 }
 0x3f6   : > { %v4833_v19 = vpack.c.bf16 %v4144_v53, %v4143_v23  ;;  %v4146_v52 = vmax.f32 %v4082_v44, 0.0  ;;  %v3890_v45 = vpop.f32.mrb[100].mxu1  ;;  %v4029_v23 = vunpack.c.l.bf16 %v5454_v38 }
 0x3f7   : > { %v3891_v56 = vadd.f32 %v3890_v45, %v7389_v20  ;;  %v3892_v3 = vpop.f32.mrb[101].mxu1 }
 0x3f8   : > { %4455 = vst [vmem:[%s7405_s21 + $0x40] sm:$0xff] %v4833_v19  ;;  %v4834_v35 = vpack.c.bf16 %v4146_v52, %v4145_v0  ;;  %v3893_v1 = vadd.f32 %v3892_v3, %v7391_v31  ;;  %v3894_v24 = vpop.f32.mrb[102].mxu1  ;;  %v4030_v0 = vunpack.c.h.bf16 %v5454_v38 }
 0x3f9   : > { %v4083_v18 = vadd.f32 %v4019_v27, %v3891_v56  ;;  %v3895_v59 = vadd.f32 %v3894_v24, %v7389_v20  ;;  %v3896_v42 = vpop.f32.mrb[103].mxu1 }
 0x3fa   : > { %4456 = vst [vmem:[%s7405_s21 + $0x48] sm:$0xff] %v4834_v35  ;;  %v4084_v46 = vadd.f32 %v4020_v54, %v3893_v1  ;;  %v3897_v21 = vadd.f32 %v3896_v42, %v7391_v31  ;;  %v5455_v35 = vld [vmem:[%s5660_s22 + $0x80] sm:$0xff] }
 0x3fb   : > { %v4147_v4 = vmax.f32 %v4083_v18, 0.0  ;;  %v4085_v47 = vadd.f32 %v4021_v57, %v3895_v59  ;;  %v4031_v1 = vunpack.c.l.bf16 %v5455_v35  ;;  %v4032_v59 = vunpack.c.h.bf16 %v5455_v35 }
 0x3fc   : > { %v4148_v60 = vmax.f32 %v4084_v46, 0.0  ;;  %v4086_v26 = vadd.f32 %v4022_v41, %v3897_v21  ;;  %v5456_v21 = vld [vmem:[%s5660_s22 + $0x88] sm:$0xff] }
 0x3fd   : > { %v4149_v49 = vmax.f32 %v4085_v47, 0.0 }
 0x3fe   : > { %v4835_v14 = vpack.c.bf16 %v4148_v60, %v4147_v4  ;;  %v4150_v6 = vmax.f32 %v4086_v26, 0.0  ;;  %v3900_v63 = vpop.f32.mrb[104].mxu1  ;;  %v4033_v4 = vunpack.c.l.bf16 %v5456_v21 }
 0x3ff   : > { %v3901_v58 = vadd.f32 %v3900_v63, %v7389_v20  ;;  %v3902_v30 = vpop.f32.mrb[105].mxu1 }
 0x400   : > { %4457 = vst [vmem:[%s7405_s21 + $0x50] sm:$0xff] %v4835_v14  ;;  %v4836_v25 = vpack.c.bf16 %v4150_v6, %v4149_v49  ;;  %v3903_v61 = vadd.f32 %v3902_v30, %v7391_v31  ;;  %v3904_v34 = vpop.f32.mrb[106].mxu1  ;;  %v4034_v49 = vunpack.c.h.bf16 %v5456_v21 }
 0x401   : > { %v4087_v28 = vadd.f32 %v4023_v22, %v3901_v58  ;;  %v3905_v13 = vadd.f32 %v3904_v34, %v7389_v20  ;;  %v3906_v8 = vpop.f32.mrb[107].mxu1 }
 0x402   : > { %4458 = vst [vmem:[%s7405_s21 + $0x58] sm:$0xff] %v4836_v25  ;;  %v4088_v39 = vadd.f32 %v4024_v62, %v3903_v61  ;;  %v3907_v36 = vadd.f32 %v3906_v8, %v7391_v31  ;;  %v5457_v25 = vld [vmem:[%s5660_s22 + $0x90] sm:$0xff] }
 0x403   : > { %v4151_v10 = vmax.f32 %v4087_v28, 0.0  ;;  %v4089_v7 = vadd.f32 %v4025_v17, %v3905_v13  ;;  %v4035_v61 = vunpack.c.l.bf16 %v5457_v25  ;;  %v4036_v13 = vunpack.c.h.bf16 %v5457_v25 }
 0x404   : > { %v4152_v43 = vmax.f32 %v4088_v39, 0.0  ;;  %v4090_v5 = vadd.f32 %v4026_v40, %v3907_v36  ;;  %v5458_v36 = vld [vmem:[%s5660_s22 + $0x98] sm:$0xff] }
 0x405   : > { %v4153_v33 = vmax.f32 %v4089_v7, 0.0 }
 0x406   : > { %v4837_v32 = vpack.c.bf16 %v4152_v43, %v4151_v10  ;;  %v4154_v37 = vmax.f32 %v4090_v5, 0.0  ;;  %v3910_v55 = vpop.f32.mrb[108].mxu1  ;;  %v4037_v10 = vunpack.c.l.bf16 %v5458_v36 }
 0x407   : > { %v3911_v12 = vadd.f32 %v3910_v55, %v7389_v20  ;;  %v3912_v2 = vpop.f32.mrb[109].mxu1 }
 0x408   : > { %4459 = vst [vmem:[%s7405_s21 + $0x60] sm:$0xff] %v4837_v32  ;;  %v4838_v9 = vpack.c.bf16 %v4154_v37, %v4153_v33  ;;  %v3913_v53 = vadd.f32 %v3912_v2, %v7391_v31  ;;  %v3914_v44 = vpop.f32.mrb[110].mxu1  ;;  %v4038_v33 = vunpack.c.h.bf16 %v5458_v36 }
 0x409   : > { %v4091_v16 = vadd.f32 %v4027_v29, %v3911_v12  ;;  %v3915_v27 = vadd.f32 %v3914_v44, %v7389_v20  ;;  %v3916_v19 = vpop.f32.mrb[111].mxu1 }
 0x40a   : > { %4460 = vst [vmem:[%s7405_s21 + $0x68] sm:$0xff] %v4838_v9  ;;  %v4092_v52 = vadd.f32 %v4028_v48, %v3913_v53  ;;  %v3917_v45 = vadd.f32 %v3916_v19, %v7391_v31  ;;  %v5459_v9 = vld [vmem:[%s5660_s22 + $0xa0] sm:$0xff] }
 0x40b   : > { %v4155_v54 = vmax.f32 %v4091_v16, 0.0  ;;  %v4093_v56 = vadd.f32 %v4029_v23, %v3915_v27  ;;  %v4039_v53 = vunpack.c.l.bf16 %v5459_v9  ;;  %v4040_v27 = vunpack.c.h.bf16 %v5459_v9 }
 0x40c   : > { %v4156_v3 = vmax.f32 %v4092_v52, 0.0  ;;  %v4094_v50 = vadd.f32 %v4030_v0, %v3917_v45  ;;  %v5460_v45 = vld [vmem:[%s5660_s22 + $0xa8] sm:$0xff] }
 0x40d   : > { %v4157_v57 = vmax.f32 %v4093_v56, 0.0 }
 0x40e   : > { %v4839_v24 = vpack.c.bf16 %v4156_v3, %v4155_v54  ;;  %v4158_v41 = vmax.f32 %v4094_v50, 0.0  ;;  %v3920_v18 = vpop.f32.mrb[112].mxu1  ;;  %v4041_v54 = vunpack.c.l.bf16 %v5460_v45 }
 0x40f   : > { %v3921_v42 = vadd.f32 %v3920_v18, %v7389_v20  ;;  %v3922_v46 = vpop.f32.mrb[113].mxu1 }
 0x410   : > { %4461 = vst [vmem:[%s7405_s21 + $0x70] sm:$0xff] %v4839_v24  ;;  %v4840_v47 = vpack.c.bf16 %v4158_v41, %v4157_v57  ;;  %v3923_v60 = vadd.f32 %v3922_v46, %v7391_v31  ;;  %v3924_v26 = vpop.f32.mrb[114].mxu1  ;;  %v4042_v57 = vunpack.c.h.bf16 %v5460_v45 }
 0x411   : > { %v4095_v15 = vadd.f32 %v4031_v1, %v3921_v42  ;;  %v3925_v22 = vadd.f32 %v3924_v26, %v7389_v20  ;;  %v3926_v14 = vpop.f32.mrb[115].mxu1 }
 0x412   : > { %4462 = vst [vmem:[%s7405_s21 + $0x78] sm:$0xff] %v4840_v47  ;;  %v4096_v6 = vadd.f32 %v4032_v59, %v3923_v60  ;;  %v3927_v63 = vadd.f32 %v3926_v14, %v7391_v31  ;;  %v5461_v47 = vld [vmem:[%s5660_s22 + $0xb0] sm:$0xff] }
 0x413   : > { %v4159_v62 = vmax.f32 %v4095_v15, 0.0  ;;  %v4097_v58 = vadd.f32 %v4033_v4, %v3925_v22  ;;  %v4043_v60 = vunpack.c.l.bf16 %v5461_v47  ;;  %v4044_v22 = vunpack.c.h.bf16 %v5461_v47 }
 0x414   : > { %v4160_v30 = vmax.f32 %v4096_v6, 0.0  ;;  %v4098_v11 = vadd.f32 %v4034_v49, %v3927_v63  ;;  %v5462_v63 = vld [vmem:[%s5660_s22 + $0xb8] sm:$0xff] }
 0x415   : > { %v4161_v17 = vmax.f32 %v4097_v58, 0.0 }
 0x416   : > { %v4841_v34 = vpack.c.bf16 %v4160_v30, %v4159_v62  ;;  %v4162_v40 = vmax.f32 %v4098_v11, 0.0  ;;  %v3930_v28 = vpop.f32.mrb[116].mxu1  ;;  %v4045_v62 = vunpack.c.l.bf16 %v5462_v63 }
 0x417   : > { %v3931_v8 = vadd.f32 %v3930_v28, %v7389_v20  ;;  %v3932_v39 = vpop.f32.mrb[117].mxu1 }
 0x418   : > { %4463 = vst [vmem:[%s7405_s21 + $0x80] sm:$0xff] %v4841_v34  ;;  %v4842_v7 = vpack.c.bf16 %v4162_v40, %v4161_v17  ;;  %v3933_v43 = vadd.f32 %v3932_v39, %v7391_v31  ;;  %v3934_v5 = vpop.f32.mrb[118].mxu1  ;;  %v4046_v17 = vunpack.c.h.bf16 %v5462_v63 }
 0x419   : > { %v4099_v51 = vadd.f32 %v4035_v61, %v3931_v8  ;;  %v3935_v29 = vadd.f32 %v3934_v5, %v7389_v20  ;;  %v3936_v32 = vpop.f32.mrb[119].mxu1 }
 0x41a   : > { %4464 = vst [vmem:[%s7405_s21 + $0x88] sm:$0xff] %v4842_v7  ;;  %v4100_v37 = vadd.f32 %v4036_v13, %v3933_v43  ;;  %v3937_v55 = vadd.f32 %v3936_v32, %v7391_v31  ;;  %v5463_v7 = vld [vmem:[%s5660_s22 + $0xc0] sm:$0xff] }
 0x41b   : > { %v4163_v48 = vmax.f32 %v4099_v51, 0.0  ;;  %v4101_v12 = vadd.f32 %v4037_v10, %v3935_v29  ;;  %v4047_v43 = vunpack.c.l.bf16 %v5463_v7  ;;  %v4048_v29 = vunpack.c.h.bf16 %v5463_v7 }
 0x41c   : > { %v4164_v2 = vmax.f32 %v4100_v37, 0.0  ;;  %v4102_v38 = vadd.f32 %v4038_v33, %v3937_v55  ;;  %v5464_v55 = vld [vmem:[%s5660_s22 + $0xc8] sm:$0xff] }
 0x41d   : > { %v4165_v23 = vmax.f32 %v4101_v12, 0.0 }
 0x41e   : > { %v4843_v44 = vpack.c.bf16 %v4164_v2, %v4163_v48  ;;  %v4166_v0 = vmax.f32 %v4102_v38, 0.0  ;;  %v3940_v16 = vpop.f32.mrb[120].mxu1  ;;  %v4049_v48 = vunpack.c.l.bf16 %v5464_v55 }
 0x41f   : > { %v3941_v19 = vadd.f32 %v3940_v16, %v7389_v20  ;;  %v3942_v52 = vpop.f32.mrb[121].mxu1 }
 0x420   : > { %4465 = vst [vmem:[%s7405_s21 + $0x90] sm:$0xff] %v4843_v44  ;;  %v4844_v56 = vpack.c.bf16 %v4166_v0, %v4165_v23  ;;  %v3943_v3 = vadd.f32 %v3942_v52, %v7391_v31  ;;  %v3944_v50 = vpop.f32.mrb[122].mxu1  ;;  %v4050_v23 = vunpack.c.h.bf16 %v5464_v55 }
 0x421   : > { %v4103_v35 = vadd.f32 %v4039_v53, %v3941_v19  ;;  %v3945_v1 = vadd.f32 %v3944_v50, %v7389_v20  ;;  %v3946_v24 = vpop.f32.mrb[123].mxu1 }
 0x422   : > { %4466 = vst [vmem:[%s7405_s21 + $0x98] sm:$0xff] %v4844_v56  ;;  %v4104_v41 = vadd.f32 %v4040_v27, %v3943_v3  ;;  %v3947_v18 = vadd.f32 %v3946_v24, %v7391_v31  ;;  %v5465_v56 = vld [vmem:[%s5660_s22 + $0xd0] sm:$0xff] }
 0x423   : > { %v4167_v59 = vmax.f32 %v4103_v35, 0.0  ;;  %v4105_v42 = vadd.f32 %v4041_v54, %v3945_v1  ;;  %v4051_v3 = vunpack.c.l.bf16 %v5465_v56  ;;  %v4052_v1 = vunpack.c.h.bf16 %v5465_v56 }
 0x424   : > { %v4168_v46 = vmax.f32 %v4104_v41, 0.0  ;;  %v4106_v21 = vadd.f32 %v4042_v57, %v3947_v18  ;;  %v5466_v18 = vld [vmem:[%s5660_s22 + $0xd8] sm:$0xff] }
 0x425   : > { %v4169_v4 = vmax.f32 %v4105_v42, 0.0 }
 0x426   : > { %v4845_v26 = vpack.c.bf16 %v4168_v46, %v4167_v59  ;;  %v4170_v49 = vmax.f32 %v4106_v21, 0.0  ;;  %v3950_v15 = vpop.f32.mrb[124].mxu1  ;;  %v4053_v59 = vunpack.c.l.bf16 %v5466_v18 }
 0x427   : > { %v3951_v14 = vadd.f32 %v3950_v15, %v7389_v20  ;;  %v3952_v6 = vpop.f32.mrb[125].mxu1 }
 0x428   : > { %4467 = vst [vmem:[%s7405_s21 + $0xa0] sm:$0xff] %v4845_v26  ;;  %v4846_v58 = vpack.c.bf16 %v4170_v49, %v4169_v4  ;;  %v3953_v30 = vadd.f32 %v3952_v6, %v7391_v31  ;;  %v3954_v11 = vpop.f32.mrb[126].mxu1  ;;  %v4054_v4 = vunpack.c.h.bf16 %v5466_v18 }
 0x429   : > { %v4107_v25 = vadd.f32 %v4043_v60, %v3951_v14  ;;  %v3955_v61 = vadd.f32 %v3954_v11, %v7389_v20  ;;  %v3956_v34 = vpop.f32.mrb[127].mxu1 }
 0x42a   : > { %4468 = vst [vmem:[%s7405_s21 + $0xa8] sm:$0xff] %v4846_v58  ;;  %v4108_v40 = vadd.f32 %v4044_v22, %v3953_v30  ;;  %v3957_v28 = vadd.f32 %v3956_v34, %v7391_v31  ;;  %v5467_v58 = vld [vmem:[%s5660_s22 + $0xe0] sm:$0xff] }
 0x42b   : > { %v4171_v13 = vmax.f32 %v4107_v25, 0.0  ;;  %v4109_v8 = vadd.f32 %v4045_v62, %v3955_v61  ;;  %v4055_v30 = vunpack.c.l.bf16 %v5467_v58  ;;  %v4056_v61 = vunpack.c.h.bf16 %v5467_v58 }
 0x42c   : > { %v4172_v39 = vmax.f32 %v4108_v40, 0.0  ;;  %v4110_v36 = vadd.f32 %v4046_v17, %v3957_v28  ;;  %v5468_v28 = vld [vmem:[%s5660_s22 + $0xe8] sm:$0xff] }
 0x42d   : > { %v4173_v10 = vmax.f32 %v4109_v8, 0.0 }
 0x42e   : > { %v4847_v5 = vpack.c.bf16 %v4172_v39, %v4171_v13  ;;  %v4174_v33 = vmax.f32 %v4110_v36, 0.0  ;;  %v3960_v51 = vpop.f32.mrb[128].mxu1  ;;  %v4057_v13 = vunpack.c.l.bf16 %v5468_v28 }
 0x42f   : > { %v3961_v32 = vadd.f32 %v3960_v51, %v7389_v20  ;;  %v3962_v37 = vpop.f32.mrb[129].mxu1 }
 0x430   : > { %4469 = vst [vmem:[%s7405_s21 + $0xb0] sm:$0xff] %v4847_v5  ;;  %v4848_v12 = vpack.c.bf16 %v4174_v33, %v4173_v10  ;;  %v3963_v2 = vadd.f32 %v3962_v37, %v7391_v31  ;;  %v3964_v38 = vpop.f32.mrb[130].mxu1  ;;  %v4058_v10 = vunpack.c.h.bf16 %v5468_v28 }
 0x431   : > { %v4111_v9 = vadd.f32 %v4047_v43, %v3961_v32  ;;  %v3965_v53 = vadd.f32 %v3964_v38, %v7389_v20  ;;  %v3966_v44 = vpop.f32.mrb[131].mxu1 }
 0x432   : > { %4470 = vst [vmem:[%s7405_s21 + $0xb8] sm:$0xff] %v4848_v12  ;;  %v4112_v0 = vadd.f32 %v4048_v29, %v3963_v2  ;;  %v3967_v16 = vadd.f32 %v3966_v44, %v7391_v31  ;;  %v5469_v12 = vld [vmem:[%s5660_s22 + $0xf0] sm:$0xff] }
 0x433   : > { %v4175_v27 = vmax.f32 %v4111_v9, 0.0  ;;  %v4113_v19 = vadd.f32 %v4049_v48, %v3965_v53  ;;  %v4059_v2 = vunpack.c.l.bf16 %v5469_v12  ;;  %v4060_v53 = vunpack.c.h.bf16 %v5469_v12 }
 0x434   : > { %v4176_v52 = vmax.f32 %v4112_v0, 0.0  ;;  %v4114_v45 = vadd.f32 %v4050_v23, %v3967_v16  ;;  %v5470_v16 = vld [vmem:[%s5660_s22 + $0xf8] sm:$0xff]  ;;  %s4858_s22 = sshll.u32 %s5602_s28, 12  ;;  %s5471_s28 = scalar_lea.vmem %s7531_s23, 4096 }
 0x435   : > { %v4177_v54 = vmax.f32 %v4113_v19, 0.0  ;;  %s7529_s15 = scalar_lea.hbm %s7585_s7, %s4858_s22  ;;  %p5472_p11 = scmp.ne.s32.totalorder %s7531_s23, %s5471_s28 }
 0x436   : > { %v4849_v50 = vpack.c.bf16 %v4176_v52, %v4175_v27  ;;  %v4178_v57 = vmax.f32 %v4114_v45, 0.0  ;;  %v3970_v35 = vpop.f32.mrb[132].mxu1  ;;  %v4061_v27 = vunpack.c.l.bf16 %v5470_v16  ;;  %p5479_p1 = scmp.lt.s32.totalorder %s5477_s16, %s5471_s28 }
 0x437   : > { %v3971_v24 = vadd.f32 %v3970_v35, %v7389_v20  ;;  %v3972_v41 = vpop.f32.mrb[133].mxu1  ;;  %p5473_p12 = pnand %p5472_p11, %p5619_p5 }
 0x438   : > { %4471 = vst [vmem:[%s7405_s21 + $0xc0] sm:$0xff] %v4849_v50  ;;  %v4850_v42 = vpack.c.bf16 %v4178_v57, %v4177_v54  ;;  %v3973_v46 = vadd.f32 %v3972_v41, %v7391_v31  ;;  %v3974_v21 = vpop.f32.mrb[134].mxu1  ;;  %v4062_v54 = vunpack.c.h.bf16 %v5470_v16  ;;  %p5480_p2 = por %p5479_p1, %p5478_p0 }
 0x439   : > { %v4115_v47 = vadd.f32 %v4051_v3, %v3971_v24  ;;  %v3975_v60 = vadd.f32 %v3974_v21, %v7389_v20  ;;  %v3976_v26 = vpop.f32.mrb[135].mxu1  ;;  %p5474_p13 = pneg %p5473_p12 }
 0x43a   : > { %4472 = vst [vmem:[%s7405_s21 + $0xc8] sm:$0xff] %v4850_v42  ;;  %v4116_v49 = vadd.f32 %v4052_v1, %v3973_v46  ;;  %v3977_v15 = vadd.f32 %v3976_v26, %v7391_v31 }
 0x43b   : > { %v4179_v22 = vmax.f32 %v4115_v47, 0.0  ;;  %v4117_v14 = vadd.f32 %v4053_v59, %v3975_v60  ;;  %p5481_p3 = pnand %p5480_p2, %p5474_p13 }
 0x43c   : > { %v4180_v6 = vmax.f32 %v4116_v49, 0.0  ;;  %v4118_v63 = vadd.f32 %v4054_v4, %v3977_v15 }
 0x43d   : > { %v4181_v62 = vmax.f32 %v4117_v14, 0.0 }
 0x43e   : > { %v4851_v11 = vpack.c.bf16 %v4180_v6, %v4179_v22  ;;  %v4182_v17 = vmax.f32 %v4118_v63, 0.0  ;;  %v3980_v25 = vpop.f32.mrb[136].mxu1 }
 0x43f   : > { %v3981_v34 = vadd.f32 %v3980_v25, %v7389_v20  ;;  %v3982_v40 = vpop.f32.mrb[137].mxu1 }
 0x440   : > { %4473 = vst [vmem:[%s7405_s21 + $0xd0] sm:$0xff] %v4851_v11  ;;  %v4852_v8 = vpack.c.bf16 %v4182_v17, %v4181_v62  ;;  %v3983_v39 = vadd.f32 %v3982_v40, %v7391_v31  ;;  %v3984_v36 = vpop.f32.mrb[138].mxu1 }
 0x441   : > { %v4119_v7 = vadd.f32 %v4055_v30, %v3981_v34  ;;  %v3985_v43 = vadd.f32 %v3984_v36, %v7389_v20  ;;  %v3986_v5 = vpop.f32.mrb[139].mxu1 }
 0x442   : > { %4474 = vst [vmem:[%s7405_s21 + $0xd8] sm:$0xff] %v4852_v8  ;;  %v4120_v33 = vadd.f32 %v4056_v61, %v3983_v39  ;;  %v3987_v51 = vadd.f32 %v3986_v5, %v7391_v31 }
 0x443   : > { %v4183_v29 = vmax.f32 %v4119_v7, 0.0  ;;  %v4121_v32 = vadd.f32 %v4057_v13, %v3985_v43 }
 0x444   : > { %v4184_v37 = vmax.f32 %v4120_v33, 0.0  ;;  %v4122_v55 = vadd.f32 %v4058_v10, %v3987_v51 }
 0x445   : > { %v4185_v48 = vmax.f32 %v4121_v32, 0.0 }
 0x446   : > { %v4853_v38 = vpack.c.bf16 %v4184_v37, %v4183_v29  ;;  %v4186_v23 = vmax.f32 %v4122_v55, 0.0  ;;  %v3990_v9 = vpop.f32.mrb[140].mxu1 }
 0x447   : > { %v3991_v44 = vadd.f32 %v3990_v9, %v7389_v20  ;;  %v3992_v0 = vpop.f32.mrb[141].mxu1 }
 0x448   : > { %4475 = vst [vmem:[%s7405_s21 + $0xe0] sm:$0xff] %v4853_v38  ;;  %v4854_v19 = vpack.c.bf16 %v4186_v23, %v4185_v48  ;;  %v3993_v52 = vadd.f32 %v3992_v0, %v7391_v31  ;;  %v3994_v45 = vpop.f32.mrb[142].mxu1 }
 0x449   : > { %v4123_v56 = vadd.f32 %v4059_v2, %v3991_v44  ;;  %v3995_v3 = vadd.f32 %v3994_v45, %v7389_v20  ;;  %v3996_v50 = vpop.f32.mrb[143].mxu1 }
 0x44a   : > { %4476 = vst [vmem:[%s7405_s21 + $0xe8] sm:$0xff] %v4854_v19  ;;  %v4124_v57 = vadd.f32 %v4060_v53, %v3993_v52  ;;  %v3997_v35 = vadd.f32 %v3996_v50, %v7391_v31 }
 0x44b   : > { %v4187_v1 = vmax.f32 %v4123_v56, 0.0  ;;  %v4125_v24 = vadd.f32 %v4061_v27, %v3995_v3 }
 0x44c   : > { %v4188_v41 = vmax.f32 %v4124_v57, 0.0  ;;  %v4126_v18 = vadd.f32 %v4062_v54, %v3997_v35 }
 0x44d   : > { %v4189_v59 = vmax.f32 %v4125_v24, 0.0 }
 0x44e   : > { %v4855_v42 = vpack.c.bf16 %v4188_v41, %v4187_v1  ;;  %v4190_v46 = vmax.f32 %v4126_v18, 0.0 }
 0x450   : > { %4477 = vst [vmem:[%s7405_s21 + $0xf0] sm:$0xff] %v4855_v42  ;;  %v4856_v20 = vpack.c.bf16 %v4190_v46, %v4189_v59 }
 0x452   : > { %4478 = vst [vmem:[%s7405_s21 + $0xf8] sm:$0xff] %v4856_v20 }
 0x453   : > { %5484 = shalt.err (!%p5481_p3)
}
 0x454   : > { %s5485_s17 = scalar_lea.hbm %s7529_s15, 4096  ;;  %s5489_s20 = scalar_lea.hbm %s7585_s7, 8192 }
 0x455   : > { %p5486_p4 = scmp.ne.s32.totalorder %s7529_s15, %s5485_s17  ;;  %p5490_p9 = scmp.lt.u32.totalorder %s7529_s15, %s7585_s7 }
 0x456   : > { %p5491_p10 = scmp.lt.u32.totalorder %s5489_s20, %s5485_s17  ;;  %p5493_p12 = scmp.lt.u32.totalorder %s5485_s17, %s7529_s15 }
 0x457   : > { %p5487_p7 = pnand %p5486_p4, %p5619_p5 }
 0x458   : > { %p5492_p11 = por %p5491_p10, %p5490_p9 }
 0x459   : > { %p5488_p8 = pneg %p5487_p7 }
 0x45a   : > { %p5494_p13 = por %p5493_p12, %p5492_p11 }
 0x45c   : > { %p5495_p0 = pnand %p5494_p13, %p5488_p8 }
 0x45e   : > { %5498 = shalt.err (!%p5495_p0)
}
 0x45f   : > { %s5539_s29 = smov 128   ;;  %s5540_s8 = smov 8  }
 0x460   : > { %5271 = dma.vmem_to_hbm [thread:$0]  (%p5619_p5), %s7531_s23, 4096, %s7529_s15, %s7537_s9, %s5539_s29, %s5539_s29, %s5540_s8  }
 0x461 PF: > { %p5277_p1 = scmp.ge.s32.totalorder %s5533_s27, 2  ;;  %s4509_s28 = sand.u32 1, %s5521_s24  }
 0x462   : > { %s4510_s13 = scalar_lea.sflag [#allocation4], %s4509_s28 }
 0x463   : > { %p5274_p2 = pnand %p5277_p1, %p5623_p6 }
 0x465   : > { %5516 = dma.done.wait (!%p5274_p2), %s4510_s13, 4096  }
 0x466   : > { %5518 = vsyncadd (!%p5274_p2), %s4510_s13, 4294963200  ;;  %p17_p3 = scmp.ge.s32.totalorder %s5606_s30, 4   ;;  %s7717_s24 = smov %s5525_s25 }
 0x467   : > { %s7718_s25 = smov %s5529_s26  ;;  %s7719_s26 = smov %s5617_s10 }
 0x468   : > { %s7720_s27 = smov %s5606_s30  ;;  %19 = sbr.rel (!%p17_p3) target bundleno = 3 (0x3), region = 86 }
 0x46f   :  { %4515 = vsyncpa [#allocation4], 1 }
 0x470   :  { %4517 = vsyncpa [#allocation4 + $0x1], 1 }

// kernel: tpu_custom_call.1
= control target key start
LH: loop header
LB: loop body
LE: loop exit
PB: predicated region body
PF: predicated region fallthrough
CT: control target
= control target key end

     0   :  { %12 = vsyncpa [#allocation4], 0  ;;  %s7670_s0 = inlined_call_operand.vmem [shape: bf16[8,8,8,256], index: 0, kind: input, shape index: {}]   ;;  %s7671_s1 = inlined_call_operand.vmem [shape: bf16[256,64], index: 1, kind: input, shape index: {}]   ;;  %s7672_s2 = inlined_call_operand.vmem [shape: f32[1,64], index: 2, kind: input, shape index: {}]   ;;  %s7673_s3 = inlined_call_operand.vmem [shape: bf16[576,64], index: 3, kind: input, shape index: {}]   ;;  %s7674_s4 = inlined_call_operand.vmem [shape: f32[1,64], index: 4, kind: input, shape index: {}]   ;;  %s7675_s5 = inlined_call_operand.vmem [shape: bf16[64,256], index: 5, kind: input, shape index: {}]   ;;  %s7676_s6 = inlined_call_operand.vmem [shape: f32[1,256], index: 6, kind: input, shape index: {}]   ;;  %s7677_s7 = inlined_call_operand.hbm [shape: bf16[8,8,8,256], index: 7, kind: output, shape index: {}]  }
   0x1   :  { %14 = vsyncpa [#allocation4 + $0x1], 0  ;;  %s5863_s24 = smov 0   ;;  %s5865_s25 = smov 0  }
   0x2   :  { %s5867_s26 = smov 0   ;;  %s5869_s27 = smov 0  }
   0x3 LB: > { %s5884_s28 = sadd.s32 4294967295, %s5815_s27   ;;  %s4838_s29 = sadd.s32 4294967294, %s5815_s27   ;;  %s5815_s27 = sphi %s5869_s27, %s7812_s27   ;;  %s5811_s26 = sphi %s5867_s26, %s7811_s26   ;;  %s5807_s25 = sphi %s5865_s25, %s7810_s25   ;;  %s5803_s24 = sphi %s5863_s24, %s7809_s24  }
   0x4   : > { %s5888_s30 = sadd.s32 1, %s5815_s27   ;;  %s179_s8 = sadd.s32 1, %s5811_s26 }
   0x5   : > { %s176_s9 = ssub.s32 %s5815_s27, %s5888_s30  ;;  %p189_p0 = scmp.ne.s32.totalorder %s5811_s26, %s5807_s25 }
   0x6   : > { %p177_p1 = scmp.eq.s32.totalorder %s176_s9, 0  ;;  %p190_p2 = scmp.eq.s32.totalorder %s5884_s28, 1 }
   0x7   : > { %p195_p3 = scmp.ne.s32.totalorder %s5807_s25, %s5803_s24  ;;  %p196_p4 = scmp.eq.s32.totalorder %s4838_s29, 1 }
   0x8   : > { %s5899_s10 = scalar_select %p177_p1, %s5811_s26, %s179_s8  }
   0x9   : > { %p5901_p5 = por %p190_p2, %p189_p0  ;;  %p5905_p6 = por %p196_p4, %p195_p3 }
   0xa   : > { %p4841_p7 = scmp.ge.s32.totalorder %s5815_s27, 1  ;;  %p242_p8 = scmp.lt.s32.totalorder %s5815_s27, 3 }
   0xc   : > { %p243_p9 = pnand %p4841_p7, %p242_p8 }
   0xe   : > { %246 = sbr.rel (%p243_p9) target bundleno = 1121 (0x461), region = 48 }
  0x15   : > { %v5597_v0 = vld [vmem:[%s7671_s1 + $0x40] sm:$0xff]   ;;  %s4843_s15 = sshll.u32 %s5884_s28, 2  ;;  %v5599_v2 = vld [vmem:[%s7671_s1 + $0x48] sm:$0xff]   ;;  %v5601_v4 = vld [vmem:[%s7671_s1 + $0x50] sm:$0xff]   ;;  %vm804_vm0 = vcmask 523264   ;;  %v5817_v61 = vmov 0.0  }
  0x16   : > { %v5598_v1 = vld [vmem:[%s7671_s1] sm:$0xff]   ;;  %5141 = vmatprep.subr.bf16.mxu0 %v5597_v0  ;;  %p276_p10 = scmp.lt.s32.totalorder %s4843_s15, 7  ;;  %v5600_v3 = vld [vmem:[%s7671_s1 + $0x8] sm:$0xff]   ;;  %v5602_v5 = vld [vmem:[%s7671_s1 + $0x10] sm:$0xff]   ;;  %807 = vst.msk [vmem:[#allocation2 + $0xa0] sm:$0xff] %vm804_vm0, %v5817_v61  ;;  %vm1008_vm1 = vcmask 1040384  }
  0x17   : > { %5142 = vmatpush3.bf16.msra.mxu0 %v5598_v1  ;;  %v5603_v6 = vld [vmem:[%s7671_s1 + $0x58] sm:$0xff]   ;;  %v5605_v8 = vld [vmem:[%s7671_s1 + $0x60] sm:$0xff]   ;;  %v5607_v10 = vld [vmem:[%s7671_s1 + $0x68] sm:$0xff]   ;;  %805 = vst.msk [vmem:[#allocation2] sm:$0xff] %vm804_vm0, %v5817_v61  ;;  %vm1169_vm2 = vcmask 1046528   ;;  %s272_s19 = sand.u32 1, %s5807_s25  }
  0x18   : > { %5143 = vmatprep.subr.bf16.mxu0 %v5599_v2  ;;  %s7814_s15 = smov (!%p276_p10, %s4843_s15), 7  ;;  %v5604_v7 = vld [vmem:[%s7671_s1 + $0x18] sm:$0xff]   ;;  %v5606_v9 = vld [vmem:[%s7671_s1 + $0x20] sm:$0xff]   ;;  %v5608_v14 = vld [vmem:[%s7671_s1 + $0x28] sm:$0xff]   ;;  %806 = vst.msk [vmem:[#allocation2 + $0x50] sm:$0xff] %vm804_vm0, %v5817_v61  ;;  %s4842_s20 = sshll.u32 %s272_s19, 8 }
  0x19   : > { %s5090_s14 = sshll.u32 %s7814_s15, 6  ;;  %v5609_v15 = vld [vmem:[%s7671_s1 + $0x70] sm:$0xff]   ;;  %v5611_v17 = vld [vmem:[%s7671_s1 + $0x78] sm:$0xff]   ;;  %808 = vst.msk [vmem:[#allocation2 + $0xf0] sm:$0xff] %vm804_vm0, %v5817_v61  ;;  %810 = vst.msk [vmem:[#allocation2 + $0x48] sm:$0xff] %vm804_vm0, %v5817_v61  ;;  %s5818_s15 = smov 64  }
  0x1a   : > { %s5942_s22 = scalar_lea.vmem %s7670_s0, %s5090_s14  ;;  %v5610_v16 = vld [vmem:[%s7671_s1 + $0x30] sm:$0xff]   ;;  %v5612_v18 = vld [vmem:[%s7671_s1 + $0x38] sm:$0xff]   ;;  %811 = vst.msk [vmem:[#allocation2 + $0x98] sm:$0xff] %vm804_vm0, %v5817_v61  ;;  %812 = vst.msk [vmem:[#allocation2 + $0xe8] sm:$0xff] %vm804_vm0, %v5817_v61  ;;  %s7497_s21 = scalar_lea.vmem [#allocation3], %s4842_s20 }
  0x1b   : > { %5144 = vmatpush3.bf16.msra.mxu0 %v5600_v3  ;;  %v284_v11 = vld [vmem:[%s5942_s22] sm:$0xff]  ;;  %v285_v12 = vld [vmem:[%s5942_s22 + $0x8] sm:$0xff]  ;;  %v286_v19 = vld [vmem:[%s5942_s22 + $0x10] sm:$0xff]  ;;  %813 = vst.msk [vmem:[#allocation2 + $0x138] sm:$0xff] %vm804_vm0, %v5817_v61  ;;  %s4776_s23 = sshll.u32 %s7497_s21, 4  ;;  %s7629_s9 = scalar_lea.sflag [#allocation4], %s272_s19  ;;  %s7623_s23 = int_to_ptr.vmem [resolvable:$true] %s4776_s23 }
  0x1c   : > { %5145 = vmatprep.subr.bf16.mxu0 %v5601_v4  ;;  %v4848_v13 = vcombine.high %v284_v11, %v285_v12  ;;  %v287_v20 = vld [vmem:[%s5942_s22 + $0x18] sm:$0xff]  ;;  %v4847_v21 = vcombine.low %v284_v11, %v285_v12  ;;  %v288_v23 = vld [vmem:[%s5942_s22 + $0x20] sm:$0xff]  ;;  %v289_v24 = vld [vmem:[%s5942_s22 + $0x28] sm:$0xff]  ;;  %s5820_s13 = smov [#allocation3]  }
  0x1d   : > { %v4850_v22 = vcombine.high %v286_v19, %v287_v20  ;;  %v4849_v25 = vcombine.low %v286_v19, %v287_v20  ;;  %v4852_v26 = vcombine.high %v288_v23, %v289_v24  ;;  %v290_v27 = vld [vmem:[%s5942_s22 + $0x30] sm:$0xff]  ;;  %v291_v28 = vld [vmem:[%s5942_s22 + $0x38] sm:$0xff]  ;;  %v4851_v29 = vcombine.low %v288_v23, %v289_v24  ;;  %v292_v31 = vld [vmem:[%s5942_s22 + $0x40] sm:$0xff]  ;;  %s5757_s14 = sshll.u32 %s5820_s13, 4  ;;  %s5758_s14 = int_to_ptr.vmem [resolvable:$false] %s5757_s14 }
  0x1e   : > { %643 = vmatprep.mubr.bf16.mxu0 %v4848_v13  ;;  %v4854_v30 = vcombine.high %v290_v27, %v291_v28  ;;  %v293_v32 = vld [vmem:[%s5942_s22 + $0x48] sm:$0xff]  ;;  %v4853_v33 = vcombine.low %v290_v27, %v291_v28  ;;  %v294_v35 = vld [vmem:[%s5942_s22 + $0x50] sm:$0xff]  ;;  %v295_v36 = vld [vmem:[%s5942_s22 + $0x58] sm:$0xff]  ;;  %s5759_s16 = scalar_lea.vmem %s5758_s14, 8192  ;;  %p5760_p0 = scmp.lt.s32.totalorder %s7623_s23, %s5758_s14 }
  0x1f   : > { %5146 = vmatpush3.bf16.msra.mxu0 %v5602_v5  ;;  %v4856_v34 = vcombine.high %v292_v31, %v293_v32  ;;  %v4855_v37 = vcombine.low %v292_v31, %v293_v32  ;;  %v4858_v38 = vcombine.high %v294_v35, %v295_v36  ;;  %v296_v39 = vld [vmem:[%s5942_s22 + $0x60] sm:$0xff]  ;;  %v297_v40 = vld [vmem:[%s5942_s22 + $0x68] sm:$0xff]  ;;  %v4857_v41 = vcombine.low %v294_v35, %v295_v36  ;;  %v298_v43 = vld [vmem:[%s5942_s22 + $0x70] sm:$0xff] }
  0x20   : > { %5147 = vmatprep.subr.bf16.mxu0 %v5603_v6  ;;  %v4860_v42 = vcombine.high %v296_v39, %v297_v40  ;;  %v299_v44 = vld [vmem:[%s5942_s22 + $0x78] sm:$0xff]  ;;  %v4859_v45 = vcombine.low %v296_v39, %v297_v40  ;;  %v300_v47 = vld [vmem:[%s5942_s22 + $0x80] sm:$0xff]  ;;  %v301_v48 = vld [vmem:[%s5942_s22 + $0x88] sm:$0xff] }
  0x21   : > { %v4862_v46 = vcombine.high %v298_v43, %v299_v44  ;;  %v4861_v49 = vcombine.low %v298_v43, %v299_v44  ;;  %v4864_v50 = vcombine.high %v300_v47, %v301_v48  ;;  %v302_v51 = vld [vmem:[%s5942_s22 + $0x90] sm:$0xff]  ;;  %v303_v52 = vld [vmem:[%s5942_s22 + $0x98] sm:$0xff]  ;;  %v4863_v53 = vcombine.low %v300_v47, %v301_v48  ;;  %v304_v55 = vld [vmem:[%s5942_s22 + $0xa0] sm:$0xff] }
  0x22   : > { %v4866_v54 = vcombine.high %v302_v51, %v303_v52  ;;  %v305_v56 = vld [vmem:[%s5942_s22 + $0xa8] sm:$0xff]  ;;  %v4865_v57 = vcombine.low %v302_v51, %v303_v52  ;;  %v306_v59 = vld [vmem:[%s5942_s22 + $0xb0] sm:$0xff]  ;;  %v307_v60 = vld [vmem:[%s5942_s22 + $0xb8] sm:$0xff] }
  0x23   : > { %5148 = vmatpush3.bf16.msra.mxu0 %v5604_v7  ;;  %v4868_v58 = vcombine.high %v304_v55, %v305_v56  ;;  %v4867_v62 = vcombine.low %v304_v55, %v305_v56  ;;  %v4870_v63 = vcombine.high %v306_v59, %v307_v60  ;;  %v863_v0 = vld [vmem:[#allocation2 + $0xa0] sm:$0xff]  ;;  %v309_v2 = vld [vmem:[%s5942_s22 + $0xc8] sm:$0xff]  ;;  %v4869_v4 = vcombine.low %v306_v59, %v307_v60  ;;  %v855_v12 = vld [vmem:[#allocation2 + $0x50] sm:$0xff] }
  0x24   : > { %5149 = vmatprep.subr.bf16.mxu0 %v5605_v8  ;;  %v308_v1 = vld [vmem:[%s5942_s22 + $0xc0] sm:$0xff]  ;;  %v1089_v3 = vpack.c.bf16 %v863_v0, %v863_v0  ;;  %v871_v8 = vld [vmem:[#allocation2 + $0xf0] sm:$0xff]  ;;  %v5647_v27 = vld [vmem:[%s7673_s3 + $0x48] sm:$0xff]  }
  0x25   : > { %v4872_v5 = vcombine.high %v308_v1, %v309_v2  ;;  %v6000_v6 = vld [vmem:[#allocation2] sm:$0xff]  ;;  %v1097_v11 = vpack.c.bf16 %v871_v8, %v871_v8  ;;  %v4871_v13 = vcombine.low %v308_v1, %v309_v2  ;;  %v314_v20 = vld [vmem:[%s5942_s22 + $0xf0] sm:$0xff]  ;;  %v5648_v28 = vld [vmem:[%s7673_s3 + $0x8] sm:$0xff]  }
  0x26   : > { %1938 = vrot.lane.b32.xlu0 %v1089_v3, %s5818_s15  ;;  %v1073_v7 = vpack.c.bf16 %v6000_v6, %v6000_v6  ;;  %v5651_v31 = vld [vmem:[%s7673_s3 + $0x58] sm:$0xff]   ;;  %v5655_v35 = vld [vmem:[%s7673_s3 + $0x68] sm:$0xff]   ;;  %v6055_v39 = vld [vmem:[%s7672_s2] ss:$0 sm:$0xff] }
  0x27   : > { %5150 = vmatpush3.bf16.msra.mxu0 %v5606_v9  ;;  %v310_v9 = vld [vmem:[%s5942_s22 + $0xd0] sm:$0xff]  ;;  %v5652_v32 = vld [vmem:[%s7673_s3 + $0x18] sm:$0xff]   ;;  %v5656_v36 = vld [vmem:[%s7673_s3 + $0x28] sm:$0xff]  }
  0x28   : > { %5151 = vmatprep.subr.bf16.mxu0 %v5607_v10  ;;  %v311_v10 = vld [vmem:[%s5942_s22 + $0xd8] sm:$0xff] }
  0x2a   : > { %1906 = vrot.lane.b32.xlu0 %v1073_v7, %s5818_s15 }
  0x2b   : > { %5152 = vmatpush3.bf16.msra.mxu0 %v5608_v14  ;;  %v1081_v14 = vpack.c.bf16 %v855_v12, %v855_v12 }
  0x2c   : > { %5153 = vmatprep.subr.bf16.mxu0 %v5609_v15  ;;  %v4874_v15 = vcombine.high %v310_v9, %v311_v10 }
  0x2d   : > { %1922 = vrot.lane.b32.xlu1 %v1081_v14, %s5818_s15 }
  0x2e   : > { %1954 = vrot.lane.b32.xlu0 %v1097_v11, %s5818_s15 }
  0x2f   : > { %5154 = vmatpush3.bf16.msra.mxu0 %v5610_v16  ;;  %v312_v16 = vld [vmem:[%s5942_s22 + $0xe0] sm:$0xff] }
  0x30   : > { %5155 = vmatprep.subr.bf16.mxu0 %v5611_v17  ;;  %v313_v17 = vld [vmem:[%s5942_s22 + $0xe8] sm:$0xff] }
  0x31   : > { %v4876_v19 = vcombine.high %v312_v16, %v313_v17 }
  0x33   : > { %5156 = vmatpush3.bf16.msra.mxu0 %v5612_v18  ;;  %v4873_v18 = vcombine.low %v310_v9, %v311_v10 }
  0x36   : > { %644 = vmatmul.mubr.bf16.vlgmr.msra.gmra.mrb[0].mxu0 %v4847_v21  ;;  %v315_v21 = vld [vmem:[%s5942_s22 + $0xf8] sm:$0xff] }
  0x37   : > { %651 = vmatprep.mubr.bf16.mxu0 %v4850_v22  ;;  %v4875_v22 = vcombine.low %v312_v16, %v313_v17  ;;  %v4878_v23 = vcombine.high %v314_v20, %v315_v21  ;;  %v4877_v24 = vcombine.low %v314_v20, %v315_v21 }
  0x3e   : > { %652 = vmatmul.mubr.bf16.gmra.mrb[4].mxu0 %v4849_v25  ;;  %v5645_v25 = vld [vmem:[%s7673_s3 + $0x40] sm:$0xff]  }
  0x3f   : > { %659 = vmatprep.mubr.bf16.mxu0 %v4852_v26  ;;  %v5646_v26 = vld [vmem:[%s7673_s3] sm:$0xff]   ;;  %5253 = vmatprep.subr.bf16.mxu0 %v5645_v25 }
  0x40   : > { %5537 = vmatprep.subr.bf16.mxu1 %v5645_v25  ;;  %5254 = vmatpush3.bf16.msra.mxu0 %v5646_v26 }
  0x41   : > { %5545 = vmatpush3.bf16.msra.mxu1 %v5646_v26  ;;  %5255 = vmatprep.subr.bf16.mxu0 %v5647_v27 }
  0x42   : > { %5538 = vmatprep.subr.bf16.mxu1 %v5647_v27 }
  0x44   : > { %5256 = vmatpush3.bf16.msra.mxu0 %v5648_v28 }
  0x45   : > { %5546 = vmatpush3.bf16.msra.mxu1 %v5648_v28 }
  0x46   : > { %660 = vmatmul.mubr.bf16.gmra.mrb[8].mxu0 %v4851_v29  ;;  %v5649_v29 = vld [vmem:[%s7673_s3 + $0x50] sm:$0xff]  }
  0x47   : > { %667 = vmatprep.mubr.bf16.mxu0 %v4854_v30  ;;  %v5650_v30 = vld [vmem:[%s7673_s3 + $0x10] sm:$0xff]   ;;  %5257 = vmatprep.subr.bf16.mxu0 %v5649_v29 }
  0x48   : > { %5539 = vmatprep.subr.bf16.mxu1 %v5649_v29  ;;  %5258 = vmatpush3.bf16.msra.mxu0 %v5650_v30 }
  0x49   : > { %5547 = vmatpush3.bf16.msra.mxu1 %v5650_v30  ;;  %5259 = vmatprep.subr.bf16.mxu0 %v5651_v31 }
  0x4a   : > { %5540 = vmatprep.subr.bf16.mxu1 %v5651_v31 }
  0x4c   : > { %5260 = vmatpush3.bf16.msra.mxu0 %v5652_v32 }
  0x4d   : > { %5548 = vmatpush3.bf16.msra.mxu1 %v5652_v32 }
  0x4e   : > { %668 = vmatmul.mubr.bf16.gmra.mrb[12].mxu0 %v4853_v33  ;;  %v5653_v33 = vld [vmem:[%s7673_s3 + $0x60] sm:$0xff]  }
  0x4f   : > { %675 = vmatprep.mubr.bf16.mxu0 %v4856_v34  ;;  %v5654_v34 = vld [vmem:[%s7673_s3 + $0x20] sm:$0xff]   ;;  %5261 = vmatprep.subr.bf16.mxu0 %v5653_v33 }
  0x50   : > { %5541 = vmatprep.subr.bf16.mxu1 %v5653_v33  ;;  %5262 = vmatpush3.bf16.msra.mxu0 %v5654_v34 }
  0x51   : > { %5549 = vmatpush3.bf16.msra.mxu1 %v5654_v34  ;;  %5263 = vmatprep.subr.bf16.mxu0 %v5655_v35 }
  0x52   : > { %5542 = vmatprep.subr.bf16.mxu1 %v5655_v35 }
  0x54   : > { %5264 = vmatpush3.bf16.msra.mxu0 %v5656_v36 }
  0x55   : > { %5550 = vmatpush3.bf16.msra.mxu1 %v5656_v36 }
  0x56   : > { %676 = vmatmul.mubr.bf16.gmra.mrb[16].mxu0 %v4855_v37  ;;  %v5657_v37 = vld [vmem:[%s7673_s3 + $0x70] sm:$0xff]  }
  0x57   : > { %683 = vmatprep.mubr.bf16.mxu0 %v4858_v38  ;;  %5265 = vmatprep.subr.bf16.mxu0 %v5657_v37 }
  0x58   : > { %5543 = vmatprep.subr.bf16.mxu1 %v5657_v37 }
  0x5e   : > { %684 = vmatmul.mubr.bf16.gmra.mrb[20].mxu0 %v4857_v41  ;;  %v5658_v41 = vld [vmem:[%s7673_s3 + $0x30] sm:$0xff]  }
  0x5f   : > { %691 = vmatprep.mubr.bf16.mxu0 %v4860_v42  ;;  %5266 = vmatpush3.bf16.msra.mxu0 %v5658_v41 }
  0x60   : > { %5551 = vmatpush3.bf16.msra.mxu1 %v5658_v41 }
  0x66   : > { %692 = vmatmul.mubr.bf16.gmra.mrb[24].mxu0 %v4859_v45  ;;  %v5659_v45 = vld [vmem:[%s7673_s3 + $0x78] sm:$0xff]  }
  0x67   : > { %699 = vmatprep.mubr.bf16.mxu0 %v4862_v46  ;;  %5267 = vmatprep.subr.bf16.mxu0 %v5659_v45 }
  0x68   : > { %5544 = vmatprep.subr.bf16.mxu1 %v5659_v45 }
  0x6e   : > { %700 = vmatmul.mubr.bf16.gmra.mrb[28].mxu0 %v4861_v49 }
  0x6f   : > { %707 = vmatprep.mubr.bf16.mxu0 %v4864_v50  ;;  %v5660_v50 = vld [vmem:[%s7673_s3 + $0x38] sm:$0xff]  }
  0x70   : > { %5268 = vmatpush3.bf16.msra.mxu0 %v5660_v50  ;;  %5552 = vmatpush3.bf16.msra.mxu1 %v5660_v50 }
  0x76   : > { %708 = vmatmul.mubr.bf16.gmra.mrb[32].mxu0 %v4863_v53 }
  0x77   : > { %715 = vmatprep.mubr.bf16.mxu0 %v4866_v54 }
  0x7e   : > { %716 = vmatmul.mubr.bf16.gmra.mrb[36].mxu0 %v4865_v57 }
  0x7f   : > { %723 = vmatprep.mubr.bf16.mxu0 %v4868_v58 }
  0x86   : > { %724 = vmatmul.mubr.bf16.gmra.mrb[40].mxu0 %v4867_v62 }
  0x87   : > { %731 = vmatprep.mubr.bf16.mxu0 %v4870_v63 }
  0x8e   : > { %732 = vmatmul.mubr.bf16.gmra.mrb[44].mxu0 %v4869_v4 }
  0x8f   : > { %739 = vmatprep.mubr.bf16.mxu0 %v4872_v5 }
  0x96   : > { %740 = vmatmul.mubr.bf16.gmra.mrb[48].mxu0 %v4871_v13 }
  0x97   : > { %747 = vmatprep.mubr.bf16.mxu0 %v4874_v15 }
  0x9e   : > { %748 = vmatmul.mubr.bf16.gmra.mrb[52].mxu0 %v4873_v18 }
  0x9f   : > { %755 = vmatprep.mubr.bf16.mxu0 %v4876_v19 }
  0xa6   : > { %756 = vmatmul.mubr.bf16.gmra.mrb[56].mxu0 %v4875_v22 }
  0xa7   : > { %763 = vmatprep.mubr.bf16.mxu0 %v4878_v23 }
  0xae   : > { %764 = vmatmul.mubr.bf16.gmra.mrb[60].mxu0 %v4877_v24 }
 0x109   : > { %v5157_v38 = vpop.f32.mrb[0].mxu0 }
 0x10a   : > { %v5158_v40 = vpop.f32.mrb[1].mxu0 }
 0x10b   : > { %v5159_v42 = vadd.f32 %v5158_v40, %v5157_v38  ;;  %v5160_v43 = vpop.f32.mrb[2].mxu0 }
 0x10c   : > { %v5161_v44 = vpop.f32.mrb[3].mxu0 }
 0x10d   : > { %v646_v46 = vadd.f32 %v5159_v42, %v6055_v39  ;;  %v5162_v47 = vadd.f32 %v5161_v44, %v5160_v43 }
 0x10f   : > { %v6064_v48 = vmax.f32 %v646_v46, 0.0  ;;  %v649_v49 = vadd.f32 %v5162_v47, %v6055_v39 }
 0x111   : > { %815 = vst.msk [vmem:[#allocation2 + $0x8] sm:$0xff] %vm804_vm0, %v6064_v48  ;;  %v6072_v51 = vmax.f32 %v649_v49, 0.0  ;;  %v5163_v52 = vpop.f32.mrb[4].mxu0  ;;  %v1266_v53 = vrot.slane %v6064_v48, 7 }
 0x112   : > { %v5164_v54 = vpop.f32.mrb[5].mxu0 }
 0x113   : > { %816 = vst.msk [vmem:[#allocation2 + $0x10] sm:$0xff] %vm804_vm0, %v6072_v51  ;;  %v5165_v55 = vadd.f32 %v5164_v54, %v5163_v52  ;;  %v5166_v56 = vpop.f32.mrb[6].mxu0  ;;  %v1330_v57 = vsel %vm1008_vm1, 0.0, %v1266_v53  ;;  %v1267_v58 = vrot.slane %v6072_v51, 7 }
 0x114   : > { %v5167_v59 = vpop.f32.mrb[7].mxu0  ;;  %v1362_v60 = vpack.c.bf16 %v1330_v57, %v1330_v57 }
 0x115   : > { %v654_v61 = vadd.f32 %v5165_v55, %v6055_v39  ;;  %v5168_v62 = vadd.f32 %v5167_v59, %v5166_v56  ;;  %v1331_v63 = vsel %vm1008_vm1, 0.0, %v1267_v58 }
 0x116   : > { %2002 = vrot.lane.b32.xlu0 %v1362_v60, %s5818_s15  ;;  %v1363_v0 = vpack.c.bf16 %v1331_v63, %v1331_v63 }
 0x117   : > { %v6082_v1 = vmax.f32 %v654_v61, 0.0  ;;  %v657_v2 = vadd.f32 %v5168_v62, %v6055_v39 }
 0x118   : > { %2004 = vrot.lane.b32.xlu1 %v1363_v0, %s5818_s15  ;;  %v6086_v3 = vld [vmem:[#allocation2 + $0x8] sm:$0xff] }
 0x119   : > { %817 = vst.msk [vmem:[#allocation2 + $0x18] sm:$0xff] %vm804_vm0, %v6082_v1  ;;  %v6090_v4 = vmax.f32 %v657_v2, 0.0  ;;  %v5169_v5 = vpop.f32.mrb[8].mxu0  ;;  %v1074_v7 = vpack.c.bf16 %v6086_v3, %v6086_v3  ;;  %v1268_v8 = vrot.slane %v6082_v1, 7 }
 0x11a   : > { %v5170_v9 = vpop.f32.mrb[9].mxu0  ;;  %v6095_v10 = vld [vmem:[#allocation2 + $0x10] sm:$0xff] }
 0x11b   : > { %818 = vst.msk [vmem:[#allocation2 + $0x20] sm:$0xff] %vm804_vm0, %v6090_v4  ;;  %v5171_v11 = vadd.f32 %v5170_v9, %v5169_v5  ;;  %v5172_v12 = vpop.f32.mrb[10].mxu0  ;;  %v6101_v13 = vpack.c.bf16 %v6095_v10, %v6095_v10  ;;  %v1269_v14 = vrot.slane %v6090_v4, 7  ;;  %v1332_v16 = vsel %vm1008_vm1, 0.0, %v1268_v8 }
 0x11c   : > { %v5173_v15 = vpop.f32.mrb[11].mxu0  ;;  %1908 = vrot.lane.b32.xlu1 %v1074_v7, %s5818_s15  ;;  %v1364_v23 = vpack.c.bf16 %v1332_v16, %v1332_v16 }
 0x11d   : > { %v662_v17 = vadd.f32 %v5171_v11, %v6055_v39  ;;  %v5174_v18 = vadd.f32 %v5173_v15, %v5172_v12  ;;  %1910 = vrot.lane.b32.xlu0 %v6101_v13, %s5818_s15  ;;  %v1333_v19 = vsel %vm1008_vm1, 0.0, %v1269_v14 }
 0x11e   : > { %v1365_v20 = vpack.c.bf16 %v1333_v19, %v1333_v19 }
 0x11f   : > { %v6110_v21 = vmax.f32 %v662_v17, 0.0  ;;  %v665_v22 = vadd.f32 %v5174_v18, %v6055_v39 }
 0x120   : > { %2008 = vrot.lane.b32.xlu1 %v1365_v20, %s5818_s15  ;;  %v6114_v24 = vld [vmem:[#allocation2 + $0x18] sm:$0xff] }
 0x121   : > { %819 = vst.msk [vmem:[#allocation2 + $0x28] sm:$0xff] %vm804_vm0, %v6110_v21  ;;  %v6118_v25 = vmax.f32 %v665_v22, 0.0  ;;  %v5175_v26 = vpop.f32.mrb[12].mxu0  ;;  %2006 = vrot.lane.b32.xlu0 %v1364_v23, %s5818_s15  ;;  %v6123_v27 = vpack.c.bf16 %v6114_v24, %v6114_v24  ;;  %v1270_v28 = vrot.slane %v6110_v21, 7 }
 0x122   : > { %v5176_v29 = vpop.f32.mrb[13].mxu0  ;;  %v6126_v30 = vld [vmem:[#allocation2 + $0x20] sm:$0xff] }
 0x123   : > { %820 = vst.msk [vmem:[#allocation2 + $0x30] sm:$0xff] %vm804_vm0, %v6118_v25  ;;  %v5177_v31 = vadd.f32 %v5176_v29, %v5175_v26  ;;  %v5178_v32 = vpop.f32.mrb[14].mxu0  ;;  %v6132_v33 = vpack.c.bf16 %v6126_v30, %v6126_v30  ;;  %v1271_v34 = vrot.slane %v6118_v25, 7  ;;  %v1334_v36 = vsel %vm1008_vm1, 0.0, %v1270_v28 }
 0x124   : > { %v5179_v35 = vpop.f32.mrb[15].mxu0  ;;  %1912 = vrot.lane.b32.xlu1 %v6123_v27, %s5818_s15  ;;  %v1366_v44 = vpack.c.bf16 %v1334_v36, %v1334_v36  ;;  %v1109_v52 = vrot.slane %v6126_v30, 1 }
 0x125   : > { %v670_v37 = vadd.f32 %v5177_v31, %v6055_v39  ;;  %v5180_v38 = vadd.f32 %v5179_v35, %v5178_v32  ;;  %1914 = vrot.lane.b32.xlu0 %v6132_v33, %s5818_s15  ;;  %v1335_v40 = vsel %vm1008_vm1, 0.0, %v1271_v34 }
 0x126   : > { %v1367_v41 = vpack.c.bf16 %v1335_v40, %v1335_v40  ;;  %v6168_v60 = vsel %vm1169_vm2, %v1109_v52, 0.0  ;;  %v6215_v52 = vld [vmem:[%s7673_s3 + $0x100] sm:$0xff]  }
 0x127   : > { %v6142_v42 = vmax.f32 %v670_v37, 0.0  ;;  %v673_v43 = vadd.f32 %v5180_v38, %v6055_v39  ;;  %5497 = vmatprep.subr.bf16.mxu1 %v6215_v52 }
 0x128   : > { %2012 = vrot.lane.b32.xlu1 %v1367_v41, %s5818_s15  ;;  %v6146_v45 = vld [vmem:[#allocation2 + $0x28] sm:$0xff] }
 0x129   : > { %821 = vst.msk [vmem:[#allocation2 + $0x38] sm:$0xff] %vm804_vm0, %v6142_v42  ;;  %v6150_v46 = vmax.f32 %v673_v43, 0.0  ;;  %v5181_v47 = vpop.f32.mrb[16].mxu0  ;;  %2010 = vrot.lane.b32.xlu0 %v1366_v44, %s5818_s15  ;;  %v6155_v49 = vpack.c.bf16 %v6146_v45, %v6146_v45  ;;  %v1110_v50 = vrot.slane %v6146_v45, 1 }
 0x12a   : > { %v5182_v53 = vpop.f32.mrb[17].mxu0 }
 0x12b   : > { %822 = vst.msk [vmem:[#allocation2 + $0x40] sm:$0xff] %vm804_vm0, %v6150_v46  ;;  %v5183_v54 = vadd.f32 %v5182_v53, %v5181_v47  ;;  %v5184_v55 = vpop.f32.mrb[18].mxu0  ;;  %v6164_v57 = vsel %vm1169_vm2, %v1110_v50, 0.0 }
 0x12c   : > { %v5185_v56 = vpop.f32.mrb[19].mxu0  ;;  %1916 = vrot.lane.b32.xlu1 %v6155_v49, %s5818_s15 }
 0x12d   : > { %v678_v58 = vadd.f32 %v5183_v54, %v6055_v39  ;;  %v5186_v59 = vadd.f32 %v5185_v56, %v5184_v55 }
 0x12f   : > { %v6172_v62 = vmax.f32 %v678_v58, 0.0  ;;  %v681_v63 = vadd.f32 %v5186_v59, %v6055_v39 }
 0x131   : > { %823 = vst.msk [vmem:[#allocation2 + $0x58] sm:$0xff] %vm804_vm0, %v6172_v62  ;;  %v6177_v0 = vmax.f32 %v681_v63, 0.0  ;;  %v5187_v2 = vpop.f32.mrb[20].mxu0  ;;  %v1274_v5 = vrot.slane %v6172_v62, 7 }
 0x132   : > { %v5188_v7 = vpop.f32.mrb[21].mxu0 }
 0x133   : > { %824 = vst.msk [vmem:[#allocation2 + $0x60] sm:$0xff] %vm804_vm0, %v6177_v0  ;;  %v5189_v8 = vadd.f32 %v5188_v7, %v5187_v2  ;;  %v5190_v9 = vpop.f32.mrb[22].mxu0  ;;  %v1338_v11 = vsel %vm1008_vm1, 0.0, %v1274_v5  ;;  %v1275_v12 = vrot.slane %v6177_v0, 7 }
 0x134   : > { %v5191_v14 = vpop.f32.mrb[23].mxu0  ;;  %v1370_v15 = vpack.c.bf16 %v1338_v11, %v1338_v11 }
 0x135   : > { %v686_v16 = vadd.f32 %v5189_v8, %v6055_v39  ;;  %v5192_v17 = vadd.f32 %v5191_v14, %v5190_v9  ;;  %v1339_v18 = vsel %vm1008_vm1, 0.0, %v1275_v12 }
 0x136   : > { %2018 = vrot.lane.b32.xlu0 %v1370_v15, %s5818_s15  ;;  %v1371_v22 = vpack.c.bf16 %v1339_v18, %v1339_v18 }
 0x137   : > { %v6187_v19 = vmax.f32 %v686_v16, 0.0  ;;  %v689_v20 = vadd.f32 %v5192_v17, %v6055_v39 }
 0x138   : > { %v6190_v23 = vld [vmem:[#allocation2 + $0x58] sm:$0xff] }
 0x139   : > { %7730 = vst [vmem:[#allocation6_spill] sm:$0xff] %v6187_v19  ;;  %825 = vst.msk [vmem:[#allocation2 + $0x68] sm:$0xff] %vm804_vm0, %v6187_v19  ;;  %v6194_v26 = vmax.f32 %v689_v20, 0.0  ;;  %v5193_v28 = vpop.f32.mrb[24].mxu0  ;;  %v1082_v29 = vpack.c.bf16 %v6190_v23, %v6190_v23  ;;  %v1276_v31 = vrot.slane %v6187_v19, 7 }
 0x13a   : > { %v5194_v32 = vpop.f32.mrb[25].mxu0  ;;  %2020 = vrot.lane.b32.xlu0 %v1371_v22, %s5818_s15  ;;  %v6200_v34 = vld [vmem:[#allocation2 + $0x60] sm:$0xff]  ;;  %v1273_v22 = vrot.slane %v6150_v46, 7 }
 0x13b   : > { %7731 = vst [vmem:[#allocation7_spill] sm:$0xff] %v6194_v26  ;;  %826 = vst.msk [vmem:[#allocation2 + $0x70] sm:$0xff] %vm804_vm0, %v6194_v26  ;;  %v5195_v35 = vadd.f32 %v5194_v32, %v5193_v28  ;;  %v5196_v36 = vpop.f32.mrb[26].mxu0  ;;  %1924 = vrot.lane.b32.xlu1 %v1082_v29, %s5818_s15  ;;  %v1083_v37 = vpack.c.bf16 %v6200_v34, %v6200_v34  ;;  %v1277_v38 = vrot.slane %v6194_v26, 7  ;;  %v1340_v47 = vsel %vm1008_vm1, 0.0, %v1276_v31 }
 0x13c   : > { %v5197_v40 = vpop.f32.mrb[27].mxu0  ;;  %v1372_v55 = vpack.c.bf16 %v1340_v47, %v1340_v47 }
 0x13d   : > { %v694_v41 = vadd.f32 %v5195_v35, %v6055_v39  ;;  %v5198_v43 = vadd.f32 %v5197_v40, %v5196_v36  ;;  %v1341_v44 = vsel %vm1008_vm1, 0.0, %v1277_v38 }
 0x13e   : > { %1926 = vrot.lane.b32.xlu0 %v1083_v37, %s5818_s15  ;;  %v1373_v50 = vpack.c.bf16 %v1341_v44, %v1341_v44 }
 0x13f   : > { %v6217_v53 = vmax.f32 %v694_v41, 0.0  ;;  %v697_v54 = vadd.f32 %v5198_v43, %v6055_v39  ;;  %v1337_v43 = vsel %vm1008_vm1, 0.0, %v1273_v22 }
 0x140   : > { %2024 = vrot.lane.b32.xlu1 %v1373_v50, %s5818_s15  ;;  %v6221_v56 = vld [vmem:[#allocation2 + $0x68] sm:$0xff] }
 0x141   : > { %7732 = vst [vmem:[#allocation8_spill] sm:$0xff] %v6217_v53  ;;  %827 = vst.msk [vmem:[#allocation2 + $0x78] sm:$0xff] %vm804_vm0, %v6217_v53  ;;  %v6226_v58 = vmax.f32 %v697_v54, 0.0  ;;  %v5199_v59 = vpop.f32.mrb[28].mxu0  ;;  %v1084_v63 = vpack.c.bf16 %v6221_v56, %v6221_v56  ;;  %v1278_v2 = vrot.slane %v6217_v53, 7 }
 0x142   : > { %v5200_v5 = vpop.f32.mrb[29].mxu0  ;;  %2022 = vrot.lane.b32.xlu0 %v1372_v55, %s5818_s15  ;;  %v6232_v7 = vld [vmem:[#allocation2 + $0x70] sm:$0xff] }
 0x143   : > { %7733 = vst [vmem:[#allocation9_spill] sm:$0xff] %v6226_v58  ;;  %828 = vst.msk [vmem:[#allocation2 + $0x80] sm:$0xff] %vm804_vm0, %v6226_v58  ;;  %v5201_v8 = vadd.f32 %v5200_v5, %v5199_v59  ;;  %v5202_v9 = vpop.f32.mrb[30].mxu0  ;;  %v1085_v11 = vpack.c.bf16 %v6232_v7, %v6232_v7  ;;  %v1279_v12 = vrot.slane %v6226_v58, 7  ;;  %v1342_v18 = vsel %vm1008_vm1, 0.0, %v1278_v2 }
 0x144   : > { %1928 = vrot.lane.b32.xlu1 %v1084_v63, %s5818_s15  ;;  %v5203_v14 = vpop.f32.mrb[31].mxu0  ;;  %v1374_v31 = vpack.c.bf16 %v1342_v18, %v1342_v18  ;;  %v1272_v5 = vrot.slane %v6142_v42, 7 }
 0x145   : > { %v702_v15 = vadd.f32 %v5201_v8, %v6055_v39  ;;  %v5204_v16 = vadd.f32 %v5203_v14, %v5202_v9  ;;  %v1343_v17 = vsel %vm1008_vm1, 0.0, %v1279_v12  ;;  %v1369_v8 = vpack.c.bf16 %v1337_v43, %v1337_v43 }
 0x146   : > { %1930 = vrot.lane.b32.xlu0 %v1085_v11, %s5818_s15  ;;  %v1375_v20 = vpack.c.bf16 %v1343_v17, %v1343_v17  ;;  %v1336_v17 = vsel %vm1008_vm1, 0.0, %v1272_v5 }
 0x147   : > { %v6245_v28 = vmax.f32 %v702_v15, 0.0  ;;  %v705_v29 = vadd.f32 %v5204_v16, %v6055_v39  ;;  %v1368_v43 = vpack.c.bf16 %v1336_v17, %v1336_v17 }
 0x148   : > { %2028 = vrot.lane.b32.xlu1 %v1375_v20, %s5818_s15  ;;  %v6249_v32 = vld [vmem:[#allocation2 + $0x78] sm:$0xff] }
 0x149   : > { %7734 = vst [vmem:[#allocation10_spill] sm:$0xff] %v6245_v28  ;;  %829 = vst.msk [vmem:[#allocation2 + $0x88] sm:$0xff] %vm804_vm0, %v6245_v28  ;;  %v6253_v35 = vmax.f32 %v705_v29, 0.0  ;;  %v5205_v36 = vpop.f32.mrb[32].mxu0  ;;  %v1086_v37 = vpack.c.bf16 %v6249_v32, %v6249_v32  ;;  %v1280_v38 = vrot.slane %v6245_v28, 7 }
 0x14a   : > { %2026 = vrot.lane.b32.xlu0 %v1374_v31, %s5818_s15  ;;  %v5206_v40 = vpop.f32.mrb[33].mxu0  ;;  %v6259_v41 = vld [vmem:[#allocation2 + $0x80] sm:$0xff] }
 0x14b   : > { %7735 = vst [vmem:[#allocation11_spill] sm:$0xff] %v6253_v35  ;;  %830 = vst.msk [vmem:[#allocation2 + $0x90] sm:$0xff] %vm804_vm0, %v6253_v35  ;;  %v5207_v44 = vadd.f32 %v5206_v40, %v5205_v36  ;;  %v5208_v47 = vpop.f32.mrb[34].mxu0  ;;  %v1087_v50 = vpack.c.bf16 %v6259_v41, %v6259_v41  ;;  %v1344_v54 = vsel %vm1008_vm1, 0.0, %v1280_v38  ;;  %v1281_v55 = vrot.slane %v6253_v35, 7 }
 0x14c   : > { %1932 = vrot.lane.b32.xlu1 %v1086_v37, %s5818_s15  ;;  %v5209_v59 = vpop.f32.mrb[35].mxu0  ;;  %v1376_v9 = vpack.c.bf16 %v1344_v54, %v1344_v54 }
 0x14d   : > { %v710_v63 = vadd.f32 %v5207_v44, %v6055_v39  ;;  %v5210_v2 = vadd.f32 %v5209_v59, %v5208_v47  ;;  %v1345_v14 = vsel %vm1008_vm1, 0.0, %v1281_v55 }
 0x14e   : > { %1934 = vrot.lane.b32.xlu0 %v1087_v50, %s5818_s15  ;;  %v1377_v22 = vpack.c.bf16 %v1345_v14, %v1345_v14 }
 0x14f   : > { %v6272_v11 = vmax.f32 %v710_v63, 0.0  ;;  %v713_v12 = vadd.f32 %v5210_v2, %v6055_v39 }
 0x150   : > { %2016 = vrot.lane.b32.xlu1 %v1369_v8, %s5818_s15  ;;  %v6286_v36 = vld [vmem:[#allocation2 + $0x88] sm:$0xff] }
 0x151   : > { %7736 = vst [vmem:[#allocation12_spill] sm:$0xff] %v6272_v11  ;;  %831 = vst.msk [vmem:[#allocation2 + $0xa8] sm:$0xff] %vm804_vm0, %v6272_v11  ;;  %v6279_v15 = vmax.f32 %v713_v12, 0.0  ;;  %v5211_v16 = vpop.f32.mrb[36].mxu0  ;;  %v1282_v18 = vrot.slane %v6272_v11, 7  ;;  %v1088_v50 = vpack.c.bf16 %v6286_v36, %v6286_v36 }
 0x152   : > { %v5212_v20 = vpop.f32.mrb[37].mxu0  ;;  %2030 = vrot.lane.b32.xlu0 %v1376_v9, %s5818_s15 }
 0x153   : > { %7737 = vst [vmem:[#allocation13_spill] sm:$0xff] %v6279_v15  ;;  %832 = vst.msk [vmem:[#allocation2 + $0xb0] sm:$0xff] %vm804_vm0, %v6279_v15  ;;  %v5213_v29 = vadd.f32 %v5212_v20, %v5211_v16  ;;  %v5214_v31 = vpop.f32.mrb[38].mxu0  ;;  %v1346_v37 = vsel %vm1008_vm1, 0.0, %v1282_v18  ;;  %v1283_v38 = vrot.slane %v6279_v15, 7 }
 0x154   : > { %2032 = vrot.lane.b32.xlu1 %v1377_v22, %s5818_s15  ;;  %v5215_v40 = vpop.f32.mrb[39].mxu0  ;;  %v1378_v54 = vpack.c.bf16 %v1346_v37, %v1346_v37 }
 0x155   : > { %v718_v44 = vadd.f32 %v5213_v29, %v6055_v39  ;;  %v5216_v47 = vadd.f32 %v5215_v40, %v5214_v31  ;;  %v1347_v63 = vsel %vm1008_vm1, 0.0, %v1283_v38 }
 0x156   : > { %2014 = vrot.lane.b32.xlu0 %v1368_v43, %s5818_s15  ;;  %v1379_v12 = vpack.c.bf16 %v1347_v63, %v1347_v63 }
 0x157   : > { %v6295_v55 = vmax.f32 %v718_v44, 0.0  ;;  %v721_v59 = vadd.f32 %v5216_v47, %v6055_v39 }
 0x158   : > { %1936 = vrot.lane.b32.xlu1 %v1088_v50, %s5818_s15  ;;  %v6312_v20 = vld [vmem:[#allocation2 + $0xa8] sm:$0xff] }
 0x159   : > { %7738 = vst [vmem:[#allocation14_spill] sm:$0xff] %v6295_v55  ;;  %833 = vst.msk [vmem:[#allocation2 + $0xb8] sm:$0xff] %vm804_vm0, %v6295_v55  ;;  %v6302_v2 = vmax.f32 %v721_v59, 0.0  ;;  %v5217_v5 = vpop.f32.mrb[40].mxu0  ;;  %v1284_v8 = vrot.slane %v6295_v55, 7  ;;  %v1090_v40 = vpack.c.bf16 %v6312_v20, %v6312_v20 }
 0x15a   : > { %v5218_v9 = vpop.f32.mrb[41].mxu0  ;;  %2034 = vrot.lane.b32.xlu0 %v1378_v54, %s5818_s15  ;;  %v6306_v14 = vld [vmem:[#allocation2 + $0xb0] sm:$0xff] }
 0x15b   : > { %7739 = vst [vmem:[#allocation15_spill] sm:$0xff] %v6302_v2  ;;  %7740 = vst [vmem:[#allocation16_spill] sm:$0xff] %v6306_v14  ;;  %v5219_v16 = vadd.f32 %v5218_v9, %v5217_v5  ;;  %v5220_v17 = vpop.f32.mrb[42].mxu0  ;;  %v1091_v18 = vpack.c.bf16 %v6306_v14, %v6306_v14  ;;  %v1348_v22 = vsel %vm1008_vm1, 0.0, %v1284_v8  ;;  %v1285_v29 = vrot.slane %v6302_v2, 7 }
 0x15c   : > { %834 = vst.msk [vmem:[#allocation2 + $0xc0] sm:$0xff] %vm804_vm0, %v6302_v2  ;;  %2036 = vrot.lane.b32.xlu1 %v1379_v12, %s5818_s15  ;;  %v5221_v31 = vpop.f32.mrb[43].mxu0  ;;  %v1380_v43 = vpack.c.bf16 %v1348_v22, %v1348_v22 }
 0x15d   : > { %v726_v37 = vadd.f32 %v5219_v16, %v6055_v39  ;;  %v5222_v38 = vadd.f32 %v5221_v31, %v5220_v17  ;;  %v1349_v50 = vsel %vm1008_vm1, 0.0, %v1285_v29 }
 0x15e   : > { %1942 = vrot.lane.b32.xlu0 %v1091_v18, %s5818_s15  ;;  %v1381_v8 = vpack.c.bf16 %v1349_v50, %v1349_v50 }
 0x15f   : > { %v6321_v44 = vmax.f32 %v726_v37, 0.0  ;;  %v729_v47 = vadd.f32 %v5222_v38, %v6055_v39 }
 0x160   : > { %1940 = vrot.lane.b32.xlu1 %v1090_v40, %s5818_s15  ;;  %v6334_v18 = vld [vmem:[#allocation2 + $0xb8] sm:$0xff] }
 0x161   : > { %7741 = vst [vmem:[#allocation17_spill] sm:$0xff] %v6321_v44  ;;  %835 = vst.msk [vmem:[#allocation2 + $0xc8] sm:$0xff] %vm804_vm0, %v6321_v44  ;;  %v6328_v54 = vmax.f32 %v729_v47, 0.0  ;;  %v5223_v59 = vpop.f32.mrb[44].mxu0  ;;  %v1286_v63 = vrot.slane %v6321_v44, 7  ;;  %v1092_v40 = vpack.c.bf16 %v6334_v18, %v6334_v18 }
 0x162   : > { %v5224_v5 = vpop.f32.mrb[45].mxu0  ;;  %2038 = vrot.lane.b32.xlu0 %v1380_v43, %s5818_s15  ;;  %7743 = vst [vmem:[#allocation19_spill] sm:$0xff] %v6334_v18 }
 0x163   : > { %7742 = vst [vmem:[#allocation18_spill] sm:$0xff] %v6328_v54  ;;  %v867_v9 = vld [vmem:[#allocation2 + $0xc0] sm:$0xff]  ;;  %836 = vst.msk [vmem:[#allocation2 + $0xd0] sm:$0xff] %vm804_vm0, %v6328_v54  ;;  %v5225_v12 = vadd.f32 %v5224_v5, %v5223_v59  ;;  %v5226_v17 = vpop.f32.mrb[46].mxu0  ;;  %v1350_v22 = vsel %vm1008_vm1, 0.0, %v1286_v63  ;;  %v1287_v29 = vrot.slane %v6328_v54, 7  ;;  %v6396_v54 = vpop.permute.xlu0 %1938 }
 0x164   : > { %v1093_v16 = vpack.c.bf16 %v867_v9, %v867_v9  ;;  %2040 = vrot.lane.b32.xlu1 %v1381_v8, %s5818_s15  ;;  %v5227_v31 = vpop.f32.mrb[47].mxu0  ;;  %v1382_v43 = vpack.c.bf16 %v1350_v22, %v1350_v22  ;;  %7749 = vst [vmem:[#allocation25_spill] sm:$0xff] %v6396_v54 }
 0x165   : > { %v734_v37 = vadd.f32 %v5225_v12, %v6055_v39  ;;  %v5228_v38 = vadd.f32 %v5227_v31, %v5226_v17  ;;  %v1351_v59 = vsel %vm1008_vm1, 0.0, %v1287_v29 }
 0x166   : > { %1946 = vrot.lane.b32.xlu0 %v1093_v16, %s5818_s15  ;;  %v1383_v12 = vpack.c.bf16 %v1351_v59, %v1351_v59 }
 0x167   : > { %v6343_v47 = vmax.f32 %v734_v37, 0.0  ;;  %v737_v50 = vadd.f32 %v5228_v38, %v6055_v39  ;;  %v6421_v55 = vpop.permute.xlu0 %1906 }
 0x168   : > { %1944 = vrot.lane.b32.xlu1 %v1092_v40, %s5818_s15  ;;  %v6356_v31 = vld [vmem:[#allocation2 + $0xc8] sm:$0xff] }
 0x169   : > { %7744 = vst [vmem:[#allocation20_spill] sm:$0xff] %v6343_v47  ;;  %837 = vst.msk [vmem:[#allocation2 + $0xd8] sm:$0xff] %vm804_vm0, %v6343_v47  ;;  %v6350_v63 = vmax.f32 %v737_v50, 0.0  ;;  %v5229_v5 = vpop.f32.mrb[48].mxu0  ;;  %v1288_v8 = vrot.slane %v6343_v47, 7 }
 0x16a   : > { %2042 = vrot.lane.b32.xlu0 %v1382_v43, %s5818_s15  ;;  %v5230_v9 = vpop.f32.mrb[49].mxu0  ;;  %v869_v16 = vld [vmem:[#allocation2 + $0xd0] sm:$0xff]  ;;  %7746 = vst [vmem:[#allocation22_spill] sm:$0xff] %v6356_v31  ;;  %v1094_v43 = vpack.c.bf16 %v6356_v31, %v6356_v31 }
 0x16b   : > { %7745 = vst [vmem:[#allocation21_spill] sm:$0xff] %v6350_v63  ;;  %838 = vst.msk [vmem:[#allocation2 + $0xe0] sm:$0xff] %vm804_vm0, %v6350_v63  ;;  %v5231_v17 = vadd.f32 %v5230_v9, %v5229_v5  ;;  %v5232_v22 = vpop.f32.mrb[50].mxu0  ;;  %v1095_v29 = vpack.c.bf16 %v869_v16, %v869_v16  ;;  %v1352_v37 = vsel %vm1008_vm1, 0.0, %v1288_v8  ;;  %v6367_v9 = vld [vmem:[#allocation2 + $0x38] sm:$0xff]  ;;  %v1289_v8 = vrot.slane %v6350_v63, 7 }
 0x16c   : > { %2044 = vrot.lane.b32.xlu1 %v1383_v12, %s5818_s15  ;;  %v5233_v38 = vpop.f32.mrb[51].mxu0  ;;  %v1384_v59 = vpack.c.bf16 %v1352_v37, %v1352_v37  ;;  %v6381_v37 = vpack.c.bf16 %v6367_v9, %v6367_v9 }
 0x16d   : > { %v742_v40 = vadd.f32 %v5231_v17, %v6055_v39  ;;  %v5234_v50 = vadd.f32 %v5233_v38, %v5232_v22  ;;  %v6375_v17 = vld [vmem:[#allocation2 + $0x30] sm:$0xff] }
 0x16e   : > { %1950 = vrot.lane.b32.xlu0 %v1095_v29, %s5818_s15 }
 0x16f   : > { %v6364_v61 = vmax.f32 %v742_v40, 0.0  ;;  %v745_v5 = vadd.f32 %v5234_v50, %v6055_v39  ;;  %v1353_v50 = vsel %vm1008_vm1, 0.0, %v1289_v8 }
 0x170   : > { %1948 = vrot.lane.b32.xlu1 %v1094_v43, %s5818_s15  ;;  %v6401_v47 = vld [vmem:[#allocation2 + $0xd8] sm:$0xff] }
 0x171   : > { %7747 = vst [vmem:[#allocation23_spill] sm:$0xff] %v6364_v61  ;;  %839 = vst.msk [vmem:[#allocation2 + $0xf8] sm:$0xff] %vm804_vm0, %v6364_v61  ;;  %v6373_v12 = vmax.f32 %v745_v5, 0.0  ;;  %v5235_v16 = vpop.f32.mrb[52].mxu0  ;;  %v1290_v22 = vrot.slane %v6364_v61, 7 }
 0x172   : > { %v5236_v29 = vpop.f32.mrb[53].mxu0  ;;  %2046 = vrot.lane.b32.xlu0 %v1384_v59, %s5818_s15  ;;  %v6391_v59 = vpack.c.bf16 %v6375_v17, %v6375_v17  ;;  %7751 = vst [vmem:[#allocation27_spill] sm:$0xff] %v6401_v47 }
 0x173   : > { %7748 = vst [vmem:[#allocation24_spill] sm:$0xff] %v6373_v12  ;;  %840 = vst.msk [vmem:[#allocation2 + $0x100] sm:$0xff] %vm804_vm0, %v6373_v12  ;;  %v5237_v38 = vadd.f32 %v5236_v29, %v5235_v16  ;;  %v5238_v40 = vpop.f32.mrb[54].mxu0  ;;  %v1354_v43 = vsel %vm1008_vm1, 0.0, %v1290_v22  ;;  %v1385_v16 = vpack.c.bf16 %v1353_v50, %v1353_v50  ;;  %v1291_v2 = vrot.slane %v6373_v12, 7 }
 0x174   : > { %1920 = vrot.lane.b32.xlu1 %v6381_v37, %s5818_s15  ;;  %v5239_v5 = vpop.f32.mrb[55].mxu0  ;;  %v1386_v29 = vpack.c.bf16 %v1354_v43, %v1354_v43 }
 0x175   : > { %v750_v63 = vadd.f32 %v5237_v38, %v6055_v39  ;;  %v5240_v61 = vadd.f32 %v5239_v5, %v5238_v40  ;;  %v1355_v44 = vsel %vm1008_vm1, 0.0, %v1291_v2 }
 0x176   : > { %1918 = vrot.lane.b32.xlu0 %v6391_v59, %s5818_s15  ;;  %v1387_v31 = vpack.c.bf16 %v1355_v44, %v1355_v44  ;;  %v944_v44 = vrot.slane %v6000_v6, 7 }
 0x177   : > { %v6398_v8 = vmax.f32 %v750_v63, 0.0  ;;  %v753_v22 = vadd.f32 %v5240_v61, %v6055_v39  ;;  %v5664_v63 = vld [vmem:[%s7673_s3 + $0xc0] sm:$0xff]   ;;  %v1096_v61 = vpack.c.bf16 %v6401_v47, %v6401_v47 }
 0x178   : > { %2048 = vrot.lane.b32.xlu1 %v1385_v16, %s5818_s15  ;;  %5365 = vmatprep.subr.bf16.mxu0 %v5664_v63  ;;  %v6428_v2 = vld [vmem:[#allocation2 + $0xf8] sm:$0xff]  ;;  %v1105_v63 = vrot.slane %v6000_v6, 1 }
 0x179   : > { %7750 = vst [vmem:[#allocation26_spill] sm:$0xff] %v6398_v8  ;;  %841 = vst.msk [vmem:[#allocation2 + $0x108] sm:$0xff] %vm804_vm0, %v6398_v8  ;;  %v6407_v38 = vmax.f32 %v753_v22, 0.0  ;;  %v5241_v40 = vpop.f32.mrb[56].mxu0  ;;  %v1292_v50 = vrot.slane %v6398_v8, 7 }
 0x17a   : > { %v5242_v43 = vpop.f32.mrb[57].mxu0  ;;  %2050 = vrot.lane.b32.xlu0 %v1386_v29, %s5818_s15  ;;  %v873_v5 = vld [vmem:[#allocation2 + $0x100] sm:$0xff]  ;;  %7754 = vst [vmem:[#allocation30_spill] sm:$0xff] %v6428_v2 }
 0x17b   : > { %7752 = vst [vmem:[#allocation28_spill] sm:$0xff] %v6407_v38  ;;  %842 = vst.msk [vmem:[#allocation2 + $0x110] sm:$0xff] %vm804_vm0, %v6407_v38  ;;  %v5243_v16 = vadd.f32 %v5242_v43, %v5241_v40  ;;  %v5244_v22 = vpop.f32.mrb[58].mxu0  ;;  %v1099_v12 = vpack.c.bf16 %v873_v5, %v873_v5  ;;  %v1356_v8 = vsel %vm1008_vm1, 0.0, %v1292_v50  ;;  %v1293_v50 = vrot.slane %v6407_v38, 7 }
 0x17c   : > { %1952 = vrot.lane.b32.xlu1 %v1096_v61, %s5818_s15  ;;  %v5245_v15 = vpop.f32.mrb[59].mxu0  ;;  %v1388_v35 = vpack.c.bf16 %v1356_v8, %v1356_v8 }
 0x17d   : > { %v758_v29 = vadd.f32 %v5243_v16, %v6055_v39  ;;  %v5246_v47 = vadd.f32 %v5245_v15, %v5244_v22  ;;  %v1106_v16 = vrot.slane %v6086_v3, 1  ;;  %v1357_v6 = vsel %vm1008_vm1, 0.0, %v1293_v50 }
 0x17e   : > { %1958 = vrot.lane.b32.xlu0 %v1099_v12, %s5818_s15  ;;  %v1389_v50 = vpack.c.bf16 %v1357_v6, %v1357_v6 }
 0x17f   : > { %v6425_v40 = vmax.f32 %v758_v29, 0.0  ;;  %v761_v43 = vadd.f32 %v5246_v47, %v6055_v39  ;;  %v6440_v47 = vpop.permute.xlu0 %1954 }
 0x180   : > { %2052 = vrot.lane.b32.xlu1 %v1387_v31, %s5818_s15  ;;  %7755 = vst [vmem:[#allocation31_spill] sm:$0xff] %v6440_v47  ;;  %v1098_v31 = vpack.c.bf16 %v6428_v2, %v6428_v2  ;;  %v1009_v2 = vsel %vm1008_vm1, 0.0, %v944_v44 }
 0x181   : > { %7753 = vst [vmem:[#allocation29_spill] sm:$0xff] %v6425_v40  ;;  %843 = vst.msk [vmem:[#allocation2 + $0x118] sm:$0xff] %vm804_vm0, %v6425_v40  ;;  %v6435_v15 = vmax.f32 %v761_v43, 0.0  ;;  %v5247_v12 = vpop.f32.mrb[60].mxu0  ;;  %v1294_v8 = vrot.slane %v6425_v40, 7  ;;  %v1170_v40 = vsel %vm1169_vm2, %v1105_v63, 0.0  ;;  %v1041_v44 = vpack.c.bf16 %v1009_v2, %v1009_v2 }
 0x182   : > { %v5248_v61 = vpop.f32.mrb[61].mxu0  ;;  %2054 = vrot.lane.b32.xlu0 %v1388_v35, %s5818_s15  ;;  %v875_v5 = vld [vmem:[#allocation2 + $0x110] sm:$0xff]  ;;  %v6450_v35 = vpop.permute.xlu1 %1922  ;;  %v1202_v18 = vpack.c.bf16 %v1170_v40, %v1170_v40  ;;  %v874_v63 = vld [vmem:[#allocation2 + $0x108] sm:$0xff]  ;;  %v1107_v2 = vrot.slane %v6095_v10, 1 }
 0x183   : > { %844 = vst.msk [vmem:[#allocation2 + $0x120] sm:$0xff] %vm804_vm0, %v6435_v15  ;;  %v5249_v22 = vadd.f32 %v5248_v61, %v5247_v12  ;;  %v1101_v29 = vpack.c.bf16 %v875_v5, %v875_v5  ;;  %v1358_v43 = vsel %vm1008_vm1, 0.0, %v1294_v8  ;;  %v5250_v38 = vpop.f32.mrb[62].mxu0  ;;  %v945_v12 = vrot.slane %v6086_v3, 7 }
 0x184   : > { %1956 = vrot.lane.b32.xlu1 %v1098_v31, %s5818_s15  ;;  %v5251_v47 = vpop.f32.mrb[63].mxu0  ;;  %v1171_v8 = vsel %vm1169_vm2, %v1106_v16, 0.0  ;;  %v1390_v61 = vpack.c.bf16 %v1358_v43, %v1358_v43  ;;  %v1295_v31 = vrot.slane %v6435_v15, 7  ;;  %v1100_v40 = vpack.c.bf16 %v874_v63, %v874_v63 }
 0x185   : > { %v766_v54 = vadd.f32 %v5249_v22, %v6055_v39  ;;  %v5252_v11 = vadd.f32 %v5251_v47, %v5250_v38  ;;  %v1203_v3 = vpack.c.bf16 %v1171_v8, %v1171_v8  ;;  %v1010_v47 = vsel %vm1008_vm1, 0.0, %v945_v12 }
 0x186   : > { %1962 = vrot.lane.b32.xlu0 %v1101_v29, %s5818_s15  ;;  %v1042_v8 = vpack.c.bf16 %v1010_v47, %v1010_v47  ;;  %v5666_v47 = vld [vmem:[%s7673_s3 + $0xc8] sm:$0xff]  }
 0x187   : > { %v6459_v5 = vmax.f32 %v766_v54, 0.0  ;;  %v769_v14 = vadd.f32 %v5252_v11, %v6055_v39  ;;  %v1359_v39 = vsel %vm1008_vm1, 0.0, %v1295_v31  ;;  %v1108_v11 = vrot.slane %v6114_v24, 1 }
 0x188   : > { %v2003_v58 = vpop.permute.xlu0 %2002  ;;  %2056 = vrot.lane.b32.xlu1 %v1389_v50, %s5818_s15  ;;  %v2260_v50 = vsel %vm804_vm0, %v1041_v44, %v6421_v55  ;;  %v876_v55 = vld [vmem:[#allocation2 + $0x118] sm:$0xff] }
 0x189   : > { %845 = vst.msk [vmem:[#allocation2 + $0x128] sm:$0xff] %vm804_vm0, %v6459_v5  ;;  %v6465_v38 = vmax.f32 %v769_v14, 0.0  ;;  %v1296_v16 = vrot.slane %v6459_v5, 7  ;;  %v2356_v29 = vsel %vm804_vm0, %v1202_v18, %v2003_v58  ;;  %v1391_v18 = vpack.c.bf16 %v1359_v39, %v1359_v39 }
 0x18a   : > { %v2005_v54 = vpop.permute.xlu1 %2004  ;;  %2058 = vrot.lane.b32.xlu0 %v1390_v61, %s5818_s15  ;;  %v877_v22 = vld [vmem:[#allocation2 + $0x120] sm:$0xff]  ;;  %v946_v61 = vrot.slane %v6095_v10, 7  ;;  %v6484_v63 = vsel %vm1169_vm2, %v1108_v11, 0.0 }
 0x18b   : > { %v2359_v14 = vsel %vm804_vm0, %v1203_v3, %v2005_v54  ;;  %846 = vst.msk [vmem:[#allocation2 + $0x130] sm:$0xff] %vm804_vm0, %v6465_v38  ;;  %v1103_v6 = vpack.c.bf16 %v877_v22, %v877_v22  ;;  %v1360_v43 = vsel %vm1008_vm1, 0.0, %v1296_v16  ;;  %v947_v3 = vrot.slane %v6114_v24, 7  ;;  %v5665_v10 = vld [vmem:[%s7673_s3 + $0x80] sm:$0xff]  }
 0x18c   : > { %v4897_v12 = vcombine.low %v2356_v29, %v2359_v14  ;;  %1960 = vrot.lane.b32.xlu1 %v1100_v40, %s5818_s15  ;;  %v1392_v31 = vpack.c.bf16 %v1360_v43, %v1360_v43  ;;  %v6489_v40 = vsel %vm1169_vm2, %v1107_v2, 0.0  ;;  %v1205_v24 = vpack.c.bf16 %v6484_v63, %v6484_v63 }
 0x18d   : > { %v1426_v22 = vrot.slane %v6064_v48, 1  ;;  %v1011_v39 = vsel %vm1008_vm1, 0.0, %v946_v61  ;;  %v1204_v2 = vpack.c.bf16 %v6489_v40, %v6489_v40  ;;  %v1102_v29 = vpack.c.bf16 %v876_v55, %v876_v55  ;;  %v5668_v61 = vld [vmem:[%s7673_s3 + $0xd0] sm:$0xff]  }
 0x18e   : > { %1966 = vrot.lane.b32.xlu0 %v1103_v6, %s5818_s15  ;;  %3481 = vmatprep.mubr.bf16.mxu0 %v4897_v12  ;;  %v1909_v58 = vpop.permute.xlu1 %1908  ;;  %v1012_v14 = vsel %vm1008_vm1, 0.0, %v947_v3  ;;  %v1297_v12 = vrot.slane %v6465_v38, 7  ;;  %v948_v55 = vrot.slane %v6126_v30, 7  ;;  %v5670_v30 = vld [vmem:[%s7673_s3 + $0xd8] sm:$0xff]  }
 0x18f   : > { %v2263_v16 = vsel %vm804_vm0, %v1042_v8, %v1909_v58  ;;  %v1911_v54 = vpop.permute.xlu0 %1910  ;;  %v1043_v58 = vpack.c.bf16 %v1011_v39, %v1011_v39  ;;  %v1490_v3 = vsel %vm1169_vm2, %v1426_v22, 0.0  ;;  %v5669_v22 = vld [vmem:[%s7673_s3 + $0x90] sm:$0xff]  }
 0x190   : > { %v4896_v44 = vcombine.low %v2260_v50, %v2263_v16  ;;  %2060 = vrot.lane.b32.xlu1 %v1391_v18, %s5818_s15  ;;  %v5667_v50 = vld [vmem:[%s7673_s3 + $0x88] sm:$0xff]   ;;  %v1361_v39 = vsel %vm1008_vm1, 0.0, %v1297_v12 }
 0x192   : > { %2062 = vrot.lane.b32.xlu0 %v1392_v31, %s5818_s15  ;;  %v2009_v11 = vpop.permute.xlu1 %2008  ;;  %3482 = vmatmul.mubr.bf16.vlgmr.msra.gmra.mrb[64].mxu0 %v4896_v44  ;;  %v1044_v31 = vpack.c.bf16 %v1012_v14, %v1012_v14  ;;  %v2266_v44 = vsel %vm804_vm0, %v1043_v58, %v1911_v54  ;;  %v1428_v54 = vrot.slane %v6082_v1, 1  ;;  %v1393_v14 = vpack.c.bf16 %v1361_v39, %v1361_v39 }
 0x193   : > { %v2365_v6 = vsel %vm804_vm0, %v1205_v24, %v2009_v11  ;;  %v2007_v43 = vpop.permute.xlu0 %2006  ;;  %5366 = vmatpush3.bf16.msra.mxu0 %v5665_v10  ;;  %v949_v10 = vrot.slane %v6146_v45, 7  ;;  %v1207_v45 = vpack.c.bf16 %v6164_v57, %v6164_v57 }
 0x194   : > { %v2362_v8 = vsel %vm804_vm0, %v1204_v2, %v2007_v43  ;;  %1964 = vrot.lane.b32.xlu1 %v1102_v29, %s5818_s15  ;;  %5367 = vmatprep.subr.bf16.mxu0 %v5666_v47  ;;  %v1013_v2 = vsel %vm1008_vm1, 0.0, %v948_v55  ;;  %v1492_v55 = vsel %vm1169_vm2, %v1428_v54, 0.0  ;;  %v1430_v54 = vrot.slane %v6110_v21, 1 }
 0x195   : > { %v4902_v18 = vcombine.low %v2362_v8, %v2365_v6  ;;  %v1014_v6 = vsel %vm1008_vm1, 0.0, %v949_v10  ;;  %v1427_v8 = vrot.slane %v6072_v51, 1 }
 0x196   : > { %2194 = vrot.lane.b32.xlu0 %v6101_v13, %s5818_s15  ;;  %v1913_v16 = vpop.permute.xlu1 %1912  ;;  %v1522_v13 = vpack.c.bf16 %v1490_v3, %v1490_v3 }
 0x197   : > { %v2269_v47 = vsel %vm804_vm0, %v1044_v31, %v1913_v16  ;;  %v1915_v24 = vpop.permute.xlu0 %1914  ;;  %3489 = vmatprep.mubr.bf16.mxu0 %v4902_v18  ;;  %5368 = vmatpush3.bf16.msra.mxu0 %v5667_v50  ;;  %v878_v50 = vld [vmem:[#allocation2 + $0x128] sm:$0xff]  ;;  %v5673_v18 = vld [vmem:[%s7673_s3 + $0xe0] sm:$0xff]   ;;  %v1045_v31 = vpack.c.bf16 %v1013_v2, %v1013_v2  ;;  %v1046_v16 = vpack.c.bf16 %v1014_v6, %v1014_v6 }
 0x198   : > { %v4901_v11 = vcombine.low %v2266_v44, %v2269_v47  ;;  %2196 = vrot.lane.b32.xlu1 %v6123_v27, %s5818_s15  ;;  %5369 = vmatprep.subr.bf16.mxu0 %v5668_v61  ;;  %v1206_v27 = vpack.c.bf16 %v6168_v60, %v6168_v60  ;;  %v5672_v61 = vld [vmem:[%s7673_s3 + $0x98] sm:$0xff]   ;;  %v1104_v44 = vpack.c.bf16 %v878_v50, %v878_v50  ;;  %v1494_v50 = vsel %vm1169_vm2, %v1430_v54, 0.0 }
 0x199   : > { %v2272_v47 = vsel %vm804_vm0, %v1045_v31, %v1915_v24  ;;  %v5675_v24 = vld [vmem:[%s7673_s3 + $0xe8] sm:$0xff]   ;;  %v5678_v31 = vld [vmem:[%s7673_s3 + $0xb0] sm:$0xff]   ;;  %v1116_v54 = vrot.slane %v6221_v56, 1 }
 0x19a   : > { %2098 = vrot.lane.b32.xlu0 %v1522_v13, %s5818_s15  ;;  %v2013_v29 = vpop.permute.xlu1 %2012  ;;  %3490 = vmatmul.mubr.bf16.gmra.mrb[68].mxu0 %v4901_v11  ;;  %v5674_v11 = vld [vmem:[%s7673_s3 + $0xa0] sm:$0xff]   ;;  %v5693_v13 = vld [vmem:[#allocation2 + $0x50] sm:$0xff] }
 0x19b   : > { %v2371_v43 = vsel %vm804_vm0, %v1207_v45, %v2013_v29  ;;  %v2011_v12 = vpop.permute.xlu0 %2010  ;;  %5370 = vmatpush3.bf16.msra.mxu0 %v5669_v22  ;;  %v1491_v22 = vsel %vm1169_vm2, %v1427_v8, 0.0  ;;  %v1113_v2 = vrot.slane %v5693_v13, 1  ;;  %v953_v8 = vrot.slane %v6190_v23, 7 }
 0x19c   : > { %v2368_v58 = vsel %vm804_vm0, %v1206_v27, %v2011_v12  ;;  %2064 = vrot.lane.b32.xlu1 %v1393_v14, %s5818_s15  ;;  %5371 = vmatprep.subr.bf16.mxu0 %v5670_v30  ;;  %v952_v30 = vrot.slane %v5693_v13, 7  ;;  %v1523_v29 = vpack.c.bf16 %v1491_v22, %v1491_v22  ;;  %v1429_v27 = vrot.slane %v6090_v4, 1  ;;  %v5676_v14 = vld [vmem:[%s7673_s3 + $0xa8] sm:$0xff]   ;;  %v5677_v12 = vld [vmem:[%s7673_s3 + $0xf0] sm:$0xff]  }
 0x19d   : > { %v4907_v3 = vcombine.low %v2368_v58, %v2371_v43  ;;  %v1114_v43 = vrot.slane %v6190_v23, 1  ;;  %v1431_v13 = vrot.slane %v6118_v25, 1 }
 0x19e   : > { %2198 = vrot.lane.b32.xlu0 %v6132_v33, %s5818_s15  ;;  %v1917_v10 = vpop.permute.xlu1 %1916  ;;  %v1524_v33 = vpack.c.bf16 %v1492_v55, %v1492_v55  ;;  %v1017_v6 = vsel %vm1008_vm1, 0.0, %v952_v30  ;;  %v886_v55 = vld [vmem:[#allocation2 + $0x40] sm:$0xff]  ;;  %v5680_v30 = vld [vmem:[%s7673_s3 + $0xb8] sm:$0xff]  }
 0x19f   : > { %v2275_v39 = vsel %vm804_vm0, %v1046_v16, %v1917_v10  ;;  %3497 = vmatprep.mubr.bf16.mxu0 %v4907_v3  ;;  %5372 = vmatpush3.bf16.msra.mxu0 %v5672_v61  ;;  %v1178_v61 = vsel %vm1169_vm2, %v1113_v2, 0.0  ;;  %v1049_v58 = vpack.c.bf16 %v1017_v6, %v1017_v6  ;;  %v1526_v16 = vpack.c.bf16 %v1494_v50, %v1494_v50 }
 0x1a0   : > { %v4906_v45 = vcombine.low %v2272_v47, %v2275_v39  ;;  %1968 = vrot.lane.b32.xlu1 %v1104_v44, %s5818_s15  ;;  %5373 = vmatprep.subr.bf16.mxu0 %v5673_v18  ;;  %v1493_v18 = vsel %vm1169_vm2, %v1429_v27, 0.0  ;;  %v1179_v23 = vsel %vm1169_vm2, %v1114_v43, 0.0  ;;  %v1018_v10 = vsel %vm1008_vm1, 0.0, %v953_v8 }
 0x1a1   : > { %v1210_v44 = vpack.c.bf16 %v1178_v61, %v1178_v61  ;;  %v1432_v47 = vrot.slane %v6142_v42, 1  ;;  %v1525_v39 = vpack.c.bf16 %v1493_v18, %v1493_v18  ;;  %v1720_v22 = vpack.c.bf16 %v886_v55, %v886_v55  ;;  %v888_v55 = vld [vmem:[#allocation2 + $0x60] sm:$0xff] }
 0x1a2   : > { %2102 = vrot.lane.b32.xlu0 %v1524_v33, %s5818_s15  ;;  %3498 = vmatmul.mubr.bf16.gmra.mrb[72].mxu0 %v4906_v45  ;;  %v1050_v33 = vpack.c.bf16 %v1018_v10, %v1018_v10  ;;  %v1115_v2 = vrot.slane %v6200_v34, 1  ;;  %v955_v6 = vrot.slane %v6221_v56, 7  ;;  %v1434_v50 = vrot.slane %v6172_v62, 1 }
 0x1a3   : > { %5374 = vmatpush3.bf16.msra.mxu0 %v5674_v11  ;;  %v1211_v11 = vpack.c.bf16 %v1179_v23, %v1179_v23  ;;  %v1433_v8 = vrot.slane %v6150_v46, 1  ;;  %v1495_v61 = vsel %vm1169_vm2, %v1431_v13, 0.0 }
 0x1a4   : > { %2100 = vrot.lane.b32.xlu1 %v1523_v29, %s5818_s15  ;;  %5375 = vmatprep.subr.bf16.mxu0 %v5675_v24  ;;  %v954_v24 = vrot.slane %v6200_v34, 7  ;;  %v1020_v23 = vsel %vm1008_vm1, 0.0, %v955_v6  ;;  %v1527_v10 = vpack.c.bf16 %v1495_v61, %v1495_v61 }
 0x1a6   : > { %2202 = vrot.lane.b32.xlu0 %v6391_v59, %s5818_s15  ;;  %v5679_v59 = vld [vmem:[%s7673_s3 + $0xf8] sm:$0xff]   ;;  %v1019_v56 = vsel %vm1008_vm1, 0.0, %v954_v24  ;;  %v1722_v24 = vpack.c.bf16 %v888_v55, %v888_v55  ;;  %v6661_v55 = vld [vmem:[#allocation2 + $0x70] sm:$0xff] }
 0x1a7   : > { %5376 = vmatpush3.bf16.msra.mxu0 %v5676_v14  ;;  %v1496_v14 = vsel %vm1169_vm2, %v1432_v47, 0.0  ;;  %v1498_v47 = vsel %vm1169_vm2, %v1434_v50, 0.0 }
 0x1a8   : > { %v2019_v3 = vpop.permute.xlu0 %2018  ;;  %2200 = vrot.lane.b32.xlu1 %v6155_v49, %s5818_s15  ;;  %5377 = vmatprep.subr.bf16.mxu0 %v5677_v12  ;;  %v2284_v49 = vsel %vm804_vm0, %v1049_v58, %v6450_v35  ;;  %v5662_v58 = vld [vmem:[%s7673_s3 + $0x108] sm:$0xff]   ;;  %v1530_v50 = vpack.c.bf16 %v1498_v47, %v1498_v47 }
 0x1a9   : > { %v2380_v29 = vsel %vm804_vm0, %v1210_v44, %v2019_v3  ;;  %v1181_v3 = vsel %vm1169_vm2, %v1116_v54, 0.0  ;;  %v6622_v44 = vld [vmem:[#allocation2 + $0x48] sm:$0xff]  ;;  %v1118_v54 = vrot.slane %v6249_v32, 1 }
 0x1aa   : > { %2106 = vrot.lane.b32.xlu0 %v1526_v16, %s5818_s15  ;;  %v1180_v16 = vsel %vm1169_vm2, %v1115_v2, 0.0  ;;  %v1117_v2 = vrot.slane %v6232_v7, 1 }
 0x1ab   : > { %5378 = vmatpush3.bf16.msra.mxu0 %v5678_v31  ;;  %v1528_v31 = vpack.c.bf16 %v1496_v14, %v1496_v14  ;;  %v1212_v13 = vpack.c.bf16 %v1180_v16, %v1180_v16 }
 0x1ac   : > { %v2021_v45 = vpop.permute.xlu0 %2020  ;;  %2104 = vrot.lane.b32.xlu1 %v1525_v39, %s5818_s15  ;;  %5379 = vmatprep.subr.bf16.mxu0 %v5679_v59  ;;  %v1497_v39 = vsel %vm1169_vm2, %v1433_v8, 0.0  ;;  %v957_v8 = vrot.slane %v6249_v32, 7  ;;  %v1182_v32 = vsel %vm1169_vm2, %v1117_v2, 0.0 }
 0x1ad   : > { %v1925_v35 = vpop.permute.xlu1 %1924  ;;  %v2383_v27 = vsel %vm804_vm0, %v1211_v11, %v2021_v45  ;;  %v1213_v11 = vpack.c.bf16 %v1181_v3, %v1181_v3  ;;  %v5663_v45 = vld [vmem:[%s7673_s3 + $0x110] sm:$0xff]   ;;  %v1529_v47 = vpack.c.bf16 %v1497_v39, %v1497_v39 }
 0x1ae   : > { %v2287_v43 = vsel %vm804_vm0, %v1050_v33, %v1925_v35  ;;  %2206 = vrot.lane.b32.xlu0 %v1720_v22, %s5818_s15  ;;  %v4917_v12 = vcombine.low %v2380_v29, %v2383_v27  ;;  %v1051_v22 = vpack.c.bf16 %v1019_v56, %v1019_v56  ;;  %v1436_v56 = vrot.slane %v6187_v19, 1 }
 0x1af   : > { %v4916_v34 = vcombine.low %v2284_v49, %v2287_v43  ;;  %5380 = vmatpush3.bf16.msra.mxu0 %v5680_v30  ;;  %v6629_v49 = vld [vmem:[#allocation2 + $0x118] sm:$0xff]  ;;  %v1721_v30 = vpack.c.bf16 %v6622_v44, %v6622_v44 }
 0x1b0   : > { %3513 = vmatprep.mubr.bf16.mxu1 %v4917_v12  ;;  %v1927_v18 = vpop.permute.xlu0 %1926  ;;  %2204 = vrot.lane.b32.xlu1 %v6381_v37, %s5818_s15  ;;  %v6627_v37 = vld [vmem:[#allocation2 + $0x110] sm:$0xff]  ;;  %v1773_v14 = vrot.slane %v6629_v49, 1  ;;  %v956_v12 = vrot.slane %v6232_v7, 7  ;;  %v1183_v7 = vsel %vm1169_vm2, %v1118_v54, 0.0  ;;  %v1500_v54 = vsel %vm1169_vm2, %v1436_v56, 0.0 }
 0x1b1   : > { %3514 = vmatmul.mubr.bf16.vlgmr.msra.gmra.mrb[0].mxu1 %v4916_v34  ;;  %v1772_v27 = vrot.slane %v6627_v37, 1  ;;  %v2290_v34 = vsel %vm804_vm0, %v1051_v22, %v1927_v18  ;;  %v1022_v22 = vsel %vm1008_vm1, 0.0, %v957_v8 }
 0x1b2   : > { %2110 = vrot.lane.b32.xlu0 %v1528_v31, %s5818_s15  ;;  %v2025_v59 = vpop.permute.xlu1 %2024  ;;  %5498 = vmatpush3.bf16.msra.mxu1 %v6215_v52  ;;  %v1052_v52 = vpack.c.bf16 %v1020_v23, %v1020_v23  ;;  %v6659_v18 = vsel %vm1169_vm2, %v1773_v14, 0.0 }
 0x1b3   : > { %5499 = vmatprep.subr.bf16.mxu1 %v5662_v58  ;;  %v2389_v35 = vsel %vm804_vm0, %v1213_v11, %v2025_v59  ;;  %v6650_v31 = vsel %vm1169_vm2, %v1772_v27, 0.0  ;;  %7757 = vst [vmem:[#allocation33_spill] sm:$0xff] %v6659_v18  ;;  %v1021_v59 = vsel %vm1008_vm1, 0.0, %v956_v12  ;;  %v1215_v11 = vpack.c.bf16 %v1183_v7, %v1183_v7 }
 0x1b4   : > { %v2023_v33 = vpop.permute.xlu0 %2022  ;;  %2108 = vrot.lane.b32.xlu1 %v1527_v10, %s5818_s15  ;;  %7756 = vst [vmem:[#allocation32_spill] sm:$0xff] %v6650_v31  ;;  %v1053_v2 = vpack.c.bf16 %v1021_v59, %v1021_v59  ;;  %v1750_v12 = vrot.slane %v6375_v17, 1  ;;  %v1532_v7 = vpack.c.bf16 %v1500_v54, %v1500_v54  ;;  %v6689_v59 = vld [vmem:[#allocation2 + $0x80] sm:$0xff] }
 0x1b5   : > { %v2386_v29 = vsel %vm804_vm0, %v1212_v13, %v2023_v33  ;;  %v1214_v13 = vpack.c.bf16 %v1182_v32, %v1182_v32  ;;  %v1435_v33 = vrot.slane %v6177_v0, 1  ;;  %v958_v32 = vrot.slane %v6259_v41, 7 }
 0x1b6   : > { %v4922_v6 = vcombine.low %v2386_v29, %v2389_v35  ;;  %2210 = vrot.lane.b32.xlu0 %v1722_v24, %s5818_s15  ;;  %v1929_v43 = vpop.permute.xlu1 %1928  ;;  %5500 = vmatpush3.bf16.msra.mxu1 %v5662_v58  ;;  %v5671_v58 = vld [vmem:[%s7673_s3 + $0x118] sm:$0xff]   ;;  %v1054_v29 = vpack.c.bf16 %v1022_v22, %v1022_v22  ;;  %v959_v22 = vrot.slane %v6286_v36, 7 }
 0x1b7   : > { %v2293_v61 = vsel %vm804_vm0, %v1052_v52, %v1929_v43  ;;  %5501 = vmatprep.subr.bf16.mxu1 %v5663_v45  ;;  %v1724_v52 = vpack.c.bf16 %v6661_v55, %v6661_v55  ;;  %v1120_v43 = vrot.slane %v6286_v36, 1  ;;  %v1023_v36 = vsel %vm1008_vm1, 0.0, %v958_v32 }
 0x1b8   : > { %v4921_v3 = vcombine.low %v2290_v34, %v2293_v61  ;;  %v1931_v16 = vpop.permute.xlu0 %1930  ;;  %2208 = vrot.lane.b32.xlu1 %v1721_v30, %s5818_s15  ;;  %3521 = vmatprep.mubr.bf16.mxu1 %v4922_v6  ;;  %v6668_v30 = vld [vmem:[#allocation2 + $0x68] sm:$0xff]  ;;  %v1119_v6 = vrot.slane %v6259_v41, 1  ;;  %v1499_v34 = vsel %vm1169_vm2, %v1435_v33, 0.0  ;;  %v1751_v61 = vrot.slane %v6367_v9, 1  ;;  %v5694_v33 = vld [vmem:[#allocation2 + $0xa0] sm:$0xff] }
 0x1b9   : > { %v1185_v9 = vsel %vm1169_vm2, %v1120_v43, 0.0  ;;  %v1437_v41 = vrot.slane %v6194_v26, 1  ;;  %v1024_v43 = vsel %vm1008_vm1, 0.0, %v959_v22 }
 0x1ba   : > { %2114 = vrot.lane.b32.xlu0 %v1530_v50, %s5818_s15  ;;  %3522 = vmatmul.mubr.bf16.gmra.mrb[4].mxu1 %v4921_v3  ;;  %v2029_v10 = vpop.permute.xlu1 %2028  ;;  %v2296_v50 = vsel %vm804_vm0, %v1053_v2, %v1931_v16  ;;  %v6703_v54 = vsel %vm1169_vm2, %v1751_v61, 0.0  ;;  %v1056_v22 = vpack.c.bf16 %v1024_v43, %v1024_v43 }
 0x1bb   : > { %5502 = vmatpush3.bf16.msra.mxu1 %v5663_v45  ;;  %v2395_v39 = vsel %vm804_vm0, %v1215_v11, %v2029_v10  ;;  %v1723_v45 = vpack.c.bf16 %v6668_v30, %v6668_v30  ;;  %v1438_v10 = vrot.slane %v6217_v53, 1  ;;  %v6697_v11 = vsel %vm1169_vm2, %v1750_v12, 0.0  ;;  %v7772_v53 = vld [vmem:[#allocation18_spill] sm:$0xff] }
 0x1bc   : > { %v2027_v24 = vpop.permute.xlu0 %2026  ;;  %2112 = vrot.lane.b32.xlu1 %v1529_v47, %s5818_s15  ;;  %5503 = vmatprep.subr.bf16.mxu1 %v5671_v58  ;;  %v1531_v47 = vpack.c.bf16 %v1499_v34, %v1499_v34  ;;  %v1122_v12 = vrot.slane %v6312_v20, 1  ;;  %v1501_v61 = vsel %vm1169_vm2, %v1437_v41, 0.0 }
 0x1bd   : > { %v2392_v35 = vsel %vm804_vm0, %v1214_v13, %v2027_v24  ;;  %v6699_v13 = vld [vmem:[#allocation2 + $0x78] sm:$0xff]  ;;  %v1121_v24 = vrot.slane %v5694_v33, 1 }
 0x1be   : > { %v4927_v27 = vcombine.low %v2392_v35, %v2395_v39  ;;  %2214 = vrot.lane.b32.xlu0 %v1724_v52, %s5818_s15  ;;  %v1933_v14 = vpop.permute.xlu1 %1932  ;;  %v960_v52 = vrot.slane %v5694_v33, 7  ;;  %v1726_v39 = vpack.c.bf16 %v6689_v59, %v6689_v59  ;;  %v6726_v33 = vld [vmem:[#allocation2 + $0x90] sm:$0xff] }
 0x1bf   : > { %v2299_v8 = vsel %vm804_vm0, %v1054_v29, %v1933_v14  ;;  %5504 = vmatpush3.bf16.msra.mxu1 %v5671_v58  ;;  %v1184_v58 = vsel %vm1169_vm2, %v1119_v6, 0.0  ;;  %v1217_v29 = vpack.c.bf16 %v1185_v9, %v1185_v9  ;;  %v1725_v6 = vpack.c.bf16 %v6699_v13, %v6699_v13 }
 0x1c0   : > { %v4926_v56 = vcombine.low %v2296_v50, %v2299_v8  ;;  %v1935_v3 = vpop.permute.xlu0 %1934  ;;  %2212 = vrot.lane.b32.xlu1 %v1723_v45, %s5818_s15  ;;  %3529 = vmatprep.mubr.bf16.mxu1 %v4927_v27  ;;  %v1216_v35 = vpack.c.bf16 %v1184_v58, %v1184_v58  ;;  %v1502_v27 = vsel %vm1169_vm2, %v1438_v10, 0.0  ;;  %v1208_v45 = vpack.c.bf16 %v6697_v11, %v6697_v11 }
 0x1c1   : > { %v1209_v50 = vpack.c.bf16 %v6703_v54, %v6703_v54  ;;  %v1534_v10 = vpack.c.bf16 %v1502_v27, %v1502_v27  ;;  %v1186_v58 = vsel %vm1169_vm2, %v1121_v24, 0.0 }
 0x1c2   : > { %2118 = vrot.lane.b32.xlu0 %v1532_v7, %s5818_s15  ;;  %3530 = vmatmul.mubr.bf16.gmra.mrb[8].mxu1 %v4926_v56  ;;  %v2017_v16 = vpop.permute.xlu1 %2016  ;;  %v1055_v56 = vpack.c.bf16 %v1023_v36, %v1023_v36  ;;  %v1533_v36 = vpack.c.bf16 %v1501_v61, %v1501_v61  ;;  %v1218_v27 = vpack.c.bf16 %v1186_v58, %v1186_v58 }
 0x1c4   : > { %v2031_v2 = vpop.permute.xlu0 %2030  ;;  %2116 = vrot.lane.b32.xlu1 %v1531_v47, %s5818_s15  ;;  %v2377_v47 = vsel %vm804_vm0, %v1209_v50, %v2017_v16  ;;  %v2302_v24 = vsel %vm804_vm0, %v1055_v56, %v1935_v3  ;;  %v7759_v56 = vld [vmem:[#allocation16_spill] sm:$0xff] }
 0x1c5   : > { %v2398_v8 = vsel %vm804_vm0, %v1216_v35, %v2031_v2  ;;  %v1440_v2 = vrot.slane %v6245_v28, 1  ;;  %v1187_v35 = vsel %vm1169_vm2, %v1122_v12, 0.0 }
 0x1c6   : > { %2218 = vrot.lane.b32.xlu0 %v1726_v39, %s5818_s15  ;;  %v2033_v14 = vpop.permute.xlu1 %2032  ;;  %v1219_v12 = vpack.c.bf16 %v1187_v35, %v1187_v35 }
 0x1c7   : > { %v2401_v34 = vsel %vm804_vm0, %v1217_v29, %v2033_v14  ;;  %v961_v29 = vrot.slane %v6312_v20, 7  ;;  %v7758_v14 = vld [vmem:[#allocation9_spill] sm:$0xff]  ;;  %v1504_v20 = vsel %vm1169_vm2, %v1440_v2, 0.0 }
 0x1c8   : > { %v4932_v7 = vcombine.low %v2398_v8, %v2401_v34  ;;  %v2015_v32 = vpop.permute.xlu0 %2014  ;;  %2216 = vrot.lane.b32.xlu1 %v1725_v6, %s5818_s15  ;;  %v1025_v6 = vsel %vm1008_vm1, 0.0, %v960_v52  ;;  %v1728_v8 = vpack.c.bf16 %v6726_v33, %v6726_v33  ;;  %v6739_v34 = vld [vmem:[#allocation2 + $0x88] sm:$0xff] }
 0x1c9   : > { %v2374_v9 = vsel %vm804_vm0, %v1208_v45, %v2015_v32  ;;  %v1439_v45 = vrot.slane %v7758_v14, 1  ;;  %v1727_v52 = vpack.c.bf16 %v6739_v34, %v6739_v34  ;;  %v1026_v61 = vsel %vm1008_vm1, 0.0, %v961_v29  ;;  %v7760_v32 = vld [vmem:[#allocation19_spill] sm:$0xff]  ;;  %v6753_v29 = vld [vmem:[#allocation2 + $0xb0] sm:$0xff] }
 0x1ca   : > { %v4912_v39 = vcombine.low %v2374_v9, %v2377_v47  ;;  %2122 = vrot.lane.b32.xlu0 %v1534_v10, %s5818_s15  ;;  %3537 = vmatprep.mubr.bf16.mxu1 %v4932_v7  ;;  %v1937_v41 = vpop.permute.xlu1 %1936  ;;  %v1123_v7 = vrot.slane %v7759_v56, 1  ;;  %v1124_v10 = vrot.slane %v7760_v32, 1  ;;  %v1057_v58 = vpack.c.bf16 %v1025_v6, %v1025_v6 }
 0x1cb   : > { %v2305_v16 = vsel %vm804_vm0, %v1056_v22, %v1937_v41  ;;  %v1503_v22 = vsel %vm1169_vm2, %v1439_v45, 0.0  ;;  %v1536_v41 = vpack.c.bf16 %v1504_v20, %v1504_v20  ;;  %v1058_v35 = vpack.c.bf16 %v1026_v61, %v1026_v61 }
 0x1cc   : > { %v4931_v43 = vcombine.low %v2302_v24, %v2305_v16  ;;  %v2035_v50 = vpop.permute.xlu0 %2034  ;;  %2120 = vrot.lane.b32.xlu1 %v1533_v36, %s5818_s15  ;;  %3505 = vmatprep.mubr.bf16.mxu0 %v4912_v39  ;;  %v962_v36 = vrot.slane %v7759_v56, 7  ;;  %v7761_v24 = vld [vmem:[#allocation12_spill] sm:$0xff]  ;;  %v1188_v6 = vsel %vm1169_vm2, %v1123_v7, 0.0  ;;  %v1189_v45 = vsel %vm1169_vm2, %v1124_v10, 0.0 }
 0x1cd   : > { %v2404_v47 = vsel %vm804_vm0, %v1218_v27, %v2035_v50  ;;  %v1442_v16 = vrot.slane %v7761_v24, 1  ;;  %v963_v50 = vrot.slane %v7760_v32, 7  ;;  %v1730_v7 = vpack.c.bf16 %v6753_v29, %v6753_v29  ;;  %v6780_v24 = vld [vmem:[#allocation2 + $0xc0] sm:$0xff] }
 0x1ce   : > { %2222 = vrot.lane.b32.xlu0 %v1728_v8, %s5818_s15  ;;  %3538 = vmatmul.mubr.bf16.gmra.mrb[12].mxu1 %v4931_v43  ;;  %v2037_v3 = vpop.permute.xlu1 %2036  ;;  %v1535_v43 = vpack.c.bf16 %v1503_v22, %v1503_v22  ;;  %v7762_v8 = vld [vmem:[#allocation25_spill] sm:$0xff]  ;;  %v1220_v32 = vpack.c.bf16 %v1188_v6, %v1188_v6  ;;  %v1027_v22 = vsel %vm1008_vm1, 0.0, %v962_v36 }
 0x1cf   : > { %v2407_v9 = vsel %vm804_vm0, %v1219_v12, %v2037_v3  ;;  %v2308_v12 = vsel %vm804_vm0, %v1057_v58, %v7762_v8  ;;  %v6763_v3 = vld [vmem:[#allocation2 + $0x98] sm:$0xff]  ;;  %v1506_v58 = vsel %vm1169_vm2, %v1442_v16, 0.0 }
 0x1d0   : > { %v4937_v2 = vcombine.low %v2404_v47, %v2407_v9  ;;  %v1943_v39 = vpop.permute.xlu0 %1942  ;;  %2220 = vrot.lane.b32.xlu1 %v1727_v52, %s5818_s15  ;;  %v7763_v52 = vld [vmem:[#allocation11_spill] sm:$0xff]  ;;  %v1729_v10 = vpack.c.bf16 %v6763_v3, %v6763_v3  ;;  %v1221_v9 = vpack.c.bf16 %v1189_v45, %v1189_v45  ;;  %v1538_v36 = vpack.c.bf16 %v1506_v58, %v1506_v58 }
 0x1d1   : > { %v1441_v61 = vrot.slane %v7763_v52, 1 }
 0x1d2   : > { %2126 = vrot.lane.b32.xlu0 %v1536_v41, %s5818_s15  ;;  %3545 = vmatprep.mubr.bf16.mxu1 %v4937_v2  ;;  %v1941_v27 = vpop.permute.xlu1 %1940  ;;  %v1028_v41 = vsel %vm1008_vm1, 0.0, %v963_v50  ;;  %v7765_v50 = vld [vmem:[#allocation14_spill] sm:$0xff] }
 0x1d3   : > { %v2311_v20 = vsel %vm804_vm0, %v1058_v35, %v1941_v27  ;;  %v5695_v35 = vld [vmem:[#allocation2 + $0xc0] sm:$0xff]  ;;  %v1505_v6 = vsel %vm1169_vm2, %v1441_v61, 0.0  ;;  %v1060_v23 = vpack.c.bf16 %v1028_v41, %v1028_v41  ;;  %v1444_v31 = vrot.slane %v7765_v50, 1  ;;  %v5697_v50 = vld [vmem:[#allocation2 + $0xd0] sm:$0xff] }
 0x1d4   : > { %v4936_v56 = vcombine.low %v2308_v12, %v2311_v20  ;;  %v2039_v47 = vpop.permute.xlu0 %2038  ;;  %2124 = vrot.lane.b32.xlu1 %v1535_v43, %s5818_s15  ;;  %v1125_v27 = vrot.slane %v5695_v35, 1  ;;  %v7764_v43 = vld [vmem:[#allocation22_spill] sm:$0xff] }
 0x1d5   : > { %v1126_v8 = vrot.slane %v7764_v43, 1  ;;  %v2410_v12 = vsel %vm804_vm0, %v1220_v32, %v2039_v47 }
 0x1d6   : > { %2226 = vrot.lane.b32.xlu0 %v1730_v7, %s5818_s15  ;;  %3546 = vmatmul.mubr.bf16.gmra.mrb[16].mxu1 %v4936_v56  ;;  %v2041_v2 = vpop.permute.xlu1 %2040  ;;  %v1059_v7 = vpack.c.bf16 %v1027_v22, %v1027_v22  ;;  %v964_v56 = vrot.slane %v5695_v35, 7  ;;  %v1190_v32 = vsel %vm1169_vm2, %v1125_v27, 0.0  ;;  %v7766_v22 = vld [vmem:[#allocation13_spill] sm:$0xff] }
 0x1d7   : > { %v2413_v20 = vsel %vm804_vm0, %v1221_v9, %v2041_v2  ;;  %v1537_v9 = vpack.c.bf16 %v1505_v6, %v1505_v6  ;;  %v1191_v61 = vsel %vm1169_vm2, %v1126_v8, 0.0  ;;  %v965_v2 = vrot.slane %v7764_v43, 7  ;;  %v6793_v6 = vld [vmem:[#allocation2 + $0xb8] sm:$0xff] }
 0x1d8   : > { %v4942_v45 = vcombine.low %v2410_v12, %v2413_v20  ;;  %v1947_v16 = vpop.permute.xlu0 %1946  ;;  %2224 = vrot.lane.b32.xlu1 %v1729_v10, %s5818_s15  ;;  %v2314_v10 = vsel %vm804_vm0, %v1059_v7, %v1943_v39  ;;  %v1443_v41 = vrot.slane %v7766_v22, 1  ;;  %v1732_v20 = vpack.c.bf16 %v6780_v24, %v6780_v24  ;;  %v6808_v22 = vld [vmem:[#allocation2 + $0xd0] sm:$0xff] }
 0x1d9   : > { %v1223_v27 = vpack.c.bf16 %v1191_v61, %v1191_v61  ;;  %v1508_v8 = vsel %vm1169_vm2, %v1444_v31, 0.0  ;;  %v1029_v43 = vsel %vm1008_vm1, 0.0, %v964_v56  ;;  %v1731_v39 = vpack.c.bf16 %v6793_v6, %v6793_v6 }
 0x1da   : > { %2130 = vrot.lane.b32.xlu0 %v1538_v36, %s5818_s15  ;;  %3553 = vmatprep.mubr.bf16.mxu1 %v4942_v45  ;;  %v1945_v47 = vpop.permute.xlu1 %1944  ;;  %v1222_v45 = vpack.c.bf16 %v1190_v32, %v1190_v32  ;;  %v1030_v36 = vsel %vm1008_vm1, 0.0, %v965_v2  ;;  %v1507_v32 = vsel %vm1169_vm2, %v1443_v41, 0.0  ;;  %v1540_v56 = vpack.c.bf16 %v1508_v8, %v1508_v8 }
 0x1db   : > { %v2317_v58 = vsel %vm804_vm0, %v1060_v23, %v1945_v47  ;;  %v1127_v2 = vrot.slane %v5697_v50, 1 }
 0x1dc   : > { %v4941_v35 = vcombine.low %v2314_v10, %v2317_v58  ;;  %v2043_v12 = vpop.permute.xlu0 %2042  ;;  %2128 = vrot.lane.b32.xlu1 %v1537_v9, %s5818_s15  ;;  %v5696_v9 = vld [vmem:[#allocation2 + $0x38] sm:$0xff]  ;;  %v950_v58 = vrot.slane %v6375_v17, 7 }
 0x1dd   : > { %v2416_v7 = vsel %vm804_vm0, %v1222_v45, %v2043_v12  ;;  %v951_v61 = vrot.slane %v5696_v9, 7  ;;  %v7767_v12 = vld [vmem:[#allocation17_spill] sm:$0xff] }
 0x1de   : > { %2230 = vrot.lane.b32.xlu0 %v1732_v20, %s5818_s15  ;;  %3554 = vmatmul.mubr.bf16.gmra.mrb[20].mxu1 %v4941_v35  ;;  %v2045_v23 = vpop.permute.xlu1 %2044  ;;  %v1061_v35 = vpack.c.bf16 %v1029_v43, %v1029_v43  ;;  %v1062_v20 = vpack.c.bf16 %v1030_v36, %v1030_v36  ;;  %v1446_v45 = vrot.slane %v7767_v12, 1  ;;  %v7769_v43 = vld [vmem:[#allocation15_spill] sm:$0xff] }
 0x1df   : > { %v2419_v47 = vsel %vm804_vm0, %v1223_v27, %v2045_v23  ;;  %v1539_v27 = vpack.c.bf16 %v1507_v32, %v1507_v32  ;;  %v7768_v23 = vld [vmem:[#allocation27_spill] sm:$0xff]  ;;  %v1016_v17 = vsel %vm1008_vm1, 0.0, %v951_v61  ;;  %v1445_v36 = vrot.slane %v7769_v43, 1  ;;  %v7770_v43 = vld [vmem:[#allocation20_spill] sm:$0xff] }
 0x1e0   : > { %v4947_v31 = vcombine.low %v2416_v7, %v2419_v47  ;;  %v6804_v10 = vpop.permute.xlu0 %1950  ;;  %2228 = vrot.lane.b32.xlu1 %v1731_v39, %s5818_s15  ;;  %v1128_v7 = vrot.slane %v7768_v23, 1  ;;  %v2320_v39 = vsel %vm804_vm0, %v1061_v35, %v1947_v16  ;;  %v966_v47 = vrot.slane %v5697_v50, 7  ;;  %v6822_v23 = vld [vmem:[#allocation2 + $0xc8] sm:$0xff] }
 0x1e1   : > { %v1015_v32 = vsel %vm1008_vm1, 0.0, %v950_v58  ;;  %v1510_v16 = vsel %vm1169_vm2, %v1446_v45, 0.0  ;;  %v1733_v50 = vpack.c.bf16 %v6822_v23, %v6822_v23 }
 0x1e2   : > { %2134 = vrot.lane.b32.xlu0 %v1540_v56, %s5818_s15  ;;  %3561 = vmatprep.mubr.bf16.mxu1 %v4947_v31  ;;  %v1949_v41 = vpop.permute.xlu1 %1948  ;;  %v1734_v31 = vpack.c.bf16 %v6808_v22, %v6808_v22  ;;  %v1192_v56 = vsel %vm1169_vm2, %v1127_v2, 0.0  ;;  %v1193_v35 = vsel %vm1169_vm2, %v1128_v7, 0.0  ;;  %v6831_v58 = vpack.c.bf16 %v1015_v32, %v1015_v32  ;;  %v6840_v32 = vld [vmem:[#allocation2 + $0xe0] sm:$0xff] }
 0x1e3   : > { %v2323_v8 = vsel %vm804_vm0, %v1062_v20, %v1949_v41  ;;  %v5698_v20 = vld [vmem:[#allocation2 + $0xd8] sm:$0xff]  ;;  %v1509_v2 = vsel %vm1169_vm2, %v1445_v36, 0.0  ;;  %v1224_v45 = vpack.c.bf16 %v1192_v56, %v1192_v56  ;;  %v1448_v36 = vrot.slane %v7770_v43, 1 }
 0x1e4   : > { %v4946_v9 = vcombine.low %v2320_v39, %v2323_v8  ;;  %v2047_v18 = vpop.permute.xlu0 %2046  ;;  %2132 = vrot.lane.b32.xlu1 %v1539_v27, %s5818_s15  ;;  %v967_v41 = vrot.slane %v5698_v20, 7  ;;  %v6829_v27 = vpack.c.bf16 %v1016_v17, %v1016_v17  ;;  %v1031_v39 = vsel %vm1008_vm1, 0.0, %v966_v47 }
 0x1e5   : > { %v1225_v20 = vpack.c.bf16 %v1193_v35, %v1193_v35  ;;  %v1541_v56 = vpack.c.bf16 %v1509_v2, %v1509_v2  ;;  %v2422_v14 = vsel %vm804_vm0, %v1224_v45, %v2047_v18  ;;  %v1736_v2 = vpack.c.bf16 %v6840_v32, %v6840_v32 }
 0x1e6   : > { %2234 = vrot.lane.b32.xlu0 %v1734_v31, %s5818_s15  ;;  %3562 = vmatmul.mubr.bf16.gmra.mrb[24].mxu1 %v4946_v9  ;;  %v1921_v61 = vpop.permute.xlu1 %1920  ;;  %v1542_v9 = vpack.c.bf16 %v1510_v16, %v1510_v16  ;;  %v5699_v31 = vld [vmem:[#allocation2 + $0xf0] sm:$0xff]  ;;  %v1032_v16 = vsel %vm1008_vm1, 0.0, %v967_v41  ;;  %v1063_v41 = vpack.c.bf16 %v1031_v39, %v1031_v39  ;;  %v1512_v18 = vsel %vm1169_vm2, %v1448_v36, 0.0 }
 0x1e7   : > { %v1129_v12 = vrot.slane %v5699_v31, 1  ;;  %v2281_v7 = vsel %vm804_vm0, %v6829_v27, %v1921_v61  ;;  %v968_v35 = vrot.slane %v5699_v31, 7  ;;  %v5700_v31 = vld [vmem:[#allocation2 + $0xf8] sm:$0xff] }
 0x1e8   : > { %v1919_v8 = vpop.permute.xlu0 %1918  ;;  %2232 = vrot.lane.b32.xlu1 %v1733_v50, %s5818_s15  ;;  %v7771_v50 = vld [vmem:[#allocation30_spill] sm:$0xff] }
 0x1e9   : > { %v2278_v17 = vsel %vm804_vm0, %v6831_v58, %v1919_v8  ;;  %v1130_v28 = vrot.slane %v7771_v50, 1  ;;  %v1447_v8 = vrot.slane %v7772_v53, 1  ;;  %v1194_v19 = vsel %vm1169_vm2, %v1129_v12, 0.0 }
 0x1ea   : > { %v4911_v52 = vcombine.low %v2278_v17, %v2281_v7  ;;  %2138 = vrot.lane.b32.xlu0 %v1542_v9, %s5818_s15  ;;  %v2049_v47 = vpop.permute.xlu1 %2048  ;;  %v1064_v9 = vpack.c.bf16 %v1032_v16, %v1032_v16  ;;  %v6853_v7 = vld [vmem:[#allocation2 + $0xd8] sm:$0xff]  ;;  %v2326_v17 = vsel %vm804_vm0, %v1063_v41, %v6804_v10  ;;  %v1226_v39 = vpack.c.bf16 %v1194_v19, %v1194_v19  ;;  %v5701_v10 = vld [vmem:[#allocation2 + $0x100] sm:$0xff] }
 0x1eb   : > { %v2425_v61 = vsel %vm804_vm0, %v1225_v20, %v2049_v47  ;;  %v1195_v12 = vsel %vm1169_vm2, %v1130_v28, 0.0  ;;  %v1511_v47 = vsel %vm1169_vm2, %v1447_v8, 0.0  ;;  %v1033_v36 = vsel %vm1008_vm1, 0.0, %v968_v35  ;;  %v6868_v28 = vld [vmem:[#allocation2 + $0x100] sm:$0xff] }
 0x1ec   : > { %v4952_v26 = vcombine.low %v2422_v14, %v2425_v61  ;;  %v2051_v43 = vpop.permute.xlu0 %2050  ;;  %2136 = vrot.lane.b32.xlu1 %v1541_v56, %s5818_s15  ;;  %3506 = vmatmul.mubr.bf16.gmra.mrb[76].mxu0 %v4911_v52  ;;  %v1735_v14 = vpack.c.bf16 %v6853_v7, %v6853_v7  ;;  %v969_v52 = vrot.slane %v5700_v31, 7  ;;  %v1544_v16 = vpack.c.bf16 %v1512_v18, %v1512_v18  ;;  %v7774_v61 = vld [vmem:[#allocation23_spill] sm:$0xff] }
 0x1ed   : > { %v1227_v50 = vpack.c.bf16 %v1195_v12, %v1195_v12  ;;  %7773 = vst [vmem:[#allocation16_spill] sm:$0xff] %v6868_v28  ;;  %v1131_v41 = vrot.slane %v5701_v10, 1  ;;  %v1543_v8 = vpack.c.bf16 %v1511_v47, %v1511_v47  ;;  %v1065_v31 = vpack.c.bf16 %v1033_v36, %v1033_v36  ;;  %v6875_v12 = vld [vmem:[#allocation2 + $0xe8] sm:$0xff] }
 0x1ee   : > { %2238 = vrot.lane.b32.xlu0 %v1736_v2, %s5818_s15  ;;  %3569 = vmatprep.mubr.bf16.mxu1 %v4952_v26  ;;  %v1953_v45 = vpop.permute.xlu1 %1952  ;;  %v1450_v2 = vrot.slane %v7774_v61, 1  ;;  %v1034_v35 = vsel %vm1008_vm1, 0.0, %v969_v52  ;;  %7775 = vst [vmem:[#allocation19_spill] sm:$0xff] %v6875_v12  ;;  %v1738_v47 = vpack.c.bf16 %v6868_v28, %v6868_v28  ;;  %v1737_v52 = vpack.c.bf16 %v6875_v12, %v6875_v12  ;;  %v7778_v28 = vld [vmem:[#allocation26_spill] sm:$0xff]  ;;  %v6904_v12 = vld [vmem:[#allocation2 + $0x108] sm:$0xff] }
 0x1ef   : > { %v2329_v20 = vsel %vm804_vm0, %v1064_v9, %v1953_v45  ;;  %v5702_v9 = vld [vmem:[#allocation2 + $0x108] sm:$0xff]  ;;  %v1066_v36 = vpack.c.bf16 %v1034_v35, %v1034_v35 }
 0x1f0   : > { %v4951_v56 = vcombine.low %v2326_v17, %v2329_v20  ;;  %v6865_v26 = vpop.permute.xlu0 %1958  ;;  %2236 = vrot.lane.b32.xlu1 %v1735_v14, %s5818_s15  ;;  %v1132_v45 = vrot.slane %v5702_v9, 1  ;;  %v2428_v14 = vsel %vm804_vm0, %v1226_v39, %v2051_v43  ;;  %v7776_v17 = vld [vmem:[#allocation21_spill] sm:$0xff]  ;;  %v1514_v43 = vsel %vm1169_vm2, %v1450_v2, 0.0 }
 0x1f1   : > { %v1449_v20 = vrot.slane %v7776_v17, 1  ;;  %v1196_v39 = vsel %vm1169_vm2, %v1131_v41, 0.0  ;;  %v1546_v2 = vpack.c.bf16 %v1514_v43, %v1514_v43 }
 0x1f2   : > { %2142 = vrot.lane.b32.xlu0 %v1544_v16, %s5818_s15  ;;  %3570 = vmatmul.mubr.bf16.gmra.mrb[28].mxu1 %v4951_v56  ;;  %v2053_v19 = vpop.permute.xlu1 %2052  ;;  %v970_v56 = vrot.slane %v5701_v10, 7 }
 0x1f3   : > { %v2431_v18 = vsel %vm804_vm0, %v1227_v50, %v2053_v19  ;;  %v1197_v19 = vsel %vm1169_vm2, %v1132_v45, 0.0  ;;  %v1513_v53 = vsel %vm1169_vm2, %v1449_v20, 0.0  ;;  %v1452_v45 = vrot.slane %v7778_v28, 1  ;;  %v5704_v20 = vld [vmem:[#allocation2 + $0x118] sm:$0xff] }
 0x1f4   : > { %v4957_v61 = vcombine.low %v2428_v14, %v2431_v18  ;;  %v2055_v16 = vpop.permute.xlu0 %2054  ;;  %2140 = vrot.lane.b32.xlu1 %v1543_v8, %s5818_s15  ;;  %v971_v14 = vrot.slane %v5702_v9, 7  ;;  %v7777_v8 = vld [vmem:[#allocation31_spill] sm:$0xff]  ;;  %v1035_v41 = vsel %vm1008_vm1, 0.0, %v970_v56  ;;  %v7779_v56 = vld [vmem:[#allocation24_spill] sm:$0xff] }
 0x1f5   : > { %v2332_v18 = vsel %vm804_vm0, %v1065_v31, %v7777_v8  ;;  %v5703_v31 = vld [vmem:[#allocation2 + $0x110] sm:$0xff]  ;;  %v1134_v8 = vrot.slane %v5704_v20, 1 }
 0x1f6   : > { %2242 = vrot.lane.b32.xlu0 %v1738_v47, %s5818_s15  ;;  %3577 = vmatprep.mubr.bf16.mxu1 %v4957_v61  ;;  %v1957_v50 = vpop.permute.xlu1 %1956  ;;  %v1228_v61 = vpack.c.bf16 %v1196_v39, %v1196_v39  ;;  %v1229_v47 = vpack.c.bf16 %v1197_v19, %v1197_v19  ;;  %v1451_v39 = vrot.slane %v7779_v56, 1  ;;  %v972_v28 = vrot.slane %v5703_v31, 7 }
 0x1f7   : > { %v2335_v17 = vsel %vm804_vm0, %v1066_v36, %v1957_v50  ;;  %v1133_v36 = vrot.slane %v5703_v31, 1  ;;  %v1545_v50 = vpack.c.bf16 %v1513_v53, %v1513_v53 }
 0x1f8   : > { %v4956_v10 = vcombine.low %v2332_v18, %v2335_v17  ;;  %v6891_v35 = vpop.permute.xlu0 %1962  ;;  %2240 = vrot.lane.b32.xlu1 %v1737_v52, %s5818_s15  ;;  %v1036_v17 = vsel %vm1008_vm1, 0.0, %v971_v14  ;;  %v2434_v52 = vsel %vm804_vm0, %v1228_v61, %v2055_v16  ;;  %v1516_v14 = vsel %vm1169_vm2, %v1452_v45, 0.0 }
 0x1f9   : > { %v1068_v53 = vpack.c.bf16 %v1036_v17, %v1036_v17  ;;  %v1198_v16 = vsel %vm1169_vm2, %v1133_v36, 0.0  ;;  %v1515_v31 = vsel %vm1169_vm2, %v1451_v39, 0.0  ;;  %v1548_v36 = vpack.c.bf16 %v1516_v14, %v1516_v14 }
 0x1fa   : > { %2146 = vrot.lane.b32.xlu0 %v1546_v2, %s5818_s15  ;;  %3578 = vmatmul.mubr.bf16.gmra.mrb[32].mxu1 %v4956_v10  ;;  %v2057_v9 = vpop.permute.xlu1 %2056  ;;  %v1740_v10 = vpack.c.bf16 %v6627_v37, %v6627_v37  ;;  %v1067_v2 = vpack.c.bf16 %v1035_v41, %v1035_v41 }
 0x1fb   : > { %v2437_v43 = vsel %vm804_vm0, %v1229_v47, %v2057_v9  ;;  %v1739_v47 = vpack.c.bf16 %v6904_v12, %v6904_v12  ;;  %v1199_v9 = vsel %vm1169_vm2, %v1134_v8, 0.0 }
 0x1fc   : > { %v4962_v19 = vcombine.low %v2434_v52, %v2437_v43  ;;  %v2059_v18 = vpop.permute.xlu0 %2058  ;;  %2144 = vrot.lane.b32.xlu1 %v1545_v50, %s5818_s15  ;;  %v973_v50 = vrot.slane %v5704_v20, 7  ;;  %v2338_v37 = vsel %vm804_vm0, %v1067_v2, %v6865_v26  ;;  %v1230_v52 = vpack.c.bf16 %v1198_v16, %v1198_v16  ;;  %v7781_v20 = vld [vmem:[#allocation29_spill] sm:$0xff] }
 0x1fd   : > { %v1231_v43 = vpack.c.bf16 %v1199_v9, %v1199_v9  ;;  %v1454_v56 = vrot.slane %v7781_v20, 1  ;;  %v1037_v26 = vsel %vm1008_vm1, 0.0, %v972_v28  ;;  %v1547_v2 = vpack.c.bf16 %v1515_v31, %v1515_v31  ;;  %v7782_v9 = vld [vmem:[#allocation28_spill] sm:$0xff] }
 0x1fe   : > { %2246 = vrot.lane.b32.xlu0 %v1740_v10, %s5818_s15  ;;  %3585 = vmatprep.mubr.bf16.mxu1 %v4962_v19  ;;  %v1961_v61 = vpop.permute.xlu1 %1960  ;;  %v6919_v19 = vld [vmem:[#allocation2 + $0x120] sm:$0xff]  ;;  %v5705_v10 = vld [vmem:[#allocation2 + $0x10] sm:$0xff]  ;;  %v2440_v14 = vsel %vm804_vm0, %v1230_v52, %v2059_v18  ;;  %v1741_v52 = vpack.c.bf16 %v6629_v49, %v6629_v49 }
 0x1ff   : > { %v2341_v41 = vsel %vm804_vm0, %v1068_v53, %v1961_v61  ;;  %7780 = vst [vmem:[#allocation25_spill] sm:$0xff] %v6919_v19  ;;  %v1586_v8 = vrot.slane %v5705_v10, 7  ;;  %v1038_v53 = vsel %vm1008_vm1, 0.0, %v973_v50  ;;  %v5706_v61 = vld [vmem:[#allocation2 + $0x18] sm:$0xff]  ;;  %v1742_v28 = vpack.c.bf16 %v6919_v19, %v6919_v19  ;;  %v6942_v49 = vld [vmem:[#allocation2 + $0x130] sm:$0xff] }
 0x200   : > { %v4961_v45 = vcombine.low %v2338_v37, %v2341_v41  ;;  %v6916_v17 = vpop.permute.xlu0 %1966  ;;  %2244 = vrot.lane.b32.xlu1 %v1739_v47, %s5818_s15  ;;  %v1587_v47 = vrot.slane %v5706_v61, 7  ;;  %v1453_v37 = vrot.slane %v7782_v9, 1  ;;  %v1518_v50 = vsel %vm1169_vm2, %v1454_v56, 0.0  ;;  %v5707_v61 = vld [vmem:[#allocation2 + $0x120] sm:$0xff] }
 0x201   : > { %v1650_v31 = vsel %vm1008_vm1, 0.0, %v1586_v8  ;;  %v1135_v20 = vrot.slane %v5707_v61, 1 }
 0x202   : > { %2150 = vrot.lane.b32.xlu0 %v1548_v36, %s5818_s15  ;;  %3586 = vmatmul.mubr.bf16.gmra.mrb[36].mxu1 %v4961_v45  ;;  %v2061_v39 = vpop.permute.xlu1 %2060  ;;  %v1069_v45 = vpack.c.bf16 %v1037_v26, %v1037_v26  ;;  %v1070_v36 = vpack.c.bf16 %v1038_v53, %v1038_v53  ;;  %v1517_v56 = vsel %vm1169_vm2, %v1453_v37, 0.0 }
 0x203   : > { %v2443_v16 = vsel %vm804_vm0, %v1231_v43, %v2061_v39  ;;  %v1651_v43 = vsel %vm1008_vm1, 0.0, %v1587_v47  ;;  %v5708_v39 = vld [vmem:[#allocation2 + $0x128] sm:$0xff]  ;;  %v1456_v47 = vrot.slane %v6459_v5, 1  ;;  %v1200_v19 = vsel %vm1169_vm2, %v1135_v20, 0.0 }
 0x204   : > { %v4967_v41 = vcombine.low %v2440_v14, %v2443_v16  ;;  %v2063_v10 = vpop.permute.xlu0 %2062  ;;  %2148 = vrot.lane.b32.xlu1 %v1547_v2, %s5818_s15  ;;  %v1136_v2 = vrot.slane %v5708_v39, 1  ;;  %v2344_v26 = vsel %vm804_vm0, %v1069_v45, %v6891_v35  ;;  %v1550_v16 = vpack.c.bf16 %v1518_v50, %v1518_v50 }
 0x205   : > { %v1683_v9 = vpack.c.bf16 %v1651_v43, %v1651_v43  ;;  %v1549_v45 = vpack.c.bf16 %v1517_v56, %v1517_v56  ;;  %v1744_v20 = vpack.c.bf16 %v6942_v49, %v6942_v49  ;;  %v1232_v43 = vpack.c.bf16 %v1200_v19, %v1200_v19 }
 0x206   : > { %2250 = vrot.lane.b32.xlu0 %v1742_v28, %s5818_s15  ;;  %3593 = vmatprep.mubr.bf16.mxu1 %v4967_v41  ;;  %v1965_v18 = vpop.permute.xlu1 %1964  ;;  %v974_v41 = vrot.slane %v5707_v61, 7  ;;  %v1682_v28 = vpack.c.bf16 %v1650_v31, %v1650_v31  ;;  %v1201_v37 = vsel %vm1169_vm2, %v1136_v2, 0.0  ;;  %v1455_v31 = vrot.slane %v6435_v15, 1 }
 0x207   : > { %v2347_v8 = vsel %vm804_vm0, %v1070_v36, %v1965_v18  ;;  %v975_v36 = vrot.slane %v5708_v39, 7  ;;  %v1520_v2 = vsel %vm1169_vm2, %v1456_v47, 0.0 }
 0x208   : > { %v4966_v53 = vcombine.low %v2344_v26, %v2347_v8  ;;  %v2195_v14 = vpop.permute.xlu0 %2194  ;;  %2248 = vrot.lane.b32.xlu1 %v1741_v52, %s5818_s15  ;;  %v1233_v26 = vpack.c.bf16 %v1201_v37, %v1201_v37  ;;  %v6954_v8 = vld [vmem:[#allocation2 + $0x128] sm:$0xff]  ;;  %v1039_v39 = vsel %vm1008_vm1, 0.0, %v974_v41  ;;  %v1552_v41 = vpack.c.bf16 %v1520_v2, %v1520_v2  ;;  %v5709_v37 = vld [vmem:[#allocation2 + $0x20] sm:$0xff] }
 0x209   : > { %v2548_v18 = vsel %vm804_vm0, %v1682_v28, %v2195_v14  ;;  %v1743_v56 = vpack.c.bf16 %v6954_v8, %v6954_v8  ;;  %v2446_v14 = vsel %vm804_vm0, %v1232_v43, %v2063_v10  ;;  %v1071_v47 = vpack.c.bf16 %v1039_v39, %v1039_v39  ;;  %v6970_v43 = vld [vmem:[#allocation2 + $0x138] sm:$0xff] }
 0x20a   : > { %2154 = vrot.lane.b32.xlu0 %v1550_v16, %s5818_s15  ;;  %3594 = vmatmul.mubr.bf16.gmra.mrb[40].mxu1 %v4966_v53  ;;  %v2197_v35 = vpop.permute.xlu1 %2196  ;;  %v1040_v53 = vsel %vm1008_vm1, 0.0, %v975_v36  ;;  %v1519_v16 = vsel %vm1169_vm2, %v1455_v31, 0.0 }
 0x20b   : > { %v2551_v50 = vsel %vm804_vm0, %v1683_v9, %v2197_v35  ;;  %v1551_v36 = vpack.c.bf16 %v1519_v16, %v1519_v16 }
 0x20c   : > { %v4899_v61 = vcombine.low %v2548_v18, %v2551_v50  ;;  %v2099_v52 = vpop.permute.xlu0 %2098  ;;  %2152 = vrot.lane.b32.xlu1 %v1549_v45, %s5818_s15  ;;  %v1072_v45 = vpack.c.bf16 %v1040_v53, %v1040_v53  ;;  %v1588_v18 = vrot.slane %v5709_v37, 7  ;;  %v1395_v53 = vpack.c.bf16 %v6072_v51, %v6072_v51 }
 0x20e   : > { %2254 = vrot.lane.b32.xlu0 %v1744_v20, %s5818_s15  ;;  %v2065_v9 = vpop.permute.xlu1 %2064  ;;  %3642 = vmatprep.mubr.bf16.mxu0 %v4899_v61  ;;  %v5710_v61 = vld [vmem:[#allocation2 + $0x28] sm:$0xff]  ;;  %v2350_v20 = vsel %vm804_vm0, %v1071_v47, %v6916_v17  ;;  %v5091_v17 = vpack.c.bf16 %v6484_v63, %v6489_v40 }
 0x20f   : > { %v2449_v19 = vsel %vm804_vm0, %v1233_v26, %v2065_v9  ;;  %v1589_v10 = vrot.slane %v5710_v61, 7  ;;  %v1457_v26 = vrot.slane %v6465_v38, 1  ;;  %v1745_v9 = vpack.c.bf16 %v6970_v43, %v6970_v43 }
 0x210   : > { %v4972_v28 = vcombine.low %v2446_v14, %v2449_v19  ;;  %v2199_v35 = vpop.permute.xlu0 %2198  ;;  %2252 = vrot.lane.b32.xlu1 %v1743_v56, %s5818_s15  ;;  %v1394_v56 = vpack.c.bf16 %v6064_v48, %v6064_v48  ;;  %v1652_v14 = vsel %vm1008_vm1, 0.0, %v1588_v18 }
 0x211   : > { %v1653_v16 = vsel %vm1008_vm1, 0.0, %v1589_v10  ;;  %v1521_v48 = vsel %vm1169_vm2, %v1457_v26, 0.0  ;;  %v1684_v51 = vpack.c.bf16 %v1652_v14, %v1652_v14  ;;  %v5711_v10 = vld [vmem:[#allocation2 + $0x40] sm:$0xff]  ;;  %v1397_v26 = vpack.c.bf16 %v6090_v4, %v6090_v4 }
 0x212   : > { %2158 = vrot.lane.b32.xlu0 %v1552_v41, %s5818_s15  ;;  %3601 = vmatprep.mubr.bf16.mxu1 %v4972_v28  ;;  %v1969_v50 = vpop.permute.xlu1 %1968  ;;  %v2452_v28 = vsel %vm804_vm0, %v1394_v56, %v2099_v52  ;;  %v1685_v63 = vpack.c.bf16 %v1653_v16, %v1653_v16  ;;  %v1553_v37 = vpack.c.bf16 %v1521_v48, %v1521_v48  ;;  %v1753_v52 = vrot.slane %v6622_v44, 1 }
 0x213   : > { %v2353_v31 = vsel %vm804_vm0, %v1072_v45, %v1969_v50  ;;  %v2554_v18 = vsel %vm804_vm0, %v1684_v51, %v2199_v35  ;;  %v1755_v35 = vrot.slane %v6668_v30, 1  ;;  %v7783_v44 = vpack.c.bf16 %v6164_v57, %v6168_v60 }
 0x214   : > { %v4971_v2 = vcombine.low %v2350_v20, %v2353_v31  ;;  %v2103_v39 = vpop.permute.xlu0 %2102  ;;  %2156 = vrot.lane.b32.xlu1 %v1551_v36, %s5818_s15  ;;  %v1752_v20 = vrot.slane %v5711_v10, 1  ;;  %v1396_v31 = vpack.c.bf16 %v6082_v1, %v6082_v1  ;;  %v5712_v1 = vld [vmem:[#allocation2 + $0x60] sm:$0xff]  ;;  %v1817_v57 = vsel %vm1169_vm2, %v1753_v52, 0.0 }
 0x215   : > { %v1754_v4 = vrot.slane %v5712_v1, 1  ;;  %v1592_v60 = vrot.slane %v5711_v10, 7 }
 0x216   : > { %3602 = vmatmul.mubr.bf16.gmra.mrb[44].mxu1 %v4971_v2  ;;  %v2101_v19 = vpop.permute.xlu1 %2100  ;;  %v5093_v2 = vpack.c.bf16 %v6703_v54, %v6697_v11  ;;  %v2458_v56 = vsel %vm804_vm0, %v1396_v31, %v2103_v39  ;;  %v5713_v11 = vld [vmem:[#allocation2 + $0x48] sm:$0xff] }
 0x217   : > { %v2455_v41 = vsel %vm804_vm0, %v1395_v53, %v2101_v19  ;;  %5505 = vmatprep.mubr.msk.bf16.mxu1 %vm804_vm0, %v5091_v17  ;;  %v1593_v54 = vrot.slane %v5713_v11, 7  ;;  %v1816_v19 = vsel %vm1169_vm2, %v1752_v20, 0.0 }
 0x218   : > { %v4898_v47 = vcombine.low %v2452_v28, %v2455_v41  ;;  %v2203_v45 = vpop.permute.xlu0 %2202  ;;  %2256 = vrot.lane.b32.xlu1 %v1745_v9, %s5818_s15  ;;  %v1819_v28 = vsel %vm1169_vm2, %v1755_v35, 0.0  ;;  %v5094_v51 = vpack.c.bf16 %v1817_v57, %v1816_v19  ;;  %v1400_v57 = vpack.c.bf16 %v6142_v42, %v6142_v42 }
 0x219   : > { %v2560_v39 = vsel %vm804_vm0, %v6831_v58, %v2203_v45  ;;  %v1759_v58 = vrot.slane %v6739_v34, 1  ;;  %v1762_v42 = vrot.slane %v6753_v29, 1 }
 0x21a   : > { %v2201_v40 = vpop.permute.xlu1 %2200  ;;  %3643 = vmatmul.mubr.bf16.vlgmr.msra.gmra.mrb[80].mxu0 %v4898_v47 }
 0x21b   : > { %v2557_v50 = vsel %vm804_vm0, %v1685_v63, %v2201_v40  ;;  %v1818_v63 = vsel %vm1169_vm2, %v1754_v4, 0.0  ;;  %v1657_v40 = vsel %vm1008_vm1, 0.0, %v1593_v54 }
 0x21c   : > { %v4904_v36 = vcombine.low %v2554_v18, %v2557_v50  ;;  %v2107_v61 = vpop.permute.xlu0 %2106  ;;  %2160 = vrot.lane.b32.xlu1 %v1553_v37, %s5818_s15  ;;  %v1757_v37 = vrot.slane %v6699_v13, 1  ;;  %v1398_v18 = vpack.c.bf16 %v6110_v21, %v6110_v21  ;;  %v1399_v50 = vpack.c.bf16 %v6118_v25, %v6118_v25 }
 0x21d   : > { %v5095_v52 = vpack.c.bf16 %v1819_v28, %v1818_v63  ;;  %v1689_v21 = vpack.c.bf16 %v1657_v40, %v1657_v40  ;;  %v1758_v25 = vrot.slane %v6689_v59, 1  ;;  %v1761_v59 = vrot.slane %v6763_v3, 1 }
 0x21e   : > { %5506 = vmatmul.mubr.msk.bf16.vlgmr.msra.gmra.mrb[48].mxu1 %vm804_vm0, %v7783_v44  ;;  %v2105_v9 = vpop.permute.xlu1 %2104  ;;  %3650 = vmatprep.mubr.bf16.mxu0 %v4904_v36  ;;  %v1756_v36 = vrot.slane %v6661_v55, 1  ;;  %v2464_v10 = vsel %vm804_vm0, %v1398_v18, %v2107_v61  ;;  %v1821_v35 = vsel %vm1169_vm2, %v1757_v37, 0.0  ;;  %v1594_v44 = vrot.slane %v5712_v1, 7  ;;  %v5714_v18 = vld [vmem:[#allocation2 + $0x70] sm:$0xff] }
 0x21f   : > { %v2461_v53 = vsel %vm804_vm0, %v1397_v26, %v2105_v9  ;;  %5509 = vmatprep.mubr.msk.bf16.mxu1 %vm804_vm0, %v5093_v2  ;;  %v1595_v55 = vrot.slane %v6668_v30, 7  ;;  %v1822_v19 = vsel %vm1169_vm2, %v1758_v25, 0.0  ;;  %v1760_v1 = vrot.slane %v6726_v33, 1 }
 0x220   : > { %v4903_v17 = vcombine.low %v2458_v56, %v2461_v53  ;;  %v2207_v14 = vpop.permute.xlu0 %2206  ;;  %v1823_v56 = vsel %vm1169_vm2, %v1759_v58, 0.0  ;;  %v1820_v4 = vsel %vm1169_vm2, %v1756_v36, 0.0  ;;  %v1401_v30 = vpack.c.bf16 %v6150_v46, %v6150_v46 }
 0x221   : > { %v5096_v54 = vpack.c.bf16 %v1821_v35, %v1820_v4  ;;  %v1824_v40 = vsel %vm1169_vm2, %v1760_v1, 0.0  ;;  %v1825_v37 = vsel %vm1169_vm2, %v1761_v59, 0.0  ;;  %v1597_v58 = vrot.slane %v6699_v13, 7 }
 0x222   : > { %v2205_v16 = vpop.permute.xlu1 %2204  ;;  %3651 = vmatmul.mubr.bf16.gmra.mrb[84].mxu0 %v4903_v17  ;;  %v1403_v25 = vpack.c.bf16 %v6177_v0, %v6177_v0  ;;  %v1764_v0 = vrot.slane %v6780_v24, 1  ;;  %v1599_v1 = vrot.slane %v6739_v34, 7  ;;  %v1768_v34 = vrot.slane %v6840_v32, 1 }
 0x223   : > { %v2563_v41 = vsel %vm804_vm0, %v6829_v27, %v2205_v16  ;;  %v1656_v27 = vsel %vm1008_vm1, 0.0, %v1592_v60  ;;  %v1763_v60 = vrot.slane %v6793_v6, 1  ;;  %v1658_v16 = vsel %vm1008_vm1, 0.0, %v1594_v44 }
 0x224   : > { %v4909_v48 = vcombine.low %v2560_v39, %v2563_v41  ;;  %v2111_v47 = vpop.permute.xlu0 %2110  ;;  %v1688_v2 = vpack.c.bf16 %v1656_v27, %v1656_v27  ;;  %v1659_v39 = vsel %vm1008_vm1, 0.0, %v1595_v55  ;;  %v1661_v35 = vsel %vm1008_vm1, 0.0, %v1597_v58 }
 0x225   : > { %v2470_v41 = vsel %vm804_vm0, %v1400_v57, %v2111_v47  ;;  %v1691_v63 = vpack.c.bf16 %v1659_v39, %v1659_v39  ;;  %v1827_v47 = vsel %vm1169_vm2, %v1763_v60, 0.0  ;;  %v1767_v44 = vrot.slane %v6853_v7, 1 }
 0x226   : > { %5510 = vmatmul.mubr.msk.bf16.gmra.mrb[52].mxu1 %vm804_vm0, %v5094_v51  ;;  %v2109_v45 = vpop.permute.xlu1 %2108  ;;  %3658 = vmatprep.mubr.bf16.mxu0 %v4909_v48  ;;  %v2566_v61 = vsel %vm804_vm0, %v1688_v2, %v2207_v14  ;;  %v5097_v14 = vpack.c.bf16 %v1823_v56, %v1822_v19  ;;  %v1690_v51 = vpack.c.bf16 %v1658_v16, %v1658_v16  ;;  %v1765_v2 = vrot.slane %v6822_v23, 1 }
 0x227   : > { %v2467_v20 = vsel %vm804_vm0, %v1399_v50, %v2109_v45  ;;  %5513 = vmatprep.mubr.msk.bf16.mxu1 %vm804_vm0, %v5095_v52  ;;  %v1596_v50 = vrot.slane %v5714_v18, 7  ;;  %v1693_v4 = vpack.c.bf16 %v1661_v35, %v1661_v35  ;;  %v1771_v58 = vrot.slane %v6904_v12, 1 }
 0x228   : > { %v4908_v31 = vcombine.low %v2464_v10, %v2467_v20  ;;  %v2211_v26 = vpop.permute.xlu0 %2210  ;;  %v5098_v10 = vpack.c.bf16 %v1825_v37, %v1824_v40  ;;  %v1826_v20 = vsel %vm1169_vm2, %v1762_v42, 0.0  ;;  %v1829_v59 = vsel %vm1169_vm2, %v1765_v2, 0.0  ;;  %v5683_v40 = vld [vmem:[%s7675_s5 + $0x4] ss:$8 sps:$4 sm:$0xff]  }
 0x229   : > { %v2572_v27 = vsel %vm804_vm0, %v1690_v51, %v2211_v26  ;;  %v1660_v13 = vsel %vm1008_vm1, 0.0, %v1596_v50  ;;  %v7786_v51 = vld [vmem:[#allocation19_spill] sm:$0xff]  ;;  %v1663_v50 = vsel %vm1008_vm1, 0.0, %v1599_v1  ;;  %4088 = vmatprep.subr.bf16.mxu1 %v5683_v40  ;;  %v5684_v40 = vld [vmem:[%s7675_s5 + $0x10] ss:$8 sps:$4 sm:$0xff]  }
 0x22a   : > { %v2209_v9 = vpop.permute.xlu1 %2208  ;;  %3659 = vmatmul.mubr.bf16.gmra.mrb[88].mxu0 %v4908_v31  ;;  %v5099_v31 = vpack.c.bf16 %v1827_v47, %v1826_v20  ;;  %v1601_v20 = vrot.slane %v6763_v3, 7 }
 0x22b   : > { %v2569_v53 = vsel %vm804_vm0, %v1689_v21, %v2209_v9  ;;  %v1402_v21 = vpack.c.bf16 %v6172_v62, %v6172_v62 }
 0x22c   : > { %v4914_v17 = vcombine.low %v2566_v61, %v2569_v53  ;;  %v2115_v11 = vpop.permute.xlu0 %2114  ;;  %v1766_v61 = vrot.slane %v6808_v22, 1  ;;  %v1692_v53 = vpack.c.bf16 %v1660_v13, %v1660_v13  ;;  %v5716_v13 = vld [vmem:[#allocation2 + $0x90] sm:$0xff] }
 0x22d   : > { %v2476_v9 = vsel %vm804_vm0, %v1402_v21, %v2115_v11  ;;  %v1831_v11 = vsel %vm1169_vm2, %v1767_v44, 0.0  ;;  %v1835_v44 = vsel %vm1169_vm2, %v1771_v58, 0.0 }
 0x22e   : > { %5514 = vmatmul.mubr.msk.bf16.gmra.mrb[56].mxu1 %vm804_vm0, %v5096_v54  ;;  %v2113_v28 = vpop.permute.xlu1 %2112  ;;  %3666 = vmatprep.mubr.bf16.mxu0 %v4914_v17  ;;  %v5715_v17 = vld [vmem:[#allocation2 + $0x80] sm:$0xff] }
 0x22f   : > { %v2473_v33 = vsel %vm804_vm0, %v1401_v30, %v2113_v28  ;;  %5517 = vmatprep.mubr.msk.bf16.mxu1 %vm804_vm0, %v5097_v14  ;;  %v1598_v54 = vrot.slane %v5715_v17, 7  ;;  %v1828_v30 = vsel %vm1169_vm2, %v1764_v0, 0.0  ;;  %v7784_v14 = vld [vmem:[#allocation6_spill] sm:$0xff] }
 0x230   : > { %v4913_v46 = vcombine.low %v2470_v41, %v2473_v33  ;;  %v2215_v48 = vpop.permute.xlu0 %2214  ;;  %v1404_v60 = vpack.c.bf16 %v7784_v14, %v7784_v14  ;;  %v5100_v39 = vpack.c.bf16 %v1829_v59, %v1828_v30  ;;  %v1830_v41 = vsel %vm1169_vm2, %v1766_v61, 0.0  ;;  %v7785_v33 = vld [vmem:[#allocation7_spill] sm:$0xff]  ;;  %v7789_v59 = vld [vmem:[#allocation9_spill] sm:$0xff] }
 0x231   : > { %v2578_v57 = vsel %vm804_vm0, %v1692_v53, %v2215_v48  ;;  %v1405_v42 = vpack.c.bf16 %v7785_v33, %v7785_v33  ;;  %v1769_v48 = vrot.slane %v7786_v51, 1  ;;  %v1662_v37 = vsel %vm1008_vm1, 0.0, %v1598_v54  ;;  %v7788_v53 = vld [vmem:[#allocation8_spill] sm:$0xff] }
 0x232   : > { %v2213_v52 = vpop.permute.xlu1 %2212  ;;  %3667 = vmatmul.mubr.bf16.gmra.mrb[92].mxu0 %v4913_v46  ;;  %v5101_v46 = vpack.c.bf16 %v1831_v11, %v1830_v41  ;;  %v1694_v21 = vpack.c.bf16 %v1662_v37, %v1662_v37  ;;  %v1665_v61 = vsel %vm1008_vm1, 0.0, %v1601_v20  ;;  %v1407_v17 = vpack.c.bf16 %v7789_v59, %v7789_v59  ;;  %v5717_v41 = vld [vmem:[#allocation2 + $0xb0] sm:$0xff] }
 0x233   : > { %v2575_v29 = vsel %vm804_vm0, %v1691_v63, %v2213_v52  ;;  %v5681_v63 = vld [vmem:[%s7675_s5] ss:$8 sps:$4 sm:$0xff]   ;;  %v7787_v52 = vld [vmem:[#allocation16_spill] sm:$0xff]  ;;  %v1833_v2 = vsel %vm1169_vm2, %v1769_v48, 0.0  ;;  %v1697_v14 = vpack.c.bf16 %v1665_v61, %v1665_v61  ;;  %v1602_v33 = vrot.slane %v5717_v41, 7 }
 0x234   : > { %v4919_v45 = vcombine.low %v2572_v27, %v2575_v29  ;;  %v2119_v36 = vpop.permute.xlu0 %2118  ;;  %v1770_v47 = vrot.slane %v7787_v52, 1  ;;  %4089 = vmatpush1.bf16.msra.mxu1 %v5681_v63  ;;  %v1603_v48 = vrot.slane %v6793_v6, 7  ;;  %v5686_v37 = vld [vmem:[%s7675_s5 + $0x14] ss:$8 sps:$4 sm:$0xff]   ;;  %v5718_v61 = vld [vmem:[#allocation2 + $0xc0] sm:$0xff]  ;;  %v1605_v59 = vrot.slane %v6822_v23, 7 }
 0x235   : > { %v2482_v27 = vsel %vm804_vm0, %v1404_v60, %v2119_v36  ;;  %4090 = vmatprep.subr.bf16.mxu1 %v5686_v37  ;;  %v1666_v20 = vsel %vm1008_vm1, 0.0, %v1602_v33  ;;  %v5687_v37 = vld [vmem:[%s7675_s5 + $0x20] ss:$8 sps:$4 sm:$0xff]  }
 0x236   : > { %5518 = vmatmul.mubr.msk.bf16.gmra.mrb[60].mxu1 %vm804_vm0, %v5098_v10  ;;  %v2117_v26 = vpop.permute.xlu1 %2116  ;;  %3674 = vmatprep.mubr.bf16.mxu0 %v4919_v45  ;;  %v1834_v36 = vsel %vm1169_vm2, %v1770_v47, 0.0  ;;  %v1669_v23 = vsel %vm1008_vm1, 0.0, %v1605_v59 }
 0x237   : > { %v2479_v62 = vsel %vm804_vm0, %v1403_v25, %v2117_v26  ;;  %5521 = vmatprep.mubr.msk.bf16.mxu1 %vm804_vm0, %v5099_v31  ;;  %v1695_v25 = vpack.c.bf16 %v1663_v50, %v1663_v50  ;;  %v1832_v31 = vsel %vm1169_vm2, %v1768_v34, 0.0  ;;  %v1600_v26 = vrot.slane %v5716_v13, 7 }
 0x238   : > { %v4918_v56 = vcombine.low %v2476_v9, %v2479_v62  ;;  %v2219_v55 = vpop.permute.xlu0 %2218  ;;  %v5103_v54 = vpack.c.bf16 %v1835_v44, %v1834_v36  ;;  %v1667_v13 = vsel %vm1008_vm1, 0.0, %v1603_v48  ;;  %4091 = vmatpush1.bf16.msra.mxu1 %v5684_v40 }
 0x239   : > { %v2584_v9 = vsel %vm804_vm0, %v1694_v21, %v2219_v55  ;;  %v7790_v55 = vld [vmem:[#allocation25_spill] sm:$0xff] }
 0x23a   : > { %v2217_v19 = vpop.permute.xlu1 %2216  ;;  %3675 = vmatmul.mubr.bf16.gmra.mrb[96].mxu0 %v4918_v56  ;;  %v5102_v56 = vpack.c.bf16 %v1833_v2, %v1832_v31  ;;  %v1774_v1 = vrot.slane %v7790_v55, 1  ;;  %v7793_v21 = vld [vmem:[#allocation33_spill] sm:$0xff] }
 0x23b   : > { %v2581_v24 = vsel %vm804_vm0, %v1693_v4, %v2217_v19  ;;  %v1406_v4 = vpack.c.bf16 %v7788_v53, %v7788_v53  ;;  %v1664_v19 = vsel %vm1008_vm1, 0.0, %v1600_v26  ;;  %v1604_v53 = vrot.slane %v5718_v61, 7 }
 0x23c   : > { %v4924_v16 = vcombine.low %v2578_v57, %v2581_v24  ;;  %v2123_v28 = vpop.permute.xlu0 %2122  ;;  %v1775_v57 = vrot.slane %v6954_v8, 1 }
 0x23d   : > { %v2488_v24 = vsel %vm804_vm0, %v1406_v4, %v2123_v28 }
 0x23e   : > { %5522 = vmatmul.mubr.msk.bf16.gmra.mrb[64].mxu1 %vm804_vm0, %v5100_v39  ;;  %v2121_v18 = vpop.permute.xlu1 %2120  ;;  %3682 = vmatprep.mubr.bf16.mxu0 %v4924_v16  ;;  %v1696_v39 = vpack.c.bf16 %v1664_v19, %v1664_v19  ;;  %v1839_v34 = vsel %vm1169_vm2, %v1775_v57, 0.0 }
 0x23f   : > { %v2485_v29 = vsel %vm804_vm0, %v1405_v42, %v2121_v18  ;;  %5525 = vmatprep.mubr.msk.bf16.mxu1 %vm804_vm0, %v5101_v46  ;;  %v1838_v46 = vsel %vm1169_vm2, %v1774_v1, 0.0  ;;  %v7791_v18 = vld [vmem:[#allocation10_spill] sm:$0xff]  ;;  %v7796_v1 = vld [vmem:[#allocation12_spill] sm:$0xff] }
 0x240   : > { %v4923_v45 = vcombine.low %v2482_v27, %v2485_v29  ;;  %v2223_v10 = vpop.permute.xlu0 %2222  ;;  %v1408_v50 = vpack.c.bf16 %v7791_v18, %v7791_v18  ;;  %v7792_v27 = vld [vmem:[#allocation11_spill] sm:$0xff]  ;;  %v5105_v29 = vpack.c.bf16 %v1839_v34, %v1838_v46  ;;  %v1410_v57 = vpack.c.bf16 %v7796_v1, %v7796_v1 }
 0x241   : > { %v2590_v28 = vsel %vm804_vm0, %v1696_v39, %v2223_v10  ;;  %v1409_v6 = vpack.c.bf16 %v7792_v27, %v7792_v27  ;;  %v1777_v10 = vrot.slane %v6970_v43, 1  ;;  %v1701_v46 = vpack.c.bf16 %v1669_v23, %v1669_v23  ;;  %v5689_v18 = vld [vmem:[%s7675_s5 + $0x24] ss:$8 sps:$4 sm:$0xff]  }
 0x242   : > { %v2221_v35 = vpop.permute.xlu1 %2220  ;;  %3683 = vmatmul.mubr.bf16.gmra.mrb[100].mxu0 %v4923_v45  ;;  %v1776_v45 = vrot.slane %v6942_v49, 1  ;;  %v1606_v34 = vrot.slane %v6808_v22, 7  ;;  %v7799_v27 = vld [vmem:[#allocation15_spill] sm:$0xff]  ;;  %4092 = vmatprep.subr.bf16.mxu1 %v5689_v18  ;;  %v1610_v23 = vrot.slane %v7787_v52, 7  ;;  %v5690_v52 = vld [vmem:[%s7675_s5 + $0x30] ss:$8 sps:$4 sm:$0xff]  }
 0x243   : > { %v2587_v62 = vsel %vm804_vm0, %v1695_v25, %v2221_v35  ;;  %v7794_v25 = vld [vmem:[#allocation32_spill] sm:$0xff]  ;;  %4093 = vmatpush1.bf16.msra.mxu1 %v5687_v37 }
 0x244   : > { %v4929_v3 = vcombine.low %v2584_v9, %v2587_v62  ;;  %v2127_v0 = vpop.permute.xlu0 %2126  ;;  %v7795_v31 = vpack.c.bf16 %v7793_v21, %v7794_v25  ;;  %v1698_v9 = vpack.c.bf16 %v1666_v20, %v1666_v20  ;;  %v1699_v62 = vpack.c.bf16 %v1667_v13, %v1667_v13 }
 0x245   : > { %v2494_v26 = vsel %vm804_vm0, %v1408_v50, %v2127_v0  ;;  %v1674_v37 = vsel %vm1008_vm1, 0.0, %v1610_v23 }
 0x246   : > { %5526 = vmatmul.mubr.msk.bf16.gmra.mrb[68].mxu1 %vm804_vm0, %v5102_v56  ;;  %v2125_v11 = vpop.permute.xlu1 %2124  ;;  %3690 = vmatprep.mubr.bf16.mxu0 %v4929_v3  ;;  %v1840_v3 = vsel %vm1169_vm2, %v1776_v45, 0.0  ;;  %v1841_v56 = vsel %vm1169_vm2, %v1777_v10, 0.0 }
 0x247   : > { %v2491_v30 = vsel %vm804_vm0, %v1407_v17, %v2125_v11  ;;  %5529 = vmatprep.mubr.msk.bf16.mxu1 %vm804_vm0, %v5103_v54  ;;  %v5106_v11 = vpack.c.bf16 %v1841_v56, %v1840_v3  ;;  %v7800_v56 = vld [vmem:[#allocation17_spill] sm:$0xff] }
 0x248   : > { %v4928_v60 = vcombine.low %v2488_v24, %v2491_v30  ;;  %v2227_v16 = vpop.permute.xlu0 %2226  ;;  %v7797_v24 = vld [vmem:[#allocation13_spill] sm:$0xff]  ;;  %v1414_v61 = vpack.c.bf16 %v7800_v56, %v7800_v56 }
 0x249   : > { %v2596_v0 = vsel %vm804_vm0, %v1698_v9, %v2227_v16  ;;  %v1411_v30 = vpack.c.bf16 %v7797_v24, %v7797_v24 }
 0x24a   : > { %v2225_v42 = vpop.permute.xlu1 %2224  ;;  %3691 = vmatmul.mubr.bf16.gmra.mrb[104].mxu0 %v4928_v60 }
 0x24b   : > { %v2593_v63 = vsel %vm804_vm0, %v1697_v14, %v2225_v42  ;;  %v1668_v14 = vsel %vm1008_vm1, 0.0, %v1604_v53 }
 0x24c   : > { %v4934_v47 = vcombine.low %v2590_v28, %v2593_v63  ;;  %v2131_v58 = vpop.permute.xlu0 %2130  ;;  %v1700_v42 = vpack.c.bf16 %v1668_v14, %v1668_v14  ;;  %v1607_v28 = vrot.slane %v6853_v7, 7  ;;  %v1413_v7 = vpack.c.bf16 %v7799_v27, %v7799_v27 }
 0x24d   : > { %v2500_v16 = vsel %vm804_vm0, %v1410_v57, %v2131_v58  ;;  %v7798_v58 = vld [vmem:[#allocation14_spill] sm:$0xff] }
 0x24e   : > { %5530 = vmatmul.mubr.msk.bf16.gmra.mrb[72].mxu1 %vm804_vm0, %v7795_v31  ;;  %v2129_v2 = vpop.permute.xlu1 %2128  ;;  %3698 = vmatprep.mubr.bf16.mxu0 %v4934_v47  ;;  %v1412_v22 = vpack.c.bf16 %v7798_v58, %v7798_v58  ;;  %v1671_v45 = vsel %vm1008_vm1, 0.0, %v1607_v28  ;;  %v1609_v31 = vrot.slane %v7786_v51, 7 }
 0x24f   : > { %v2497_v35 = vsel %vm804_vm0, %v1409_v6, %v2129_v2  ;;  %5533 = vmatprep.mubr.msk.bf16.mxu1 %vm804_vm0, %v5105_v29  ;;  %v1670_v6 = vsel %vm1008_vm1, 0.0, %v1606_v34  ;;  %v1703_v13 = vpack.c.bf16 %v1671_v45, %v1671_v45  ;;  %v7802_v34 = vld [vmem:[#allocation20_spill] sm:$0xff] }
 0x250   : > { %v4933_v36 = vcombine.low %v2494_v26, %v2497_v35  ;;  %v2231_v44 = vpop.permute.xlu0 %2230  ;;  %v1702_v2 = vpack.c.bf16 %v1670_v6, %v1670_v6  ;;  %v1608_v26 = vrot.slane %v6840_v32, 7  ;;  %v1673_v3 = vsel %vm1008_vm1, 0.0, %v1609_v31 }
 0x251   : > { %v2602_v63 = vsel %vm804_vm0, %v1700_v42, %v2231_v44  ;;  %v1705_v1 = vpack.c.bf16 %v1673_v3, %v1673_v3 }
 0x252   : > { %v2229_v4 = vpop.permute.xlu1 %2228  ;;  %3699 = vmatmul.mubr.bf16.gmra.mrb[108].mxu0 %v4933_v36  ;;  %v1672_v59 = vsel %vm1008_vm1, 0.0, %v1608_v26 }
 0x253   : > { %v2599_v17 = vsel %vm804_vm0, %v1699_v62, %v2229_v4  ;;  %v7801_v4 = vld [vmem:[#allocation18_spill] sm:$0xff]  ;;  %v1704_v14 = vpack.c.bf16 %v1672_v59, %v1672_v59 }
 0x254   : > { %v4939_v54 = vcombine.low %v2596_v0, %v2599_v17  ;;  %v2135_v19 = vpop.permute.xlu0 %2134  ;;  %v1415_v51 = vpack.c.bf16 %v7801_v4, %v7801_v4 }
 0x255   : > { %v2506_v10 = vsel %vm804_vm0, %v1412_v22, %v2135_v19 }
 0x256   : > { %5534 = vmatmul.mubr.msk.bf16.gmra.mrb[76].mxu1 %vm804_vm0, %v5106_v11  ;;  %v2133_v60 = vpop.permute.xlu1 %2132  ;;  %3706 = vmatprep.mubr.bf16.mxu0 %v4939_v54 }
 0x257   : > { %v2503_v39 = vsel %vm804_vm0, %v1411_v30, %v2133_v60 }
 0x258   : > { %v4938_v41 = vcombine.low %v2500_v16, %v2503_v39  ;;  %v2235_v33 = vpop.permute.xlu0 %2234  ;;  %v1611_v39 = vrot.slane %v6904_v12, 7  ;;  %v5692_v12 = vld [vmem:[%s7675_s5 + $0x34] ss:$8 sps:$4 sm:$0xff]  }
 0x259   : > { %v2608_v36 = vsel %vm804_vm0, %v1702_v2, %v2235_v33  ;;  %4094 = vmatprep.subr.bf16.mxu1 %v5692_v12 }
 0x25a   : > { %v2233_v48 = vpop.permute.xlu1 %2232  ;;  %3707 = vmatmul.mubr.bf16.gmra.mrb[112].mxu0 %v4938_v41  ;;  %4095 = vmatpush1.bf16.msra.mxu1 %v5690_v52 }
 0x25b   : > { %v2605_v40 = vsel %vm804_vm0, %v1701_v46, %v2233_v48  ;;  %v1416_v48 = vpack.c.bf16 %v7802_v34, %v7802_v34  ;;  %v7806_v34 = vld [vmem:[#allocation26_spill] sm:$0xff] }
 0x25c   : > { %v4944_v50 = vcombine.low %v2602_v63, %v2605_v40  ;;  %v2139_v47 = vpop.permute.xlu0 %2138  ;;  %v7803_v63 = vld [vmem:[#allocation21_spill] sm:$0xff] }
 0x25d   : > { %v2512_v17 = vsel %vm804_vm0, %v1414_v61, %v2139_v47  ;;  %v1417_v40 = vpack.c.bf16 %v7803_v63, %v7803_v63  ;;  %v1675_v47 = vsel %vm1008_vm1, 0.0, %v1611_v39  ;;  %v7805_v61 = vld [vmem:[#allocation24_spill] sm:$0xff] }
 0x25e   : > { %v2137_v29 = vpop.permute.xlu1 %2136  ;;  %3714 = vmatprep.mubr.bf16.mxu0 %v4944_v50 }
 0x25f   : > { %v2509_v20 = vsel %vm804_vm0, %v1413_v7, %v2137_v29 }
 0x260   : > { %v4943_v21 = vcombine.low %v2506_v10, %v2509_v20  ;;  %v2239_v25 = vpop.permute.xlu0 %2238  ;;  %v1706_v10 = vpack.c.bf16 %v1674_v37, %v1674_v37 }
 0x261   : > { %v2614_v41 = vsel %vm804_vm0, %v1704_v14, %v2239_v25  ;;  %v5719_v25 = vld [vmem:[#allocation2 + $0x110] sm:$0xff] }
 0x262   : > { %v2237_v35 = vpop.permute.xlu1 %2236  ;;  %3715 = vmatmul.mubr.bf16.gmra.mrb[116].mxu0 %v4943_v21  ;;  %v1707_v21 = vpack.c.bf16 %v1675_v47, %v1675_v47  ;;  %v1612_v31 = vrot.slane %v5719_v25, 7 }
 0x263   : > { %v2611_v44 = vsel %vm804_vm0, %v1703_v13, %v2237_v35  ;;  %v5720_v13 = vld [vmem:[#allocation2 + $0x118] sm:$0xff] }
 0x264   : > { %v4949_v9 = vcombine.low %v2608_v36, %v2611_v44  ;;  %v2143_v62 = vpop.permute.xlu0 %2142  ;;  %v1613_v26 = vrot.slane %v5720_v13, 7  ;;  %v1676_v4 = vsel %vm1008_vm1, 0.0, %v1612_v31  ;;  %v7808_v31 = vld [vmem:[#allocation29_spill] sm:$0xff] }
 0x265   : > { %v5269_v53 = vpop.f32.mrb[64].mxu0  ;;  %v2518_v58 = vsel %vm804_vm0, %v1416_v48, %v2143_v62  ;;  %v7804_v62 = vld [vmem:[#allocation23_spill] sm:$0xff]  ;;  %v1420_v48 = vpack.c.bf16 %v7806_v34, %v7806_v34 }
 0x266   : > { %v2141_v32 = vpop.permute.xlu1 %2140  ;;  %v5270_v0 = vpop.f32.mrb[65].mxu0  ;;  %3722 = vmatprep.mubr.bf16.mxu0 %v4949_v9  ;;  %v1418_v3 = vpack.c.bf16 %v7804_v62, %v7804_v62 }
 0x267   : > { %v2515_v54 = vsel %vm804_vm0, %v1415_v51, %v2141_v32  ;;  %v7187_v19 = vadd.f32 %v5270_v0, %v5269_v53  ;;  %v5272_v11 = vpop.f32.mrb[66].mxu0  ;;  %v1419_v53 = vpack.c.bf16 %v7805_v61, %v7805_v61  ;;  %v1677_v32 = vsel %vm1008_vm1, 0.0, %v1613_v26 }
 0x268   : > { %v4948_v57 = vcombine.low %v2512_v17, %v2515_v54  ;;  %v2243_v24 = vpop.permute.xlu0 %2242  ;;  %v5273_v30 = vpop.f32.mrb[67].mxu0  ;;  %v1709_v23 = vpack.c.bf16 %v1677_v32, %v1677_v32 }
 0x269   : > { %v7189_v60 = vadd.f32 %v5273_v30, %v5272_v11  ;;  %v2620_v35 = vsel %vm804_vm0, %v1706_v10, %v2243_v24  ;;  %v1708_v24 = vpack.c.bf16 %v1676_v4, %v1676_v4 }
 0x26a   : > { %v2241_v16 = vpop.permute.xlu1 %2240  ;;  %3723 = vmatmul.mubr.bf16.gmra.mrb[120].mxu0 %v4948_v57 }
 0x26b   : > { %v2617_v33 = vsel %vm804_vm0, %v1705_v1, %v2241_v16  ;;  %v1614_v16 = vrot.slane %v7790_v55, 7 }
 0x26c   : > { %v4954_v42 = vcombine.low %v2614_v41, %v2617_v33  ;;  %v2147_v46 = vpop.permute.xlu0 %2146  ;;  %v1615_v41 = vrot.slane %v6954_v8, 7 }
 0x26d   : > { %v5275_v28 = vpop.f32.mrb[68].mxu0  ;;  %v2524_v0 = vsel %vm804_vm0, %v1418_v3, %v2147_v46 }
 0x26e   : > { %v2145_v18 = vpop.permute.xlu1 %2144  ;;  %v5276_v50 = vpop.f32.mrb[69].mxu0  ;;  %3730 = vmatprep.mubr.bf16.mxu0 %v4954_v42  ;;  %v1679_v55 = vsel %vm1008_vm1, 0.0, %v1615_v41 }
 0x26f   : > { %v2521_v22 = vsel %vm804_vm0, %v1417_v40, %v2145_v18  ;;  %v7209_v27 = vadd.f32 %v5276_v50, %v5275_v28  ;;  %v5278_v7 = vpop.f32.mrb[70].mxu0  ;;  %v7807_v28 = vld [vmem:[#allocation28_spill] sm:$0xff]  ;;  %v1678_v40 = vsel %vm1008_vm1, 0.0, %v1614_v16  ;;  %v1617_v50 = vrot.slane %v6970_v43, 7 }
 0x270   : > { %v4953_v6 = vcombine.low %v2518_v58, %v2521_v22  ;;  %v2247_v29 = vpop.permute.xlu0 %2246  ;;  %v5279_v45 = vpop.f32.mrb[71].mxu0  ;;  %v1421_v63 = vpack.c.bf16 %v7807_v28, %v7807_v28  ;;  %v1710_v47 = vpack.c.bf16 %v1678_v40, %v1678_v40  ;;  %v1711_v58 = vpack.c.bf16 %v1679_v55, %v1679_v55 }
 0x271   : > { %v7211_v20 = vadd.f32 %v5279_v45, %v5278_v7  ;;  %v2626_v33 = vsel %vm804_vm0, %v1708_v24, %v2247_v29  ;;  %v1616_v22 = vrot.slane %v6942_v49, 7  ;;  %v1681_v25 = vsel %vm1008_vm1, 0.0, %v1617_v50 }
 0x272   : > { %v2245_v2 = vpop.permute.xlu1 %2244  ;;  %3731 = vmatmul.mubr.bf16.gmra.mrb[124].mxu0 %v4953_v6  ;;  %v5819_v6 = vmov 0   ;;  %v1422_v43 = vpack.c.bf16 %v7808_v31, %v7808_v31  ;;  %v1423_v49 = vpack.c.bf16 %v6435_v15, %v6435_v15 }
 0x273   : > { %v2623_v36 = vsel %vm804_vm0, %v1707_v21, %v2245_v2  ;;  %4120 = vmatprep.mubr.bf16.mxu1 %v5819_v6  ;;  %v1680_v26 = vsel %vm1008_vm1, 0.0, %v1616_v22 }
 0x274   : > { %v4959_v44 = vcombine.low %v2620_v35, %v2623_v36  ;;  %v2151_v9 = vpop.permute.xlu0 %2150  ;;  %v1712_v4 = vpack.c.bf16 %v1680_v26, %v1680_v26 }
 0x275   : > { %v5281_v56 = vpop.f32.mrb[72].mxu0  ;;  %v2530_v12 = vsel %vm804_vm0, %v1420_v48, %v2151_v9 }
 0x276   : > { %v2149_v51 = vpop.permute.xlu1 %2148  ;;  %v5282_v59 = vpop.f32.mrb[73].mxu0  ;;  %3738 = vmatprep.mubr.bf16.mxu0 %v4959_v44 }
 0x277   : > { %v2527_v17 = vsel %vm804_vm0, %v1419_v53, %v2149_v51  ;;  %v7223_v54 = vadd.f32 %v5282_v59, %v5281_v56  ;;  %v5284_v11 = vpop.f32.mrb[74].mxu0  ;;  %v1713_v56 = vpack.c.bf16 %v1681_v25, %v1681_v25 }
 0x278   : > { %v4958_v1 = vcombine.low %v2524_v0, %v2527_v17  ;;  %v5285_v57 = vpop.f32.mrb[75].mxu0  ;;  %v2251_v30 = vpop.permute.xlu0 %2250  ;;  %v1424_v17 = vpack.c.bf16 %v6459_v5, %v6459_v5 }
 0x279   : > { %v7225_v14 = vadd.f32 %v5285_v57, %v5284_v11  ;;  %v2632_v29 = vsel %vm804_vm0, %v1710_v47, %v2251_v30 }
 0x27a   : > { %v2249_v39 = vpop.permute.xlu1 %2248  ;;  %3739 = vmatmul.mubr.bf16.gmra.mrb[128].mxu0 %v4958_v1  ;;  %v1425_v1 = vpack.c.bf16 %v6465_v38, %v6465_v38 }
 0x27b   : > { %v2629_v42 = vsel %vm804_vm0, %v1709_v23, %v2249_v39 }
 0x27c   : > { %v4964_v46 = vcombine.low %v2626_v33, %v2629_v42  ;;  %v2155_v8 = vpop.permute.xlu0 %2154 }
 0x27d   : > { %v2536_v9 = vsel %vm804_vm0, %v1422_v43, %v2155_v8 }
 0x27e   : > { %v2153_v52 = vpop.permute.xlu1 %2152  ;;  %3746 = vmatprep.mubr.bf16.mxu0 %v4964_v46 }
 0x27f   : > { %v2533_v37 = vsel %vm804_vm0, %v1421_v63, %v2153_v52 }
 0x280   : > { %v4963_v18 = vcombine.low %v2530_v12, %v2533_v37  ;;  %v2255_v2 = vpop.permute.xlu0 %2254 }
 0x281   : > { %v2638_v15 = vsel %vm804_vm0, %v1712_v4, %v2255_v2 }
 0x282   : > { %v2253_v7 = vpop.permute.xlu1 %2252  ;;  %3747 = vmatmul.mubr.bf16.gmra.mrb[132].mxu0 %v4963_v18 }
 0x283   : > { %v2635_v45 = vsel %vm804_vm0, %v1711_v58, %v2253_v7 }
 0x284   : > { %v4969_v10 = vcombine.low %v2632_v29, %v2635_v45  ;;  %v5293_v21 = vpop.f32.mrb[0].mxu1  ;;  %v2159_v32 = vpop.permute.xlu0 %2158 }
 0x285   : > { %v5294_v13 = vpop.f32.mrb[1].mxu1  ;;  %v2542_v30 = vsel %vm804_vm0, %v1424_v17, %v2159_v32 }
 0x286   : > { %v7250_v35 = vadd.f32 %v5294_v13, %v5293_v21  ;;  %v5296_v36 = vpop.f32.mrb[2].mxu1  ;;  %v2157_v44 = vpop.permute.xlu1 %2156  ;;  %3754 = vmatprep.mubr.bf16.mxu0 %v4969_v10 }
 0x287   : > { %v2539_v62 = vsel %vm804_vm0, %v1423_v49, %v2157_v44  ;;  %v5297_v3 = vpop.f32.mrb[3].mxu1 }
 0x288   : > { %v4968_v61 = vcombine.low %v2536_v9, %v2539_v62  ;;  %v7254_v53 = vadd.f32 %v5297_v3, %v5296_v36 }
 0x28a   : > { %v2257_v51 = vpop.permute.xlu1 %2256  ;;  %3755 = vmatmul.mubr.bf16.gmra.mrb[136].mxu0 %v4968_v61 }
 0x28b   : > { %v2641_v59 = vsel %vm804_vm0, %v1713_v56, %v2257_v51 }
 0x28c   : > { %v4974_v0 = vcombine.low %v2638_v15, %v2641_v59 }
 0x28d   : > { %v5299_v11 = vpop.f32.mrb[4].mxu1 }
 0x28e   : > { %v5300_v57 = vpop.f32.mrb[5].mxu1  ;;  %v2161_v24 = vpop.permute.xlu1 %2160  ;;  %3762 = vmatprep.mubr.bf16.mxu0 %v4974_v0 }
 0x28f   : > { %v7263_v23 = vadd.f32 %v5300_v57, %v5299_v11  ;;  %v2545_v16 = vsel %vm804_vm0, %v1425_v1, %v2161_v24  ;;  %v5302_v39 = vpop.f32.mrb[6].mxu1 }
 0x290   : > { %v4973_v41 = vcombine.low %v2542_v30, %v2545_v16  ;;  %v5303_v33 = vpop.f32.mrb[7].mxu1 }
 0x291   : > { %v7266_v42 = vadd.f32 %v5303_v33, %v5302_v39 }
 0x292   : > { %3763 = vmatmul.mubr.bf16.gmra.mrb[140].mxu0 %v4973_v41 }
 0x295   : > { %v5305_v5 = vpop.f32.mrb[8].mxu1 }
 0x296   : > { %v5306_v46 = vpop.f32.mrb[9].mxu1 }
 0x297   : > { %v7268_v34 = vadd.f32 %v5306_v46, %v5305_v5  ;;  %v5308_v38 = vpop.f32.mrb[10].mxu1 }
 0x298   : > { %v5309_v48 = vpop.f32.mrb[11].mxu1 }
 0x299   : > { %v7270_v28 = vadd.f32 %v5309_v48, %v5308_v38 }
 0x2a1   : > { %v5311_v63 = vpop.f32.mrb[12].mxu1 }
 0x2a2   : > { %v5312_v40 = vpop.f32.mrb[13].mxu1 }
 0x2a3   : > { %v7272_v52 = vadd.f32 %v5312_v40, %v5311_v63  ;;  %v5314_v55 = vpop.f32.mrb[14].mxu1 }
 0x2a4   : > { %v5315_v12 = vpop.f32.mrb[15].mxu1 }
 0x2a5   : > { %v7274_v8 = vadd.f32 %v5315_v12, %v5314_v55 }
 0x2a9   : > { %v5317_v37 = vpop.f32.mrb[16].mxu1 }
 0x2aa   : > { %v5318_v18 = vpop.f32.mrb[17].mxu1 }
 0x2ab   : > { %v7276_v50 = vadd.f32 %v5318_v18, %v5317_v37  ;;  %v5320_v47 = vpop.f32.mrb[18].mxu1 }
 0x2ac   : > { %v5321_v58 = vpop.f32.mrb[19].mxu1 }
 0x2ad   : > { %v7278_v22 = vadd.f32 %v5321_v58, %v5320_v47  ;;  %v7313_v58 = vld [vmem:[%s7674_s4] ss:$0 sm:$0xff] }
 0x2b1   : > { %v5323_v7 = vpop.f32.mrb[20].mxu1 }
 0x2b2   : > { %v5324_v29 = vpop.f32.mrb[21].mxu1 }
 0x2b3   : > { %v7280_v45 = vadd.f32 %v5324_v29, %v5323_v7  ;;  %v5326_v10 = vpop.f32.mrb[22].mxu1 }
 0x2b4   : > { %v5327_v21 = vpop.f32.mrb[23].mxu1 }
 0x2b5   : > { %v7282_v25 = vadd.f32 %v5327_v21, %v5326_v10 }
 0x2b9   : > { %v5329_v31 = vpop.f32.mrb[24].mxu1 }
 0x2ba   : > { %v5330_v43 = vpop.f32.mrb[25].mxu1 }
 0x2bb   : > { %v7284_v2 = vadd.f32 %v5330_v43, %v5329_v31  ;;  %v5332_v13 = vpop.f32.mrb[26].mxu1  ;;  %v3484_v31 = vadd.f32 %v7187_v19, %v7313_v58  ;;  %v3492_v19 = vadd.f32 %v7209_v27, %v7313_v58 }
 0x2bc   : > { %v5333_v49 = vpop.f32.mrb[27].mxu1 }
 0x2bd   : > { %v7286_v26 = vadd.f32 %v5333_v49, %v5332_v13 }
 0x2bf   : > { %v5287_v36 = vpop.f32.mrb[76].mxu0 }
 0x2c0   : > { %v5288_v44 = vpop.f32.mrb[77].mxu0 }
 0x2c1   : > { %v7288_v9 = vadd.f32 %v5288_v44, %v5287_v36  ;;  %v5290_v62 = vpop.f32.mrb[78].mxu0  ;;  %v3487_v36 = vadd.f32 %v7189_v60, %v7313_v58  ;;  %v3495_v60 = vadd.f32 %v7211_v20, %v7313_v58 }
 0x2c2   : > { %v5291_v3 = vpop.f32.mrb[79].mxu0 }
 0x2c3   : > { %v7290_v56 = vadd.f32 %v5291_v3, %v5290_v62 }
 0x2c5   : > { %v5335_v61 = vpop.f32.mrb[28].mxu1 }
 0x2c6   : > { %v5336_v4 = vpop.f32.mrb[29].mxu1 }
 0x2c7   : > { %v7292_v51 = vadd.f32 %v5336_v4, %v5335_v61  ;;  %v5338_v15 = vpop.f32.mrb[30].mxu1 }
 0x2c8   : > { %v5339_v59 = vpop.f32.mrb[31].mxu1 }
 0x2c9   : > { %v7294_v32 = vadd.f32 %v5339_v59, %v5338_v15 }
 0x2cd   : > { %v5341_v0 = vpop.f32.mrb[32].mxu1 }
 0x2ce   : > { %v5342_v17 = vpop.f32.mrb[33].mxu1 }
 0x2cf   : > { %v7296_v11 = vadd.f32 %v5342_v17, %v5341_v0  ;;  %v5344_v1 = vpop.f32.mrb[34].mxu1 }
 0x2d0   : > { %v5345_v57 = vpop.f32.mrb[35].mxu1 }
 0x2d1   : > { %v7298_v24 = vadd.f32 %v5345_v57, %v5344_v1 }
 0x2d5   : > { %v5347_v30 = vpop.f32.mrb[36].mxu1 }
 0x2d6   : > { %v5348_v16 = vpop.f32.mrb[37].mxu1 }
 0x2d7   : > { %v7300_v39 = vadd.f32 %v5348_v16, %v5347_v30  ;;  %v5350_v41 = vpop.f32.mrb[38].mxu1 }
 0x2d8   : > { %v5351_v33 = vpop.f32.mrb[39].mxu1 }
 0x2d9   : > { %v7302_v5 = vadd.f32 %v5351_v33, %v5350_v41 }
 0x2dd   : > { %v5353_v46 = vpop.f32.mrb[40].mxu1 }
 0x2de   : > { %v5354_v38 = vpop.f32.mrb[41].mxu1 }
 0x2df   : > { %v7304_v48 = vadd.f32 %v5354_v38, %v5353_v46  ;;  %v5356_v63 = vpop.f32.mrb[42].mxu1 }
 0x2e0   : > { %v5357_v40 = vpop.f32.mrb[43].mxu1 }
 0x2e1   : > { %v7306_v55 = vadd.f32 %v5357_v40, %v5356_v63 }
 0x2e9   : > { %v5359_v12 = vpop.f32.mrb[44].mxu1 }
 0x2ea   : > { %v5360_v37 = vpop.f32.mrb[45].mxu1 }
 0x2eb   : > { %v7308_v18 = vadd.f32 %v5360_v37, %v5359_v12  ;;  %v5362_v47 = vpop.f32.mrb[46].mxu1 }
 0x2ec   : > { %v5363_v7 = vpop.f32.mrb[47].mxu1 }
 0x2ed   : > { %v7315_v29 = vadd.f32 %v5363_v7, %v5362_v47  ;;  %v5381_v10 = vpop.f32.mrb[80].mxu0 }
 0x2ee   : > { %v5382_v21 = vpop.f32.mrb[81].mxu0 }
 0x2ef   : > { %v5383_v43 = vadd.f32 %v5382_v21, %v5381_v10  ;;  %v5384_v13 = vpop.f32.mrb[82].mxu0 }
 0x2f0   : > { %v5385_v49 = vpop.f32.mrb[83].mxu0 }
 0x2f1   : > { %v5386_v44 = vadd.f32 %v5385_v49, %v5384_v13  ;;  %v5507_v62 = vpop.f32.mrb[48].mxu1  ;;  %v3645_v3 = vadd.f32 %v5383_v43, %v3484_v31  ;;  %v3500_v13 = vadd.f32 %v7223_v54, %v7313_v58 }
 0x2f2   : > { %v3805_v61 = vpop.f32.mrb[49].mxu1 }
 0x2f3   : > { %v3806_v4 = vadd.f32 %v3805_v61, %v3645_v3  ;;  %v5508_v15 = vpop.f32.mrb[50].mxu1  ;;  %v3648_v59 = vadd.f32 %v5386_v44, %v3487_v36 }
 0x2f4   : > { %v3808_v0 = vpop.f32.mrb[51].mxu1 }
 0x2f5   : > { %v3809_v17 = vadd.f32 %v3808_v0, %v3648_v59  ;;  %v5387_v1 = vpop.f32.mrb[84].mxu0  ;;  %v3932_v30 = vmax.f32 %v3806_v4, 0.0 }
 0x2f6   : > { %v5388_v57 = vpop.f32.mrb[85].mxu0 }
 0x2f7   : > { %v3933_v16 = vmax.f32 %v3809_v17, 0.0  ;;  %v5389_v41 = vadd.f32 %v5388_v57, %v5387_v1  ;;  %v5390_v33 = vpop.f32.mrb[86].mxu0 }
 0x2f8   : > { %v5391_v46 = vpop.f32.mrb[87].mxu0 }
 0x2f9   : > { %v3964_v38 = vpack.c.bf16 %v3933_v16, %v3932_v30  ;;  %v3653_v63 = vadd.f32 %v5389_v41, %v3492_v19  ;;  %v5392_v40 = vadd.f32 %v5391_v46, %v5390_v33  ;;  %v5511_v12 = vpop.f32.mrb[52].mxu1 }
 0x2fa   : > { %v3821_v37 = vpop.f32.mrb[53].mxu1 }
 0x2fb   : > { %v3814_v47 = vadd.f32 %v5507_v62, %v3653_v63  ;;  %v3656_v7 = vadd.f32 %v5392_v40, %v3495_v60  ;;  %v5512_v10 = vpop.f32.mrb[54].mxu1  ;;  %5036 = vmatmul.mubr.msk.bf16.vlgmr.msra.gmra.mrb[80].mxu1 %vm804_vm0, %v3964_v38  ;;  %v3503_v62 = vadd.f32 %v7225_v14, %v7313_v58  ;;  %v3508_v14 = vadd.f32 %v7288_v9, %v7313_v58 }
 0x2fc   : > { %v3824_v21 = vpop.f32.mrb[55].mxu1  ;;  %4130 = vmatprep.mubr.bf16.mxu1 %v5819_v6  ;;  %v3511_v63 = vadd.f32 %v7290_v56, %v7313_v58 }
 0x2fd   : > { %v3817_v27 = vadd.f32 %v5508_v15, %v3656_v7  ;;  %v5393_v31 = vpop.f32.mrb[88].mxu0  ;;  %v3934_v20 = vmax.f32 %v3814_v47, 0.0 }
 0x2fe   : > { %v5394_v43 = vpop.f32.mrb[89].mxu0 }
 0x2ff   : > { %v3935_v49 = vmax.f32 %v3817_v27, 0.0  ;;  %v5395_v36 = vadd.f32 %v5394_v43, %v5393_v31  ;;  %v5396_v44 = vpop.f32.mrb[90].mxu0 }
 0x300   : > { %v5397_v3 = vpop.f32.mrb[91].mxu0 }
 0x301   : > { %v3965_v61 = vpack.c.bf16 %v3935_v49, %v3934_v20  ;;  %v3661_v4 = vadd.f32 %v5395_v36, %v3500_v13  ;;  %v5398_v59 = vadd.f32 %v5397_v3, %v5396_v44  ;;  %v7331_v0 = vpop.f32.mrb[56].mxu1  ;;  %v3516_v49 = vadd.f32 %v7250_v35, %v7313_v58 }
 0x302   : > { %v3837_v17 = vpop.f32.mrb[57].mxu1 }
 0x303   : > { %v3822_v15 = vadd.f32 %v3821_v37, %v3661_v4  ;;  %v3664_v1 = vadd.f32 %v5398_v59, %v3503_v62  ;;  %v7333_v57 = vpop.f32.mrb[58].mxu1  ;;  %5037 = vmatmul.mubr.msk.bf16.gmra.mrb[84].mxu1 %vm804_vm0, %v3965_v61  ;;  %v3519_v61 = vadd.f32 %v7254_v53, %v7313_v58 }
 0x304   : > { %v3840_v54 = vpop.f32.mrb[59].mxu1  ;;  %4140 = vmatprep.mubr.bf16.mxu1 %v5819_v6 }
 0x305   : > { %v3825_v19 = vadd.f32 %v3824_v21, %v3664_v1  ;;  %v5399_v30 = vpop.f32.mrb[92].mxu0  ;;  %v3936_v41 = vmax.f32 %v3822_v15, 0.0 }
 0x306   : > { %v5400_v16 = vpop.f32.mrb[93].mxu0 }
 0x307   : > { %v3937_v33 = vmax.f32 %v3825_v19, 0.0  ;;  %v5401_v46 = vadd.f32 %v5400_v16, %v5399_v30  ;;  %v5402_v60 = vpop.f32.mrb[94].mxu0 }
 0x308   : > { %v5403_v38 = vpop.f32.mrb[95].mxu0 }
 0x309   : > { %v3966_v40 = vpack.c.bf16 %v3937_v33, %v3936_v41  ;;  %v3669_v37 = vadd.f32 %v5401_v46, %v3508_v14  ;;  %v5404_v47 = vadd.f32 %v5403_v38, %v5402_v60  ;;  %v7341_v7 = vpop.f32.mrb[60].mxu1  ;;  %v3524_v33 = vadd.f32 %v7263_v23, %v7313_v58 }
 0x30a   : > { %v7343_v27 = vpop.f32.mrb[61].mxu1 }
 0x30b   : > { %v3830_v21 = vadd.f32 %v5511_v12, %v3669_v37  ;;  %v3672_v31 = vadd.f32 %v5404_v47, %v3511_v63  ;;  %v7345_v43 = vpop.f32.mrb[62].mxu1  ;;  %5038 = vmatmul.mubr.msk.bf16.gmra.mrb[88].mxu1 %vm804_vm0, %v3966_v40  ;;  %v3527_v40 = vadd.f32 %v7266_v42, %v7313_v58 }
 0x30c   : > { %v7348_v9 = vpop.f32.mrb[63].mxu1  ;;  %4150 = vmatprep.mubr.bf16.mxu1 %v5819_v6 }
 0x30d   : > { %v3833_v13 = vadd.f32 %v5512_v10, %v3672_v31  ;;  %v5405_v20 = vpop.f32.mrb[96].mxu0  ;;  %v3938_v36 = vmax.f32 %v3830_v21, 0.0 }
 0x30e   : > { %v5406_v56 = vpop.f32.mrb[97].mxu0 }
 0x30f   : > { %v3939_v44 = vmax.f32 %v3833_v13, 0.0  ;;  %v5407_v3 = vadd.f32 %v5406_v56, %v5405_v20  ;;  %v5408_v62 = vpop.f32.mrb[98].mxu0 }
 0x310   : > { %v5409_v12 = vpop.f32.mrb[99].mxu0 }
 0x311   : > { %v3967_v4 = vpack.c.bf16 %v3939_v44, %v3938_v36  ;;  %v3677_v59 = vadd.f32 %v5407_v3, %v3516_v49  ;;  %v5410_v15 = vadd.f32 %v5409_v12, %v5408_v62  ;;  %v7355_v1 = vpop.f32.mrb[64].mxu1  ;;  %v3532_v44 = vadd.f32 %v7268_v34, %v7313_v58 }
 0x312   : > { %v7357_v19 = vpop.f32.mrb[65].mxu1 }
 0x313   : > { %v3838_v10 = vadd.f32 %v3837_v17, %v3677_v59  ;;  %v3680_v30 = vadd.f32 %v5410_v15, %v3519_v61  ;;  %v7359_v16 = vpop.f32.mrb[66].mxu1  ;;  %5039 = vmatmul.mubr.msk.bf16.gmra.mrb[92].mxu1 %vm804_vm0, %v3967_v4  ;;  %v3535_v4 = vadd.f32 %v7270_v28, %v7313_v58 }
 0x314   : > { %v7362_v35 = vpop.f32.mrb[67].mxu1  ;;  %4160 = vmatprep.mubr.bf16.mxu1 %v5819_v6 }
 0x315   : > { %v3841_v14 = vadd.f32 %v3840_v54, %v3680_v30  ;;  %v5411_v41 = vpop.f32.mrb[100].mxu0  ;;  %v3940_v46 = vmax.f32 %v3838_v10, 0.0 }
 0x316   : > { %v5412_v53 = vpop.f32.mrb[101].mxu0 }
 0x317   : > { %v3941_v60 = vmax.f32 %v3841_v14, 0.0  ;;  %v5413_v38 = vadd.f32 %v5412_v53, %v5411_v41  ;;  %v5414_v63 = vpop.f32.mrb[102].mxu0 }
 0x318   : > { %v5415_v17 = vpop.f32.mrb[103].mxu0 }
 0x319   : > { %v3968_v37 = vpack.c.bf16 %v3941_v60, %v3940_v46  ;;  %v3685_v47 = vadd.f32 %v5413_v38, %v3524_v33  ;;  %v5416_v21 = vadd.f32 %v5415_v17, %v5414_v63  ;;  %v7369_v31 = vpop.f32.mrb[68].mxu1  ;;  %v3540_v60 = vadd.f32 %v7272_v52, %v7313_v58 }
 0x31a   : > { %v7371_v13 = vpop.f32.mrb[69].mxu1 }
 0x31b   : > { %v3846_v54 = vadd.f32 %v7331_v0, %v3685_v47  ;;  %v3688_v20 = vadd.f32 %v5416_v21, %v3527_v40  ;;  %v7374_v56 = vpop.f32.mrb[70].mxu1  ;;  %5040 = vmatmul.mubr.msk.bf16.gmra.mrb[96].mxu1 %vm804_vm0, %v3968_v37  ;;  %v3543_v37 = vadd.f32 %v7274_v8, %v7313_v58 }
 0x31c   : > { %v7377_v23 = vpop.f32.mrb[71].mxu1  ;;  %4170 = vmatprep.mubr.bf16.mxu1 %v5819_v6 }
 0x31d   : > { %v3849_v42 = vadd.f32 %v7333_v57, %v3688_v20  ;;  %v5417_v49 = vpop.f32.mrb[104].mxu0  ;;  %v3942_v3 = vmax.f32 %v3846_v54, 0.0 }
 0x31e   : > { %v5418_v36 = vpop.f32.mrb[105].mxu0 }
 0x31f   : > { %v3943_v62 = vmax.f32 %v3849_v42, 0.0  ;;  %v5419_v12 = vadd.f32 %v5418_v36, %v5417_v49  ;;  %v5420_v0 = vpop.f32.mrb[106].mxu0 }
 0x320   : > { %v5421_v61 = vpop.f32.mrb[107].mxu0 }
 0x321   : > { %v3969_v59 = vpack.c.bf16 %v3943_v62, %v3942_v3  ;;  %v3693_v15 = vadd.f32 %v5419_v12, %v3532_v44  ;;  %v5422_v10 = vadd.f32 %v5421_v61, %v5420_v0  ;;  %v7385_v30 = vpop.f32.mrb[72].mxu1  ;;  %v3548_v62 = vadd.f32 %v7276_v50, %v7313_v58 }
 0x322   : > { %v7387_v14 = vpop.f32.mrb[73].mxu1 }
 0x323   : > { %v3854_v57 = vadd.f32 %v7343_v27, %v3693_v15  ;;  %v3696_v41 = vadd.f32 %v5422_v10, %v3535_v4  ;;  %v7390_v53 = vpop.f32.mrb[74].mxu1  ;;  %5041 = vmatmul.mubr.msk.bf16.gmra.mrb[100].mxu1 %vm804_vm0, %v3969_v59  ;;  %v3551_v59 = vadd.f32 %v7278_v22, %v7313_v58 }
 0x324   : > { %v7393_v34 = vpop.f32.mrb[75].mxu1  ;;  %4180 = vmatprep.mubr.bf16.mxu1 %v5819_v6 }
 0x325   : > { %v3857_v28 = vadd.f32 %v7348_v9, %v3696_v41  ;;  %v5423_v33 = vpop.f32.mrb[108].mxu0  ;;  %v3944_v38 = vmax.f32 %v3854_v57, 0.0 }
 0x326   : > { %v5424_v46 = vpop.f32.mrb[109].mxu0 }
 0x327   : > { %v3945_v63 = vmax.f32 %v3857_v28, 0.0  ;;  %v5425_v17 = vadd.f32 %v5424_v46, %v5423_v33  ;;  %v5426_v27 = vpop.f32.mrb[110].mxu0  ;;  %v3556_v46 = vadd.f32 %v7280_v45, %v7313_v58 }
 0x328   : > { %v5427_v40 = vpop.f32.mrb[111].mxu0 }
 0x329   : > { %v3970_v47 = vpack.c.bf16 %v3945_v63, %v3944_v38  ;;  %v3701_v21 = vadd.f32 %v5425_v17, %v3540_v60  ;;  %v5428_v54 = vadd.f32 %v5427_v40, %v5426_v27  ;;  %v7401_v20 = vpop.f32.mrb[76].mxu1 }
 0x32a   : > { %v7403_v42 = vpop.f32.mrb[77].mxu1 }
 0x32b   : > { %v3862_v9 = vadd.f32 %v7341_v7, %v3701_v21  ;;  %v3704_v49 = vadd.f32 %v5428_v54, %v3543_v37  ;;  %v7406_v36 = vpop.f32.mrb[78].mxu1  ;;  %5042 = vmatmul.mubr.msk.bf16.gmra.mrb[104].mxu1 %vm804_vm0, %v3970_v47 }
 0x32c   : > { %v7409_v52 = vpop.f32.mrb[79].mxu1  ;;  %4190 = vmatprep.mubr.bf16.mxu1 %v5819_v6 }
 0x32d   : > { %v3865_v8 = vadd.f32 %v7345_v43, %v3704_v49  ;;  %v5429_v44 = vpop.f32.mrb[112].mxu0  ;;  %v3946_v12 = vmax.f32 %v3862_v9, 0.0  ;;  %v3564_v9 = vadd.f32 %v7284_v2, %v7313_v58 }
 0x32e   : > { %v5430_v3 = vpop.f32.mrb[113].mxu0 }
 0x32f   : > { %v3947_v0 = vmax.f32 %v3865_v8, 0.0  ;;  %v5431_v61 = vadd.f32 %v5430_v3, %v5429_v44  ;;  %v5432_v7 = vpop.f32.mrb[114].mxu0 }
 0x330   : > { %v5433_v4 = vpop.f32.mrb[115].mxu0 }
 0x331   : > { %v3971_v15 = vpack.c.bf16 %v3947_v0, %v3946_v12  ;;  %v3709_v10 = vadd.f32 %v5431_v61, %v3548_v62  ;;  %v5434_v57 = vadd.f32 %v5433_v4, %v5432_v7 }
 0x333   : > { %v3870_v41 = vadd.f32 %v7357_v19, %v3709_v10  ;;  %v3712_v28 = vadd.f32 %v5434_v57, %v3551_v59  ;;  %5043 = vmatmul.mubr.msk.bf16.gmra.mrb[108].mxu1 %vm804_vm0, %v3971_v15  ;;  %v3559_v19 = vadd.f32 %v7282_v25, %v7313_v58  ;;  %v3572_v59 = vadd.f32 %v7292_v51, %v7313_v58 }
 0x334   : > { %4200 = vmatprep.mubr.bf16.mxu1 %v5819_v6 }
 0x335   : > { %v3873_v50 = vadd.f32 %v7362_v35, %v3712_v28  ;;  %v5435_v43 = vpop.f32.mrb[116].mxu0  ;;  %v3948_v60 = vmax.f32 %v3870_v41, 0.0 }
 0x336   : > { %v5436_v33 = vpop.f32.mrb[117].mxu0 }
 0x337   : > { %v3949_v38 = vmax.f32 %v3873_v50, 0.0  ;;  %v5437_v22 = vadd.f32 %v5436_v33, %v5435_v43  ;;  %v5438_v63 = vpop.f32.mrb[118].mxu0 }
 0x338   : > { %v5439_v17 = vpop.f32.mrb[119].mxu0 }
 0x339   : > { %v3972_v27 = vpack.c.bf16 %v3949_v38, %v3948_v60  ;;  %v3717_v40 = vadd.f32 %v5437_v22, %v3556_v46  ;;  %v5440_v37 = vadd.f32 %v5439_v17, %v5438_v63  ;;  %v3580_v38 = vadd.f32 %v7296_v11, %v7313_v58 }
 0x33b   : > { %v3878_v47 = vadd.f32 %v7355_v1, %v3717_v40  ;;  %v3720_v21 = vadd.f32 %v5440_v37, %v3559_v19  ;;  %5044 = vmatmul.mubr.msk.bf16.gmra.mrb[112].mxu1 %vm804_vm0, %v3972_v27  ;;  %v3567_v1 = vadd.f32 %v7286_v26, %v7313_v58 }
 0x33c   : > { %4210 = vmatprep.mubr.bf16.mxu1 %v5819_v6 }
 0x33d   : > { %v3881_v45 = vadd.f32 %v7359_v16, %v3720_v21  ;;  %v5441_v35 = vpop.f32.mrb[120].mxu0  ;;  %v3950_v49 = vmax.f32 %v3878_v47, 0.0 }
 0x33e   : > { %v5442_v54 = vpop.f32.mrb[121].mxu0 }
 0x33f   : > { %v3951_v8 = vmax.f32 %v3881_v45, 0.0  ;;  %v5443_v25 = vadd.f32 %v5442_v54, %v5441_v35  ;;  %v5444_v44 = vpop.f32.mrb[122].mxu0  ;;  %v3588_v35 = vadd.f32 %v7300_v39, %v7313_v58 }
 0x340   : > { %v5445_v3 = vpop.f32.mrb[123].mxu0 }
 0x341   : > { %v3973_v62 = vpack.c.bf16 %v3951_v8, %v3950_v49  ;;  %v3725_v12 = vadd.f32 %v5443_v25, %v3564_v9  ;;  %v5446_v0 = vadd.f32 %v5445_v3, %v5444_v44 }
 0x343   : > { %v3886_v61 = vadd.f32 %v7371_v13, %v3725_v12  ;;  %v3728_v7 = vadd.f32 %v5446_v0, %v3567_v1  ;;  %5045 = vmatmul.mubr.msk.bf16.gmra.mrb[116].mxu1 %vm804_vm0, %v3973_v62  ;;  %v3575_v13 = vadd.f32 %v7294_v32, %v7313_v58  ;;  %v3596_v0 = vadd.f32 %v7304_v48, %v7313_v58 }
 0x344   : > { %4220 = vmatprep.mubr.bf16.mxu1 %v5819_v6 }
 0x345   : > { %v3889_v2 = vadd.f32 %v7377_v23, %v3728_v7  ;;  %v5447_v16 = vpop.f32.mrb[124].mxu0  ;;  %v3952_v15 = vmax.f32 %v3886_v61, 0.0 }
 0x346   : > { %v5448_v4 = vpop.f32.mrb[125].mxu0 }
 0x347   : > { %v3953_v10 = vmax.f32 %v3889_v2, 0.0  ;;  %v5449_v26 = vadd.f32 %v5448_v4, %v5447_v16  ;;  %v5450_v57 = vpop.f32.mrb[126].mxu0 }
 0x348   : > { %v5451_v41 = vpop.f32.mrb[127].mxu0 }
 0x349   : > { %v3974_v28 = vpack.c.bf16 %v3953_v10, %v3952_v15  ;;  %v3733_v50 = vadd.f32 %v5449_v26, %v3572_v59  ;;  %v5452_v43 = vadd.f32 %v5451_v41, %v5450_v57  ;;  %v3604_v41 = vadd.f32 %v7308_v18, %v7313_v58 }
 0x34b   : > { %v3894_v33 = vadd.f32 %v7369_v31, %v3733_v50  ;;  %v3736_v46 = vadd.f32 %v5452_v43, %v3575_v13  ;;  %5046 = vmatmul.mubr.msk.bf16.gmra.mrb[120].mxu1 %vm804_vm0, %v3974_v28  ;;  %v3583_v31 = vadd.f32 %v7298_v24, %v7313_v58 }
 0x34c   : > { %4230 = vmatprep.mubr.bf16.mxu1 %v5819_v6 }
 0x34d   : > { %v3897_v51 = vadd.f32 %v7374_v56, %v3736_v46  ;;  %v5453_v23 = vpop.f32.mrb[128].mxu0  ;;  %v3954_v22 = vmax.f32 %v3894_v33, 0.0 }
 0x34e   : > { %v5454_v60 = vpop.f32.mrb[129].mxu0 }
 0x34f   : > { %v3955_v63 = vmax.f32 %v3897_v51, 0.0  ;;  %v5455_v32 = vadd.f32 %v5454_v60, %v5453_v23  ;;  %v5456_v17 = vpop.f32.mrb[130].mxu0 }
 0x350   : > { %v5457_v19 = vpop.f32.mrb[131].mxu0 }
 0x351   : > { %v3975_v27 = vpack.c.bf16 %v3955_v63, %v3954_v22  ;;  %v3741_v40 = vadd.f32 %v5455_v32, %v3580_v38  ;;  %v5458_v37 = vadd.f32 %v5457_v19, %v5456_v17 }
 0x353   : > { %v3902_v47 = vadd.f32 %v7387_v14, %v3741_v40  ;;  %v3744_v21 = vadd.f32 %v5458_v37, %v3583_v31  ;;  %5047 = vmatmul.mubr.msk.bf16.gmra.mrb[124].mxu1 %vm804_vm0, %v3975_v27  ;;  %v3591_v14 = vadd.f32 %v7302_v5, %v7313_v58 }
 0x354   : > { %4240 = vmatprep.mubr.bf16.mxu1 %v5819_v6 }
 0x355   : > { %v3905_v11 = vadd.f32 %v7393_v34, %v3744_v21  ;;  %v5459_v56 = vpop.f32.mrb[132].mxu0  ;;  %v3956_v54 = vmax.f32 %v3902_v47, 0.0  ;;  %v5722_v47 = vld [vmem:[%s5942_s22 + $0x8] sm:$0xff] }
 0x356   : > { %v5460_v45 = vpop.f32.mrb[133].mxu0  ;;  %v4283_v21 = vunpack.c.l.bf16 %v5722_v47 }
 0x357   : > { %v3957_v9 = vmax.f32 %v3905_v11, 0.0  ;;  %v5461_v24 = vadd.f32 %v5460_v45, %v5459_v56  ;;  %v5462_v49 = vpop.f32.mrb[134].mxu0  ;;  %v4284_v45 = vunpack.c.h.bf16 %v5722_v47 }
 0x358   : > { %v5463_v8 = vpop.f32.mrb[135].mxu0 }
 0x359   : > { %v3976_v25 = vpack.c.bf16 %v3957_v9, %v3956_v54  ;;  %v3749_v44 = vadd.f32 %v5461_v24, %v3588_v35  ;;  %v5464_v3 = vadd.f32 %v5463_v8, %v5462_v49 }
 0x35b   : > { %v3910_v1 = vadd.f32 %v7385_v30, %v3749_v44  ;;  %v3752_v62 = vadd.f32 %v5464_v3, %v3591_v14  ;;  %5048 = vmatmul.mubr.msk.bf16.gmra.mrb[128].mxu1 %vm804_vm0, %v3976_v25  ;;  %v3599_v30 = vadd.f32 %v7306_v55, %v7313_v58 }
 0x35c   : > { %4250 = vmatprep.mubr.bf16.mxu1 %v5819_v6 }
 0x35d   : > { %v3913_v39 = vadd.f32 %v7390_v53, %v3752_v62  ;;  %v5465_v34 = vpop.f32.mrb[136].mxu0  ;;  %v3958_v61 = vmax.f32 %v3910_v1, 0.0  ;;  %v5723_v1 = vld [vmem:[%s5942_s22 + $0x10] sm:$0xff] }
 0x35e   : > { %v5466_v12 = vpop.f32.mrb[137].mxu0  ;;  %v4285_v62 = vunpack.c.l.bf16 %v5723_v1 }
 0x35f   : > { %v3959_v7 = vmax.f32 %v3913_v39, 0.0  ;;  %v5467_v5 = vadd.f32 %v5466_v12, %v5465_v34  ;;  %v5468_v2 = vpop.f32.mrb[138].mxu0 }
 0x360   : > { %v5469_v16 = vpop.f32.mrb[139].mxu0 }
 0x361   : > { %v3977_v4 = vpack.c.bf16 %v3959_v7, %v3958_v61  ;;  %v3757_v59 = vadd.f32 %v5467_v5, %v3596_v0  ;;  %v5470_v15 = vadd.f32 %v5469_v16, %v5468_v2  ;;  %v4286_v0 = vunpack.c.h.bf16 %v5723_v1  ;;  %v5724_v5 = vld [vmem:[%s5942_s22 + $0x18] sm:$0xff] }
 0x362   : > { %v4287_v2 = vunpack.c.l.bf16 %v5724_v5 }
 0x363   : > { %v3918_v10 = vadd.f32 %v7403_v42, %v3757_v59  ;;  %v3760_v26 = vadd.f32 %v5470_v15, %v3599_v30  ;;  %5049 = vmatmul.mubr.msk.bf16.gmra.mrb[132].mxu1 %vm804_vm0, %v3977_v4  ;;  %v3607_v42 = vadd.f32 %v7315_v29, %v7313_v58  ;;  %v3990_v58 = vlaneseq }
 0x364   : > { %4260 = vmatprep.mubr.bf16.mxu1 %v5819_v6  ;;  %v4288_v59 = vunpack.c.h.bf16 %v5724_v5 }
 0x365   : > { %v3921_v48 = vadd.f32 %v7409_v52, %v3760_v26  ;;  %v5471_v53 = vpop.f32.mrb[140].mxu0  ;;  %v3960_v13 = vmax.f32 %v3918_v10, 0.0  ;;  %v3991_v29 = vshrl.u32 %v3990_v58, 7 }
 0x366   : > { %v5472_v57 = vpop.f32.mrb[141].mxu0 }
 0x367   : > { %v3961_v28 = vmax.f32 %v3921_v48, 0.0  ;;  %v5473_v55 = vadd.f32 %v5472_v57, %v5471_v53  ;;  %v5474_v50 = vpop.f32.mrb[142].mxu0  ;;  %v3992_v63 = vsub.s32 0, %v3991_v29  ;;  %v3996_v32 = vsub.s32 1, %v3991_v29 }
 0x368   : > { %v5475_v43 = vpop.f32.mrb[143].mxu0 }
 0x369   : > { %v3978_v33 = vpack.c.bf16 %v3961_v28, %v3960_v13  ;;  %v3765_v46 = vadd.f32 %v5473_v55, %v3604_v41  ;;  %v5476_v51 = vadd.f32 %v5475_v43, %v5474_v50  ;;  %v5725_v50 = vld [vmem:[%s5942_s22 + $0x20] sm:$0xff] }
 0x36a   : > { %v4289_v43 = vunpack.c.l.bf16 %v5725_v50 }
 0x36b   : > { %v3926_v23 = vadd.f32 %v7401_v20, %v3765_v46  ;;  %v3768_v52 = vadd.f32 %v5476_v51, %v3607_v42  ;;  %5050 = vmatmul.mubr.msk.bf16.gmra.mrb[136].mxu1 %vm804_vm0, %v3978_v33  ;;  %v3988_v20 = vld [vmem:[%s7676_s6] sm:$0x3]  ;;  %v4290_v51 = vunpack.c.h.bf16 %v5725_v50 }
 0x36c   : > { %4270 = vmatprep.mubr.bf16.mxu1 %v5819_v6  ;;  %v7481_v17 = vrot.slane %v3988_v20, %v3992_v63  ;;  %v7483_v6 = vrot.slane %v3988_v20, %v3996_v32 }
 0x36d   : > { %v3929_v18 = vadd.f32 %v7406_v36, %v3768_v52  ;;  %v3962_v60 = vmax.f32 %v3926_v23, 0.0  ;;  %v5721_v36 = vld [vmem:[%s5942_s22] sm:$0xff] }
 0x36e   : > { %v4281_v19 = vunpack.c.l.bf16 %v5721_v36  ;;  %v4282_v27 = vunpack.c.h.bf16 %v5721_v36 }
 0x36f   : > { %v3963_v38 = vmax.f32 %v3929_v18, 0.0  ;;  %v5726_v18 = vld [vmem:[%s5942_s22 + $0x28] sm:$0xff] }
 0x370   : > { %v4292_v29 = vunpack.c.h.bf16 %v5726_v18 }
 0x371   : > { %v3979_v22 = vpack.c.bf16 %v3963_v38, %v3962_v60  ;;  %v4291_v60 = vunpack.c.l.bf16 %v5726_v18 }
 0x373   : > { %5051 = vmatmul.mubr.msk.bf16.gmra.mrb[140].mxu1 %vm804_vm0, %v3979_v22 }
 0x3ce   : > { %v4122_v31 = vpop.f32.mrb[80].mxu1 }
 0x3cf   : > { %v4123_v40 = vadd.f32 %v4122_v31, %v7481_v17  ;;  %v4124_v37 = vpop.f32.mrb[81].mxu1 }
 0x3d0   : > { %v4125_v11 = vadd.f32 %v4124_v37, %v7483_v6  ;;  %v4126_v56 = vpop.f32.mrb[82].mxu1 }
 0x3d1   : > { %v4345_v35 = vadd.f32 %v4281_v19, %v4123_v40  ;;  %v4127_v54 = vadd.f32 %v4126_v56, %v7481_v17  ;;  %v4128_v9 = vpop.f32.mrb[83].mxu1 }
 0x3d2   : > { %v4346_v24 = vadd.f32 %v4282_v27, %v4125_v11  ;;  %v4129_v49 = vadd.f32 %v4128_v9, %v7483_v6 }
 0x3d3   : > { %v4409_v8 = vmax.f32 %v4345_v35, 0.0  ;;  %v4347_v14 = vadd.f32 %v4283_v21, %v4127_v54  ;;  %v5727_v21 = vld [vmem:[%s5942_s22 + $0x30] sm:$0xff] }
 0x3d4   : > { %v4410_v25 = vmax.f32 %v4346_v24, 0.0  ;;  %v4348_v44 = vadd.f32 %v4284_v45, %v4129_v49  ;;  %v4293_v11 = vunpack.c.l.bf16 %v5727_v21  ;;  %v4294_v54 = vunpack.c.h.bf16 %v5727_v21  ;;  %v5728_v49 = vld [vmem:[%s5942_s22 + $0x38] sm:$0xff] }
 0x3d5   : > { %v4411_v3 = vmax.f32 %v4347_v14, 0.0 }
 0x3d6   : > { %v5107_v39 = vpack.c.bf16 %v4410_v25, %v4409_v8  ;;  %v4412_v34 = vmax.f32 %v4348_v44, 0.0  ;;  %v4132_v12 = vpop.f32.mrb[84].mxu1  ;;  %v4295_v8 = vunpack.c.l.bf16 %v5728_v49 }
 0x3d7   : > { %v4133_v61 = vadd.f32 %v4132_v12, %v7481_v17  ;;  %v4134_v7 = vpop.f32.mrb[85].mxu1 }
 0x3d8   : > { %4729 = vst [vmem:[%s7497_s21] sm:$0xff] %v5107_v39  ;;  %v5108_v16 = vpack.c.bf16 %v4412_v34, %v4411_v3  ;;  %v4135_v30 = vadd.f32 %v4134_v7, %v7483_v6  ;;  %v4136_v4 = vpop.f32.mrb[86].mxu1  ;;  %v4296_v3 = vunpack.c.h.bf16 %v5728_v49 }
 0x3d9   : > { %v4349_v15 = vadd.f32 %v4285_v62, %v4133_v61  ;;  %v4137_v10 = vadd.f32 %v4136_v4, %v7481_v17  ;;  %v4138_v26 = vpop.f32.mrb[87].mxu1 }
 0x3da   : > { %4730 = vst [vmem:[%s7497_s21 + $0x8] sm:$0xff] %v5108_v16  ;;  %v4350_v48 = vadd.f32 %v4286_v0, %v4135_v30  ;;  %v4139_v53 = vadd.f32 %v4138_v26, %v7483_v6  ;;  %v5729_v16 = vld [vmem:[%s5942_s22 + $0x40] sm:$0xff] }
 0x3db   : > { %v4413_v57 = vmax.f32 %v4349_v15, 0.0  ;;  %v4351_v41 = vadd.f32 %v4287_v2, %v4137_v10  ;;  %v4297_v30 = vunpack.c.l.bf16 %v5729_v16  ;;  %v4298_v10 = vunpack.c.h.bf16 %v5729_v16 }
 0x3dc   : > { %v4414_v13 = vmax.f32 %v4350_v48, 0.0  ;;  %v4352_v28 = vadd.f32 %v4288_v59, %v4139_v53  ;;  %v5730_v53 = vld [vmem:[%s5942_s22 + $0x48] sm:$0xff] }
 0x3dd   : > { %v4415_v55 = vmax.f32 %v4351_v41, 0.0 }
 0x3de   : > { %v5109_v42 = vpack.c.bf16 %v4414_v13, %v4413_v57  ;;  %v4416_v33 = vmax.f32 %v4352_v28, 0.0  ;;  %v4142_v46 = vpop.f32.mrb[88].mxu1  ;;  %v4299_v57 = vunpack.c.l.bf16 %v5730_v53 }
 0x3df   : > { %v4143_v23 = vadd.f32 %v4142_v46, %v7481_v17  ;;  %v4144_v52 = vpop.f32.mrb[89].mxu1 }
 0x3e0   : > { %4731 = vst [vmem:[%s7497_s21 + $0x10] sm:$0xff] %v5109_v42  ;;  %v5110_v38 = vpack.c.bf16 %v4416_v33, %v4415_v55  ;;  %v4145_v22 = vadd.f32 %v4144_v52, %v7483_v6  ;;  %v4146_v58 = vpop.f32.mrb[90].mxu1  ;;  %v4300_v55 = vunpack.c.h.bf16 %v5730_v53 }
 0x3e1   : > { %v4353_v63 = vadd.f32 %v4289_v43, %v4143_v23  ;;  %v4147_v20 = vadd.f32 %v4146_v58, %v7481_v17  ;;  %v4148_v32 = vpop.f32.mrb[91].mxu1 }
 0x3e2   : > { %4732 = vst [vmem:[%s7497_s21 + $0x18] sm:$0xff] %v5110_v38  ;;  %v4354_v36 = vadd.f32 %v4290_v51, %v4145_v22  ;;  %v4149_v19 = vadd.f32 %v4148_v32, %v7483_v6  ;;  %v5731_v38 = vld [vmem:[%s5942_s22 + $0x50] sm:$0xff] }
 0x3e3   : > { %v4417_v31 = vmax.f32 %v4353_v63, 0.0  ;;  %v4355_v27 = vadd.f32 %v4291_v60, %v4147_v20  ;;  %v4301_v22 = vunpack.c.l.bf16 %v5731_v38  ;;  %v4302_v20 = vunpack.c.h.bf16 %v5731_v38 }
 0x3e4   : > { %v4418_v40 = vmax.f32 %v4354_v36, 0.0  ;;  %v4356_v37 = vadd.f32 %v4292_v29, %v4149_v19  ;;  %v5732_v19 = vld [vmem:[%s5942_s22 + $0x58] sm:$0xff] }
 0x3e5   : > { %v4419_v47 = vmax.f32 %v4355_v27, 0.0 }
 0x3e6   : > { %v5111_v56 = vpack.c.bf16 %v4418_v40, %v4417_v31  ;;  %v4420_v45 = vmax.f32 %v4356_v37, 0.0  ;;  %v4152_v35 = vpop.f32.mrb[92].mxu1  ;;  %v4303_v31 = vunpack.c.l.bf16 %v5732_v19 }
 0x3e7   : > { %v4153_v9 = vadd.f32 %v4152_v35, %v7481_v17  ;;  %v4154_v24 = vpop.f32.mrb[93].mxu1 }
 0x3e8   : > { %4733 = vst [vmem:[%s7497_s21 + $0x20] sm:$0xff] %v5111_v56  ;;  %v5112_v14 = vpack.c.bf16 %v4420_v45, %v4419_v47  ;;  %v4155_v25 = vadd.f32 %v4154_v24, %v7483_v6  ;;  %v4156_v44 = vpop.f32.mrb[94].mxu1  ;;  %v4304_v47 = vunpack.c.h.bf16 %v5732_v19 }
 0x3e9   : > { %v4357_v1 = vadd.f32 %v4293_v11, %v4153_v9  ;;  %v4157_v62 = vadd.f32 %v4156_v44, %v7481_v17  ;;  %v4158_v39 = vpop.f32.mrb[95].mxu1 }
 0x3ea   : > { %4734 = vst [vmem:[%s7497_s21 + $0x28] sm:$0xff] %v5112_v14  ;;  %v4358_v34 = vadd.f32 %v4294_v54, %v4155_v25  ;;  %v4159_v12 = vadd.f32 %v4158_v39, %v7483_v6  ;;  %v5733_v14 = vld [vmem:[%s5942_s22 + $0x60] sm:$0xff] }
 0x3eb   : > { %v4421_v0 = vmax.f32 %v4357_v1, 0.0  ;;  %v4359_v61 = vadd.f32 %v4295_v8, %v4157_v62  ;;  %v4305_v25 = vunpack.c.l.bf16 %v5733_v14  ;;  %v4306_v62 = vunpack.c.h.bf16 %v5733_v14 }
 0x3ec   : > { %v4422_v7 = vmax.f32 %v4358_v34, 0.0  ;;  %v4360_v5 = vadd.f32 %v4296_v3, %v4159_v12  ;;  %v5734_v12 = vld [vmem:[%s5942_s22 + $0x68] sm:$0xff] }
 0x3ed   : > { %v4423_v2 = vmax.f32 %v4359_v61, 0.0 }
 0x3ee   : > { %v5113_v4 = vpack.c.bf16 %v4422_v7, %v4421_v0  ;;  %v4424_v59 = vmax.f32 %v4360_v5, 0.0  ;;  %v4162_v15 = vpop.f32.mrb[96].mxu1  ;;  %v4307_v0 = vunpack.c.l.bf16 %v5734_v12 }
 0x3ef   : > { %v4163_v26 = vadd.f32 %v4162_v15, %v7481_v17  ;;  %v4164_v48 = vpop.f32.mrb[97].mxu1 }
 0x3f0   : > { %4735 = vst [vmem:[%s7497_s21 + $0x30] sm:$0xff] %v5113_v4  ;;  %v5114_v41 = vpack.c.bf16 %v4424_v59, %v4423_v2  ;;  %v4165_v13 = vadd.f32 %v4164_v48, %v7483_v6  ;;  %v4166_v28 = vpop.f32.mrb[98].mxu1  ;;  %v4308_v2 = vunpack.c.h.bf16 %v5734_v12 }
 0x3f1   : > { %v4361_v50 = vadd.f32 %v4297_v30, %v4163_v26  ;;  %v4167_v43 = vadd.f32 %v4166_v28, %v7481_v17  ;;  %v4168_v42 = vpop.f32.mrb[99].mxu1 }
 0x3f2   : > { %4736 = vst [vmem:[%s7497_s21 + $0x38] sm:$0xff] %v5114_v41  ;;  %v4362_v33 = vadd.f32 %v4298_v10, %v4165_v13  ;;  %v4169_v46 = vadd.f32 %v4168_v42, %v7483_v6  ;;  %v5735_v41 = vld [vmem:[%s5942_s22 + $0x70] sm:$0xff] }
 0x3f3   : > { %v4425_v51 = vmax.f32 %v4361_v50, 0.0  ;;  %v4363_v23 = vadd.f32 %v4299_v57, %v4167_v43  ;;  %v4309_v13 = vunpack.c.l.bf16 %v5735_v41  ;;  %v4310_v43 = vunpack.c.h.bf16 %v5735_v41 }
 0x3f4   : > { %v4426_v52 = vmax.f32 %v4362_v33, 0.0  ;;  %v4364_v18 = vadd.f32 %v4300_v55, %v4169_v46  ;;  %v5736_v46 = vld [vmem:[%s5942_s22 + $0x78] sm:$0xff] }
 0x3f5   : > { %v4427_v60 = vmax.f32 %v4363_v23, 0.0 }
 0x3f6   : > { %v5115_v58 = vpack.c.bf16 %v4426_v52, %v4425_v51  ;;  %v4428_v29 = vmax.f32 %v4364_v18, 0.0  ;;  %v4172_v63 = vpop.f32.mrb[100].mxu1  ;;  %v4311_v51 = vunpack.c.l.bf16 %v5736_v46 }
 0x3f7   : > { %v4173_v32 = vadd.f32 %v4172_v63, %v7481_v17  ;;  %v4174_v36 = vpop.f32.mrb[101].mxu1 }
 0x3f8   : > { %4737 = vst [vmem:[%s7497_s21 + $0x40] sm:$0xff] %v5115_v58  ;;  %v5116_v27 = vpack.c.bf16 %v4428_v29, %v4427_v60  ;;  %v4175_v40 = vadd.f32 %v4174_v36, %v7483_v6  ;;  %v4176_v37 = vpop.f32.mrb[102].mxu1  ;;  %v4312_v60 = vunpack.c.h.bf16 %v5736_v46 }
 0x3f9   : > { %v4365_v21 = vadd.f32 %v4301_v22, %v4173_v32  ;;  %v4177_v11 = vadd.f32 %v4176_v37, %v7481_v17  ;;  %v4178_v56 = vpop.f32.mrb[103].mxu1 }
 0x3fa   : > { %4738 = vst [vmem:[%s7497_s21 + $0x48] sm:$0xff] %v5116_v27  ;;  %v4366_v45 = vadd.f32 %v4302_v20, %v4175_v40  ;;  %v4179_v35 = vadd.f32 %v4178_v56, %v7483_v6  ;;  %v5737_v27 = vld [vmem:[%s5942_s22 + $0x80] sm:$0xff] }
 0x3fb   : > { %v4429_v54 = vmax.f32 %v4365_v21, 0.0  ;;  %v4367_v9 = vadd.f32 %v4303_v31, %v4177_v11  ;;  %v4313_v40 = vunpack.c.l.bf16 %v5737_v27  ;;  %v4314_v11 = vunpack.c.h.bf16 %v5737_v27 }
 0x3fc   : > { %v4430_v24 = vmax.f32 %v4366_v45, 0.0  ;;  %v4368_v49 = vadd.f32 %v4304_v47, %v4179_v35  ;;  %v5738_v35 = vld [vmem:[%s5942_s22 + $0x88] sm:$0xff] }
 0x3fd   : > { %v4431_v8 = vmax.f32 %v4367_v9, 0.0 }
 0x3fe   : > { %v5117_v44 = vpack.c.bf16 %v4430_v24, %v4429_v54  ;;  %v4432_v3 = vmax.f32 %v4368_v49, 0.0  ;;  %v4182_v1 = vpop.f32.mrb[104].mxu1  ;;  %v4315_v54 = vunpack.c.l.bf16 %v5738_v35 }
 0x3ff   : > { %v4183_v39 = vadd.f32 %v4182_v1, %v7481_v17  ;;  %v4184_v34 = vpop.f32.mrb[105].mxu1 }
 0x400   : > { %4739 = vst [vmem:[%s7497_s21 + $0x50] sm:$0xff] %v5117_v44  ;;  %v5118_v61 = vpack.c.bf16 %v4432_v3, %v4431_v8  ;;  %v4185_v7 = vadd.f32 %v4184_v34, %v7483_v6  ;;  %v4186_v5 = vpop.f32.mrb[106].mxu1  ;;  %v4316_v8 = vunpack.c.h.bf16 %v5738_v35 }
 0x401   : > { %v4369_v16 = vadd.f32 %v4305_v25, %v4183_v39  ;;  %v4187_v30 = vadd.f32 %v4186_v5, %v7481_v17  ;;  %v4188_v4 = vpop.f32.mrb[107].mxu1 }
 0x402   : > { %4740 = vst [vmem:[%s7497_s21 + $0x58] sm:$0xff] %v5118_v61  ;;  %v4370_v59 = vadd.f32 %v4306_v62, %v4185_v7  ;;  %v4189_v15 = vadd.f32 %v4188_v4, %v7483_v6  ;;  %v5739_v61 = vld [vmem:[%s5942_s22 + $0x90] sm:$0xff] }
 0x403   : > { %v4433_v10 = vmax.f32 %v4369_v16, 0.0  ;;  %v4371_v26 = vadd.f32 %v4307_v0, %v4187_v30  ;;  %v4317_v7 = vunpack.c.l.bf16 %v5739_v61  ;;  %v4318_v30 = vunpack.c.h.bf16 %v5739_v61 }
 0x404   : > { %v4434_v48 = vmax.f32 %v4370_v59, 0.0  ;;  %v4372_v53 = vadd.f32 %v4308_v2, %v4189_v15  ;;  %v5740_v15 = vld [vmem:[%s5942_s22 + $0x98] sm:$0xff] }
 0x405   : > { %v4435_v57 = vmax.f32 %v4371_v26, 0.0 }
 0x406   : > { %v5119_v28 = vpack.c.bf16 %v4434_v48, %v4433_v10  ;;  %v4436_v55 = vmax.f32 %v4372_v53, 0.0  ;;  %v4192_v50 = vpop.f32.mrb[108].mxu1  ;;  %v4319_v10 = vunpack.c.l.bf16 %v5740_v15 }
 0x407   : > { %v4193_v42 = vadd.f32 %v4192_v50, %v7481_v17  ;;  %v4194_v33 = vpop.f32.mrb[109].mxu1 }
 0x408   : > { %4741 = vst [vmem:[%s7497_s21 + $0x60] sm:$0xff] %v5119_v28  ;;  %v5120_v23 = vpack.c.bf16 %v4436_v55, %v4435_v57  ;;  %v4195_v52 = vadd.f32 %v4194_v33, %v7483_v6  ;;  %v4196_v18 = vpop.f32.mrb[110].mxu1  ;;  %v4320_v57 = vunpack.c.h.bf16 %v5740_v15 }
 0x409   : > { %v4373_v38 = vadd.f32 %v4309_v13, %v4193_v42  ;;  %v4197_v22 = vadd.f32 %v4196_v18, %v7481_v17  ;;  %v4198_v58 = vpop.f32.mrb[111].mxu1 }
 0x40a   : > { %4742 = vst [vmem:[%s7497_s21 + $0x68] sm:$0xff] %v5120_v23  ;;  %v4374_v29 = vadd.f32 %v4310_v43, %v4195_v52  ;;  %v4199_v63 = vadd.f32 %v4198_v58, %v7483_v6  ;;  %v5741_v23 = vld [vmem:[%s5942_s22 + $0xa0] sm:$0xff] }
 0x40b   : > { %v4437_v20 = vmax.f32 %v4373_v38, 0.0  ;;  %v4375_v32 = vadd.f32 %v4311_v51, %v4197_v22  ;;  %v4321_v52 = vunpack.c.l.bf16 %v5741_v23  ;;  %v4322_v22 = vunpack.c.h.bf16 %v5741_v23 }
 0x40c   : > { %v4438_v36 = vmax.f32 %v4374_v29, 0.0  ;;  %v4376_v19 = vadd.f32 %v4312_v60, %v4199_v63  ;;  %v5742_v63 = vld [vmem:[%s5942_s22 + $0xa8] sm:$0xff] }
 0x40d   : > { %v4439_v31 = vmax.f32 %v4375_v32, 0.0 }
 0x40e   : > { %v5121_v37 = vpack.c.bf16 %v4438_v36, %v4437_v20  ;;  %v4440_v47 = vmax.f32 %v4376_v19, 0.0  ;;  %v4202_v21 = vpop.f32.mrb[112].mxu1  ;;  %v4323_v20 = vunpack.c.l.bf16 %v5742_v63 }
 0x40f   : > { %v4203_v56 = vadd.f32 %v4202_v21, %v7481_v17  ;;  %v4204_v45 = vpop.f32.mrb[113].mxu1 }
 0x410   : > { %4743 = vst [vmem:[%s7497_s21 + $0x70] sm:$0xff] %v5121_v37  ;;  %v5122_v9 = vpack.c.bf16 %v4440_v47, %v4439_v31  ;;  %v4205_v24 = vadd.f32 %v4204_v45, %v7483_v6  ;;  %v4206_v49 = vpop.f32.mrb[114].mxu1  ;;  %v4324_v31 = vunpack.c.h.bf16 %v5742_v63 }
 0x411   : > { %v4377_v14 = vadd.f32 %v4313_v40, %v4203_v56  ;;  %v4207_v25 = vadd.f32 %v4206_v49, %v7481_v17  ;;  %v4208_v44 = vpop.f32.mrb[115].mxu1 }
 0x412   : > { %4744 = vst [vmem:[%s7497_s21 + $0x78] sm:$0xff] %v5122_v9  ;;  %v4378_v3 = vadd.f32 %v4314_v11, %v4205_v24  ;;  %v4209_v1 = vadd.f32 %v4208_v44, %v7483_v6  ;;  %v5743_v9 = vld [vmem:[%s5942_s22 + $0xb0] sm:$0xff] }
 0x413   : > { %v4441_v62 = vmax.f32 %v4377_v14, 0.0  ;;  %v4379_v39 = vadd.f32 %v4315_v54, %v4207_v25  ;;  %v4325_v24 = vunpack.c.l.bf16 %v5743_v9  ;;  %v4326_v25 = vunpack.c.h.bf16 %v5743_v9 }
 0x414   : > { %v4442_v34 = vmax.f32 %v4378_v3, 0.0  ;;  %v4380_v12 = vadd.f32 %v4316_v8, %v4209_v1  ;;  %v5744_v1 = vld [vmem:[%s5942_s22 + $0xb8] sm:$0xff] }
 0x415   : > { %v4443_v0 = vmax.f32 %v4379_v39, 0.0 }
 0x416   : > { %v5123_v5 = vpack.c.bf16 %v4442_v34, %v4441_v62  ;;  %v4444_v2 = vmax.f32 %v4380_v12, 0.0  ;;  %v4212_v16 = vpop.f32.mrb[116].mxu1  ;;  %v4327_v62 = vunpack.c.l.bf16 %v5744_v1 }
 0x417   : > { %v4213_v4 = vadd.f32 %v4212_v16, %v7481_v17  ;;  %v4214_v59 = vpop.f32.mrb[117].mxu1 }
 0x418   : > { %4745 = vst [vmem:[%s7497_s21 + $0x80] sm:$0xff] %v5123_v5  ;;  %v5124_v26 = vpack.c.bf16 %v4444_v2, %v4443_v0  ;;  %v4215_v48 = vadd.f32 %v4214_v59, %v7483_v6  ;;  %v4216_v53 = vpop.f32.mrb[118].mxu1  ;;  %v4328_v0 = vunpack.c.h.bf16 %v5744_v1 }
 0x419   : > { %v4381_v41 = vadd.f32 %v4317_v7, %v4213_v4  ;;  %v4217_v13 = vadd.f32 %v4216_v53, %v7481_v17  ;;  %v4218_v28 = vpop.f32.mrb[119].mxu1 }
 0x41a   : > { %4746 = vst [vmem:[%s7497_s21 + $0x88] sm:$0xff] %v5124_v26  ;;  %v4382_v55 = vadd.f32 %v4318_v30, %v4215_v48  ;;  %v4219_v50 = vadd.f32 %v4218_v28, %v7483_v6  ;;  %v5745_v26 = vld [vmem:[%s5942_s22 + $0xc0] sm:$0xff] }
 0x41b   : > { %v4445_v43 = vmax.f32 %v4381_v41, 0.0  ;;  %v4383_v42 = vadd.f32 %v4319_v10, %v4217_v13  ;;  %v4329_v48 = vunpack.c.l.bf16 %v5745_v26  ;;  %v4330_v13 = vunpack.c.h.bf16 %v5745_v26 }
 0x41c   : > { %v4446_v33 = vmax.f32 %v4382_v55, 0.0  ;;  %v4384_v46 = vadd.f32 %v4320_v57, %v4219_v50  ;;  %v5746_v50 = vld [vmem:[%s5942_s22 + $0xc8] sm:$0xff] }
 0x41d   : > { %v4447_v51 = vmax.f32 %v4383_v42, 0.0 }
 0x41e   : > { %v5125_v18 = vpack.c.bf16 %v4446_v33, %v4445_v43  ;;  %v4448_v60 = vmax.f32 %v4384_v46, 0.0  ;;  %v4222_v38 = vpop.f32.mrb[120].mxu1  ;;  %v4331_v43 = vunpack.c.l.bf16 %v5746_v50 }
 0x41f   : > { %v4223_v58 = vadd.f32 %v4222_v38, %v7481_v17  ;;  %v4224_v29 = vpop.f32.mrb[121].mxu1 }
 0x420   : > { %4747 = vst [vmem:[%s7497_s21 + $0x90] sm:$0xff] %v5125_v18  ;;  %v5126_v32 = vpack.c.bf16 %v4448_v60, %v4447_v51  ;;  %v4225_v36 = vadd.f32 %v4224_v29, %v7483_v6  ;;  %v4226_v19 = vpop.f32.mrb[122].mxu1  ;;  %v4332_v51 = vunpack.c.h.bf16 %v5746_v50 }
 0x421   : > { %v4385_v27 = vadd.f32 %v4321_v52, %v4223_v58  ;;  %v4227_v40 = vadd.f32 %v4226_v19, %v7481_v17  ;;  %v4228_v37 = vpop.f32.mrb[123].mxu1 }
 0x422   : > { %4748 = vst [vmem:[%s7497_s21 + $0x98] sm:$0xff] %v5126_v32  ;;  %v4386_v47 = vadd.f32 %v4322_v22, %v4225_v36  ;;  %v4229_v21 = vadd.f32 %v4228_v37, %v7483_v6  ;;  %v5747_v32 = vld [vmem:[%s5942_s22 + $0xd0] sm:$0xff] }
 0x423   : > { %v4449_v11 = vmax.f32 %v4385_v27, 0.0  ;;  %v4387_v56 = vadd.f32 %v4323_v20, %v4227_v40  ;;  %v4333_v36 = vunpack.c.l.bf16 %v5747_v32  ;;  %v4334_v40 = vunpack.c.h.bf16 %v5747_v32 }
 0x424   : > { %v4450_v45 = vmax.f32 %v4386_v47, 0.0  ;;  %v4388_v35 = vadd.f32 %v4324_v31, %v4229_v21  ;;  %v5748_v21 = vld [vmem:[%s5942_s22 + $0xd8] sm:$0xff] }
 0x425   : > { %v4451_v54 = vmax.f32 %v4387_v56, 0.0 }
 0x426   : > { %v5127_v49 = vpack.c.bf16 %v4450_v45, %v4449_v11  ;;  %v4452_v8 = vmax.f32 %v4388_v35, 0.0  ;;  %v4232_v14 = vpop.f32.mrb[124].mxu1  ;;  %v4335_v11 = vunpack.c.l.bf16 %v5748_v21 }
 0x427   : > { %v4233_v44 = vadd.f32 %v4232_v14, %v7481_v17  ;;  %v4234_v3 = vpop.f32.mrb[125].mxu1 }
 0x428   : > { %4749 = vst [vmem:[%s7497_s21 + $0xa0] sm:$0xff] %v5127_v49  ;;  %v5128_v39 = vpack.c.bf16 %v4452_v8, %v4451_v54  ;;  %v4235_v34 = vadd.f32 %v4234_v3, %v7483_v6  ;;  %v4236_v12 = vpop.f32.mrb[126].mxu1  ;;  %v4336_v54 = vunpack.c.h.bf16 %v5748_v21 }
 0x429   : > { %v4389_v61 = vadd.f32 %v4325_v24, %v4233_v44  ;;  %v4237_v7 = vadd.f32 %v4236_v12, %v7481_v17  ;;  %v4238_v5 = vpop.f32.mrb[127].mxu1 }
 0x42a   : > { %4750 = vst [vmem:[%s7497_s21 + $0xa8] sm:$0xff] %v5128_v39  ;;  %v4390_v2 = vadd.f32 %v4326_v25, %v4235_v34  ;;  %v4239_v16 = vadd.f32 %v4238_v5, %v7483_v6  ;;  %v5749_v39 = vld [vmem:[%s5942_s22 + $0xe0] sm:$0xff] }
 0x42b   : > { %v4453_v30 = vmax.f32 %v4389_v61, 0.0  ;;  %v4391_v4 = vadd.f32 %v4327_v62, %v4237_v7  ;;  %v4337_v34 = vunpack.c.l.bf16 %v5749_v39  ;;  %v4338_v7 = vunpack.c.h.bf16 %v5749_v39 }
 0x42c   : > { %v4454_v59 = vmax.f32 %v4390_v2, 0.0  ;;  %v4392_v15 = vadd.f32 %v4328_v0, %v4239_v16  ;;  %v5750_v16 = vld [vmem:[%s5942_s22 + $0xe8] sm:$0xff] }
 0x42d   : > { %v4455_v10 = vmax.f32 %v4391_v4, 0.0 }
 0x42e   : > { %v5129_v53 = vpack.c.bf16 %v4454_v59, %v4453_v30  ;;  %v4456_v57 = vmax.f32 %v4392_v15, 0.0  ;;  %v4242_v41 = vpop.f32.mrb[128].mxu1  ;;  %v4339_v30 = vunpack.c.l.bf16 %v5750_v16 }
 0x42f   : > { %v4243_v28 = vadd.f32 %v4242_v41, %v7481_v17  ;;  %v4244_v55 = vpop.f32.mrb[129].mxu1 }
 0x430   : > { %4751 = vst [vmem:[%s7497_s21 + $0xb0] sm:$0xff] %v5129_v53  ;;  %v5130_v42 = vpack.c.bf16 %v4456_v57, %v4455_v10  ;;  %v4245_v33 = vadd.f32 %v4244_v55, %v7483_v6  ;;  %v4246_v46 = vpop.f32.mrb[130].mxu1  ;;  %v4340_v10 = vunpack.c.h.bf16 %v5750_v16 }
 0x431   : > { %v4393_v23 = vadd.f32 %v4329_v48, %v4243_v28  ;;  %v4247_v52 = vadd.f32 %v4246_v46, %v7481_v17  ;;  %v4248_v18 = vpop.f32.mrb[131].mxu1 }
 0x432   : > { %4752 = vst [vmem:[%s7497_s21 + $0xb8] sm:$0xff] %v5130_v42  ;;  %v4394_v60 = vadd.f32 %v4330_v13, %v4245_v33  ;;  %v4249_v38 = vadd.f32 %v4248_v18, %v7483_v6  ;;  %v5751_v42 = vld [vmem:[%s5942_s22 + $0xf0] sm:$0xff] }
 0x433   : > { %v4457_v22 = vmax.f32 %v4393_v23, 0.0  ;;  %v4395_v58 = vadd.f32 %v4331_v43, %v4247_v52  ;;  %v4341_v33 = vunpack.c.l.bf16 %v5751_v42  ;;  %v4342_v52 = vunpack.c.h.bf16 %v5751_v42 }
 0x434   : > { %v4458_v29 = vmax.f32 %v4394_v60, 0.0  ;;  %v4396_v63 = vadd.f32 %v4332_v51, %v4249_v38  ;;  %v5752_v38 = vld [vmem:[%s5942_s22 + $0xf8] sm:$0xff]  ;;  %s5140_s22 = sshll.u32 %s5884_s28, 12  ;;  %s5753_s28 = scalar_lea.vmem %s7623_s23, 4096 }
 0x435   : > { %v4459_v20 = vmax.f32 %v4395_v58, 0.0  ;;  %s7621_s15 = scalar_lea.hbm %s7677_s7, %s5140_s22  ;;  %p5754_p11 = scmp.ne.s32.totalorder %s7623_s23, %s5753_s28 }
 0x436   : > { %v5131_v19 = vpack.c.bf16 %v4458_v29, %v4457_v22  ;;  %v4460_v31 = vmax.f32 %v4396_v63, 0.0  ;;  %v4252_v27 = vpop.f32.mrb[132].mxu1  ;;  %v4343_v22 = vunpack.c.l.bf16 %v5752_v38  ;;  %p5761_p1 = scmp.lt.s32.totalorder %s5759_s16, %s5753_s28 }
 0x437   : > { %v4253_v37 = vadd.f32 %v4252_v27, %v7481_v17  ;;  %v4254_v47 = vpop.f32.mrb[133].mxu1  ;;  %p5755_p12 = pnand %p5754_p11, %p5901_p5 }
 0x438   : > { %4753 = vst [vmem:[%s7497_s21 + $0xc0] sm:$0xff] %v5131_v19  ;;  %v5132_v56 = vpack.c.bf16 %v4460_v31, %v4459_v20  ;;  %v4255_v45 = vadd.f32 %v4254_v47, %v7483_v6  ;;  %v4256_v35 = vpop.f32.mrb[134].mxu1  ;;  %v4344_v20 = vunpack.c.h.bf16 %v5752_v38  ;;  %p5762_p2 = por %p5761_p1, %p5760_p0 }
 0x439   : > { %v4397_v9 = vadd.f32 %v4333_v36, %v4253_v37  ;;  %v4257_v24 = vadd.f32 %v4256_v35, %v7481_v17  ;;  %v4258_v49 = vpop.f32.mrb[135].mxu1  ;;  %p5756_p13 = pneg %p5755_p12 }
 0x43a   : > { %4754 = vst [vmem:[%s7497_s21 + $0xc8] sm:$0xff] %v5132_v56  ;;  %v4398_v8 = vadd.f32 %v4334_v40, %v4255_v45  ;;  %v4259_v14 = vadd.f32 %v4258_v49, %v7483_v6 }
 0x43b   : > { %v4461_v25 = vmax.f32 %v4397_v9, 0.0  ;;  %v4399_v44 = vadd.f32 %v4335_v11, %v4257_v24  ;;  %p5763_p3 = pnand %p5762_p2, %p5756_p13 }
 0x43c   : > { %v4462_v3 = vmax.f32 %v4398_v8, 0.0  ;;  %v4400_v1 = vadd.f32 %v4336_v54, %v4259_v14 }
 0x43d   : > { %v4463_v62 = vmax.f32 %v4399_v44, 0.0 }
 0x43e   : > { %v5133_v12 = vpack.c.bf16 %v4462_v3, %v4461_v25  ;;  %v4464_v0 = vmax.f32 %v4400_v1, 0.0  ;;  %v4262_v61 = vpop.f32.mrb[136].mxu1 }
 0x43f   : > { %v4263_v5 = vadd.f32 %v4262_v61, %v7481_v17  ;;  %v4264_v2 = vpop.f32.mrb[137].mxu1 }
 0x440   : > { %4755 = vst [vmem:[%s7497_s21 + $0xd0] sm:$0xff] %v5133_v12  ;;  %v5134_v4 = vpack.c.bf16 %v4464_v0, %v4463_v62  ;;  %v4265_v59 = vadd.f32 %v4264_v2, %v7483_v6  ;;  %v4266_v15 = vpop.f32.mrb[138].mxu1 }
 0x441   : > { %v4401_v26 = vadd.f32 %v4337_v34, %v4263_v5  ;;  %v4267_v48 = vadd.f32 %v4266_v15, %v7481_v17  ;;  %v4268_v53 = vpop.f32.mrb[139].mxu1 }
 0x442   : > { %4756 = vst [vmem:[%s7497_s21 + $0xd8] sm:$0xff] %v5134_v4  ;;  %v4402_v57 = vadd.f32 %v4338_v7, %v4265_v59  ;;  %v4269_v41 = vadd.f32 %v4268_v53, %v7483_v6 }
 0x443   : > { %v4465_v13 = vmax.f32 %v4401_v26, 0.0  ;;  %v4403_v28 = vadd.f32 %v4339_v30, %v4267_v48 }
 0x444   : > { %v4466_v55 = vmax.f32 %v4402_v57, 0.0  ;;  %v4404_v50 = vadd.f32 %v4340_v10, %v4269_v41 }
 0x445   : > { %v4467_v43 = vmax.f32 %v4403_v28, 0.0 }
 0x446   : > { %v5135_v46 = vpack.c.bf16 %v4466_v55, %v4465_v13  ;;  %v4468_v51 = vmax.f32 %v4404_v50, 0.0  ;;  %v4272_v23 = vpop.f32.mrb[140].mxu1 }
 0x447   : > { %v4273_v18 = vadd.f32 %v4272_v23, %v7481_v17  ;;  %v4274_v60 = vpop.f32.mrb[141].mxu1 }
 0x448   : > { %4757 = vst [vmem:[%s7497_s21 + $0xe0] sm:$0xff] %v5135_v46  ;;  %v5136_v58 = vpack.c.bf16 %v4468_v51, %v4467_v43  ;;  %v4275_v29 = vadd.f32 %v4274_v60, %v7483_v6  ;;  %v4276_v63 = vpop.f32.mrb[142].mxu1 }
 0x449   : > { %v4405_v32 = vadd.f32 %v4341_v33, %v4273_v18  ;;  %v4277_v36 = vadd.f32 %v4276_v63, %v7481_v17  ;;  %v4278_v19 = vpop.f32.mrb[143].mxu1 }
 0x44a   : > { %4758 = vst [vmem:[%s7497_s21 + $0xe8] sm:$0xff] %v5136_v58  ;;  %v4406_v31 = vadd.f32 %v4342_v52, %v4275_v29  ;;  %v4279_v27 = vadd.f32 %v4278_v19, %v7483_v6 }
 0x44b   : > { %v4469_v40 = vmax.f32 %v4405_v32, 0.0  ;;  %v4407_v37 = vadd.f32 %v4343_v22, %v4277_v36 }
 0x44c   : > { %v4470_v47 = vmax.f32 %v4406_v31, 0.0  ;;  %v4408_v21 = vadd.f32 %v4344_v20, %v4279_v27 }
 0x44d   : > { %v4471_v11 = vmax.f32 %v4407_v37, 0.0 }
 0x44e   : > { %v5137_v56 = vpack.c.bf16 %v4470_v47, %v4469_v40  ;;  %v4472_v45 = vmax.f32 %v4408_v21, 0.0 }
 0x450   : > { %4759 = vst [vmem:[%s7497_s21 + $0xf0] sm:$0xff] %v5137_v56  ;;  %v5138_v17 = vpack.c.bf16 %v4472_v45, %v4471_v11 }
 0x452   : > { %4760 = vst [vmem:[%s7497_s21 + $0xf8] sm:$0xff] %v5138_v17 }
 0x453   : > { %5766 = shalt.err (!%p5763_p3)
}
 0x454   : > { %s5767_s17 = scalar_lea.hbm %s7621_s15, 4096  ;;  %s5771_s20 = scalar_lea.hbm %s7677_s7, 8192 }
 0x455   : > { %p5768_p4 = scmp.ne.s32.totalorder %s7621_s15, %s5767_s17  ;;  %p5772_p9 = scmp.lt.u32.totalorder %s7621_s15, %s7677_s7 }
 0x456   : > { %p5773_p10 = scmp.lt.u32.totalorder %s5771_s20, %s5767_s17  ;;  %p5775_p12 = scmp.lt.u32.totalorder %s5767_s17, %s7621_s15 }
 0x457   : > { %p5769_p7 = pnand %p5768_p4, %p5901_p5 }
 0x458   : > { %p5774_p11 = por %p5773_p10, %p5772_p9 }
 0x459   : > { %p5770_p8 = pneg %p5769_p7 }
 0x45a   : > { %p5776_p13 = por %p5775_p12, %p5774_p11 }
 0x45c   : > { %p5777_p0 = pnand %p5776_p13, %p5770_p8 }
 0x45e   : > { %5780 = shalt.err (!%p5777_p0)
}
 0x45f   : > { %s5821_s29 = smov 128   ;;  %s5822_s8 = smov 8  }
 0x460   : > { %5553 = dma.vmem_to_hbm [thread:$0]  (%p5901_p5), %s7623_s23, 4096, %s7621_s15, %s7629_s9, %s5821_s29, %s5821_s29, %s5822_s8  }
 0x461 PF: > { %p5559_p1 = scmp.ge.s32.totalorder %s5815_s27, 2  ;;  %s4791_s28 = sand.u32 1, %s5803_s24  }
 0x462   : > { %s4792_s13 = scalar_lea.sflag [#allocation4], %s4791_s28 }
 0x463   : > { %p5556_p2 = pnand %p5559_p1, %p5905_p6 }
 0x465   : > { %5798 = dma.done.wait (!%p5556_p2), %s4792_s13, 4096  }
 0x466   : > { %5800 = vsyncadd (!%p5556_p2), %s4792_s13, 4294963200  ;;  %p17_p3 = scmp.ge.s32.totalorder %s5888_s30, 4   ;;  %s7809_s24 = smov %s5807_s25 }
 0x467   : > { %s7810_s25 = smov %s5811_s26  ;;  %s7811_s26 = smov %s5899_s10 }
 0x468   : > { %s7812_s27 = smov %s5888_s30  ;;  %19 = sbr.rel (!%p17_p3) target bundleno = 3 (0x3), region = 86 }
 0x46f   :  { %4797 = vsyncpa [#allocation4], 1 }
 0x470   :  { %4799 = vsyncpa [#allocation4 + $0x1], 1 }

</bundles_post_ra>
